<compile_context>
chip_gen: v5e
topology: v5e:2x2
jax: 0.10.0
libtpu: 0.0.40
codegen_flags: <defaults>
</compile_context>

<pallas_src>
import functools

import jax
import jax.numpy as jnp
from jax.experimental import pallas as pl
from jax.experimental.pallas import tpu as pltpu


HIDDEN = (1024, 512, 256, 128)
LANE = 128          # output padded to a multiple of this for lane-dense stores
SMALL_CIN = 64      # below this, layer 1 runs on the VPU as rank-1 FMAs
_MIB = 1024 * 1024


def _classifier_kernel(x_ref,
                       w1_ref, b1_ref,
                       w2_ref, b2_ref,
                       w3_ref, b3_ref,
                       w4_ref, b4_ref,
                       w5_ref, b5_ref,
                       o_ref, *, cin_on_vpu):
    """Fused 5-layer pointwise-conv (GEMM) classifier for one row tile.

    Layers 2..5: bf16 operands on the MXU, f32 accumulation, f32 bias add.
    Layer 1: VPU rank-1 FMAs in f32 when C_in is small, else bf16 MXU dot.
    Final store is a lane-dense (tile_m, k_pad) bf16 block.
    """

    def mxu_layer(h_bf16, w_ref, b_ref):
        return (jnp.dot(h_bf16, w_ref[...], preferred_element_type=jnp.float32)
                + b_ref[...])

    if cin_on_vpu:
        # K = C_in is tiny: an MXU matmul would stream tile_m rows while using
        # only C_in/256 of the contraction rows (~25% of total MXU cycles on
        # v6e/v7x for <1% of the FLOPs).  Do it on the VPU instead:
        #   h[m, o] = sum_c x[m, c] * w1[c, o]   (C_in broadcast FMAs, f32)
        x = x_ref[...]                              # (tm, C_in) f32
        w1 = w1_ref[...]                            # (C_in, 1024) f32
        c_in = x.shape[1]
        h = b1_ref[...] + x[:, 0:1] * w1[0:1, :]
        for c in range(1, c_in):                    # static unroll, C_in small
            h = h + x[:, c:c + 1] * w1[c:c + 1, :]
    else:
        h = mxu_layer(x_ref[...], w1_ref, b1_ref)   # (tm, 1024) f32
    h = jnp.maximum(h, 0.0).astype(jnp.bfloat16)    # ReLU, back to bf16

    h = mxu_layer(h, w2_ref, b2_ref)                # (tm, 512)
    h = jnp.maximum(h, 0.0).astype(jnp.bfloat16)

    h = mxu_layer(h, w3_ref, b3_ref)                # (tm, 256)
    h = jnp.maximum(h, 0.0).astype(jnp.bfloat16)

    h = mxu_layer(h, w4_ref, b4_ref)                # (tm, 128)
    h = jnp.maximum(h, 0.0).astype(jnp.bfloat16)

    out = mxu_layer(h, w5_ref, b5_ref)              # (tm, k_pad) padded classes
    o_ref[...] = out.astype(o_ref.dtype)            # bf16 lane-dense writeback


def _resident_spec(shape):
    # Weight/bias block is identical for every grid step (constant index map),
    # so it stays resident in VMEM across the whole grid.
    return pl.BlockSpec(shape, lambda i: tuple(0 for _ in shape))


@functools.lru_cache(maxsize=None)
def _vmem_capacity_bytes():
    """Trace-time VMEM query; falls back to the v7x per-core size (64 MiB)."""
    try:
        return int(pltpu.get_tpu_info().vmem_capacity_bytes)
    except Exception:
        return 64 * _MIB


def _pick_tile_m(m):
    """Large tiles amortize the ~0.35us per-grid-step overhead, but keep >= 4
    grid steps so each of v7x's two TensorCores still gets >= 2 steps
    (otherwise its single step's x DMA / output writeback is fully exposed).
    2048-row tiles are only used when the chip has >=100 MiB VMEM (v5e/v6e)."""
    if _vmem_capacity_bytes() >= 100 * _MIB:
        candidates = (2048, 1024, 512, 256, 128)
    else:
        candidates = (1024, 512, 256, 128)
    for t in candidates:
        if m >= 4 * t:
            return t
    return 128


def _classifier_flat(x_flat, flat_params, *, tile_m, cin_on_vpu):
    """x_flat: (M, C_in), M % tile_m == 0 (f32 if cin_on_vpu else bf16).
    flat_params: (w1,b1,...,w5,b5); w1 matches x dtype, other w's bf16,
    biases f32 (1, C_out); last (w, b) pair padded to a 128-multiple width.
    Returns (M, k_pad) bf16."""
    m, c_in = x_flat.shape
    k_pad = flat_params[-2].shape[1]

    in_specs = [pl.BlockSpec((tile_m, c_in), lambda i: (i, 0))]
    in_specs += [_resident_spec(p.shape) for p in flat_params]

    kernel = functools.partial(_classifier_kernel, cin_on_vpu=cin_on_vpu)

    return pl.pallas_call(
        kernel,
        out_shape=jax.ShapeDtypeStruct((m, k_pad), jnp.bfloat16),
        grid_spec=pltpu.PrefetchScalarGridSpec(
            num_scalar_prefetch=0,
            grid=(m // tile_m,),
            in_specs=in_specs,
            out_specs=pl.BlockSpec((tile_m, k_pad), lambda i: (i, 0)),
        ),
        compiler_params=pltpu.CompilerParams(
            dimension_semantics=("parallel",),
            vmem_limit_bytes=48 * _MIB,   # v7x-safe; footprint <= ~30 MiB
        ),
    )(x_flat, *flat_params)


@jax.jit
def convolutional_classifier_forward(x, params):
    """Equivalent of ConvolutionalClassifier(...)(x) for 1-D/2-D/3-D conv.

    x: (N, C_in, *spatial) float32  ->  (N, num_classes, *spatial) float32
    params: list of (W:(C_in, C_out) f32, b:(1, C_out) f32) per layer.
    jit-ed so transpose/pad/cast/slice fuse around the Pallas kernel.
    """
    n, c_in = x.shape[0], x.shape[1]
    spatial = x.shape[2:]
    num_classes = params[-1][0].shape[1]
    cin_on_vpu = c_in < SMALL_CIN

    # channels-last, flatten pixels: (N, C, *S) -> (M, C)
    # TODO(synk): for large C_in, feed (C_in, tile_m) blocks straight from the
    # natural (N, C, prod(S)) layout to skip this HBM transpose pass.
    perm = (0,) + tuple(range(2, x.ndim)) + (1,)
    x_flat = jnp.transpose(x, perm).reshape(-1, c_in)
    m = x_flat.shape[0]

    tile_m = _pick_tile_m(m)
    m_pad = pl.cdiv(m, tile_m) * tile_m
    if m_pad != m:
        x_flat = jnp.pad(x_flat, ((0, m_pad - m), (0, 0)))  # pad rows sliced off

    # Small C_in: keep x / w1 in f32 for the VPU path (exact layer 1).
    # Large C_in: bf16 operands for the MXU.
    x_dtype = jnp.float32 if cin_on_vpu else jnp.bfloat16
    x_flat = x_flat.astype(x_dtype)

    # bf16 operands for the MXU layers; f32 biases; last layer padded to 128.
    k_pad = max(LANE, pl.cdiv(num_classes, LANE) * LANE)
    n_layers = len(params)
    flat = []
    for i, (w, b) in enumerate(params):
        w_c = w.astype(x_dtype if i == 0 else jnp.bfloat16)
        b_c = b.reshape(1, -1).astype(jnp.float32)
        if i == n_layers - 1 and w_c.shape[1] != k_pad:
            w_c = jnp.pad(w_c, ((0, 0), (0, k_pad - w_c.shape[1])))
            b_c = jnp.pad(b_c, ((0, 0), (0, k_pad - b_c.shape[1])))
        flat += [w_c, b_c]

    out = _classifier_flat(x_flat, tuple(flat),
                           tile_m=tile_m, cin_on_vpu=cin_on_vpu)
    out = out[:m, :num_classes].astype(jnp.float32)

    # (M, K) -> (N, *spatial, K) -> (N, K, *spatial)
    out = out.reshape((n,) + spatial + (num_classes,))
    inv_perm = (0, x.ndim - 1) + tuple(range(1, x.ndim - 1))
    return jnp.transpose(out, inv_perm)


def init_params(key, c_in, num_classes):
    """Deterministic PyTorch-Conv-default-like init (kaiming-uniform bounds)."""
    dims = (c_in,) + HIDDEN + (num_classes,)
    params = []
    for fan_in, fan_out in zip(dims[:-1], dims[1:]):
        key, kw, kb = jax.random.split(key, 3)
        bound = 1.0 / jnp.sqrt(float(fan_in))
        w = jax.random.uniform(kw, (fan_in, fan_out), jnp.float32, -bound, bound)
        b = jax.random.uniform(kb, (1, fan_out), jnp.float32, -bound, bound)
        params.append((w, b))
    return params


def _flatten_cl(x):
    perm = (0,) + tuple(range(2, x.ndim)) + (1,)
    return jnp.transpose(x, perm).reshape(-1, x.shape[1])


def _unflatten_cl(y, x_shape):
    n, spatial = x_shape[0], x_shape[2:]
    k = y.shape[-1]
    y = y.reshape((n,) + spatial + (k,))
    inv_perm = (0, len(x_shape) - 1) + tuple(range(1, len(x_shape) - 1))
    return jnp.transpose(y, inv_perm)


def _reference_forward_matched(x, params):
    """Pure-JAX reference mirroring the kernel numerics: f32 layer 1 when C_in
    is small, bf16 operands + f32 accumulation elsewhere, bf16 output."""
    cin_on_vpu = x.shape[1] < SMALL_CIN
    y = _flatten_cl(x)
    n_layers = len(params)
    for i, (w, b) in enumerate(params):
        if i == 0 and cin_on_vpu:
            h = jnp.dot(y, w, preferred_element_type=jnp.float32) + b.reshape(1, -1)
        else:
            h = jnp.dot(y.astype(jnp.bfloat16), w.astype(jnp.bfloat16),
                        preferred_element_type=jnp.float32) + b.reshape(1, -1)
        if i < n_layers - 1:
            y = jnp.maximum(h, 0.0).astype(jnp.bfloat16)
        else:
            y = h.astype(jnp.bfloat16).astype(jnp.float32)
    return _unflatten_cl(y, x.shape)


def _reference_forward_f32(x, params):
    """Pure-JAX full-f32 reference (original PyTorch module semantics)."""
    y = _flatten_cl(x)
    for i, (w, b) in enumerate(params):
        y = jnp.dot(y, w, preferred_element_type=jnp.float32) + b.reshape(1, -1)
        if i < len(params) - 1:
            y = jnp.maximum(y, 0.0)
    return _unflatten_cl(y, x.shape)


if __name__ == "__main__":
    key = jax.random.PRNGKey(0)
    k_x, k_p = jax.random.split(key)

    # Small example consistent with the module: 2-D conv path,
    # classifier_input_channels=4, number_of_classes=8.
    N, C_IN, H, W = 2, 4, 16, 16
    NUM_CLASSES = 8

    x = jax.random.normal(k_x, (N, C_IN, H, W), dtype=jnp.float32)
    params = init_params(k_p, C_IN, NUM_CLASSES)

    out = convolutional_classifier_forward(x, params)
    out = jax.block_until_ready(out)
    assert out.shape == (N, NUM_CLASSES, H, W), out.shape

    # Check vs a reference with matching numerics (f32 VPU layer 1, bf16
    # operands / f32 accumulation for the MXU layers, bf16 output rounding).
    ref_m = _reference_forward_matched(x, params)
    assert jnp.allclose(out, ref_m, atol=2e-2, rtol=2e-2), \
        float(jnp.max(jnp.abs(out - ref_m)))

    # Loose sanity check vs the full-f32 module semantics.
    ref_f32 = _reference_forward_f32(x, params)
    assert jnp.allclose(out, ref_f32, atol=5e-2, rtol=5e-2), \
        float(jnp.max(jnp.abs(out - ref_f32)))

    print("KERNEL_OK")
</pallas_src>

<mosaic_0001>
module attributes {stable_mosaic.version = 11 : i64} {
  func.func @_classifier_kernel(%arg0: i32, %arg1: memref<128x4xf32, #tpu.memory_space<vmem>>, %arg2: memref<4x1024xf32, #tpu.memory_space<vmem>>, %arg3: memref<1x1024xf32, #tpu.memory_space<vmem>>, %arg4: memref<1024x512xbf16, #tpu.memory_space<vmem>>, %arg5: memref<1x512xf32, #tpu.memory_space<vmem>>, %arg6: memref<512x256xbf16, #tpu.memory_space<vmem>>, %arg7: memref<1x256xf32, #tpu.memory_space<vmem>>, %arg8: memref<256x128xbf16, #tpu.memory_space<vmem>>, %arg9: memref<1x128xf32, #tpu.memory_space<vmem>>, %arg10: memref<128x128xbf16, #tpu.memory_space<vmem>>, %arg11: memref<1x128xf32, #tpu.memory_space<vmem>>, %arg12: memref<128x128xbf16, #tpu.memory_space<vmem>>) attributes {dimension_semantics = [#tpu.dimension_semantics<parallel>], iteration_bounds = array<i64: 4>, scalar_prefetch = 0 : i64, scratch_operands = 0 : i64, tpu.core_type = #tpu.core_type<tc>, window_params = [{transform_indices = @transform_0, window_bounds = array<i64: 128, 4>}, {pipeline_mode = #tpu.pipeline_mode<synchronous>, transform_indices = @transform_1, window_bounds = array<i64: 4, 1024>}, {pipeline_mode = #tpu.pipeline_mode<synchronous>, transform_indices = @transform_2, window_bounds = array<i64: 1, 1024>}, {pipeline_mode = #tpu.pipeline_mode<synchronous>, transform_indices = @transform_3, window_bounds = array<i64: 1024, 512>}, {pipeline_mode = #tpu.pipeline_mode<synchronous>, transform_indices = @transform_4, window_bounds = array<i64: 1, 512>}, {pipeline_mode = #tpu.pipeline_mode<synchronous>, transform_indices = @transform_5, window_bounds = array<i64: 512, 256>}, {pipeline_mode = #tpu.pipeline_mode<synchronous>, transform_indices = @transform_6, window_bounds = array<i64: 1, 256>}, {pipeline_mode = #tpu.pipeline_mode<synchronous>, transform_indices = @transform_7, window_bounds = array<i64: 256, 128>}, {pipeline_mode = #tpu.pipeline_mode<synchronous>, transform_indices = @transform_8, window_bounds = array<i64: 1, 128>}, {pipeline_mode = #tpu.pipeline_mode<synchronous>, transform_indices = @transform_9, window_bounds = array<i64: 128, 128>}, {pipeline_mode = #tpu.pipeline_mode<synchronous>, transform_indices = @transform_10, window_bounds = array<i64: 1, 128>}, {transform_indices = @transform_11, window_bounds = array<i64: 128, 128>}]} {
    %c0 = arith.constant 0 : index
    %c0_0 = arith.constant 0 : index
    %0 = vector.load %arg1[%c0, %c0_0] : memref<128x4xf32, #tpu.memory_space<vmem>>, vector<128x4xf32>
    %c0_1 = arith.constant 0 : index
    %c0_2 = arith.constant 0 : index
    %1 = vector.load %arg2[%c0_1, %c0_2] : memref<4x1024xf32, #tpu.memory_space<vmem>>, vector<4x1024xf32>
    %c0_3 = arith.constant 0 : index
    %c0_4 = arith.constant 0 : index
    %2 = vector.load %arg3[%c0_3, %c0_4] : memref<1x1024xf32, #tpu.memory_space<vmem>>, vector<1x1024xf32>
    %3 = vector.extract_strided_slice %0 {offsets = [0, 0], sizes = [128, 1], strides = [1, 1]} : vector<128x4xf32> to vector<128x1xf32>
    %4 = vector.extract_strided_slice %1 {offsets = [0, 0], sizes = [1, 1024], strides = [1, 1]} : vector<4x1024xf32> to vector<1x1024xf32>
    %5 = vector.broadcast %3 : vector<128x1xf32> to vector<128x1024xf32>
    %6 = vector.broadcast %4 : vector<1x1024xf32> to vector<128x1024xf32>
    %7 = arith.mulf %5, %6 : vector<128x1024xf32>
    %8 = vector.broadcast %2 : vector<1x1024xf32> to vector<128x1024xf32>
    %9 = arith.addf %8, %7 : vector<128x1024xf32>
    %10 = vector.extract_strided_slice %0 {offsets = [0, 1], sizes = [128, 1], strides = [1, 1]} : vector<128x4xf32> to vector<128x1xf32>
    %11 = vector.extract_strided_slice %1 {offsets = [1, 0], sizes = [1, 1024], strides = [1, 1]} : vector<4x1024xf32> to vector<1x1024xf32>
    %12 = vector.broadcast %10 : vector<128x1xf32> to vector<128x1024xf32>
    %13 = vector.broadcast %11 : vector<1x1024xf32> to vector<128x1024xf32>
    %14 = arith.mulf %12, %13 : vector<128x1024xf32>
    %15 = arith.addf %9, %14 : vector<128x1024xf32>
    %16 = vector.extract_strided_slice %0 {offsets = [0, 2], sizes = [128, 1], strides = [1, 1]} : vector<128x4xf32> to vector<128x1xf32>
    %17 = vector.extract_strided_slice %1 {offsets = [2, 0], sizes = [1, 1024], strides = [1, 1]} : vector<4x1024xf32> to vector<1x1024xf32>
    %18 = vector.broadcast %16 : vector<128x1xf32> to vector<128x1024xf32>
    %19 = vector.broadcast %17 : vector<1x1024xf32> to vector<128x1024xf32>
    %20 = arith.mulf %18, %19 : vector<128x1024xf32>
    %21 = arith.addf %15, %20 : vector<128x1024xf32>
    %22 = vector.extract_strided_slice %0 {offsets = [0, 3], sizes = [128, 1], strides = [1, 1]} : vector<128x4xf32> to vector<128x1xf32>
    %23 = vector.extract_strided_slice %1 {offsets = [3, 0], sizes = [1, 1024], strides = [1, 1]} : vector<4x1024xf32> to vector<1x1024xf32>
    %24 = vector.broadcast %22 : vector<128x1xf32> to vector<128x1024xf32>
    %25 = vector.broadcast %23 : vector<1x1024xf32> to vector<128x1024xf32>
    %26 = arith.mulf %24, %25 : vector<128x1024xf32>
    %27 = arith.addf %21, %26 : vector<128x1024xf32>
    %cst = arith.constant 0.000000e+00 : f32
    %28 = vector.broadcast %cst : f32 to vector<128x1024xf32>
    %29 = arith.maximumf %27, %28 : vector<128x1024xf32>
    %30 = arith.truncf %29 : vector<128x1024xf32> to vector<128x1024xbf16>
    %c0_5 = arith.constant 0 : index
    %c0_6 = arith.constant 0 : index
    %31 = vector.load %arg4[%c0_5, %c0_6] : memref<1024x512xbf16, #tpu.memory_space<vmem>>, vector<1024x512xbf16>
    %cst_7 = arith.constant dense<0.000000e+00> : vector<128x512xf32>
    %32 = tpu.matmul %30, %31, %cst_7 {dimension_numbers = #tpu.dot_dimension_numbers<[1], [0], [0], [1], [0, 0, 1, 1], [], []>} : vector<128x1024xbf16>, vector<1024x512xbf16>, vector<128x512xf32> -> vector<128x512xf32>
    %c0_8 = arith.constant 0 : index
    %c0_9 = arith.constant 0 : index
    %33 = vector.load %arg5[%c0_8, %c0_9] : memref<1x512xf32, #tpu.memory_space<vmem>>, vector<1x512xf32>
    %34 = vector.broadcast %33 : vector<1x512xf32> to vector<128x512xf32>
    %35 = arith.addf %32, %34 : vector<128x512xf32>
    %cst_10 = arith.constant 0.000000e+00 : f32
    %36 = vector.broadcast %cst_10 : f32 to vector<128x512xf32>
    %37 = arith.maximumf %35, %36 : vector<128x512xf32>
    %38 = arith.truncf %37 : vector<128x512xf32> to vector<128x512xbf16>
    %c0_11 = arith.constant 0 : index
    %c0_12 = arith.constant 0 : index
    %39 = vector.load %arg6[%c0_11, %c0_12] : memref<512x256xbf16, #tpu.memory_space<vmem>>, vector<512x256xbf16>
    %cst_13 = arith.constant dense<0.000000e+00> : vector<128x256xf32>
    %40 = tpu.matmul %38, %39, %cst_13 {dimension_numbers = #tpu.dot_dimension_numbers<[1], [0], [0], [1], [0, 0, 1, 1], [], []>} : vector<128x512xbf16>, vector<512x256xbf16>, vector<128x256xf32> -> vector<128x256xf32>
    %c0_14 = arith.constant 0 : index
    %c0_15 = arith.constant 0 : index
    %41 = vector.load %arg7[%c0_14, %c0_15] : memref<1x256xf32, #tpu.memory_space<vmem>>, vector<1x256xf32>
    %42 = vector.broadcast %41 : vector<1x256xf32> to vector<128x256xf32>
    %43 = arith.addf %40, %42 : vector<128x256xf32>
    %cst_16 = arith.constant 0.000000e+00 : f32
    %44 = vector.broadcast %cst_16 : f32 to vector<128x256xf32>
    %45 = arith.maximumf %43, %44 : vector<128x256xf32>
    %46 = arith.truncf %45 : vector<128x256xf32> to vector<128x256xbf16>
    %c0_17 = arith.constant 0 : index
    %c0_18 = arith.constant 0 : index
    %47 = vector.load %arg8[%c0_17, %c0_18] : memref<256x128xbf16, #tpu.memory_space<vmem>>, vector<256x128xbf16>
    %cst_19 = arith.constant dense<0.000000e+00> : vector<128x128xf32>
    %48 = tpu.matmul %46, %47, %cst_19 {dimension_numbers = #tpu.dot_dimension_numbers<[1], [0], [0], [1], [0, 0, 1, 1], [], []>} : vector<128x256xbf16>, vector<256x128xbf16>, vector<128x128xf32> -> vector<128x128xf32>
    %c0_20 = arith.constant 0 : index
    %c0_21 = arith.constant 0 : index
    %49 = vector.load %arg9[%c0_20, %c0_21] : memref<1x128xf32, #tpu.memory_space<vmem>>, vector<1x128xf32>
    %50 = vector.broadcast %49 : vector<1x128xf32> to vector<128x128xf32>
    %51 = arith.addf %48, %50 : vector<128x128xf32>
    %cst_22 = arith.constant 0.000000e+00 : f32
    %52 = vector.broadcast %cst_22 : f32 to vector<128x128xf32>
    %53 = arith.maximumf %51, %52 : vector<128x128xf32>
    %54 = arith.truncf %53 : vector<128x128xf32> to vector<128x128xbf16>
    %c0_23 = arith.constant 0 : index
    %c0_24 = arith.constant 0 : index
    %55 = vector.load %arg10[%c0_23, %c0_24] : memref<128x128xbf16, #tpu.memory_space<vmem>>, vector<128x128xbf16>
    %cst_25 = arith.constant dense<0.000000e+00> : vector<128x128xf32>
    %56 = tpu.matmul %54, %55, %cst_25 {dimension_numbers = #tpu.dot_dimension_numbers<[1], [0], [0], [1], [0, 0, 1, 1], [], []>} : vector<128x128xbf16>, vector<128x128xbf16>, vector<128x128xf32> -> vector<128x128xf32>
    %c0_26 = arith.constant 0 : index
    %c0_27 = arith.constant 0 : index
    %57 = vector.load %arg11[%c0_26, %c0_27] : memref<1x128xf32, #tpu.memory_space<vmem>>, vector<1x128xf32>
    %58 = vector.broadcast %57 : vector<1x128xf32> to vector<128x128xf32>
    %59 = arith.addf %56, %58 : vector<128x128xf32>
    %60 = arith.truncf %59 : vector<128x128xf32> to vector<128x128xbf16>
    %c0_28 = arith.constant 0 : index
    %c0_29 = arith.constant 0 : index
    %61 = vector.load %arg12[%c0_28, %c0_29] : memref<128x128xbf16, #tpu.memory_space<vmem>>, vector<128x128xbf16>
    tpu.vector_store %arg12[%c0_28, %c0_29], %60 {strides = array<i32>} : memref<128x128xbf16, #tpu.memory_space<vmem>>, vector<128x128xbf16>,
    return
  }
  func.func @transform_0(%arg0: i32) -> (i32, i32) {
    %c0_i32 = arith.constant 0 : i32
    %c0_i32_0 = arith.constant 0 : i32
    return %arg0, %c0_i32 : i32, i32
  }
  func.func @transform_1(%arg0: i32) -> (i32, i32) {
    %c0_i32 = arith.constant 0 : i32
    %c0_i32_0 = arith.constant 0 : i32
    %c0_i32_1 = arith.constant 0 : i32
    return %c0_i32, %c0_i32_0 : i32, i32
  }
  func.func @transform_2(%arg0: i32) -> (i32, i32) {
    %c0_i32 = arith.constant 0 : i32
    %c0_i32_0 = arith.constant 0 : i32
    %c0_i32_1 = arith.constant 0 : i32
    return %c0_i32, %c0_i32_0 : i32, i32
  }
  func.func @transform_3(%arg0: i32) -> (i32, i32) {
    %c0_i32 = arith.constant 0 : i32
    %c0_i32_0 = arith.constant 0 : i32
    %c0_i32_1 = arith.constant 0 : i32
    return %c0_i32, %c0_i32_0 : i32, i32
  }
  func.func @transform_4(%arg0: i32) -> (i32, i32) {
    %c0_i32 = arith.constant 0 : i32
    %c0_i32_0 = arith.constant 0 : i32
    %c0_i32_1 = arith.constant 0 : i32
    return %c0_i32, %c0_i32_0 : i32, i32
  }
  func.func @transform_5(%arg0: i32) -> (i32, i32) {
    %c0_i32 = arith.constant 0 : i32
    %c0_i32_0 = arith.constant 0 : i32
    %c0_i32_1 = arith.constant 0 : i32
    return %c0_i32, %c0_i32_0 : i32, i32
  }
  func.func @transform_6(%arg0: i32) -> (i32, i32) {
    %c0_i32 = arith.constant 0 : i32
    %c0_i32_0 = arith.constant 0 : i32
    %c0_i32_1 = arith.constant 0 : i32
    return %c0_i32, %c0_i32_0 : i32, i32
  }
  func.func @transform_7(%arg0: i32) -> (i32, i32) {
    %c0_i32 = arith.constant 0 : i32
    %c0_i32_0 = arith.constant 0 : i32
    %c0_i32_1 = arith.constant 0 : i32
    return %c0_i32, %c0_i32_0 : i32, i32
  }
  func.func @transform_8(%arg0: i32) -> (i32, i32) {
    %c0_i32 = arith.constant 0 : i32
    %c0_i32_0 = arith.constant 0 : i32
    %c0_i32_1 = arith.constant 0 : i32
    return %c0_i32, %c0_i32_0 : i32, i32
  }
  func.func @transform_9(%arg0: i32) -> (i32, i32) {
    %c0_i32 = arith.constant 0 : i32
    %c0_i32_0 = arith.constant 0 : i32
    %c0_i32_1 = arith.constant 0 : i32
    return %c0_i32, %c0_i32_0 : i32, i32
  }
  func.func @transform_10(%arg0: i32) -> (i32, i32) {
    %c0_i32 = arith.constant 0 : i32
    %c0_i32_0 = arith.constant 0 : i32
    %c0_i32_1 = arith.constant 0 : i32
    return %c0_i32, %c0_i32_0 : i32, i32
  }
  func.func @transform_11(%arg0: i32) -> (i32, i32) {
    %c0_i32 = arith.constant 0 : i32
    %c0_i32_0 = arith.constant 0 : i32
    return %arg0, %c0_i32 : i32, i32
  }
}

</mosaic_0001>

<bundles_post_ra>
// kernel: convolutional_classifier_forward.1
= control target key start
LH: loop header
LB: loop body
LE: loop exit
PB: predicated region body
PF: predicated region fallthrough
CT: control target
= control target key end

     0   :  { %s8467_s17 = smov 0   ;;  %s14392_s0 = inlined_call_operand.vmem [shape: f32[512,4], index: 0, kind: input, shape index: {}]   ;;  %s14393_s1 = inlined_call_operand.vmem [shape: f32[4,1024], index: 1, kind: input, shape index: {}]   ;;  %s14394_s2 = inlined_call_operand.vmem [shape: f32[1,1024], index: 2, kind: input, shape index: {}]   ;;  %s14395_s3 = inlined_call_operand.vmem [shape: bf16[1024,512], index: 3, kind: input, shape index: {}]   ;;  %s14396_s4 = inlined_call_operand.vmem [shape: f32[1,512], index: 4, kind: input, shape index: {}]   ;;  %s14397_s5 = inlined_call_operand.vmem [shape: bf16[512,256], index: 5, kind: input, shape index: {}]   ;;  %s14398_s6 = inlined_call_operand.vmem [shape: f32[1,256], index: 6, kind: input, shape index: {}]   ;;  %s14399_s7 = inlined_call_operand.vmem [shape: bf16[256,128], index: 7, kind: input, shape index: {}]   ;;  %s14400_s8 = inlined_call_operand.vmem [shape: f32[1,128], index: 8, kind: input, shape index: {}]   ;;  %s14401_s9 = inlined_call_operand.vmem [shape: bf16[128,128], index: 9, kind: input, shape index: {}]   ;;  %s14402_s10 = inlined_call_operand.vmem [shape: f32[1,128], index: 10, kind: input, shape index: {}]   ;;  %s14403_s11 = inlined_call_operand.vmem [shape: bf16[512,128], index: 11, kind: output, shape index: {}]  }
   0x1 LB: > { %s6515_s18 = sadd.s32 4294967295, %s8401_s17   ;;  %p6519_p0 = scmp.ge.s32.totalorder %s8401_s17, 1  ;;  %s8401_s17 = sphi %s8467_s17, %s21_s17  }
   0x2   : > { %p338_p1 = scmp.lt.s32.totalorder %s8401_s17, 5 }
   0x4   : > { %p339_p2 = pnand %p6519_p0, %p338_p1 }
   0x6   : > { %342 = sbr.rel (%p339_p2) target bundleno = 2060 (0x80c), region = 64 }
   0xb   : > { %s6520_s19 = sshll.u32 %s6515_s18, 4  ;;  %v14404_v0 = vmov 1   ;;  %v14415_v1 = vmov 0   ;;  %v14408_v2 = vmov 2   ;;  %v14406_v7 = vmov 3  }
   0xc   : > { %8330 = vset.pattern.permute.xlu1 %v14404_v0  ;;  %8329 = vset.pattern.permute.xlu0 %v14415_v1  ;;  %p379_p3 = scmp.lt.s32.totalorder %s6520_s19, 63  ;;  %v6638_v15 = vld [vmem:[%s14395_s3 + $0xe0] sm:$0xf]  ;;  %v7932_v16 = vld [vmem:[%s14395_s3 + $0xec] sm:$0xf0] }
   0xd   : > { %8331 = vset.pattern.permute.xlu2 %v14408_v2  ;;  %v6766_v17 = vld [vmem:[%s14395_s3 + $0x1e0] sm:$0xf]  ;;  %v6639_v18 = vor.u32 %v7932_v16, %v6638_v15  ;;  %v7964_v19 = vld [vmem:[%s14395_s3 + $0x1ec] sm:$0xf0] }
   0xe   : > { %s15635_s19 = smov (!%p379_p3, %s6520_s19), 63  ;;  %v6894_v20 = vld [vmem:[%s14395_s3 + $0x2e0] sm:$0xf]  ;;  %v7996_v21 = vld [vmem:[%s14395_s3 + $0x2ec] sm:$0xf0]  ;;  %v8544_v22 = vor.u32 %v7964_v19, %v6766_v17 }
   0xf   : > { %s6521_s20 = sshll.u32 %s15635_s19, 3  ;;  %v8546_v23 = vor.u32 %v7996_v21, %v6894_v20  ;;  %8293 = vmatpush.bf16.msra.mxu3 %v6639_v18  ;;  %v6622_v24 = vld [vmem:[%s14395_s3 + $0xc0] sm:$0xf]  ;;  %v7928_v25 = vld [vmem:[%s14395_s3 + $0xcc] sm:$0xf0]  ;;  %3562 = vmatpush.bf16.msra.mxu0 %v6639_v18  ;;  %s6523_s28 = sshll.u32 %s15635_s19, 2 }
  0x10   : > { %s8484_s23 = scalar_lea.vmem %s14392_s0, %s6521_s20  ;;  %v6750_v26 = vld [vmem:[%s14395_s3 + $0x1c0] sm:$0xf]  ;;  %8301 = vmatpush.bf16.msra.mxu1 %v8544_v22  ;;  %v6623_v27 = vor.u32 %v7928_v25, %v6622_v24  ;;  %v7960_v28 = vld [vmem:[%s14395_s3 + $0x1cc] sm:$0xf0]  ;;  %s14379_s30 = scalar_lea.vmem %s14403_s11, %s6523_s28 }
  0x11   : > { %v394_v3 = vld [vmem:[%s8484_s23 + $0x20] sm:$0xff]  ;;  %v395_v4 = vld [vmem:[%s8484_s23 + $0x28] sm:$0xff]  ;;  %v396_v6 = vld [vmem:[%s8484_s23 + $0x30] sm:$0xff]  ;;  %14816 = vst [vmem:[#allocation4_spill] sm:$0xff] %v8546_v23  ;;  %8309 = vmatpush.bf16.msra.mxu2 %v8546_v23  ;;  %v8568_v31 = vor.u32 %v7960_v28, %v6750_v26 }
  0x12   : > { %809 = vperm.xlu1 %8330, %v394_v3   ;;  %433 = vperm.xlu0 %8329, %v394_v3   ;;  %v398_v5 = vld [vmem:[%s8484_s23 + $0x40] sm:$0xff]  ;;  %v397_v8 = vld [vmem:[%s8484_s23 + $0x38] sm:$0xff]  ;;  %v400_v9 = vld [vmem:[%s8484_s23 + $0x50] sm:$0xff] }
  0x13   : > { %1153 = vperm.xlu2 %8331, %v394_v3   ;;  %v401_v10 = vld [vmem:[%s8484_s23 + $0x58] sm:$0xff]  ;;  %v399_v11 = vld [vmem:[%s8484_s23 + $0x48] sm:$0xff]  ;;  %v8512_v12 = vld [vmem:[%s8484_s23 + $0x60] sm:$0xff]  ;;  %8294 = vmatpush.bf16.msra.mxu3 %v6623_v27 }
  0x14   : > { %v6878_v29 = vld [vmem:[%s14395_s3 + $0x2c0] sm:$0xf]  ;;  %v7992_v30 = vld [vmem:[%s14395_s3 + $0x2cc] sm:$0xf0]  ;;  %v8571_v32 = vld [vmem:[%s8484_s23 + $0x68] sm:$0xff]  ;;  %8302 = vmatpush.bf16.msra.mxu1 %v8568_v31  ;;  %3563 = vmatpush.bf16.msra.mxu0 %v6623_v27 }
  0x15   : > { %v8573_v33 = vor.u32 %v7992_v30, %v6878_v29  ;;  %v6606_v34 = vld [vmem:[%s14395_s3 + $0xa0] sm:$0xf]  ;;  %v7924_v35 = vld [vmem:[%s14395_s3 + $0xac] sm:$0xf0]  ;;  %v8592_v38 = vld [vmem:[%s8484_s23 + $0x78] sm:$0xff] }
  0x16   : > { %v6734_v36 = vld [vmem:[%s14395_s3 + $0x1a0] sm:$0xf]  ;;  %v6607_v39 = vor.u32 %v7924_v35, %v6606_v34  ;;  %v7956_v40 = vld [vmem:[%s14395_s3 + $0x1ac] sm:$0xf0] }
  0x17   : > { %14817 = vst [vmem:[#allocation5_spill] sm:$0xff] %v8573_v33  ;;  %v6862_v41 = vld [vmem:[%s14395_s3 + $0x2a0] sm:$0xf]  ;;  %8310 = vmatpush.bf16.msra.mxu2 %v8573_v33  ;;  %v8602_v42 = vor.u32 %v7956_v40, %v6734_v36  ;;  %v7988_v43 = vld [vmem:[%s14395_s3 + $0x2ac] sm:$0xf0] }
  0x18   : > { %8295 = vmatpush.bf16.msra.mxu3 %v6607_v39  ;;  %v8607_v44 = vor.u32 %v7988_v43, %v6862_v41  ;;  %v6590_v45 = vld [vmem:[%s14395_s3 + $0x80] sm:$0xf]  ;;  %v7920_v46 = vld [vmem:[%s14395_s3 + $0x8c] sm:$0xf0]  ;;  %3564 = vmatpush.bf16.msra.mxu0 %v6607_v39 }
  0x19   : > { %v6718_v47 = vld [vmem:[%s14395_s3 + $0x180] sm:$0xf]  ;;  %8303 = vmatpush.bf16.msra.mxu1 %v8602_v42  ;;  %v6591_v48 = vor.u32 %v7920_v46, %v6590_v45  ;;  %v7952_v49 = vld [vmem:[%s14395_s3 + $0x18c] sm:$0xf0] }
  0x1a   : > { %813 = vperm.xlu1 %8330, %v395_v4   ;;  %438 = vperm.xlu0 %8329, %v395_v4   ;;  %14819 = vst [vmem:[#allocation7_spill] sm:$0xff] %v8607_v44  ;;  %v6846_v50 = vld [vmem:[%s14395_s3 + $0x280] sm:$0xf]  ;;  %v7984_v51 = vld [vmem:[%s14395_s3 + $0x28c] sm:$0xf0]  ;;  %v8629_v52 = vor.u32 %v7952_v49, %v6718_v47 }
  0x1b   : > { %1157 = vperm.xlu2 %8331, %v395_v4   ;;  %8311 = vmatpush.bf16.msra.mxu2 %v8607_v44  ;;  %v8635_v55 = vor.u32 %v7984_v51, %v6846_v50  ;;  %v6574_v56 = vld [vmem:[%s14395_s3 + $0x60] sm:$0xf]  ;;  %v7916_v57 = vld [vmem:[%s14395_s3 + $0x6c] sm:$0xf0]  ;;  %v8763_v50 = vld [vmem:[%s14393_s1 + $0x8] sm:$0xff] }
  0x1c   : > { %8296 = vmatpush.bf16.msra.mxu3 %v6591_v48  ;;  %v6702_v58 = vld [vmem:[%s14395_s3 + $0x160] sm:$0xf]  ;;  %v6575_v59 = vor.u32 %v7916_v57, %v6574_v56  ;;  %v7948_v60 = vld [vmem:[%s14395_s3 + $0x16c] sm:$0xf0]  ;;  %3565 = vmatpush.bf16.msra.mxu0 %v6591_v48 }
  0x1d   : > { %14822 = vst [vmem:[#allocation10_spill] sm:$0xff] %v8635_v55  ;;  %v6830_v61 = vld [vmem:[%s14395_s3 + $0x260] sm:$0xf]  ;;  %v7980_v62 = vld [vmem:[%s14395_s3 + $0x26c] sm:$0xf0]  ;;  %8304 = vmatpush.bf16.msra.mxu1 %v8629_v52  ;;  %v8660_v63 = vor.u32 %v7948_v60, %v6702_v58  ;;  %v497_v58 = vperm.slane %v8763_v50, 0 }
  0x1e   : > { %v6814_v15 = vld [vmem:[%s14395_s3 + $0x240] sm:$0xf]  ;;  %v7976_v16 = vld [vmem:[%s14395_s3 + $0x24c] sm:$0xf0] }
  0x1f   : > { %8312 = vmatpush.bf16.msra.mxu2 %v8635_v55  ;;  %v8698_v20 = vor.u32 %v7976_v16, %v6814_v15  ;;  %v6542_v21 = vld [vmem:[%s14395_s3 + $0x20] sm:$0xf]  ;;  %v7908_v24 = vld [vmem:[%s14395_s3 + $0x2c] sm:$0xf0] }
  0x20   : > { %8297 = vmatpush.bf16.msra.mxu3 %v6575_v59  ;;  %v6670_v25 = vld [vmem:[%s14395_s3 + $0x120] sm:$0xf]  ;;  %3566 = vmatpush.bf16.msra.mxu0 %v6575_v59  ;;  %v6543_v26 = vor.u32 %v7908_v24, %v6542_v21  ;;  %v7940_v27 = vld [vmem:[%s14395_s3 + $0x12c] sm:$0xf0]  ;;  %v858_v24 = vperm.slane %v8763_v50, 1 }
  0x21   : > { %8305 = vmatpush.bf16.msra.mxu1 %v8660_v63  ;;  %14827 = vst [vmem:[#allocation15_spill] sm:$0xff] %v8698_v20  ;;  %v6798_v28 = vld [vmem:[%s14395_s3 + $0x220] sm:$0xf]  ;;  %v7972_v29 = vld [vmem:[%s14395_s3 + $0x22c] sm:$0xf0]  ;;  %v8723_v30 = vor.u32 %v7940_v27, %v6670_v25 }
  0x22   : > { %8332 = vset.pattern.permute.xlu1 %v14406_v7  ;;  %453 = vperm.xlu0 %8329, %v398_v5   ;;  %v8726_v34 = vor.u32 %v7972_v29, %v6798_v28  ;;  %v6526_v35 = vld [vmem:[%s14395_s3] sm:$0xf]  ;;  %v7904_v36 = vld [vmem:[%s14395_s3 + $0xc] sm:$0xf0]  ;;  %v1202_v28 = vperm.slane %v8763_v50, 2 }
  0x23   : > { %1501 = vperm.xlu1 %8332, %v395_v4   ;;  %8333 = vset.pattern.permute.xlu2 %v14415_v1  ;;  %v8665_v4 = vld [vmem:[%s8484_s23 + $0x70] sm:$0xff]  ;;  %v6654_v40 = vld [vmem:[%s14395_s3 + $0x100] sm:$0xf] }
  0x24   : > { %443 = vperm.xlu2 %8333, %v396_v6   ;;  %14828 = vst [vmem:[#allocation16_spill] sm:$0xff] %v8726_v34  ;;  %v7936_v41 = vld [vmem:[%s14395_s3 + $0x10c] sm:$0xf0]  ;;  %v6782_v43 = vld [vmem:[%s14395_s3 + $0x200] sm:$0xf] }
  0x25   : > { %v7968_v45 = vld [vmem:[%s14395_s3 + $0x20c] sm:$0xf0]  ;;  %v8755_v48 = vor.u32 %v7936_v41, %v6654_v40  ;;  %v406_v49 = vld [vmem:[%s14393_s1] sm:$0xff] }
  0x26   : > { %v8765_v51 = vor.u32 %v7968_v45, %v6782_v43  ;;  %v495_v56 = vperm.slane %v406_v49, 0  ;;  %v496_v57 = vperm.slane %v406_v49, 4  ;;  %v856_v59 = vperm.slane %v406_v49, 1  ;;  %v8792_v15 = vld [vmem:[%s14394_s2] sm:$0xff] }
  0x27   : > { %v1200_v60 = vperm.slane %v406_v49, 2  ;;  %v1544_v29 = vperm.slane %v406_v49, 3  ;;  %v8814_v40 = vperm.slane %v8792_v15, 0  ;;  %v8817_v41 = vperm.slane %v8792_v15, 1 }
  0x28   : > { %14832 = vst [vmem:[#allocation20_spill] sm:$0xff] %v8765_v51  ;;  %v8794_v16 = vperm.slane %v856_v59, 1  ;;  %v8820_v43 = vperm.slane %v8792_v15, 2  ;;  %v1546_v45 = vperm.slane %v8763_v50, 3 }
  0x29   : > { %v8796_v21 = vperm.slane %v1200_v60, 2  ;;  %14840 = vst [vmem:[#allocation28_spill] sm:$0xff] %v8817_v41 }
  0x2a   : > { %8340 = vset.pattern.permute.xlu0 %v14404_v0  ;;  %14841 = vst [vmem:[#allocation29_spill] sm:$0xff] %v8820_v43 }
  0x2b   : > { %8334 = vset.pattern.permute.xlu1 %v14415_v1  ;;  %821 = vperm.xlu0 %8340, %v397_v8  }
  0x2c   : > { %448 = vperm.xlu1 %8334, %v397_v8   ;;  %8335 = vset.pattern.permute.xlu2 %v14404_v0 }
  0x2d   : > { %817 = vperm.xlu2 %8335, %v396_v6  }
  0x33   : > { %833 = vperm.xlu0 %8340, %v400_v9  }
  0x34   : > { %8336 = vset.pattern.permute.xlu1 %v14408_v2 }
  0x35   : > { %1161 = vperm.xlu1 %8336, %v396_v6   ;;  %8337 = vset.pattern.permute.xlu2 %v14408_v2 }
  0x36   : > { %1165 = vperm.xlu2 %8337, %v397_v8  }
  0x3b   : > { %8349 = vset.pattern.permute.xlu0 %v14406_v7 }
  0x3c   : > { %1497 = vperm.xlu0 %8349, %v394_v3  }
  0x3d   : > { %8338 = vset.pattern.permute.xlu1 %v14406_v7 }
  0x3e   : > { %1505 = vperm.xlu1 %8338, %v396_v6   ;;  %8339 = vset.pattern.permute.xlu2 %v14406_v7  ;;  %v6558_v6 = vld [vmem:[%s14395_s3 + $0x40] sm:$0xf] }
  0x3f   : > { %1509 = vperm.xlu2 %8339, %v397_v8   ;;  %v7912_v8 = vld [vmem:[%s14395_s3 + $0x4c] sm:$0xf0] }
  0x44   : > { %1525 = vperm.xlu0 %8349, %v401_v10  }
  0x46   : > { %8341 = vset.pattern.permute.xlu1 %v14415_v1 }
  0x47   : > { %458 = vperm.xlu1 %8341, %v399_v11   ;;  %8342 = vset.pattern.permute.xlu2 %v14404_v0 }
  0x48   : > { %825 = vperm.xlu2 %8342, %v398_v5  }
  0x4c   : > { %8354 = vset.pattern.permute.xlu0 %v14408_v2 }
  0x4d   : > { %1173 = vperm.xlu0 %8354, %v399_v11  }
  0x4f   : > { %8343 = vset.pattern.permute.xlu1 %v14404_v0 }
  0x50   : > { %829 = vperm.xlu1 %8343, %v399_v11   ;;  %8344 = vset.pattern.permute.xlu2 %v14408_v2 }
  0x51   : > { %1169 = vperm.xlu2 %8344, %v398_v5  }
  0x55   : > { %1185 = vperm.xlu0 %8354, %v8512_v12  }
  0x58   : > { %8345 = vset.pattern.permute.xlu1 %v14406_v7 }
  0x59   : > { %1513 = vperm.xlu1 %8345, %v398_v5   ;;  %8346 = vset.pattern.permute.xlu2 %v14406_v7  ;;  %v8668_v5 = vor.u32 %v7980_v62, %v6830_v61  ;;  %v857_v61 = vperm.slane %v406_v49, 5  ;;  %v1201_v62 = vperm.slane %v406_v49, 6 }
  0x5a   : > { %1517 = vperm.xlu2 %8346, %v399_v11   ;;  %v7944_v11 = vld [vmem:[%s14395_s3 + $0x14c] sm:$0xf0] }
  0x5b   : > { %14824 = vst [vmem:[#allocation12_spill] sm:$0xff] %v8668_v5  ;;  %8313 = vmatpush.bf16.msra.mxu2 %v8668_v5 }
  0x5d   : > { %8363 = vset.pattern.permute.xlu0 %v14415_v1 }
  0x5e   : > { %488 = vperm.xlu0 %8363, %v8592_v38  }
  0x5f   : > { %8314 = vmatpush.bf16.msra.mxu2 %v8698_v20 }
  0x61   : > { %8347 = vset.pattern.permute.xlu1 %v14415_v1 }
  0x62   : > { %463 = vperm.xlu1 %8347, %v400_v9   ;;  %8348 = vset.pattern.permute.xlu2 %v14415_v1 }
  0x63   : > { %468 = vperm.xlu2 %8348, %v401_v10   ;;  %8315 = vmatpush.bf16.msra.mxu2 %v8726_v34 }
  0x66   : > { %8368 = vset.pattern.permute.xlu0 %v14406_v7 }
  0x67   : > { %1537 = vperm.xlu0 %8368, %v8665_v4   ;;  %8316 = vmatpush.bf16.msra.mxu2 %v8765_v51 }
  0x6a   : > { %8350 = vset.pattern.permute.xlu1 %v14404_v0 }
  0x6b   : > { %837 = vperm.xlu1 %8350, %v401_v10   ;;  %8351 = vset.pattern.permute.xlu2 %v14408_v2 }
  0x6c   : > { %1177 = vperm.xlu2 %8351, %v400_v9  }
  0x6d   : > { %v8520_v13 = vpop.permute.xlu2 %1153 }
  0x6e   : > { %14814 = vst [vmem:[#allocation2_spill] sm:$0xff] %v8520_v13 }
  0x6f   : > { %8373 = vset.pattern.permute.xlu0 %v14404_v0 }
  0x73   : > { %8352 = vset.pattern.permute.xlu1 %v14408_v2 }
  0x74   : > { %1181 = vperm.xlu1 %8352, %v401_v10   ;;  %8353 = vset.pattern.permute.xlu2 %v14406_v7  ;;  %v6559_v10 = vor.u32 %v7912_v8, %v6558_v6  ;;  %v8775_v6 = vld [vmem:[%s8484_s23 + $0x8] sm:$0xff]  ;;  %v8779_v8 = vperm.slane %v495_v56, 0 }
  0x75   : > { %1521 = vperm.xlu2 %8353, %v400_v9   ;;  %v8524_v14 = vpop.permute.xlu2 %1157  ;;  %v6686_v9 = vld [vmem:[%s14395_s3 + $0x140] sm:$0xf]  ;;  %797 = vperm.xlu0 %8373, %v8775_v6  }
  0x76   : > { %14815 = vst [vmem:[#allocation3_spill] sm:$0xff] %v8524_v14  ;;  %8298 = vmatpush.bf16.msra.mxu3 %v6559_v10  ;;  %v8696_v19 = vor.u32 %v7944_v11, %v6686_v9  ;;  %3567 = vmatpush.bf16.msra.mxu0 %v6559_v10  ;;  %v8781_v9 = vperm.slane %v496_v57, 0  ;;  %v8783_v10 = vperm.slane %v497_v58, 0  ;;  %v8832_v58 = vperm.slane %v858_v24, 1 }
  0x78   : > { %8306 = vmatpush.bf16.msra.mxu1 %v8696_v19  ;;  %14834 = vst [vmem:[#allocation22_spill] sm:$0xff] %v8781_v9 }
  0x79   : > { %14835 = vst [vmem:[#allocation23_spill] sm:$0xff] %v8783_v10 }
  0x7a   : > { %8299 = vmatpush.bf16.msra.mxu3 %v6543_v26  ;;  %3568 = vmatpush.bf16.msra.mxu0 %v6543_v26  ;;  %14842 = vst [vmem:[#allocation30_spill] sm:$0xff] %v8832_v58 }
  0x7c   : > { %8355 = vset.pattern.permute.xlu1 %v14415_v1  ;;  %8307 = vmatpush.bf16.msra.mxu1 %v8723_v30 }
  0x7d   : > { %473 = vperm.xlu1 %8355, %v8512_v12   ;;  %8356 = vset.pattern.permute.xlu2 %v14415_v1 }
  0x7e   : > { %478 = vperm.xlu2 %8356, %v8571_v32   ;;  %v8588_v37 = vpop.permute.xlu2 %443  ;;  %8378 = vset.pattern.permute.xlu0 %v14415_v1 }
  0x7f   : > { %14818 = vst [vmem:[#allocation6_spill] sm:$0xff] %v8588_v37  ;;  %v569_v23 = vmul.f32 %v8783_v10, %v8588_v37 }
  0x80   : > { %8308 = vmatpush.bf16.msra.mxu1 %v8755_v48 }
  0x84   : > { %v8631_v53 = vpop.permute.xlu1 %809  ;;  %v8633_v54 = vpop.permute.xlu0 %433 }
  0x85   : > { %14820 = vst [vmem:[#allocation8_spill] sm:$0xff] %v8631_v53  ;;  %8357 = vset.pattern.permute.xlu1 %v14404_v0  ;;  %v552_v56 = vmul.f32 %v8781_v9, %v8633_v54  ;;  %v553_v57 = vmul.f32 %v8783_v10, %v8633_v54 }
  0x86   : > { %14821 = vst [vmem:[#allocation9_spill] sm:$0xff] %v8633_v54  ;;  %841 = vperm.xlu1 %8357, %v8512_v12   ;;  %8358 = vset.pattern.permute.xlu2 %v14404_v0 }
  0x87   : > { %845 = vperm.xlu2 %8358, %v8571_v32   ;;  %v8662_v3 = vpop.permute.xlu2 %817  ;;  %v698_v34 = vadd.f32 %v8820_v43, %v553_v57  ;;  %v567_v57 = vmul.f32 %v8779_v8, %v8588_v37 }
  0x88   : > { %14823 = vst [vmem:[#allocation11_spill] sm:$0xff] %v8662_v3 }
  0x8c   : > { %v8691_v17 = vpop.permute.xlu1 %813  ;;  %v8693_v18 = vpop.permute.xlu0 %438 }
  0x8d   : > { %14825 = vst [vmem:[#allocation13_spill] sm:$0xff] %v8691_v17  ;;  %v559_v26 = vmul.f32 %v8779_v8, %v8693_v18  ;;  %v561_v27 = vmul.f32 %v8783_v10, %v8693_v18  ;;  %v920_v24 = vmul.f32 %v8794_v16, %v8691_v17 }
  0x8e   : > { %14826 = vst [vmem:[#allocation14_spill] sm:$0xff] %v8693_v18  ;;  %8359 = vset.pattern.permute.xlu1 %v14408_v2 }
  0x8f   : > { %1189 = vperm.xlu1 %8359, %v8571_v32   ;;  %8360 = vset.pattern.permute.xlu2 %v14406_v7  ;;  %v704_v59 = vadd.f32 %v8814_v40, %v559_v26  ;;  %v706_v60 = vadd.f32 %v8820_v43, %v561_v27  ;;  %v8854_v27 = vperm.slane %v1546_v45, 3 }
  0x90   : > { %1529 = vperm.xlu2 %8360, %v8512_v12   ;;  %v8734_v39 = vpop.permute.xlu2 %1165  ;;  %v6527_v12 = vor.u32 %v7904_v36, %v6526_v35  ;;  %v8808_v35 = vperm.slane %v857_v61, 1  ;;  %v8810_v36 = vperm.slane %v1201_v62, 2  ;;  %v8838_v61 = vperm.slane %v1202_v28, 2 }
  0x91   : > { %14829 = vst [vmem:[#allocation17_spill] sm:$0xff] %v8734_v39  ;;  %v1264_v62 = vmul.f32 %v8796_v21, %v8524_v14  ;;  %v1048_v20 = vadd.f32 %v920_v24, %v704_v59  ;;  %v568_v24 = vmul.f32 %v8781_v9, %v8588_v37  ;;  %v8928_v37 = vld [vmem:[%s8484_s23] sm:$0xff] }
  0x92   : > { %8300 = vmatpush.bf16.msra.mxu3 %v6527_v12  ;;  %3569 = vmatpush.bf16.msra.mxu0 %v6527_v12  ;;  %14838 = vst [vmem:[#allocation26_spill] sm:$0xff] %v8808_v35  ;;  %v1545_v12 = vperm.slane %v406_v49, 7  ;;  %v551_v49 = vmul.f32 %v8779_v8, %v8633_v54  ;;  %v921_v26 = vmul.f32 %v8808_v35, %v8691_v17 }
  0x93   : > { %14839 = vst [vmem:[#allocation27_spill] sm:$0xff] %v8810_v36  ;;  %v1265_v51 = vmul.f32 %v8810_v36, %v8524_v14  ;;  %v1266_v45 = vmul.f32 %v8838_v61, %v8524_v14  ;;  %v1392_v14 = vadd.f32 %v1264_v62, %v1048_v20  ;;  %v713_v20 = vadd.f32 %v8817_v41, %v568_v24 }
  0x94   : > { %v8749_v46 = vpop.permute.xlu0 %453  ;;  %14843 = vst [vmem:[#allocation31_spill] sm:$0xff] %v8838_v61  ;;  %v714_v62 = vadd.f32 %v8820_v43, %v569_v23 }
  0x95   : > { %14830 = vst [vmem:[#allocation18_spill] sm:$0xff] %v8749_v46  ;;  %v8752_v47 = vpop.permute.xlu1 %1501 }
  0x96   : > { %14831 = vst [vmem:[#allocation19_spill] sm:$0xff] %v8752_v47  ;;  %3611 = vmatpush.bf16.msrb.mxu0 %v8544_v22  ;;  %v560_v22 = vmul.f32 %v8781_v9, %v8693_v18 }
  0x97   : > { %8361 = vset.pattern.permute.xlu1 %v14406_v7  ;;  %v8844_v7 = vperm.slane %v1545_v12, 3  ;;  %14846 = vst [vmem:[#allocation34_spill] sm:$0xff] %v8854_v27  ;;  %v697_v12 = vadd.f32 %v8817_v41, %v552_v56  ;;  %v914_v56 = vmul.f32 %v8832_v58, %v8631_v53 }
  0x98   : > { %1533 = vperm.xlu1 %8361, %v8571_v32   ;;  %8362 = vset.pattern.permute.xlu2 %v14415_v1 }
  0x99   : > { %483 = vperm.xlu2 %8362, %v8665_v4   ;;  %v8777_v32 = vpop.permute.xlu2 %1509  ;;  %14844 = vst [vmem:[#allocation32_spill] sm:$0xff] %v8844_v7  ;;  %v1042_v33 = vadd.f32 %v914_v56, %v698_v34  ;;  %v1258_v34 = vmul.f32 %v8838_v61, %v8520_v13 }
  0x9a   : > { %14833 = vst [vmem:[#allocation21_spill] sm:$0xff] %v8777_v32  ;;  %3612 = vmatpush.bf16.msrb.mxu0 %v8568_v31  ;;  %v705_v31 = vadd.f32 %v8817_v41, %v560_v22  ;;  %v922_v22 = vmul.f32 %v8832_v58, %v8691_v17 }
  0x9c   : > { %v1049_v5 = vadd.f32 %v921_v26, %v705_v31  ;;  %v1050_v55 = vadd.f32 %v922_v22, %v706_v60  ;;  %v1609_v31 = vmul.f32 %v8844_v7, %v8752_v47  ;;  %v1610_v60 = vmul.f32 %v8854_v27, %v8752_v47 }
  0x9d   : > { %v8787_v11 = vpop.permute.xlu0 %821  ;;  %v14849_v26 = vmov 2  }
  0x9e   : > { %14836 = vst [vmem:[#allocation24_spill] sm:$0xff] %v8787_v11  ;;  %v8799_v25 = vpop.permute.xlu1 %448  ;;  %3613 = vmatpush.bf16.msrb.mxu0 %v8602_v42  ;;  %v912_v42 = vmul.f32 %v8794_v16, %v8631_v53 }
  0x9f   : > { %14837 = vst [vmem:[#allocation25_spill] sm:$0xff] %v8799_v25 }
  0xa0   : > { %8364 = vset.pattern.permute.xlu1 %v14404_v0 }
  0xa1   : > { %849 = vperm.xlu1 %8364, %v8665_v4   ;;  %8365 = vset.pattern.permute.xlu2 %v14404_v0  ;;  %v8842_v0 = vperm.slane %v1544_v29, 3  ;;  %v696_v29 = vadd.f32 %v8814_v40, %v551_v49  ;;  %v913_v49 = vmul.f32 %v8808_v35, %v8631_v53  ;;  %v1393_v53 = vadd.f32 %v1265_v51, %v1049_v5 }
  0xa2   : > { %853 = vperm.xlu2 %8365, %v8592_v38   ;;  %v8846_v2 = vpop.permute.xlu2 %825  ;;  %3614 = vmatpush.bf16.msrb.mxu0 %v8629_v52  ;;  %v1256_v52 = vmul.f32 %v8796_v21, %v8520_v13  ;;  %v928_v5 = vmul.f32 %v8794_v16, %v8662_v3  ;;  %v929_v51 = vmul.f32 %v8808_v35, %v8662_v3 }
  0xa3   : > { %14845 = vst [vmem:[#allocation33_spill] sm:$0xff] %v8846_v2  ;;  %v1608_v59 = vmul.f32 %v8842_v0, %v8752_v47  ;;  %v1040_v22 = vadd.f32 %v912_v42, %v696_v29  ;;  %v1041_v44 = vadd.f32 %v913_v49, %v697_v12  ;;  %v1394_v47 = vadd.f32 %v1266_v45, %v1050_v55 }
  0xa4   : > { %v1257_v29 = vmul.f32 %v8810_v36, %v8520_v13  ;;  %v712_v12 = vadd.f32 %v8814_v40, %v567_v57  ;;  %v1386_v57 = vadd.f32 %v1258_v34, %v1042_v33  ;;  %v577_v33 = vmul.f32 %v8783_v10, %v8799_v25 }
  0xa5   : > { %v8858_v28 = vpop.permute.xlu0 %833  ;;  %v1736_v42 = vadd.f32 %v1608_v59, %v1392_v14  ;;  %v1738_v49 = vadd.f32 %v1610_v60, %v1394_v47  ;;  %v1384_v55 = vadd.f32 %v1256_v52, %v1040_v22  ;;  %v930_v22 = vmul.f32 %v8832_v58, %v8662_v3  ;;  %v8946_v3 = vld [vmem:[%s8484_s23 + $0x10] sm:$0xff] }
  0xa6   : > { %14847 = vst [vmem:[#allocation35_spill] sm:$0xff] %v8858_v28  ;;  %3615 = vmatpush.bf16.msrb.mxu0 %v8660_v63  ;;  %v1385_v56 = vadd.f32 %v1257_v29, %v1041_v44  ;;  %v576_v63 = vmul.f32 %v8781_v9, %v8799_v25  ;;  %v14853_v13 = vmov 3   ;;  %423 = vperm.xlu0 %8378, %v8946_v3  }
  0xa7   : > { %v8867_v1 = vpop.permute.xlu1 %1161  ;;  %v1866_v24 = vmax.f32 %v1738_v49, 0.0  ;;  %v937_v49 = vmul.f32 %v8808_v35, %v8787_v11 }
  0xa8   : > { %14848 = vst [vmem:[#allocation36_spill] sm:$0xff] %v8867_v1 }
  0xa9   : > { %8366 = vset.pattern.permute.xlu1 %v14849_v26 }
  0xaa   : > { %1193 = vperm.xlu1 %8366, %v8665_v4   ;;  %8367 = vset.pattern.permute.xlu2 %v14849_v26  ;;  %v1737_v4 = vadd.f32 %v1609_v31, %v1393_v53  ;;  %v575_v53 = vmul.f32 %v8779_v8, %v8799_v25  ;;  %v1864_v31 = vmax.f32 %v1736_v42, 0.0 }
  0xab   : > { %1197 = vperm.xlu2 %8367, %v8592_v38   ;;  %v8908_v14 = vpop.permute.xlu2 %1169  ;;  %3616 = vmatpush.bf16.msrb.mxu0 %v8696_v19  ;;  %v938_v19 = vmul.f32 %v8832_v58, %v8787_v11 }
  0xac   : > { %14851 = vst [vmem:[#allocation38_spill] sm:$0xff] %v8908_v14  ;;  %v1865_v60 = vmax.f32 %v1737_v4, 0.0  ;;  %v720_v42 = vadd.f32 %v8814_v40, %v575_v53  ;;  %v721_v4 = vadd.f32 %v8817_v41, %v576_v63  ;;  %v1056_v53 = vadd.f32 %v928_v5, %v712_v12 }
  0xad   : > { %v1280_v63 = vmul.f32 %v8796_v21, %v8734_v39  ;;  %v1272_v5 = vmul.f32 %v8796_v21, %v8867_v1 }
  0xae   : > { %v8906_v45 = vpop.permute.xlu0 %1497  ;;  %8383 = vset.pattern.permute.xlu0 %v14849_v26 }
  0xaf   : > { %14850 = vst [vmem:[#allocation37_spill] sm:$0xff] %v8906_v45  ;;  %v1600_v47 = vmul.f32 %v8842_v0, %v8906_v45  ;;  %v1601_v59 = vmul.f32 %v8844_v7, %v8906_v45  ;;  %v1602_v23 = vmul.f32 %v8854_v27, %v8906_v45  ;;  %v936_v45 = vmul.f32 %v8794_v16, %v8787_v11 }
  0xb0   : > { %v8922_v44 = vpop.permute.xlu1 %1505  ;;  %3617 = vmatpush.bf16.msrb.mxu0 %v8723_v30  ;;  %v583_v30 = vmul.f32 %v8779_v8, %v8749_v46 }
  0xb1   : > { %14852 = vst [vmem:[#allocation39_spill] sm:$0xff] %v8922_v44  ;;  %v1728_v52 = vadd.f32 %v1600_v47, %v1384_v55  ;;  %v1729_v29 = vadd.f32 %v1601_v59, %v1385_v56  ;;  %v1730_v34 = vadd.f32 %v1602_v23, %v1386_v57  ;;  %v14854_v47 = vmov 0  }
  0xb2   : > { %8369 = vset.pattern.permute.xlu1 %v14853_v13  ;;  %v722_v59 = vadd.f32 %v8820_v43, %v577_v33  ;;  %v1057_v23 = vadd.f32 %v929_v51, %v713_v20  ;;  %v1281_v33 = vmul.f32 %v8810_v36, %v8734_v39  ;;  %v1064_v12 = vadd.f32 %v936_v45, %v720_v42 }
  0xb3   : > { %1541 = vperm.xlu1 %8369, %v8592_v38   ;;  %v1856_v55 = vmax.f32 %v1728_v52, 0.0  ;;  %v1857_v56 = vmax.f32 %v1729_v29, 0.0  ;;  %v1858_v57 = vmax.f32 %v1730_v34, 0.0  ;;  %8370 = vset.pattern.permute.xlu2 %v14854_v47  ;;  %v1282_v20 = vmul.f32 %v8838_v61, %v8734_v39 }
  0xb4   : > { %413 = vperm.xlu2 %8370, %v8928_v37   ;;  %v1065_v51 = vadd.f32 %v937_v49, %v721_v4  ;;  %v8969_v45 = vpop.permute.xlu2 %1517  ;;  %v1058_v29 = vadd.f32 %v930_v22, %v714_v62  ;;  %v1274_v34 = vmul.f32 %v8838_v61, %v8867_v1  ;;  %v584_v42 = vmul.f32 %v8781_v9, %v8749_v46 }
  0xb5   : > { %v8949_v11 = vpack.c.bf16 %v1864_v31, %v1856_v55  ;;  %v8951_v38 = vpack.c.bf16 %v1865_v60, %v1857_v56  ;;  %v8953_v52 = vpack.c.bf16 %v1866_v24, %v1858_v57  ;;  %v1273_v31 = vmul.f32 %v8810_v36, %v8867_v1  ;;  %14858 = vst [vmem:[#allocation43_spill] sm:$0xff] %v8969_v45 }
  0xb6   : > { %v1066_v60 = vadd.f32 %v938_v19, %v722_v59  ;;  %v1616_v24 = vmul.f32 %v8842_v0, %v8922_v44  ;;  %v8979_v4 = vpop.permute.xlu0 %1525  ;;  %v1624_v49 = vmul.f32 %v8842_v0, %v8777_v32  ;;  %v1617_v19 = vmul.f32 %v8844_v7, %v8922_v44  ;;  %3618 = vmatpush.bf16.msrb.mxu0 %v8755_v48 }
  0xb7   : > { %14855 = vst [vmem:[#allocation40_spill] sm:$0xff] %v8949_v11  ;;  %3580 = vmatmul.bf16.vlgmr.msra.gmra.mxu3 %v8949_v11  ;;  %3629 = vmatmul.bf16.vlgmr.msra.gmra.mxu1 %v8951_v38  ;;  %v1625_v56 = vmul.f32 %v8844_v7, %v8777_v32  ;;  %v585_v62 = vmul.f32 %v8783_v10, %v8749_v46 }
  0xb8   : > { %14856 = vst [vmem:[#allocation41_spill] sm:$0xff] %v8951_v38  ;;  %3678 = vmatmul.bf16.vlgmr.msra.gmra.mxu2 %v8953_v52  ;;  %v1400_v22 = vadd.f32 %v1272_v5, %v1056_v53  ;;  %v1408_v57 = vadd.f32 %v1280_v63, %v1064_v12  ;;  %v1618_v59 = vmul.f32 %v8854_v27, %v8922_v44  ;;  %v14861_v53 = vmov 1  }
  0xb9   : > { %14857 = vst [vmem:[#allocation42_spill] sm:$0xff] %v8953_v52  ;;  %v8977_v55 = vpop.permute.xlu1 %458  ;;  %v1626_v11 = vmul.f32 %v8854_v27, %v8777_v32  ;;  %v1401_v52 = vadd.f32 %v1273_v31, %v1057_v23  ;;  %v1409_v38 = vadd.f32 %v1281_v33, %v1065_v51  ;;  %v1410_v39 = vadd.f32 %v1282_v20, %v1066_v60  ;;  %v9005_v33 = vld [vmem:[%s8484_s23 + $0x18] sm:$0xff] }
  0xba   : > { %14859 = vst [vmem:[#allocation44_spill] sm:$0xff] %v8977_v55  ;;  %v728_v1 = vadd.f32 %v8814_v40, %v583_v30  ;;  %v1744_v46 = vadd.f32 %v1616_v24, %v1400_v22  ;;  %v1402_v48 = vadd.f32 %v1274_v34, %v1058_v29  ;;  %v944_v63 = vmul.f32 %v8794_v16, %v8846_v2 }
  0xbb   : > { %14860 = vst [vmem:[#allocation45_spill] sm:$0xff] %v8979_v4  ;;  %8371 = vset.pattern.permute.xlu1 %v14854_v47  ;;  %v1745_v12 = vadd.f32 %v1617_v19, %v1401_v52  ;;  %v729_v5 = vadd.f32 %v8817_v41, %v584_v42  ;;  %v945_v23 = vmul.f32 %v8808_v35, %v8846_v2 }
  0xbc   : > { %418 = vperm.xlu1 %8371, %v8775_v6   ;;  %8372 = vset.pattern.permute.xlu2 %v14861_v53  ;;  %v1752_v20 = vadd.f32 %v1624_v49, %v1408_v57  ;;  %v1746_v30 = vadd.f32 %v1618_v59, %v1402_v48  ;;  %v730_v51 = vadd.f32 %v8820_v43, %v585_v62  ;;  %v1872_v24 = vmax.f32 %v1744_v46, 0.0 }
  0xbd   : > { %793 = vperm.xlu2 %8372, %v8928_v37   ;;  %v946_v31 = vmul.f32 %v8832_v58, %v8846_v2  ;;  %1149 = vperm.xlu0 %8383, %v9005_v33   ;;  %v1753_v52 = vadd.f32 %v1625_v56, %v1409_v38  ;;  %v1754_v60 = vadd.f32 %v1626_v11, %v1410_v39  ;;  %v1873_v34 = vmax.f32 %v1745_v12, 0.0  ;;  %v9022_v46 = vpop.permute.xlu2 %468 }
  0xbe   : > { %v1072_v29 = vadd.f32 %v944_v63, %v728_v1  ;;  %v591_v42 = vmul.f32 %v8779_v8, %v8977_v55  ;;  %v592_v19 = vmul.f32 %v8781_v9, %v8977_v55  ;;  %v1073_v49 = vadd.f32 %v945_v23, %v729_v5  ;;  %14864 = vst [vmem:[#allocation48_spill] sm:$0xff] %v9022_v46 }
  0xbf   : > { %v1880_v62 = vmax.f32 %v1752_v20, 0.0  ;;  %v1874_v57 = vmax.f32 %v1746_v30, 0.0  ;;  %v593_v59 = vmul.f32 %v8783_v10, %v8977_v55  ;;  %v1074_v48 = vadd.f32 %v946_v31, %v730_v51  ;;  %v9020_v38 = vpop.permute.xlu0 %1173 }
  0xc0   : > { %14863 = vst [vmem:[#allocation47_spill] sm:$0xff] %v9020_v38  ;;  %v1881_v39 = vmax.f32 %v1753_v52, 0.0  ;;  %v1882_v1 = vmax.f32 %v1754_v60, 0.0  ;;  %v1288_v12 = vmul.f32 %v8796_v21, %v8908_v14  ;;  %v1289_v5 = vmul.f32 %v8810_v36, %v8908_v14 }
  0xc1   : > { %v9029_v63 = vpack.c.bf16 %v1880_v62, %v1872_v24  ;;  %v736_v30 = vadd.f32 %v8814_v40, %v591_v42  ;;  %v737_v51 = vadd.f32 %v8817_v41, %v592_v19  ;;  %v1296_v52 = vmul.f32 %v8796_v21, %v9020_v38 }
  0xc2   : > { %v9016_v22 = vpop.permute.xlu1 %829  ;;  %v9038_v20 = vpack.c.bf16 %v1881_v39, %v1873_v34  ;;  %v9043_v31 = vpack.c.bf16 %v1882_v1, %v1874_v57  ;;  %v738_v60 = vadd.f32 %v8820_v43, %v593_v59  ;;  %v1290_v24 = vmul.f32 %v8838_v61, %v8908_v14 }
  0xc3   : > { %14862 = vst [vmem:[#allocation46_spill] sm:$0xff] %v9016_v22  ;;  %v952_v11 = vmul.f32 %v8794_v16, %v9016_v22  ;;  %v953_v56 = vmul.f32 %v8808_v35, %v9016_v22  ;;  %v954_v23 = vmul.f32 %v8832_v58, %v9016_v22  ;;  %v1297_v19 = vmul.f32 %v8810_v36, %v9020_v38 }
  0xc4   : > { %8374 = vset.pattern.permute.xlu1 %v14849_v26  ;;  %14865 = vst [vmem:[#allocation49_spill] sm:$0xff] %v9029_v63  ;;  %v1298_v57 = vmul.f32 %v8838_v61, %v9020_v38  ;;  %v1416_v59 = vadd.f32 %v1288_v12, %v1072_v29  ;;  %v1640_v39 = vmul.f32 %v8842_v0, %v8969_v45 }
  0xc5   : > { %1137 = vperm.xlu1 %8374, %v8928_v37   ;;  %14866 = vst [vmem:[#allocation50_spill] sm:$0xff] %v9038_v20  ;;  %8375 = vset.pattern.permute.xlu2 %v14849_v26  ;;  %v1080_v34 = vadd.f32 %v952_v11, %v736_v30  ;;  %v1081_v42 = vadd.f32 %v953_v56, %v737_v51 }
  0xc6   : > { %14867 = vst [vmem:[#allocation51_spill] sm:$0xff] %v9043_v31  ;;  %1141 = vperm.xlu2 %8375, %v8775_v6   ;;  %v1082_v62 = vadd.f32 %v954_v23, %v738_v60  ;;  %8386 = vset.pattern.permute.xlu0 %v14853_v13  ;;  %v1417_v1 = vadd.f32 %v1289_v5, %v1073_v49 }
  0xc7   : > { %3585 = vmatmul.bf16.gmra.mxu3 %v9029_v63  ;;  %3634 = vmatmul.bf16.gmra.mxu1 %v9038_v20  ;;  %v1418_v63 = vadd.f32 %v1290_v24, %v1074_v48  ;;  %v1424_v11 = vadd.f32 %v1296_v52, %v1080_v34  ;;  %v1425_v56 = vadd.f32 %v1297_v19, %v1081_v42  ;;  %v9074_v48 = vpop.permute.xlu2 %1177 }
  0xc8   : > { %3683 = vmatmul.bf16.gmra.mxu2 %v9043_v31  ;;  %v1641_v30 = vmul.f32 %v8844_v7, %v8969_v45  ;;  %v1642_v23 = vmul.f32 %v8854_v27, %v8969_v45  ;;  %v1426_v12 = vadd.f32 %v1298_v57, %v1082_v62  ;;  %14869 = vst [vmem:[#allocation53_spill] sm:$0xff] %v9074_v48  ;;  %v7022_v31 = vld [vmem:[%s14395_s3 + $0x3e0] sm:$0xf] }
  0xc9   : > { %v1768_v24 = vadd.f32 %v1640_v39, %v1424_v11  ;;  %v1305_v45 = vmul.f32 %v8810_v36, %v9074_v48  ;;  %v609_v14 = vmul.f32 %v8783_v10, %v9022_v46 }
  0xca   : > { %v1769_v34 = vadd.f32 %v1641_v30, %v1425_v56  ;;  %v1770_v42 = vadd.f32 %v1642_v23, %v1426_v12  ;;  %v498_v30 = vperm.slane %v8763_v50, 4  ;;  %v9098_v23 = vld [vmem:[%s14393_s1 + $0x10] sm:$0xff]  ;;  %v1203_v12 = vperm.slane %v8763_v50, 6 }
  0xcb   : > { %v9061_v20 = vpop.permute.xlu1 %1513  ;;  %14874 = vst [vmem:[#allocation58_spill] sm:$0xff] %v9098_v23 }
  0xcc   : > { %14868 = vst [vmem:[#allocation52_spill] sm:$0xff] %v9061_v20  ;;  %v1632_v51 = vmul.f32 %v8842_v0, %v9061_v20  ;;  %v1633_v29 = vmul.f32 %v8844_v7, %v9061_v20  ;;  %v1634_v49 = vmul.f32 %v8854_v27, %v9061_v20  ;;  %v1898_v39 = vmax.f32 %v1770_v42, 0.0 }
  0xcd   : > { %8376 = vset.pattern.permute.xlu1 %v14853_v13  ;;  %v500_v42 = vperm.slane %v9098_v23, 4 }
  0xce   : > { %1481 = vperm.xlu1 %8376, %v8928_v37   ;;  %v1760_v5 = vadd.f32 %v1632_v51, %v1416_v59  ;;  %v1761_v52 = vadd.f32 %v1633_v29, %v1417_v1  ;;  %v1762_v60 = vadd.f32 %v1634_v49, %v1418_v63  ;;  %8377 = vset.pattern.permute.xlu2 %v14853_v13  ;;  %v8028_v37 = vld [vmem:[%s14395_s3 + $0x3ec] sm:$0xf0]  ;;  %v1896_v59 = vmax.f32 %v1768_v24, 0.0 }
  0xcf   : > { %1485 = vperm.xlu2 %8377, %v8775_v6   ;;  %v1897_v63 = vmax.f32 %v1769_v34, 0.0  ;;  %v7023_v1 = vor.u32 %v8028_v37, %v7022_v31  ;;  %v9102_v31 = vpop.permute.xlu2 %1521  ;;  %v859_v29 = vperm.slane %v8763_v50, 5  ;;  %v1205_v37 = vperm.slane %v9098_v23, 6 }
  0xd0   : > { %v1888_v19 = vmax.f32 %v1760_v5, 0.0  ;;  %v1889_v62 = vmax.f32 %v1761_v52, 0.0  ;;  %v1890_v57 = vmax.f32 %v1762_v60, 0.0  ;;  %14875 = vst [vmem:[#allocation59_spill] sm:$0xff] %v9102_v31  ;;  %v7006_v5 = vld [vmem:[%s14395_s3 + $0x3c0] sm:$0xf]  ;;  %v1649_v2 = vmul.f32 %v8844_v7, %v9102_v31 }
  0xd1   : > { %3709 = vmatpush.bf16.msrb.mxu3 %v7023_v1  ;;  %v8024_v52 = vld [vmem:[%s14395_s3 + $0x3cc] sm:$0xf0]  ;;  %v9121_v60 = vld [vmem:[%s14393_s1 + $0x18] sm:$0xff]  ;;  %v9140_v1 = vperm.slane %v8792_v15, 5 }
  0xd2   : > { %v9087_v11 = vpack.c.bf16 %v1896_v59, %v1888_v19  ;;  %v9089_v6 = vpack.c.bf16 %v1897_v63, %v1889_v62  ;;  %v9092_v56 = vpack.c.bf16 %v1898_v39, %v1890_v57  ;;  %14876 = vst [vmem:[#allocation60_spill] sm:$0xff] %v9121_v60  ;;  %v7007_v34 = vor.u32 %v8024_v52, %v7006_v5 }
  0xd3   : > { %v9128_v19 = vperm.slane %v498_v30, 0  ;;  %v9131_v62 = vperm.slane %v8792_v15, 3  ;;  %v861_v57 = vperm.slane %v9098_v23, 5  ;;  %v9135_v59 = vperm.slane %v859_v29, 1  ;;  %14881 = vst [vmem:[#allocation65_spill] sm:$0xff] %v9140_v1 }
  0xd4   : > { %v9085_v51 = vpop.permute.xlu1 %463  ;;  %14871 = vst [vmem:[#allocation55_spill] sm:$0xff] %v9087_v11  ;;  %v9137_v63 = vperm.slane %v1203_v12, 2  ;;  %v501_v39 = vperm.slane %v9121_v60, 0  ;;  %v960_v5 = vmul.f32 %v8794_v16, %v8858_v28  ;;  %v962_v12 = vmul.f32 %v8832_v58, %v8858_v28 }
  0xd5   : > { %14870 = vst [vmem:[#allocation54_spill] sm:$0xff] %v9085_v51  ;;  %v600_v49 = vmul.f32 %v8781_v9, %v9085_v51  ;;  %v601_v24 = vmul.f32 %v8783_v10, %v9085_v51  ;;  %3710 = vmatpush.bf16.msrb.mxu3 %v7007_v34 }
  0xd6   : > { %14872 = vst [vmem:[#allocation56_spill] sm:$0xff] %v9089_v6  ;;  %8379 = vset.pattern.permute.xlu1 %v14854_v47  ;;  %v599_v47 = vmul.f32 %v8779_v8, %v9085_v51  ;;  %v9161_v51 = vperm.slane %v1205_v37, 2  ;;  %v1304_v37 = vmul.f32 %v8796_v21, %v9074_v48 }
  0xd7   : > { %14873 = vst [vmem:[#allocation57_spill] sm:$0xff] %v9092_v56  ;;  %3590 = vmatmul.bf16.gmra.mxu3 %v9087_v11  ;;  %3639 = vmatmul.bf16.gmra.mxu1 %v9089_v6  ;;  %v745_v52 = vadd.f32 %v8817_v41, %v600_v49  ;;  %v961_v11 = vmul.f32 %v8808_v35, %v8858_v28  ;;  %v9157_v6 = vperm.slane %v8792_v15, 6  ;;  %v1547_v28 = vperm.slane %v8763_v50, 7 }
  0xd8   : > { %3688 = vmatmul.bf16.gmra.mxu2 %v9092_v56  ;;  %428 = vperm.xlu1 %8379, %v9005_v33   ;;  %14877 = vst [vmem:[#allocation61_spill] sm:$0xff] %v9128_v19  ;;  %v744_v30 = vadd.f32 %v8814_v40, %v599_v47  ;;  %v746_v29 = vadd.f32 %v8820_v43, %v601_v24  ;;  %v9154_v56 = vperm.slane %v500_v42, 0  ;;  %v9159_v47 = vperm.slane %v861_v57, 1  ;;  %v9165_v20 = vpop.permute.xlu2 %478 }
  0xd9   : > { %8380 = vset.pattern.permute.xlu2 %v14861_v53  ;;  %14878 = vst [vmem:[#allocation62_spill] sm:$0xff] %v9131_v62  ;;  %v607_v24 = vmul.f32 %v8779_v8, %v9022_v46  ;;  %v608_v42 = vmul.f32 %v8781_v9, %v9022_v46  ;;  %v9172_v15 = vperm.slane %v501_v39, 0  ;;  %v1089_v49 = vadd.f32 %v961_v11, %v745_v52 }
  0xda   : > { %801 = vperm.xlu2 %8380, %v8946_v3   ;;  %14879 = vst [vmem:[#allocation63_spill] sm:$0xff] %v9135_v59  ;;  %v1088_v57 = vadd.f32 %v960_v5, %v744_v30  ;;  %v1090_v38 = vadd.f32 %v962_v12, %v746_v29  ;;  %v1306_v50 = vmul.f32 %v8838_v61, %v9074_v48  ;;  %v1549_v39 = vperm.slane %v9098_v23, 7 }
  0xdb   : > { %14880 = vst [vmem:[#allocation64_spill] sm:$0xff] %v9137_v63  ;;  %v554_v5 = vmul.f32 %v9128_v19, %v8633_v54  ;;  %v752_v52 = vadd.f32 %v8814_v40, %v607_v24  ;;  %v753_v29 = vadd.f32 %v8817_v41, %v608_v42  ;;  %v1648_v46 = vmul.f32 %v8842_v0, %v9102_v31 }
  0xdc   : > { %14883 = vst [vmem:[#allocation67_spill] sm:$0xff] %v9154_v56  ;;  %v1432_v48 = vadd.f32 %v1304_v37, %v1088_v57  ;;  %v1433_v30 = vadd.f32 %v1305_v45, %v1089_v49  ;;  %v1656_v24 = vmul.f32 %v8842_v0, %v8979_v4  ;;  %v754_v42 = vadd.f32 %v8820_v43, %v609_v14 }
  0xdd   : > { %v9149_v34 = vpop.permute.xlu1 %837  ;;  %14884 = vst [vmem:[#allocation68_spill] sm:$0xff] %v9157_v6  ;;  %v1434_v22 = vadd.f32 %v1306_v50, %v1090_v38  ;;  %v1657_v37 = vmul.f32 %v8844_v7, %v8979_v4  ;;  %v1658_v45 = vmul.f32 %v8854_v27, %v8979_v4 }
  0xde   : > { %14882 = vst [vmem:[#allocation66_spill] sm:$0xff] %v9149_v34  ;;  %v969_v11 = vmul.f32 %v8808_v35, %v9149_v34  ;;  %v970_v12 = vmul.f32 %v8832_v58, %v9149_v34  ;;  %v1777_v32 = vadd.f32 %v1649_v2, %v1433_v30  ;;  %v8020_v2 = vld [vmem:[%s14395_s3 + $0x3ac] sm:$0xf0] }
  0xdf   : > { %14885 = vst [vmem:[#allocation69_spill] sm:$0xff] %v9159_v47 }
  0xe0   : > { %14886 = vst [vmem:[#allocation70_spill] sm:$0xff] %v9165_v20  ;;  %8381 = vset.pattern.permute.xlu1 %v14861_v53  ;;  %v968_v53 = vmul.f32 %v8794_v16, %v9149_v34  ;;  %v1650_v34 = vmul.f32 %v8854_v27, %v9102_v31  ;;  %v1097_v57 = vadd.f32 %v969_v11, %v753_v29 }
  0xe1   : > { %14887 = vst [vmem:[#allocation71_spill] sm:$0xff] %v9172_v15  ;;  %805 = vperm.xlu1 %8381, %v9005_v33   ;;  %v1098_v38 = vadd.f32 %v970_v12, %v754_v42  ;;  %v1776_v31 = vadd.f32 %v1648_v46, %v1432_v48  ;;  %v564_v11 = vmul.f32 %v9154_v56, %v8693_v18  ;;  %v6990_v46 = vld [vmem:[%s14395_s3 + $0x3a0] sm:$0xf] }
  0xe2   : > { %8382 = vset.pattern.permute.xlu2 %v14849_v26  ;;  %v562_v26 = vmul.f32 %v9128_v19, %v8693_v18  ;;  %v1096_v23 = vadd.f32 %v968_v53, %v752_v52  ;;  %v9221_v53 = vperm.slane %v1547_v28, 3  ;;  %v9226_v52 = vpop.permute.xlu2 %845  ;;  %v1778_v27 = vadd.f32 %v1650_v34, %v1434_v22 }
  0xe3   : > { %1145 = vperm.xlu2 %8382, %v8946_v3   ;;  %14889 = vst [vmem:[#allocation73_spill] sm:$0xff] %v9226_v52  ;;  %v9235_v28 = vperm.slane %v1549_v39, 3  ;;  %v699_v48 = vadd.f32 %v9131_v62, %v554_v5  ;;  %v6991_v12 = vor.u32 %v8020_v2, %v6990_v46  ;;  %v1904_v42 = vmax.f32 %v1776_v31, 0.0 }
  0xe4   : > { %v707_v30 = vadd.f32 %v9131_v62, %v562_v26  ;;  %v556_v39 = vmul.f32 %v9154_v56, %v8633_v54  ;;  %v709_v5 = vadd.f32 %v9140_v1, %v564_v11 }
  0xe5   : > { %3711 = vmatpush.bf16.msrb.mxu3 %v6991_v12 }
  0xe6   : > { %v9209_v55 = vpop.permute.xlu1 %1181 }
  0xe7   : > { %14888 = vst [vmem:[#allocation72_spill] sm:$0xff] %v9209_v55  ;;  %v1312_v49 = vmul.f32 %v8796_v21, %v9209_v55  ;;  %v1313_v14 = vmul.f32 %v8810_v36, %v9209_v55  ;;  %v1314_v50 = vmul.f32 %v8838_v61, %v9209_v55 }
  0xe9   : > { %8384 = vset.pattern.permute.xlu1 %v14853_v13  ;;  %v1440_v29 = vadd.f32 %v1312_v49, %v1096_v23  ;;  %v1441_v4 = vadd.f32 %v1313_v14, %v1097_v57  ;;  %v1442_v44 = vadd.f32 %v1314_v50, %v1098_v38  ;;  %v923_v23 = vmul.f32 %v9135_v59, %v8691_v17 }
  0xea   : > { %1489 = vperm.xlu1 %8384, %v8946_v3   ;;  %v1905_v57 = vmax.f32 %v1777_v32, 0.0  ;;  %v1906_v14 = vmax.f32 %v1778_v27, 0.0  ;;  %v557_v32 = vmul.f32 %v9172_v15, %v8633_v54  ;;  %v565_v27 = vmul.f32 %v9172_v15, %v8693_v18  ;;  %v9269_v2 = vpop.permute.xlu2 %1529 }
  0xeb   : > { %v1784_v22 = vadd.f32 %v1656_v24, %v1440_v29  ;;  %v1785_v34 = vadd.f32 %v1657_v37, %v1441_v4  ;;  %v1786_v3 = vadd.f32 %v1658_v45, %v1442_v44  ;;  %8385 = vset.pattern.permute.xlu2 %v14853_v13  ;;  %v14890_v24 = vld [vmem:[#allocation8_spill] sm:$0xff]  ;;  %v1051_v4 = vadd.f32 %v923_v23, %v707_v30 }
  0xec   : > { %1493 = vperm.xlu2 %8385, %v9005_v33   ;;  %v915_v44 = vmul.f32 %v9135_v59, %v14890_v24  ;;  %v925_v13 = vmul.f32 %v9159_v47, %v8691_v17  ;;  %v14895_v50 = vperm.slane %v9121_v60, 1  ;;  %v701_v29 = vadd.f32 %v9140_v1, %v556_v39  ;;  %14897 = vst [vmem:[#allocation79_spill] sm:$0xff] %v9269_v2 }
  0xed   : > { %v1912_v49 = vmax.f32 %v1784_v22, 0.0  ;;  %v1913_v26 = vmax.f32 %v1785_v34, 0.0  ;;  %v1914_v38 = vmax.f32 %v1786_v3, 0.0  ;;  %v14898_v30 = vperm.slane %v9121_v60, 2  ;;  %v14900_v34 = vld [vmem:[#allocation3_spill] sm:$0xff] }
  0xee   : > { %v9264_v11 = vperm.slane %v14895_v50, 1  ;;  %v1053_v46 = vadd.f32 %v925_v13, %v709_v5  ;;  %v1043_v22 = vadd.f32 %v915_v44, %v699_v48  ;;  %v1267_v3 = vmul.f32 %v9137_v63, %v14900_v34  ;;  %v6974_v50 = vld [vmem:[%s14395_s3 + $0x380] sm:$0xf] }
  0xef   : > { %v9252_v33 = vpop.permute.xlu1 %473  ;;  %v9254_v31 = vpack.c.bf16 %v1912_v49, %v1904_v42  ;;  %v9256_v37 = vpack.c.bf16 %v1913_v26, %v1905_v57  ;;  %v9258_v45 = vpack.c.bf16 %v1914_v38, %v1906_v14  ;;  %v9273_v23 = vperm.slane %v14898_v30, 2  ;;  %v14901_v42 = vld [vmem:[#allocation19_spill] sm:$0xff]  ;;  %v14904_v14 = vld [vmem:[#allocation2_spill] sm:$0xff]  ;;  %v8016_v30 = vld [vmem:[%s14395_s3 + $0x38c] sm:$0xf0] }
  0xf0   : > { %14891 = vst [vmem:[#allocation74_spill] sm:$0xff] %v9252_v33  ;;  %v1269_v12 = vmul.f32 %v9161_v51, %v14900_v34  ;;  %v1611_v57 = vmul.f32 %v9221_v53, %v14901_v42  ;;  %v917_v39 = vmul.f32 %v9159_v47, %v14890_v24  ;;  %v1613_v5 = vmul.f32 %v9235_v28, %v14901_v42 }
  0xf1   : > { %14892 = vst [vmem:[#allocation75_spill] sm:$0xff] %v9254_v31  ;;  %3595 = vmatmul.bf16.gmra.mxu3 %v9254_v31  ;;  %3644 = vmatmul.bf16.gmra.mxu1 %v9256_v37  ;;  %v702_v49 = vadd.f32 %v9157_v6, %v557_v32  ;;  %v14902_v48 = vperm.slane %v9121_v60, 3  ;;  %v1259_v38 = vmul.f32 %v9137_v63, %v14904_v14  ;;  %v14905_v31 = vld [vmem:[#allocation37_spill] sm:$0xff] }
  0xf2   : > { %14893 = vst [vmem:[#allocation76_spill] sm:$0xff] %v9256_v37  ;;  %3693 = vmatmul.bf16.gmra.mxu2 %v9258_v45  ;;  %v1395_v44 = vadd.f32 %v1267_v3, %v1051_v4  ;;  %v710_v13 = vadd.f32 %v9157_v6, %v565_v27  ;;  %v1603_v32 = vmul.f32 %v9221_v53, %v14905_v31 }
  0xf3   : > { %14894 = vst [vmem:[#allocation77_spill] sm:$0xff] %v9258_v45  ;;  %v9289_v26 = vperm.slane %v14902_v48, 3  ;;  %v1045_v45 = vadd.f32 %v917_v39, %v701_v29  ;;  %v1397_v48 = vadd.f32 %v1269_v12, %v1053_v46  ;;  %v918_v37 = vmul.f32 %v9264_v11, %v14890_v24  ;;  %v14906_v46 = vld [vmem:[#allocation6_spill] sm:$0xff] }
  0xf4   : > { %14896 = vst [vmem:[#allocation78_spill] sm:$0xff] %v9264_v11  ;;  %v6975_v18 = vor.u32 %v8016_v30, %v6974_v50  ;;  %v1387_v4 = vadd.f32 %v1259_v38, %v1043_v22  ;;  %v1261_v27 = vmul.f32 %v9161_v51, %v14904_v14  ;;  %v926_v3 = vmul.f32 %v9264_v11, %v8691_v17 }
  0xf5   : > { %14899 = vst [vmem:[#allocation80_spill] sm:$0xff] %v9273_v23  ;;  %v1739_v54 = vadd.f32 %v1611_v57, %v1395_v44  ;;  %v1605_v55 = vmul.f32 %v9235_v28, %v14905_v31  ;;  %v1741_v6 = vadd.f32 %v1613_v5, %v1397_v48  ;;  %v1046_v15 = vadd.f32 %v918_v37, %v702_v49 }
  0xf6   : > { %14903 = vst [vmem:[#allocation81_spill] sm:$0xff] %v9289_v26  ;;  %3712 = vmatpush.bf16.msrb.mxu3 %v6975_v18  ;;  %v1054_v29 = vadd.f32 %v926_v3, %v710_v13  ;;  %v570_v12 = vmul.f32 %v9128_v19, %v14906_v46  ;;  %v1731_v22 = vadd.f32 %v1603_v32, %v1387_v4  ;;  %v9323_v32 = vpop.permute.xlu2 %483 }
  0xf7   : > { %v1389_v38 = vadd.f32 %v1261_v27, %v1045_v45  ;;  %v1262_v50 = vmul.f32 %v9273_v23, %v14904_v14  ;;  %v578_v57 = vmul.f32 %v9128_v19, %v8799_v25  ;;  %v1270_v37 = vmul.f32 %v9273_v23, %v14900_v34  ;;  %14908 = vst [vmem:[#allocation83_spill] sm:$0xff] %v9323_v32 }
  0xf8   : > { %v9312_v39 = vpop.permute.xlu1 %841  ;;  %v1614_v18 = vmul.f32 %v9289_v26, %v14901_v42  ;;  %v1867_v5 = vmax.f32 %v1739_v54, 0.0  ;;  %v1869_v13 = vmax.f32 %v1741_v6, 0.0  ;;  %v615_v45 = vmul.f32 %v8779_v8, %v9252_v33  ;;  %v6958_v54 = vld [vmem:[%s14395_s3 + $0x360] sm:$0xf]  ;;  %v9347_v42 = vpop.permute.xlu0 %1185 }
  0xf9   : > { %14907 = vst [vmem:[#allocation82_spill] sm:$0xff] %v9312_v39  ;;  %v1733_v49 = vadd.f32 %v1605_v55, %v1389_v38  ;;  %v1390_v30 = vadd.f32 %v1262_v50, %v1046_v15  ;;  %v616_v48 = vmul.f32 %v8781_v9, %v9252_v33  ;;  %v1398_v4 = vadd.f32 %v1270_v37, %v1054_v29  ;;  %v8012_v55 = vld [vmem:[%s14395_s3 + $0x36c] sm:$0xf0]  ;;  %v14909_v38 = vld [vmem:[#allocation11_spill] sm:$0xff] }
  0xfa   : > { %v715_v27 = vadd.f32 %v9131_v62, %v570_v12  ;;  %v617_v3 = vmul.f32 %v8783_v10, %v9252_v33  ;;  %v1859_v6 = vmax.f32 %v1731_v22, 0.0  ;;  %v723_v15 = vadd.f32 %v9131_v62, %v578_v57  ;;  %14910 = vst [vmem:[#allocation84_spill] sm:$0xff] %v9347_v42 }
  0xfb   : > { %v931_v50 = vmul.f32 %v9135_v59, %v14909_v38  ;;  %v976_v29 = vmul.f32 %v8794_v16, %v9312_v39  ;;  %v977_v12 = vmul.f32 %v8808_v35, %v9312_v39  ;;  %v6959_v37 = vor.u32 %v8012_v55, %v6958_v54 }
  0xfc   : > { %v9345_v44 = vadd.f32 %v1614_v18, %v1398_v4  ;;  %v623_v34 = vmul.f32 %v8779_v8, %v9165_v20  ;;  %v978_v22 = vmul.f32 %v8832_v58, %v9312_v39  ;;  %v1861_v57 = vmax.f32 %v1733_v49, 0.0  ;;  %v14912_v39 = vld [vmem:[#allocation24_spill] sm:$0xff] }
  0xfd   : > { %v1606_v14 = vmul.f32 %v9289_v26, %v14905_v31  ;;  %v760_v17 = vadd.f32 %v8814_v40, %v615_v45  ;;  %v624_v24 = vmul.f32 %v8781_v9, %v9165_v20  ;;  %v761_v18 = vadd.f32 %v8817_v41, %v616_v48  ;;  %3713 = vmatpush.bf16.msrb.mxu3 %v6959_v37  ;;  %v14917_v26 = vld [vmem:[#allocation36_spill] sm:$0xff] }
  0xfe   : > { %v625_v4 = vmul.f32 %v8783_v10, %v9165_v20  ;;  %v762_v54 = vadd.f32 %v8820_v43, %v617_v3  ;;  %v9362_v55 = vpack.c.bf16 %v1867_v5, %v1859_v6  ;;  %v939_v49 = vmul.f32 %v9135_v59, %v14912_v39  ;;  %v8092_v6 = vld [vmem:[%s14395_s3 + $0x5ec] sm:$0xf0] }
  0xff   : > { %v9366_v33 = vadd.f32 %v931_v50, %v715_v27  ;;  %v1104_v45 = vadd.f32 %v976_v29, %v760_v17  ;;  %v1320_v62 = vmul.f32 %v8796_v21, %v9347_v42  ;;  %v1105_v48 = vadd.f32 %v977_v12, %v761_v18  ;;  %v9392_v18 = vpop.permute.xlu2 %853 }
 0x100   : > { %14911 = vst [vmem:[#allocation85_spill] sm:$0xff] %v9362_v55  ;;  %v1321_v20 = vmul.f32 %v8810_v36, %v9347_v42  ;;  %v1106_v37 = vadd.f32 %v978_v22, %v762_v54  ;;  %v1322_v5 = vmul.f32 %v8838_v61, %v9347_v42  ;;  %v9376_v3 = vpack.c.bf16 %v1869_v13, %v1861_v57  ;;  %v7278_v54 = vld [vmem:[%s14395_s3 + $0x5e0] sm:$0xf] }
 0x101   : > { %v9368_v31 = vpop.permute.xlu1 %1189  ;;  %v768_v27 = vadd.f32 %v8814_v40, %v623_v34  ;;  %v769_v50 = vadd.f32 %v8817_v41, %v624_v24  ;;  %v770_v17 = vadd.f32 %v8820_v43, %v625_v4  ;;  %v9382_v29 = vadd.f32 %v1606_v14, %v1390_v30  ;;  %14915 = vst [vmem:[#allocation88_spill] sm:$0xff] %v9392_v18  ;;  %v14916_v30 = vld [vmem:[#allocation34_spill] sm:$0xff] }
 0x102   : > { %14913 = vst [vmem:[#allocation86_spill] sm:$0xff] %v9368_v31  ;;  %v984_v12 = vmul.f32 %v8794_v16, %v9226_v52  ;;  %v1664_v22 = vmul.f32 %v8842_v0, %v9269_v2  ;;  %v985_v13 = vmul.f32 %v8808_v35, %v9226_v52  ;;  %v986_v57 = vmul.f32 %v8832_v58, %v9226_v52  ;;  %v7406_v42 = vld [vmem:[%s14395_s3 + $0x6e0] sm:$0xf] }
 0x103   : > { %14914 = vst [vmem:[#allocation87_spill] sm:$0xff] %v9376_v3  ;;  %v1448_v34 = vadd.f32 %v1320_v62, %v1104_v45  ;;  %v1449_v24 = vadd.f32 %v1321_v20, %v1105_v48  ;;  %v1665_v14 = vmul.f32 %v8844_v7, %v9269_v2  ;;  %v1666_v4 = vmul.f32 %v14916_v30, %v9269_v2  ;;  %v8124_v2 = vld [vmem:[%s14395_s3 + $0x6ec] sm:$0xf0] }
 0x104   : > { %v1328_v20 = vmul.f32 %v8796_v21, %v9368_v31  ;;  %v1329_v62 = vmul.f32 %v8810_v36, %v9368_v31  ;;  %v1450_v45 = vadd.f32 %v1322_v5, %v1106_v37  ;;  %v7279_v48 = vor.u32 %v8092_v6, %v7278_v54 }
 0x105   : > { %v1330_v52 = vmul.f32 %v8838_v61, %v9368_v31  ;;  %v7407_v3 = vor.u32 %v8124_v2, %v7406_v42  ;;  %v1067_v55 = vadd.f32 %v939_v49, %v723_v15  ;;  %v1275_v59 = vmul.f32 %v9137_v63, %v14917_v26  ;;  %v14918_v31 = vld [vmem:[#allocation17_spill] sm:$0xff] }
 0x106   : > { %v1112_v19 = vadd.f32 %v984_v12, %v768_v27  ;;  %v1113_v23 = vadd.f32 %v985_v13, %v769_v50  ;;  %3807 = vmatpush.bf16.msrb.mxu1 %v7279_v48  ;;  %v572_v11 = vmul.f32 %v9154_v56, %v14906_v46  ;;  %v580_v37 = vmul.f32 %v9154_v56, %v8799_v25 }
 0x107   : > { %v1792_v5 = vadd.f32 %v1664_v22, %v1448_v34  ;;  %v1114_v6 = vadd.f32 %v986_v57, %v770_v17  ;;  %3856 = vmatpush.bf16.msrb.mxu2 %v7407_v3  ;;  %v1862_v54 = vmax.f32 %v9382_v29, 0.0  ;;  %v1283_v2 = vmul.f32 %v9137_v63, %v14918_v31  ;;  %v7262_v17 = vld [vmem:[%s14395_s3 + $0x5c0] sm:$0xf]  ;;  %v14920_v29 = vld [vmem:[#allocation39_spill] sm:$0xff] }
 0x108   : > { %v1456_v15 = vadd.f32 %v1328_v20, %v1112_v19  ;;  %v1457_v49 = vadd.f32 %v1329_v62, %v1113_v23  ;;  %v1793_v27 = vadd.f32 %v1665_v14, %v1449_v24  ;;  %v1794_v50 = vadd.f32 %v1666_v4, %v1450_v45  ;;  %v8088_v19 = vld [vmem:[%s14395_s3 + $0x5cc] sm:$0xf0]  ;;  %v7390_v23 = vld [vmem:[%s14395_s3 + $0x6c0] sm:$0xf] }
 0x109   : > { %v1458_v22 = vadd.f32 %v1330_v52, %v1114_v6  ;;  %v1619_v57 = vmul.f32 %v9221_v53, %v14920_v29  ;;  %v717_v52 = vadd.f32 %v9140_v1, %v572_v11  ;;  %v725_v34 = vadd.f32 %v9140_v1, %v580_v37  ;;  %v8120_v45 = vld [vmem:[%s14395_s3 + $0x6cc] sm:$0xf0] }
 0x10a   : > { %v9425_v42 = vpop.permute.xlu1 %1533  ;;  %v933_v24 = vmul.f32 %v9159_v47, %v14909_v38  ;;  %v7263_v62 = vor.u32 %v8088_v19, %v7262_v17  ;;  %v1920_v48 = vmax.f32 %v1792_v5, 0.0  ;;  %v1921_v6 = vmax.f32 %v1793_v27, 0.0  ;;  %v8008_v5 = vld [vmem:[%s14395_s3 + $0x34c] sm:$0xf0] }
 0x10b   : > { %14919 = vst [vmem:[#allocation89_spill] sm:$0xff] %v9425_v42  ;;  %v1672_v12 = vmul.f32 %v8842_v0, %v9425_v42  ;;  %v1673_v13 = vmul.f32 %v8844_v7, %v9425_v42  ;;  %v1674_v3 = vmul.f32 %v14916_v30, %v9425_v42  ;;  %v7391_v42 = vor.u32 %v8120_v45, %v7390_v23  ;;  %v9453_v30 = vpop.permute.xlu2 %1197  ;;  %v8084_v27 = vld [vmem:[%s14395_s3 + $0x5ac] sm:$0xf0] }
 0x10c   : > { %v941_v56 = vmul.f32 %v9159_v47, %v14912_v39  ;;  %v1922_v37 = vmax.f32 %v1794_v50, 0.0  ;;  %14921 = vst [vmem:[#allocation90_spill] sm:$0xff] %v9453_v30  ;;  %3808 = vmatpush.bf16.msrb.mxu1 %v7263_v62  ;;  %v1403_v50 = vadd.f32 %v1275_v59, %v9366_v33  ;;  %v7374_v59 = vld [vmem:[%s14395_s3 + $0x6a0] sm:$0xf]  ;;  %v8116_v33 = vld [vmem:[%s14395_s3 + $0x6ac] sm:$0xf0] }
 0x10d   : > { %v1800_v14 = vadd.f32 %v1672_v12, %v1456_v15  ;;  %v1801_v4 = vadd.f32 %v1673_v13, %v1457_v49  ;;  %v1802_v20 = vadd.f32 %v1674_v3, %v1458_v22  ;;  %v6942_v15 = vld [vmem:[%s14395_s3 + $0x340] sm:$0xf]  ;;  %3857 = vmatpush.bf16.msrb.mxu2 %v7391_v42  ;;  %v1411_v12 = vadd.f32 %v1283_v2, %v1067_v55  ;;  %v14922_v13 = vld [vmem:[#allocation21_spill] sm:$0xff]  ;;  %v9472_v3 = vpop.permute.xlu0 %488 }
 0x10e   : > { %v7246_v49 = vld [vmem:[%s14395_s3 + $0x5a0] sm:$0xf]  ;;  %v1627_v22 = vmul.f32 %v9221_v53, %v14922_v13  ;;  %v1277_v42 = vmul.f32 %v9161_v51, %v14917_v26  ;;  %14923 = vst [vmem:[#allocation91_spill] sm:$0xff] %v9472_v3  ;;  %v7375_v2 = vor.u32 %v8116_v33, %v7374_v59  ;;  %v633_v59 = vmul.f32 %v8783_v10, %v9323_v32  ;;  %v14932_v33 = vld [vmem:[#allocation71_spill] sm:$0xff] }
 0x10f   : > { %v1928_v11 = vmax.f32 %v1800_v14, 0.0  ;;  %v1929_v63 = vmax.f32 %v1801_v4, 0.0  ;;  %v1930_v1 = vmax.f32 %v1802_v20, 0.0  ;;  %v6943_v14 = vor.u32 %v8008_v5, %v6942_v15  ;;  %v8112_v15 = vld [vmem:[%s14395_s3 + $0x68c] sm:$0xf0] }
 0x110   : > { %v7247_v55 = vor.u32 %v8084_v27, %v7246_v49  ;;  %v1069_v4 = vadd.f32 %v941_v56, %v725_v34  ;;  %v1285_v20 = vmul.f32 %v9161_v51, %v14918_v31  ;;  %v639_v56 = vmul.f32 %v8779_v8, %v9472_v3 }
 0x111   : > { %v9474_v17 = vpack.c.bf16 %v1928_v11, %v1920_v48  ;;  %v9476_v19 = vpack.c.bf16 %v1929_v63, %v1921_v6  ;;  %v9478_v23 = vpack.c.bf16 %v1930_v1, %v1922_v37  ;;  %v14928_v1 = vmax.f32 %v9345_v44, 0.0  ;;  %3714 = vmatpush.bf16.msrb.mxu3 %v6943_v14  ;;  %v7230_v11 = vld [vmem:[%s14395_s3 + $0x580] sm:$0xf]  ;;  %v8080_v44 = vld [vmem:[%s14395_s3 + $0x58c] sm:$0xf0]  ;;  %3858 = vmatpush.bf16.msrb.mxu2 %v7375_v2 }
 0x112   : > { %v9497_v48 = vadd.f32 %v1619_v57, %v1403_v50  ;;  %v1061_v6 = vadd.f32 %v933_v24, %v717_v52  ;;  %v640_v34 = vmul.f32 %v8781_v9, %v9472_v3  ;;  %v9513_v57 = vadd.f32 %v1627_v22, %v1411_v12  ;;  %3809 = vmatpush.bf16.msrb.mxu1 %v7247_v55 }
 0x113   : > { %14924 = vst [vmem:[#allocation92_spill] sm:$0xff] %v9474_v17  ;;  %v9488_v62 = vpop.permute.xlu1 %849  ;;  %3600 = vmatmul.bf16.gmra.mxu3 %v9474_v17  ;;  %3649 = vmatmul.bf16.gmra.mxu1 %v9476_v19  ;;  %v9495_v45 = vpack.c.bf16 %v14928_v1, %v1862_v54  ;;  %v7358_v54 = vld [vmem:[%s14395_s3 + $0x680] sm:$0xf]  ;;  %v14930_v52 = vperm.slane %v9121_v60, 4  ;;  %v7231_v37 = vor.u32 %v8080_v44, %v7230_v11  ;;  %v8076_v11 = vld [vmem:[%s14395_s3 + $0x56c] sm:$0xf0]  ;;  %v9554_v44 = vpop.permute.xlu2 %413 }
 0x114   : > { %14925 = vst [vmem:[#allocation93_spill] sm:$0xff] %v9476_v19  ;;  %3698 = vmatmul.bf16.gmra.mxu2 %v9478_v23  ;;  %v1405_v5 = vadd.f32 %v1277_v42, %v1061_v6  ;;  %v1621_v49 = vmul.f32 %v9235_v28, %v14920_v29  ;;  %v631_v27 = vmul.f32 %v8779_v8, %v9323_v32  ;;  %v7214_v6 = vld [vmem:[%s14395_s3 + $0x560] sm:$0xf] }
 0x115   : > { %14926 = vst [vmem:[#allocation94_spill] sm:$0xff] %v9478_v23  ;;  %v9517_v24 = vperm.slane %v14930_v52, 0  ;;  %v641_v50 = vmul.f32 %v8783_v10, %v9472_v3  ;;  %v7359_v12 = vor.u32 %v8112_v15, %v7358_v54  ;;  %v9528_v22 = vadd.f32 %v1285_v20, %v1069_v4  ;;  %v9556_v54 = vpop.permute.xlu0 %1537  ;;  %v8108_v52 = vld [vmem:[%s14395_s3 + $0x66c] sm:$0xf0]  ;;  %v14935_v17 = vld [vmem:[#allocation58_spill] sm:$0xff] }
 0x116   : > { %14927 = vst [vmem:[#allocation95_spill] sm:$0xff] %v9488_v62  ;;  %v632_v14 = vmul.f32 %v8781_v9, %v9323_v32  ;;  %v9536_v42 = vmul.f32 %v9235_v28, %v14922_v13  ;;  %v9540_v55 = vmul.f32 %v14932_v33, %v14906_v46  ;;  %v784_v2 = vadd.f32 %v8814_v40, %v639_v56 }
 0x117   : > { %14929 = vst [vmem:[#allocation96_spill] sm:$0xff] %v9495_v45  ;;  %v1000_v4 = vmul.f32 %v8794_v16, %v9392_v18  ;;  %v785_v20 = vadd.f32 %v8817_v41, %v640_v34  ;;  %v1001_v1 = vmul.f32 %v8808_v35, %v9392_v18  ;;  %3810 = vmatpush.bf16.msrb.mxu1 %v7231_v37  ;;  %v7342_v34 = vld [vmem:[%s14395_s3 + $0x660] sm:$0xf] }
 0x118   : > { %14931 = vst [vmem:[#allocation97_spill] sm:$0xff] %v9517_v24  ;;  %3859 = vmatpush.bf16.msrb.mxu2 %v7359_v12  ;;  %v7215_v56 = vor.u32 %v8076_v11, %v7214_v6  ;;  %v9564_v15 = vadd.f32 %v1621_v49, %v1405_v5  ;;  %v581_v63 = vmul.f32 %v14932_v33, %v8799_v25 }
 0x119   : > { %14933 = vst [vmem:[#allocation71_spill] sm:$0xff] %v9554_v44  ;;  %v776_v19 = vadd.f32 %v8814_v40, %v631_v27  ;;  %v992_v37 = vmul.f32 %v8794_v16, %v9488_v62  ;;  %v786_v12 = vadd.f32 %v8820_v43, %v641_v50  ;;  %v7343_v6 = vor.u32 %v8108_v52, %v7342_v34  ;;  %v8072_v34 = vld [vmem:[%s14395_s3 + $0x54c] sm:$0xf0]  ;;  %v7326_v52 = vld [vmem:[%s14395_s3 + $0x640] sm:$0xf] }
 0x11a   : > { %14934 = vst [vmem:[#allocation98_spill] sm:$0xff] %v9556_v54  ;;  %v777_v11 = vadd.f32 %v8817_v41, %v632_v14  ;;  %v993_v46 = vmul.f32 %v8808_v35, %v9488_v62  ;;  %v994_v5 = vmul.f32 %v8832_v58, %v9488_v62  ;;  %v1002_v49 = vmul.f32 %v8832_v58, %v9392_v18  ;;  %v7198_v14 = vld [vmem:[%s14395_s3 + $0x540] sm:$0xf] }
 0x11b   : > { %v1128_v27 = vadd.f32 %v1000_v4, %v784_v2  ;;  %v1680_v25 = vmul.f32 %v8842_v0, %v9556_v54  ;;  %v1129_v32 = vadd.f32 %v1001_v1, %v785_v20  ;;  %v778_v50 = vadd.f32 %v8820_v43, %v633_v59  ;;  %3811 = vmatpush.bf16.msrb.mxu1 %v7215_v56  ;;  %v8104_v20 = vld [vmem:[%s14395_s3 + $0x64c] sm:$0xf0]  ;;  %v6926_v56 = vld [vmem:[%s14395_s3 + $0x320] sm:$0xf] }
 0x11c   : > { %v9580_v23 = vpop.permute.xlu1 %1193  ;;  %3860 = vmatpush.bf16.msrb.mxu2 %v7343_v6  ;;  %v1120_v62 = vadd.f32 %v992_v37, %v776_v19  ;;  %v1681_v18 = vmul.f32 %v8844_v7, %v9556_v54  ;;  %v7199_v3 = vor.u32 %v8072_v34, %v7198_v14  ;;  %v7327_v24 = vor.u32 %v8104_v20, %v7326_v52  ;;  %v8004_v6 = vld [vmem:[%s14395_s3 + $0x32c] sm:$0xf0] }
 0x11d   : > { %14936 = vst [vmem:[#allocation99_spill] sm:$0xff] %v9580_v23  ;;  %v1336_v2 = vmul.f32 %v8796_v21, %v9580_v23  ;;  %v1337_v4 = vmul.f32 %v8810_v36, %v9580_v23  ;;  %v1338_v59 = vmul.f32 %v8838_v61, %v9580_v23  ;;  %v1344_v45 = vmul.f32 %v8796_v21, %v9453_v30  ;;  %v8100_v52 = vld [vmem:[%s14395_s3 + $0x62c] sm:$0xf0] }
 0x11e   : > { %v1121_v60 = vadd.f32 %v993_v46, %v777_v11  ;;  %v1122_v35 = vadd.f32 %v994_v5, %v778_v50  ;;  %v1130_v23 = vadd.f32 %v1002_v49, %v786_v12  ;;  %v1345_v37 = vmul.f32 %v8810_v36, %v9453_v30  ;;  %v7182_v46 = vld [vmem:[%s14395_s3 + $0x520] sm:$0xf]  ;;  %v8068_v12 = vld [vmem:[%s14395_s3 + $0x52c] sm:$0xf0] }
 0x11f   : > { %v1464_v19 = vadd.f32 %v1336_v2, %v1120_v62  ;;  %v1346_v14 = vmul.f32 %v8838_v61, %v9453_v30  ;;  %v6927_v34 = vor.u32 %v8004_v6, %v6926_v56  ;;  %v7310_v11 = vld [vmem:[%s14395_s3 + $0x620] sm:$0xf]  ;;  %3812 = vmatpush.bf16.msrb.mxu1 %v7199_v3  ;;  %v1883_v2 = vmax.f32 %v9513_v57, 0.0  ;;  %v14939_v3 = vld [vmem:[#allocation68_spill] sm:$0xff] }
 0x120   : > { %v1465_v62 = vadd.f32 %v1337_v4, %v1121_v60  ;;  %v1466_v5 = vadd.f32 %v1338_v59, %v1122_v35  ;;  %v14937_v49 = vld [vmem:[#allocation34_spill] sm:$0xff]  ;;  %3861 = vmatpush.bf16.msrb.mxu2 %v7327_v24  ;;  %v7183_v20 = vor.u32 %v8068_v12, %v7182_v46  ;;  %v7311_v56 = vor.u32 %v8100_v52, %v7310_v11  ;;  %v9638_v60 = vpop.permute.xlu2 %793 }
 0x121   : > { %v1682_v50 = vmul.f32 %v14937_v49, %v9556_v54  ;;  %3715 = vmatpush.bf16.msrb.mxu3 %v6927_v34  ;;  %v9635_v6 = vadd.f32 %v9536_v42, %v9528_v22  ;;  %14938 = vst [vmem:[#allocation100_spill] sm:$0xff] %v9638_v60  ;;  %v718_v24 = vadd.f32 %v14939_v3, %v9540_v55  ;;  %v14940_v59 = vld [vmem:[#allocation78_spill] sm:$0xff]  ;;  %v8000_v55 = vld [vmem:[%s14395_s3 + $0x30c] sm:$0xf0] }
 0x122   : > { %v726_v4 = vadd.f32 %v14939_v3, %v581_v63  ;;  %v934_v1 = vmul.f32 %v14940_v59, %v14909_v38  ;;  %v942_v57 = vmul.f32 %v14940_v59, %v14912_v39  ;;  %v1472_v34 = vadd.f32 %v1344_v45, %v1128_v27  ;;  %v6910_v42 = vld [vmem:[%s14395_s3 + $0x300] sm:$0xf]  ;;  %v8096_v45 = vld [vmem:[%s14395_s3 + $0x60c] sm:$0xf0]  ;;  %v14944_v39 = vld [vmem:[#allocation61_spill] sm:$0xff] }
 0x123   : > { %v1808_v46 = vadd.f32 %v1680_v25, %v1464_v19  ;;  %v1473_v12 = vadd.f32 %v1345_v37, %v1129_v32  ;;  %v1474_v22 = vadd.f32 %v1346_v14, %v1130_v23  ;;  %v7166_v63 = vld [vmem:[%s14395_s3 + $0x500] sm:$0xf]  ;;  %v1809_v52 = vadd.f32 %v1681_v18, %v1465_v62  ;;  %3813 = vmatpush.bf16.msrb.mxu1 %v7183_v20  ;;  %v8064_v32 = vld [vmem:[%s14395_s3 + $0x50c] sm:$0xf0] }
 0x124   : > { %v1810_v35 = vadd.f32 %v1682_v50, %v1466_v5  ;;  %3862 = vmatpush.bf16.msrb.mxu2 %v7311_v56  ;;  %v6911_v25 = vor.u32 %v8000_v55, %v6910_v42  ;;  %v7294_v23 = vld [vmem:[%s14395_s3 + $0x600] sm:$0xf]  ;;  %v7167_v37 = vor.u32 %v8064_v32, %v7166_v63  ;;  %v1070_v62 = vadd.f32 %v942_v57, %v726_v4  ;;  %v14942_v5 = vld [vmem:[#allocation80_spill] sm:$0xff]  ;;  %v14947_v57 = vld [vmem:[#allocation63_spill] sm:$0xff] }
 0x125   : > { %v9656_v11 = vpop.permute.xlu1 %1541  ;;  %v7295_v14 = vor.u32 %v8096_v45, %v7294_v23  ;;  %v1278_v50 = vmul.f32 %v14942_v5, %v14917_v26  ;;  %v1286_v20 = vmul.f32 %v14942_v5, %v14918_v31  ;;  %v14943_v38 = vld [vmem:[#allocation44_spill] sm:$0xff]  ;;  %v1936_v30 = vmax.f32 %v1808_v46, 0.0  ;;  %v14945_v63 = vld [vmem:[#allocation18_spill] sm:$0xff] }
 0x126   : > { %14941 = vst [vmem:[#allocation101_spill] sm:$0xff] %v9656_v11  ;;  %v1688_v27 = vmul.f32 %v8842_v0, %v9656_v11  ;;  %v1689_v18 = vmul.f32 %v8844_v7, %v9656_v11  ;;  %v1690_v19 = vmul.f32 %v14937_v49, %v9656_v11  ;;  %3716 = vmatpush.bf16.msrb.mxu3 %v6911_v25  ;;  %v1937_v7 = vmax.f32 %v1809_v52, 0.0  ;;  %v14946_v4 = vld [vmem:[#allocation46_spill] sm:$0xff] }
 0x127   : > { %v594_v54 = vmul.f32 %v14944_v39, %v14943_v38  ;;  %3814 = vmatpush.bf16.msrb.mxu1 %v7167_v37  ;;  %v586_v25 = vmul.f32 %v14944_v39, %v14945_v63  ;;  %v955_v32 = vmul.f32 %v14947_v57, %v14946_v4  ;;  %v1938_v26 = vmax.f32 %v1810_v35, 0.0  ;;  %v14952_v37 = vld [vmem:[#allocation62_spill] sm:$0xff] }
 0x128   : > { %v1816_v56 = vadd.f32 %v1688_v27, %v1472_v34  ;;  %v1817_v42 = vadd.f32 %v1689_v18, %v1473_v12  ;;  %v1818_v55 = vadd.f32 %v1690_v19, %v1474_v22  ;;  %3863 = vmatpush.bf16.msrb.mxu2 %v7295_v14  ;;  %v1062_v34 = vadd.f32 %v934_v1, %v718_v24  ;;  %v14948_v22 = vld [vmem:[#allocation81_spill] sm:$0xff] }
 0x129   : > { %v1414_v12 = vadd.f32 %v1286_v20, %v1070_v62  ;;  %v1622_v27 = vmul.f32 %v14948_v22, %v14920_v29  ;;  %v1630_v46 = vmul.f32 %v14948_v22, %v14922_v13  ;;  %v739_v14 = vadd.f32 %v14952_v37, %v594_v54  ;;  %v14956_v20 = vld [vmem:[#allocation33_spill] sm:$0xff]  ;;  %v14958_v54 = vld [vmem:[#allocation47_spill] sm:$0xff] }
 0x12a   : > { %v1944_v23 = vmax.f32 %v1816_v56, 0.0  ;;  %v1945_v45 = vmax.f32 %v1817_v42, 0.0  ;;  %v1946_v31 = vmax.f32 %v1818_v55, 0.0  ;;  %v9694_v56 = vpop.permute.xlu2 %1141  ;;  %v14954_v35 = vmax.f32 %v9497_v48, 0.0  ;;  %v14959_v42 = vld [vmem:[#allocation64_spill] sm:$0xff] }
 0x12b   : > { %14953 = vst [vmem:[#allocation102_spill] sm:$0xff] %v9694_v56  ;;  %v1885_v24 = vmax.f32 %v9635_v6, 0.0  ;;  %v731_v62 = vadd.f32 %v14952_v37, %v586_v25  ;;  %v1299_v48 = vmul.f32 %v14959_v42, %v14958_v54 }
 0x12c   : > { %v9687_v52 = vpack.c.bf16 %v1944_v23, %v1936_v30  ;;  %v9689_v18 = vpack.c.bf16 %v1945_v45, %v1937_v7  ;;  %v9691_v19 = vpack.c.bf16 %v1946_v31, %v1938_v26  ;;  %v9698_v1 = vpack.c.bf16 %v1883_v2, %v14954_v35 }
 0x12d   : > { %v947_v30 = vmul.f32 %v14947_v57, %v14956_v20  ;;  %v1406_v31 = vadd.f32 %v1278_v50, %v1062_v34  ;;  %v1083_v26 = vadd.f32 %v955_v32, %v739_v14  ;;  %v14960_v2 = vperm.slane %v14935_v17, 0  ;;  %v9724_v32 = vpop.permute.xlu0 %797  ;;  %v14965_v34 = vld [vmem:[#allocation67_spill] sm:$0xff] }
 0x12e   : > { %14949 = vst [vmem:[#allocation80_spill] sm:$0xff] %v9687_v52  ;;  %3605 = vmatmul.bf16.gmra.mxu3 %v9687_v52  ;;  %3654 = vmatmul.bf16.gmra.mxu1 %v9689_v18  ;;  %v9706_v7 = vpop.permute.xlu1 %418  ;;  %v14962_v23 = vmax.f32 %v9564_v15, 0.0  ;;  %v14968_v52 = vld [vmem:[#allocation38_spill] sm:$0xff]  ;;  %v519_v15 = vmul.f32 %v8779_v8, %v9554_v44  ;;  %v588_v50 = vmul.f32 %v14965_v34, %v14945_v63 }
 0x12f   : > { %14950 = vst [vmem:[#allocation61_spill] sm:$0xff] %v9689_v18  ;;  %v9712_v55 = vperm.slane %v14960_v2, 0  ;;  %3703 = vmatmul.bf16.gmra.mxu2 %v9691_v19  ;;  %v527_v6 = vmul.f32 %v8779_v8, %v9706_v7  ;;  %v530_v25 = vmul.f32 %v14944_v39, %v9706_v7  ;;  %v532_v14 = vmul.f32 %v14965_v34, %v9706_v7  ;;  %v2272_v18 = vld [vmem:[%s14396_s4] sm:$0xf] }
 0x130   : > { %14951 = vst [vmem:[#allocation81_spill] sm:$0xff] %v9691_v19  ;;  %v9721_v45 = vpack.c.bf16 %v1885_v24, %v14962_v23  ;;  %v9728_v35 = vadd.f32 %v1622_v27, %v1406_v31  ;;  %v9730_v2 = vadd.f32 %v1630_v46, %v1414_v12  ;;  %v9734_v19 = vmul.f32 %v14959_v42, %v14968_v52 }
 0x131   : > { %14955 = vst [vmem:[#allocation103_spill] sm:$0xff] %v9698_v1  ;;  %v522_v24 = vmul.f32 %v14944_v39, %v9554_v44  ;;  %v9740_v23 = vadd.f32 %v947_v30, %v731_v62  ;;  %v524_v27 = vmul.f32 %v14965_v34, %v9554_v44  ;;  %v533_v12 = vmul.f32 %v14932_v33, %v9706_v7 }
 0x132   : > { %14957 = vst [vmem:[#allocation104_spill] sm:$0xff] %v9706_v7  ;;  %v9748_v46 = vadd.f32 %v1299_v48, %v1083_v26  ;;  %v596_v31 = vmul.f32 %v14965_v34, %v14943_v38  ;;  %v672_v62 = vadd.f32 %v8814_v40, %v527_v6  ;;  %v888_v30 = vmul.f32 %v8794_v16, %v9724_v32  ;;  %v14972_v26 = vld [vmem:[#allocation65_spill] sm:$0xff] }
 0x133   : > { %14961 = vst [vmem:[#allocation105_spill] sm:$0xff] %v9712_v55  ;;  %v675_v13 = vadd.f32 %v14952_v37, %v530_v25  ;;  %v891_v29 = vmul.f32 %v14947_v57, %v9724_v32  ;;  %v677_v48 = vadd.f32 %v14972_v26, %v532_v14  ;;  %v525_v1 = vmul.f32 %v14932_v33, %v9554_v44 }
 0x134   : > { %14963 = vst [vmem:[#allocation106_spill] sm:$0xff] %v9721_v45  ;;  %v3630_v11 = vpop.f32.mrf.mxu1  ;;  %v893_v45 = vmul.f32 %v9159_v47, %v9724_v32  ;;  %v667_v25 = vadd.f32 %v14952_v37, %v522_v24  ;;  %v9777_v14 = vadd.f32 %v14972_v26, %v588_v50  ;;  %v669_v36 = vadd.f32 %v14972_v26, %v524_v27 }
 0x135   : > { %14964 = vst [vmem:[#allocation107_spill] sm:$0xff] %v9724_v32  ;;  %v678_v38 = vadd.f32 %v14939_v3, %v533_v12  ;;  %v1016_v24 = vadd.f32 %v888_v30, %v672_v62  ;;  %v880_v50 = vmul.f32 %v8794_v16, %v9638_v60  ;;  %v1237_v12 = vmul.f32 %v9161_v51, %v9694_v56  ;;  %v7534_v62 = vld [vmem:[%s14395_s3 + $0x7e0] sm:$0xf] }
 0x136   : > { %14966 = vst [vmem:[#allocation108_spill] sm:$0xff] %v9728_v35  ;;  %v9779_v35 = vperm.slane %v2272_v18, 0  ;;  %v1235_v18 = vmul.f32 %v14959_v42, %v9694_v56  ;;  %v1021_v27 = vadd.f32 %v893_v45, %v677_v48  ;;  %v885_v30 = vmul.f32 %v9159_v47, %v9638_v60 }
 0x137   : > { %14967 = vst [vmem:[#allocation109_spill] sm:$0xff] %v9730_v2  ;;  %v664_v2 = vadd.f32 %v8814_v40, %v519_v15  ;;  %v9787_v15 = vpop.permute.xlu1 %1137  ;;  %v886_v45 = vmul.f32 %v14940_v59, %v9638_v60 }
 0x138   : > { %14969 = vst [vmem:[#allocation110_spill] sm:$0xff] %v9734_v19  ;;  %v14975_v19 = vld [vmem:[#allocation43_spill] sm:$0xff]  ;;  %v1227_v52 = vmul.f32 %v14959_v42, %v9787_v15  ;;  %v1365_v17 = vadd.f32 %v1237_v12, %v1021_v27  ;;  %v9836_v27 = vpop.permute.xlu0 %423 }
 0x139   : > { %14970 = vst [vmem:[#allocation111_spill] sm:$0xff] %v9740_v23  ;;  %v9774_v23 = vmul.f32 %v9221_v53, %v14975_v19  ;;  %v1019_v19 = vadd.f32 %v891_v29, %v675_v13  ;;  %v8156_v29 = vld [vmem:[%s14395_s3 + $0x7ec] sm:$0xf0]  ;;  %v883_v13 = vmul.f32 %v14947_v57, %v9638_v60  ;;  %v1008_v37 = vadd.f32 %v880_v50, %v664_v2 }
 0x13a   : > { %14971 = vst [vmem:[#allocation112_spill] sm:$0xff] %v9748_v46  ;;  %v14973_v46 = vld [vmem:[#allocation52_spill] sm:$0xff]  ;;  %v3581_v48 = vpop.f32.mrf.mxu3 }
 0x13b   : > { %v9768_v6 = vmul.f32 %v9221_v53, %v14973_v46  ;;  %14976 = vst [vmem:[#allocation114_spill] sm:$0xff] %v9774_v23  ;;  %v9785_v46 = vpop.permute.xlu2 %1485  ;;  %v1232_v23 = vmul.f32 %v8796_v21, %v9694_v56  ;;  %v3582_v61 = vadd.f32 %v3581_v48, %v9779_v35  ;;  %v3679_v55 = vpop.f32.mrf.mxu2  ;;  %v1363_v9 = vadd.f32 %v1235_v18, %v1019_v19 }
 0x13c   : > { %14977 = vst [vmem:[#allocation115_spill] sm:$0xff] %v9777_v14  ;;  %v670_v14 = vadd.f32 %v14939_v3, %v525_v1  ;;  %v1238_v1 = vmul.f32 %v14942_v5, %v9694_v56  ;;  %v1576_v54 = vmul.f32 %v8842_v0, %v9785_v46  ;;  %v1579_v63 = vmul.f32 %v9221_v53, %v9785_v46 }
 0x13d   : > { %14974 = vst [vmem:[#allocation113_spill] sm:$0xff] %v9768_v6  ;;  %v894_v6 = vmul.f32 %v14940_v59, %v9724_v32  ;;  %v1581_v41 = vmul.f32 %v9235_v28, %v9785_v46  ;;  %v1360_v32 = vadd.f32 %v1232_v23, %v1016_v24  ;;  %v7535_v59 = vor.u32 %v8156_v29, %v7534_v62  ;;  %v9828_v23 = vpop.f32.mrf.mxu1 }
 0x13e   : > { %14978 = vst [vmem:[#allocation116_spill] sm:$0xff] %v9779_v35  ;;  %v1224_v56 = vmul.f32 %v8796_v21, %v9787_v15  ;;  %v1229_v3 = vmul.f32 %v9161_v51, %v9787_v15  ;;  %v3631_v57 = vadd.f32 %v3630_v11, %v3582_v61  ;;  %v1011_v4 = vadd.f32 %v883_v13, %v667_v25 }
 0x13f   : > { %14979 = vst [vmem:[#allocation117_spill] sm:$0xff] %v9785_v46  ;;  %v1022_v49 = vadd.f32 %v894_v6, %v678_v38  ;;  %3905 = vmatpush.bf16.msra.mxu3 %v7535_v59  ;;  %v9826_v38 = vadd.f32 %v14972_v26, %v596_v31  ;;  %v1013_v19 = vadd.f32 %v885_v30, %v669_v36 }
 0x140   : > { %14980 = vst [vmem:[#allocation118_spill] sm:$0xff] %v9787_v15  ;;  %v1230_v6 = vmul.f32 %v14942_v5, %v9787_v15  ;;  %v1582_v18 = vmul.f32 %v14948_v22, %v9785_v46  ;;  %v9834_v62 = vadd.f32 %v3679_v55, %v3631_v57  ;;  %v1704_v61 = vadd.f32 %v1576_v54, %v1360_v32  ;;  %v9838_v2 = vpop.permute.xlu1 %1481 }
 0x141   : > { %14981 = vst [vmem:[#allocation119_spill] sm:$0xff] %v9828_v23  ;;  %v1366_v24 = vadd.f32 %v1238_v1, %v1022_v49  ;;  %v1707_v11 = vadd.f32 %v1579_v63, %v1363_v9  ;;  %v1014_v59 = vadd.f32 %v886_v45, %v670_v14  ;;  %v1352_v31 = vadd.f32 %v1224_v56, %v1008_v37 }
 0x142   : > { %14982 = vst [vmem:[#allocation120_spill] sm:$0xff] %v9834_v62  ;;  %v1355_v25 = vadd.f32 %v1227_v52, %v1011_v4  ;;  %v1357_v50 = vadd.f32 %v1229_v3, %v1013_v19  ;;  %v1709_v36 = vadd.f32 %v1581_v41, %v1365_v17  ;;  %v1568_v12 = vmul.f32 %v8842_v0, %v9838_v2  ;;  %v9848_v9 = vpop.f32.mrf.mxu3 }
 0x143   : > { %14983 = vst [vmem:[#allocation121_spill] sm:$0xff] %v9836_v27  ;;  %v1571_v49 = vmul.f32 %v9221_v53, %v9838_v2  ;;  %v1573_v57 = vmul.f32 %v9235_v28, %v9838_v2  ;;  %v1574_v54 = vmul.f32 %v14948_v22, %v9838_v2  ;;  %v9850_v63 = vpop.permute.xlu2 %801  ;;  %v1358_v37 = vadd.f32 %v1230_v6, %v1014_v59  ;;  %v9856_v3 = vpop.f32.mrf.mxu2 }
 0x144   : > { %14984 = vst [vmem:[#allocation122_spill] sm:$0xff] %v9838_v2  ;;  %v1710_v4 = vadd.f32 %v1582_v18, %v1366_v24  ;;  %v535_v41 = vmul.f32 %v8779_v8, %v9836_v27  ;;  %v521_v17 = vmul.f32 %v8783_v10, %v9554_v44  ;;  %v1696_v52 = vadd.f32 %v1568_v12, %v1352_v31 }
 0x145   : > { %14985 = vst [vmem:[#allocation123_spill] sm:$0xff] %v9848_v9  ;;  %v1699_v56 = vadd.f32 %v1571_v49, %v1355_v25  ;;  %v1701_v55 = vadd.f32 %v1573_v57, %v1357_v50  ;;  %v538_v32 = vmul.f32 %v14944_v39, %v9836_v27  ;;  %v1832_v14 = vmax.f32 %v1704_v61, 0.0  ;;  %v7518_v50 = vld [vmem:[%s14395_s3 + $0x7c0] sm:$0xf]  ;;  %v3635_v12 = vpop.f32.mrf.mxu1 }
 0x146   : > { %14986 = vst [vmem:[#allocation124_spill] sm:$0xff] %v9850_v63  ;;  %v1835_v29 = vmax.f32 %v1707_v11, 0.0  ;;  %v1702_v13 = vadd.f32 %v1574_v54, %v1358_v37  ;;  %v540_v30 = vmul.f32 %v14965_v34, %v9836_v27  ;;  %v1824_v45 = vmax.f32 %v1696_v52, 0.0 }
 0x147   : > { %14987 = vst [vmem:[#allocation125_spill] sm:$0xff] %v9856_v3  ;;  %v1827_v1 = vmax.f32 %v1699_v56, 0.0  ;;  %v1829_v48 = vmax.f32 %v1701_v55, 0.0  ;;  %v1837_v19 = vmax.f32 %v1709_v36, 0.0  ;;  %v1838_v24 = vmax.f32 %v1710_v4, 0.0  ;;  %v9890_v4 = vpop.permute.xlu0 %1149  ;;  %v14993_v56 = vld [vmem:[#allocation46_spill] sm:$0xff] }
 0x148   : > { %v1830_v6 = vmax.f32 %v1702_v13, 0.0  ;;  %v666_v18 = vadd.f32 %v8820_v43, %v521_v17  ;;  %v882_v59 = vmul.f32 %v8832_v58, %v9638_v60  ;;  %v9865_v31 = vpack.c.bf16 %v1832_v14, %v1824_v45  ;;  %v8152_v36 = vld [vmem:[%s14395_s3 + $0x7cc] sm:$0xf0]  ;;  %14992 = vst [vmem:[#allocation130_spill] sm:$0xff] %v9890_v4  ;;  %v9901_v55 = vld [vmem:[%s14394_s2] sm:$0xff] }
 0x149   : > { %v9867_v25 = vpack.c.bf16 %v1835_v29, %v1827_v1  ;;  %v9869_v61 = vpack.c.bf16 %v1837_v19, %v1829_v48  ;;  %v541_v11 = vmul.f32 %v14932_v33, %v9836_v27  ;;  %v680_v57 = vadd.f32 %v8814_v40, %v535_v41  ;;  %14994 = vst [vmem:[#allocation131_spill] sm:$0xff] %v9901_v55  ;;  %v14997_v45 = vld [vmem:[#allocation62_spill] sm:$0xff]  ;;  %v14998_v48 = vld [vmem:[#allocation63_spill] sm:$0xff] }
 0x14a   : > { %14988 = vst [vmem:[#allocation126_spill] sm:$0xff] %v9865_v31  ;;  %v9879_v49 = vpack.c.bf16 %v1838_v24, %v1830_v6  ;;  %v896_v54 = vmul.f32 %v8794_v16, %v9850_v63  ;;  %v9886_v37 = vmul.f32 %v9159_v47, %v14956_v20  ;;  %3570 = vmatmul.bf16.vlgmr.msra.gmra.mxu0 %v9865_v31  ;;  %v9904_v14 = vperm.slane %v9901_v55, 4  ;;  %v9906_v29 = vpop.permute.xlu1 %428  ;;  %v3586_v13 = vpop.f32.mrf.mxu3  ;;  %v14999_v24 = vld [vmem:[#allocation58_spill] sm:$0xff] }
 0x14b   : > { %14989 = vst [vmem:[#allocation127_spill] sm:$0xff] %v9867_v25  ;;  %3717 = vmatmul.bf16.vlgmr.msrb.gmra.mxu3 %v9867_v25  ;;  %v7519_v17 = vor.u32 %v8152_v36, %v7518_v50  ;;  %v529_v52 = vmul.f32 %v8783_v10, %v9706_v7  ;;  %v9896_v41 = vmul.f32 %v9159_v47, %v14993_v56  ;;  %v15000_v50 = vperm.slane %v14999_v24, 1  ;;  %v3684_v25 = vpop.f32.mrf.mxu2  ;;  %v9926_v31 = vpop.permute.xlu2 %1145  ;;  %v15006_v24 = vld [vmem:[#allocation78_spill] sm:$0xff]  ;;  %v15009_v10 = vld [vmem:[#allocation107_spill] sm:$0xff] }
 0x14c   : > { %14990 = vst [vmem:[#allocation128_spill] sm:$0xff] %v9869_v61  ;;  %3815 = vmatmul.bf16.vlgmr.msrb.gmra.mxu1 %v9869_v61  ;;  %3864 = vmatmul.bf16.vlgmr.msrb.gmra.mxu2 %v9879_v49  ;;  %v683_v1 = vadd.f32 %v14997_v45, %v538_v32  ;;  %v899_v19 = vmul.f32 %v14998_v48, %v9850_v63  ;;  %v15002_v61 = vld [vmem:[#allocation68_spill] sm:$0xff] }
 0x14d   : > { %14991 = vst [vmem:[#allocation129_spill] sm:$0xff] %v9879_v49  ;;  %v9913_v6 = vadd.f32 %v882_v59, %v666_v18  ;;  %v9917_v36 = vperm.slane %v15000_v50, 1  ;;  %v3587_v3 = vadd.f32 %v3586_v13, %v9779_v35  ;;  %v685_v23 = vadd.f32 %v14972_v26, %v540_v30  ;;  %3906 = vmatpush.bf16.msra.mxu3 %v7519_v17  ;;  %v15003_v49 = vld [vmem:[#allocation38_spill] sm:$0xff]  ;;  %v15008_v30 = vld [vmem:[#allocation4_spill] sm:$0xff] }
 0x14e   : > { %14995 = vst [vmem:[#allocation132_spill] sm:$0xff] %v9904_v14  ;;  %v686_v9 = vadd.f32 %v15002_v61, %v541_v11  ;;  %v9924_v32 = vmul.f32 %v9161_v51, %v15003_v49  ;;  %v1024_v18 = vadd.f32 %v896_v54, %v680_v57  ;;  %v901_v59 = vmul.f32 %v9159_v47, %v9850_v63  ;;  %v15007_v13 = vld [vmem:[#allocation22_spill] sm:$0xff] }
 0x14f   : > { %14996 = vst [vmem:[#allocation133_spill] sm:$0xff] %v9906_v29  ;;  %v902_v50 = vmul.f32 %v15006_v24, %v9850_v63  ;;  %v528_v62 = vmul.f32 %v15007_v13, %v9706_v7  ;;  %3660 = vmatpush.bf16.msra.mxu0 %v15008_v30  ;;  %v3636_v11 = vadd.f32 %v3635_v12, %v3587_v3  ;;  %v15011_v12 = vld [vmem:[#allocation105_spill] sm:$0xff] }
 0x150   : > { %15001 = vst [vmem:[#allocation58_spill] sm:$0xff] %v9917_v36  ;;  %v1248_v17 = vmul.f32 %v8796_v21, %v9890_v4  ;;  %v674_v55 = vadd.f32 %v8820_v43, %v529_v52  ;;  %v890_v57 = vmul.f32 %v8832_v58, %v15009_v10  ;;  %v543_v54 = vmul.f32 %v8779_v8, %v9906_v29 }
 0x151   : > { %15004 = vst [vmem:[#allocation68_spill] sm:$0xff] %v9924_v32  ;;  %v546_v63 = vmul.f32 %v14944_v39, %v9906_v29  ;;  %v1027_v27 = vadd.f32 %v899_v19, %v683_v1  ;;  %v548_v7 = vmul.f32 %v14965_v34, %v9906_v29  ;;  %v9946_v30 = vadd.f32 %v3684_v25, %v3636_v11  ;;  %v15012_v34 = vld [vmem:[#allocation5_spill] sm:$0xff] }
 0x152   : > { %15005 = vst [vmem:[#allocation134_spill] sm:$0xff] %v9926_v31  ;;  %v549_v3 = vmul.f32 %v14932_v33, %v9906_v29  ;;  %v523_v52 = vmul.f32 %v15011_v12, %v9554_v44  ;;  %v884_v58 = vmul.f32 %v9917_v36, %v9638_v60  ;;  %v1251_v8 = vmul.f32 %v14959_v42, %v9890_v4  ;;  %v15014_v29 = vld [vmem:[#allocation31_spill] sm:$0xff]  ;;  %v9964_v36 = vpop.f32.mrf.mxu1  ;;  %v9966_v49 = vpop.f32.mrf.mxu3 }
 0x153   : > { %15010 = vst [vmem:[#allocation78_spill] sm:$0xff] %v9946_v30  ;;  %v1029_v43 = vadd.f32 %v901_v59, %v685_v23  ;;  %v1253_v1 = vmul.f32 %v9161_v51, %v9890_v4  ;;  %v1030_v19 = vadd.f32 %v902_v50, %v686_v9  ;;  %3661 = vmatpush.bf16.msra.mxu0 %v15012_v34  ;;  %v15013_v30 = vld [vmem:[#allocation102_spill] sm:$0xff] }
 0x154   : > { %v1254_v25 = vmul.f32 %v14942_v5, %v9890_v4  ;;  %v1018_v11 = vadd.f32 %v890_v57, %v674_v55  ;;  %v1234_v12 = vmul.f32 %v15014_v29, %v15013_v30  ;;  %v668_v32 = vadd.f32 %v9904_v14, %v523_v52  ;;  %15015 = vst [vmem:[#allocation4_spill] sm:$0xff] %v9964_v36  ;;  %v9974_v55 = vpop.permute.xlu1 %805 }
 0x155   : > { %15016 = vst [vmem:[#allocation5_spill] sm:$0xff] %v9966_v49  ;;  %v688_v23 = vadd.f32 %v8814_v40, %v543_v54  ;;  %v1240_v9 = vmul.f32 %v8796_v21, %v9926_v31  ;;  %v691_v34 = vadd.f32 %v14997_v45, %v546_v63  ;;  %v1243_v59 = vmul.f32 %v14959_v42, %v9926_v31  ;;  %v9982_v40 = vpop.f32.mrf.mxu2  ;;  %v9984_v54 = vpop.permute.xlu2 %1493  ;;  %v15020_v49 = vld [vmem:[#allocation7_spill] sm:$0xff] }
 0x156   : > { %15017 = vst [vmem:[#allocation135_spill] sm:$0xff] %v9974_v55  ;;  %v693_v50 = vadd.f32 %v14972_v26, %v548_v7  ;;  %v694_v57 = vadd.f32 %v15002_v61, %v549_v3  ;;  %v1226_v52 = vmul.f32 %v15014_v29, %v9787_v15  ;;  %v9980_v36 = vadd.f32 %v884_v58, %v668_v32 }
 0x157   : > { %15019 = vst [vmem:[#allocation137_spill] sm:$0xff] %v9982_v40  ;;  %v904_v21 = vmul.f32 %v8794_v16, %v9974_v55  ;;  %v907_v63 = vmul.f32 %v14998_v48, %v9974_v55  ;;  %v909_v7 = vmul.f32 %v9159_v47, %v9974_v55  ;;  %v910_v3 = vmul.f32 %v15006_v24, %v9974_v55  ;;  %v15021_v16 = vld [vmem:[#allocation34_spill] sm:$0xff] }
 0x158   : > { %15018 = vst [vmem:[#allocation136_spill] sm:$0xff] %v9980_v36  ;;  %3662 = vmatpush.bf16.msra.mxu0 %v15020_v49  ;;  %v1245_v58 = vmul.f32 %v9161_v51, %v9926_v31  ;;  %v1246_v32 = vmul.f32 %v14942_v5, %v9926_v31  ;;  %v1362_v40 = vadd.f32 %v1234_v12, %v1018_v11  ;;  %v15022_v48 = vld [vmem:[#allocation10_spill] sm:$0xff] }
 0x159   : > { %v1578_v36 = vmul.f32 %v15021_v16, %v9785_v46  ;;  %v1032_v29 = vadd.f32 %v904_v21, %v688_v23  ;;  %v1035_v14 = vadd.f32 %v907_v63, %v691_v34  ;;  %v1037_v4 = vadd.f32 %v909_v7, %v693_v50  ;;  %v15024_v63 = vld [vmem:[#allocation26_spill] sm:$0xff] }
 0x15a   : > { %v1038_v26 = vadd.f32 %v910_v3, %v694_v57  ;;  %v1592_v47 = vmul.f32 %v8842_v0, %v9984_v54  ;;  %v1595_v49 = vmul.f32 %v9221_v53, %v9984_v54  ;;  %v1597_v55 = vmul.f32 %v9235_v28, %v9984_v54  ;;  %v15023_v57 = vld [vmem:[#allocation28_spill] sm:$0xff]  ;;  %v7502_v3 = vld [vmem:[%s14395_s3 + $0x7a0] sm:$0xf] }
 0x15b   : > { %v1570_v31 = vmul.f32 %v15021_v16, %v9838_v2  ;;  %v1376_v12 = vadd.f32 %v1248_v17, %v1032_v29  ;;  %v1379_v11 = vadd.f32 %v1251_v8, %v1035_v14  ;;  %v1381_v42 = vadd.f32 %v1253_v1, %v1037_v4  ;;  %v8148_v4 = vld [vmem:[%s14395_s3 + $0x7ac] sm:$0xf0]  ;;  %v3591_v14 = vpop.f32.mrf.mxu3 }
 0x15c   : > { %3663 = vmatpush.bf16.msra.mxu0 %v15022_v48  ;;  %v1354_v23 = vadd.f32 %v1226_v52, %v9913_v6  ;;  %v1368_v34 = vadd.f32 %v1240_v9, %v1024_v18  ;;  %v520_v50 = vmul.f32 %v15007_v13, %v9554_v44  ;;  %v673_v21 = vadd.f32 %v15023_v57, %v528_v62  ;;  %v3640_v9 = vpop.f32.mrf.mxu1  ;;  %v10025_v52 = vpop.permute.xlu1 %1489  ;;  %v15026_v13 = vld [vmem:[#allocation12_spill] sm:$0xff] }
 0x15d   : > { %v889_v7 = vmul.f32 %v15024_v63, %v15009_v10  ;;  %v1382_v29 = vadd.f32 %v1254_v25, %v1038_v26  ;;  %v1598_v48 = vmul.f32 %v14948_v22, %v9984_v54  ;;  %v1706_v18 = vadd.f32 %v1578_v36, %v1362_v40  ;;  %15025 = vst [vmem:[#allocation7_spill] sm:$0xff] %v10025_v52 }
 0x15e   : > { %v1698_v6 = vadd.f32 %v1570_v31, %v1354_v23  ;;  %v3592_v62 = vadd.f32 %v3591_v14, %v9779_v35  ;;  %v1371_v17 = vadd.f32 %v1243_v59, %v1027_v27  ;;  %v1373_v8 = vadd.f32 %v1245_v58, %v1029_v43  ;;  %v3689_v27 = vpop.f32.mrf.mxu2 }
 0x15f   : > { %v7503_v1 = vor.u32 %v8148_v4, %v7502_v3  ;;  %v1720_v16 = vadd.f32 %v1592_v47, %v1376_v12  ;;  %v1723_v10 = vadd.f32 %v1595_v49, %v1379_v11  ;;  %v1725_v44 = vadd.f32 %v1597_v55, %v1381_v42  ;;  %v15028_v49 = vld [vmem:[#allocation15_spill] sm:$0xff] }
 0x160   : > { %v1374_v45 = vadd.f32 %v1246_v32, %v1030_v19  ;;  %3664 = vmatpush.bf16.msra.mxu0 %v15026_v13  ;;  %v3641_v26 = vadd.f32 %v3640_v9, %v3592_v62  ;;  %v1584_v25 = vmul.f32 %v8842_v0, %v10025_v52  ;;  %v1587_v31 = vmul.f32 %v9221_v53, %v10025_v52 }
 0x161   : > { %v1589_v43 = vmul.f32 %v9235_v28, %v10025_v52  ;;  %3907 = vmatpush.bf16.msra.mxu3 %v7503_v1  ;;  %v1590_v47 = vmul.f32 %v14948_v22, %v10025_v52  ;;  %v1726_v36 = vadd.f32 %v1598_v48, %v1382_v29  ;;  %v1826_v42 = vmax.f32 %v1698_v6, 0.0  ;;  %v15030_v6 = vld [vmem:[#allocation18_spill] sm:$0xff]  ;;  %v15037_v1 = vld [vmem:[#allocation44_spill] sm:$0xff] }
 0x162   : > { %v1834_v19 = vmax.f32 %v1706_v18, 0.0  ;;  %v10036_v59 = vadd.f32 %v3689_v27, %v3641_v26  ;;  %v1712_v13 = vadd.f32 %v1584_v25, %v1368_v34  ;;  %v1715_v55 = vadd.f32 %v1587_v31, %v1371_v17  ;;  %v15035_v17 = vld [vmem:[#allocation16_spill] sm:$0xff]  ;;  %v15041_v27 = vld [vmem:[#allocation27_spill] sm:$0xff] }
 0x163   : > { %v1717_v40 = vadd.f32 %v1589_v43, %v1373_v8  ;;  %v1848_v0 = vmax.f32 %v1720_v16, 0.0  ;;  %v1851_v58 = vmax.f32 %v1723_v10, 0.0  ;;  %v1718_v32 = vadd.f32 %v1590_v47, %v1374_v45  ;;  %v15038_v26 = vld [vmem:[#allocation60_spill] sm:$0xff] }
 0x164   : > { %15027 = vst [vmem:[#allocation10_spill] sm:$0xff] %v10036_v59  ;;  %3665 = vmatpush.bf16.msra.mxu0 %v15028_v49  ;;  %v10039_v12 = vpack.c.bf16 %v1834_v19, %v1826_v42  ;;  %v1840_v11 = vmax.f32 %v1712_v13, 0.0  ;;  %v1843_v23 = vmax.f32 %v1715_v55, 0.0  ;;  %v1853_v4 = vmax.f32 %v1725_v44, 0.0  ;;  %v10087_v19 = vld [vmem:[%s14393_s1 + $0x10] sm:$0xff]  ;;  %v15059_v59 = vld [vmem:[#allocation63_spill] sm:$0xff] }
 0x165   : > { %v1845_v3 = vmax.f32 %v1717_v40, 0.0  ;;  %v1846_v14 = vmax.f32 %v1718_v32, 0.0  ;;  %v1854_v29 = vmax.f32 %v1726_v36, 0.0  ;;  %v665_v48 = vadd.f32 %v15023_v57, %v520_v50  ;;  %v15036_v50 = vld [vmem:[#allocation47_spill] sm:$0xff]  ;;  %v8144_v36 = vld [vmem:[%s14395_s3 + $0x78c] sm:$0xf0] }
 0x166   : > { %15029 = vst [vmem:[#allocation28_spill] sm:$0xff] %v10039_v12  ;;  %v589_v34 = vmul.f32 %v14932_v33, %v15030_v6  ;;  %v10044_v18 = vpack.c.bf16 %v1848_v0, %v1840_v11  ;;  %v10046_v16 = vpack.c.bf16 %v1851_v58, %v1843_v23  ;;  %v881_v45 = vmul.f32 %v15024_v63, %v9638_v60  ;;  %v15042_v40 = vld [vmem:[#allocation32_spill] sm:$0xff]  ;;  %v15043_v32 = vld [vmem:[#allocation115_spill] sm:$0xff]  ;;  %v15076_v12 = vld [vmem:[#allocation65_spill] sm:$0xff] }
 0x167   : > { %v10048_v10 = vpack.c.bf16 %v1853_v4, %v1845_v3  ;;  %v10052_v62 = vpack.c.bf16 %v1854_v29, %v1846_v14  ;;  %v1085_v44 = vadd.f32 %v9896_v41, %v9826_v38  ;;  %v1301_v8 = vmul.f32 %v9161_v51, %v15036_v50  ;;  %v7486_v41 = vld [vmem:[%s14395_s3 + $0x780] sm:$0xf]  ;;  %v15044_v11 = vld [vmem:[#allocation20_spill] sm:$0xff]  ;;  %v15046_v4 = vld [vmem:[#allocation43_spill] sm:$0xff] }
 0x168   : > { %15031 = vst [vmem:[#allocation26_spill] sm:$0xff] %v10044_v18  ;;  %3666 = vmatpush.bf16.msra.mxu0 %v15035_v17  ;;  %v597_v9 = vmul.f32 %v14932_v33, %v15037_v1  ;;  %v15039_v25 = vperm.slane %v15038_v26, 5  ;;  %3722 = vmatmul.bf16.gmra.mxu3 %v10046_v16  ;;  %v1017_v43 = vadd.f32 %v889_v7, %v673_v21  ;;  %v15045_v23 = vld [vmem:[#allocation52_spill] sm:$0xff]  ;;  %v15072_v1 = vld [vmem:[#allocation135_spill] sm:$0xff] }
 0x169   : > { %15032 = vst [vmem:[#allocation12_spill] sm:$0xff] %v10046_v16  ;;  %3575 = vmatmul.bf16.gmra.mxu0 %v10044_v18  ;;  %v1225_v47 = vmul.f32 %v15041_v27, %v9787_v15  ;;  %v1233_v38 = vmul.f32 %v15041_v27, %v15013_v30  ;;  %3820 = vmatmul.bf16.gmra.mxu1 %v10048_v10  ;;  %v15051_v16 = vld [vmem:[#allocation110_spill] sm:$0xff]  ;;  %v15058_v18 = vld [vmem:[#allocation35_spill] sm:$0xff] }
 0x16a   : > { %15033 = vst [vmem:[#allocation15_spill] sm:$0xff] %v10048_v10  ;;  %v10063_v31 = vperm.slane %v15039_v25, 1  ;;  %3869 = vmatmul.bf16.gmra.mxu2 %v10052_v62  ;;  %v734_v21 = vadd.f32 %v15002_v61, %v589_v34  ;;  %v950_v7 = vmul.f32 %v15006_v24, %v14956_v20  ;;  %v958_v42 = vmul.f32 %v15006_v24, %v14993_v56  ;;  %v15047_v34 = vld [vmem:[#allocation54_spill] sm:$0xff]  ;;  %v15050_v10 = vld [vmem:[#allocation111_spill] sm:$0xff] }
 0x16b   : > { %15034 = vst [vmem:[#allocation138_spill] sm:$0xff] %v10052_v62  ;;  %v1009_v55 = vadd.f32 %v881_v45, %v665_v48  ;;  %v1569_v0 = vmul.f32 %v15042_v40, %v9838_v2  ;;  %v7487_v58 = vor.u32 %v8144_v36, %v7486_v41  ;;  %v1077_v49 = vadd.f32 %v9886_v37, %v15043_v32  ;;  %v15048_v36 = vld [vmem:[#allocation38_spill] sm:$0xff]  ;;  %v15074_v2 = vld [vmem:[#allocation59_spill] sm:$0xff] }
 0x16c   : > { %15040 = vst [vmem:[#allocation16_spill] sm:$0xff] %v10063_v31  ;;  %3667 = vmatpush.bf16.msra.mxu0 %v15044_v11  ;;  %v1637_v3 = vmul.f32 %v9235_v28, %v15045_v23  ;;  %v1645_v14 = vmul.f32 %v9235_v28, %v15046_v4  ;;  %v742_v29 = vadd.f32 %v15002_v61, %v597_v9  ;;  %v15049_v9 = vld [vmem:[#allocation108_spill] sm:$0xff] }
 0x16d   : > { %v602_v48 = vmul.f32 %v14944_v39, %v15047_v34  ;;  %v1353_v45 = vadd.f32 %v1225_v47, %v1009_v55  ;;  %v1361_v17 = vadd.f32 %v1233_v38, %v1017_v43  ;;  %v1577_v26 = vmul.f32 %v15042_v40, %v9785_v46  ;;  %3908 = vmatpush.bf16.msra.mxu3 %v7487_v58  ;;  %v15052_v43 = vld [vmem:[#allocation68_spill] sm:$0xff]  ;;  %v10112_v55 = vpop.f32.mrf.mxu3  ;;  %v15054_v58 = vld [vmem:[#allocation121_spill] sm:$0xff] }
 0x16e   : > { %v1429_v37 = vadd.f32 %v1301_v8, %v1085_v44  ;;  %v1078_v25 = vadd.f32 %v950_v7, %v734_v21  ;;  %v1086_v41 = vadd.f32 %v958_v42, %v742_v29  ;;  %v1294_v32 = vmul.f32 %v14942_v5, %v15048_v36  ;;  %15053 = vst [vmem:[#allocation60_spill] sm:$0xff] %v10112_v55  ;;  %v15055_v44 = vld [vmem:[#allocation22_spill] sm:$0xff]  ;;  %v15056_v21 = vld [vmem:[#allocation109_spill] sm:$0xff] }
 0x16f   : > { %v1302_v11 = vmul.f32 %v14942_v5, %v15036_v50  ;;  %v1697_v13 = vadd.f32 %v1569_v0, %v1353_v45  ;;  %v1419_v47 = vadd.f32 %v15051_v16, %v15050_v10  ;;  %v1421_v38 = vadd.f32 %v15052_v43, %v1077_v49  ;;  %v15057_v42 = vld [vmem:[#allocation62_spill] sm:$0xff]  ;;  %v15060_v45 = vld [vmem:[#allocation113_spill] sm:$0xff]  ;;  %v15061_v50 = vld [vmem:[#allocation112_spill] sm:$0xff]  ;;  %v10129_v43 = vpop.f32.mrf.mxu1 }
 0x170   : > { %v536_v8 = vmul.f32 %v15055_v44, %v15054_v58  ;;  %v747_v29 = vadd.f32 %v15057_v42, %v602_v48  ;;  %v963_v36 = vmul.f32 %v15059_v59, %v15058_v18  ;;  %v1705_v0 = vadd.f32 %v1577_v26, %v1361_v17  ;;  %v15062_v16 = vld [vmem:[#allocation114_spill] sm:$0xff]  ;;  %15063 = vst [vmem:[#allocation27_spill] sm:$0xff] %v10129_v43  ;;  %v15064_v48 = vld [vmem:[#allocation48_spill] sm:$0xff]  ;;  %v15065_v26 = vld [vmem:[#allocation133_spill] sm:$0xff] }
 0x171   : > { %v10121_v62 = vadd.f32 %v15060_v45, %v1419_v47  ;;  %v10125_v10 = vadd.f32 %v15062_v16, %v15061_v50  ;;  %v10127_v49 = vadd.f32 %v1637_v3, %v1421_v38  ;;  %v10131_v55 = vadd.f32 %v1645_v14, %v1429_v37  ;;  %v15066_v45 = vld [vmem:[#allocation66_spill] sm:$0xff]  ;;  %v15067_v3 = vld [vmem:[#allocation67_spill] sm:$0xff]  ;;  %v10143_v16 = vpop.f32.mrf.mxu2  ;;  %v15069_v37 = vld [vmem:[#allocation124_spill] sm:$0xff] }
 0x172   : > { %v1422_v7 = vadd.f32 %v1294_v32, %v1078_v25  ;;  %v10133_v20 = vadd.f32 %v1302_v11, %v1086_v41  ;;  %v610_v56 = vmul.f32 %v14944_v39, %v15064_v48  ;;  %v1825_v17 = vmax.f32 %v1697_v13, 0.0  ;;  %15068 = vst [vmem:[#allocation32_spill] sm:$0xff] %v10143_v16  ;;  %v15070_v32 = vld [vmem:[#allocation53_spill] sm:$0xff]  ;;  %v15071_v11 = vld [vmem:[#allocation64_spill] sm:$0xff]  ;;  %v15081_v58 = vld [vmem:[#allocation87_spill] sm:$0xff] }
 0x173   : > { %v544_v47 = vmul.f32 %v15055_v44, %v15065_v26  ;;  %v971_v50 = vmul.f32 %v15059_v59, %v15066_v45  ;;  %v604_v38 = vmul.f32 %v15067_v3, %v15047_v34  ;;  %v681_v14 = vadd.f32 %v15023_v57, %v536_v8  ;;  %v15073_v8 = vld [vmem:[#allocation72_spill] sm:$0xff]  ;;  %v15077_v46 = vld [vmem:[#allocation69_spill] sm:$0xff] }
 0x174   : > { %v897_v25 = vmul.f32 %v15024_v63, %v15069_v37  ;;  %v1091_v41 = vadd.f32 %v963_v36, %v747_v29  ;;  %v1307_v13 = vmul.f32 %v15071_v11, %v15070_v32  ;;  %v1833_v43 = vmax.f32 %v1705_v0, 0.0 }
 0x175   : > { %v905_v44 = vmul.f32 %v15024_v63, %v15072_v1  ;;  %v1638_v6 = vmul.f32 %v14948_v22, %v15045_v23  ;;  %v1646_v31 = vmul.f32 %v14948_v22, %v15046_v4  ;;  %v755_v16 = vadd.f32 %v15057_v42, %v610_v56  ;;  %v3596_v15 = vpop.f32.mrf.mxu3  ;;  %v15078_v1 = vld [vmem:[#allocation134_spill] sm:$0xff] }
 0x176   : > { %v1315_v60 = vmul.f32 %v15071_v11, %v15073_v8  ;;  %v1651_v36 = vmul.f32 %v9221_v53, %v15074_v2  ;;  %v612_v29 = vmul.f32 %v15067_v3, %v15064_v48  ;;  %v10163_v0 = vpack.c.bf16 %v1833_v43, %v1825_v17  ;;  %v15079_v43 = vld [vmem:[#allocation85_spill] sm:$0xff] }
 0x177   : > { %v689_v63 = vadd.f32 %v15023_v57, %v544_v47  ;;  %v749_v23 = vadd.f32 %v15076_v12, %v604_v38  ;;  %v965_v4 = vmul.f32 %v15077_v46, %v15058_v18  ;;  %v1025_v56 = vadd.f32 %v897_v25, %v681_v14  ;;  %v15080_v57 = vld [vmem:[#allocation130_spill] sm:$0xff]  ;;  %v3645_v3 = vpop.f32.mrf.mxu1  ;;  %v15082_v14 = vld [vmem:[#allocation96_spill] sm:$0xff]  ;;  %v15083_v25 = vld [vmem:[#allocation45_spill] sm:$0xff] }
 0x178   : > { %15075 = vst [vmem:[#allocation115_spill] sm:$0xff] %v10163_v0  ;;  %v1241_v30 = vmul.f32 %v15041_v27, %v15078_v1  ;;  %v1099_v26 = vadd.f32 %v971_v50, %v755_v16  ;;  %v1435_v37 = vadd.f32 %v1307_v13, %v1091_v41  ;;  %v3597_v11 = vadd.f32 %v3596_v15, %v9779_v35  ;;  %v7470_v50 = vld [vmem:[%s14395_s3 + $0x760] sm:$0xf]  ;;  %v8140_v15 = vld [vmem:[%s14395_s3 + $0x76c] sm:$0xf0] }
 0x179   : > { %3619 = vmatmul.bf16.vlgmr.msrb.gmra.mxu0 %v10163_v0  ;;  %3727 = vmatmul.bf16.gmra.mxu3 %v15079_v43  ;;  %v1033_v17 = vadd.f32 %v905_v44, %v689_v63  ;;  %v1249_v47 = vmul.f32 %v15041_v27, %v15080_v57  ;;  %v1891_v38 = vmax.f32 %v10121_v62, 0.0  ;;  %v7150_v16 = vld [vmem:[%s14395_s3 + $0x4e0] sm:$0xf]  ;;  %v1659_v62 = vmul.f32 %v9221_v53, %v15083_v25  ;;  %v3694_v43 = vpop.f32.mrf.mxu2 }
 0x17a   : > { %3825 = vmatmul.bf16.gmra.mxu1 %v15081_v58  ;;  %3874 = vmatmul.bf16.gmra.mxu2 %v15082_v14  ;;  %v1443_v27 = vadd.f32 %v1315_v60, %v1099_v26  ;;  %v757_v41 = vadd.f32 %v15076_v12, %v612_v29  ;;  %v3646_v13 = vadd.f32 %v3645_v3, %v3597_v11  ;;  %v8060_v14 = vld [vmem:[%s14395_s3 + $0x4ec] sm:$0xf0]  ;;  %v1893_v35 = vmax.f32 %v10127_v49, 0.0 }
 0x17b   : > { %v1585_v44 = vmul.f32 %v15042_v40, %v10025_v52  ;;  %v7471_v63 = vor.u32 %v8140_v15, %v7470_v50  ;;  %v973_v58 = vmul.f32 %v15077_v46, %v15066_v45  ;;  %v7151_v0 = vor.u32 %v8060_v14, %v7150_v16 }
 0x17c   : > { %v1093_v60 = vadd.f32 %v965_v4, %v749_v23  ;;  %v1309_v26 = vmul.f32 %v9161_v51, %v15070_v32  ;;  %v1317_v3 = vmul.f32 %v9161_v51, %v15073_v8  ;;  %v10202_v11 = vadd.f32 %v3694_v43, %v3646_v13 }
 0x17d   : > { %v1369_v29 = vadd.f32 %v1241_v30, %v1025_v56  ;;  %v1377_v50 = vadd.f32 %v1249_v47, %v1033_v17  ;;  %v1593_v15 = vmul.f32 %v15042_v40, %v9984_v54  ;;  %3909 = vmatpush.bf16.msra.mxu3 %v7471_v63  ;;  %v1899_v52 = vmax.f32 %v10125_v10, 0.0  ;;  %3758 = vmatpush.bf16.msrb.mxu0 %v7151_v0  ;;  %v7134_v30 = vld [vmem:[%s14395_s3 + $0x4c0] sm:$0xf]  ;;  %v8056_v40 = vld [vmem:[%s14395_s3 + $0x4cc] sm:$0xf0] }
 0x17e   : > { %15084 = vst [vmem:[#allocation20_spill] sm:$0xff] %v10202_v11  ;;  %v1901_v23 = vmax.f32 %v10131_v55, 0.0  ;;  %v1766_v4 = vadd.f32 %v1638_v6, %v1422_v7  ;;  %v1774_v16 = vadd.f32 %v1646_v31, %v10133_v20  ;;  %v7118_v10 = vld [vmem:[%s14395_s3 + $0x4a0] sm:$0xf]  ;;  %v1787_v49 = vadd.f32 %v1659_v62, %v1443_v27  ;;  %v8052_v6 = vld [vmem:[%s14395_s3 + $0x4ac] sm:$0xf0] }
 0x17f   : > { %v1713_v14 = vadd.f32 %v1585_v44, %v1369_v29  ;;  %v1101_v56 = vadd.f32 %v973_v58, %v757_v41  ;;  %v7135_v55 = vor.u32 %v8056_v40, %v7134_v30  ;;  %v1779_v20 = vadd.f32 %v1651_v36, %v1435_v37  ;;  %v7102_v40 = vld [vmem:[%s14395_s3 + $0x480] sm:$0xf]  ;;  %v15108_v11 = vld [vmem:[#allocation64_spill] sm:$0xff] }
 0x180   : > { %v1437_v31 = vadd.f32 %v1309_v26, %v1093_v60  ;;  %v1653_v7 = vmul.f32 %v9235_v28, %v15074_v2  ;;  %v1721_v0 = vadd.f32 %v1593_v15, %v1377_v50  ;;  %v1661_v17 = vmul.f32 %v9235_v28, %v15083_v25 }
 0x181   : > { %v1445_v43 = vadd.f32 %v1317_v3, %v1101_v56  ;;  %v605_v47 = vmul.f32 %v14932_v33, %v15047_v34  ;;  %v15085_v58 = vmax.f32 %v15049_v9, 0.0  ;;  %v15086_v27 = vmax.f32 %v15056_v21, 0.0  ;;  %3759 = vmatpush.bf16.msrb.mxu0 %v7135_v55  ;;  %v15097_v55 = vld [vmem:[#allocation70_spill] sm:$0xff]  ;;  %v15112_v34 = vld [vmem:[#allocation132_spill] sm:$0xff] }
 0x182   : > { %v1894_v41 = vmax.f32 %v1766_v4, 0.0  ;;  %v7119_v37 = vor.u32 %v8052_v6, %v7118_v10  ;;  %v15088_v36 = vperm.slane %v10087_v19, 2  ;;  %v1841_v44 = vmax.f32 %v1713_v14, 0.0  ;;  %v8048_v10 = vld [vmem:[%s14395_s3 + $0x48c] sm:$0xf0] }
 0x183   : > { %v10232_v62 = vpack.c.bf16 %v15086_v27, %v15085_v58  ;;  %v10238_v63 = vpack.c.bf16 %v1899_v52, %v1891_v38  ;;  %v10240_v60 = vpack.c.bf16 %v1901_v23, %v1893_v35  ;;  %v1915_v26 = vmax.f32 %v1787_v49, 0.0  ;;  %v15094_v38 = vld [vmem:[#allocation74_spill] sm:$0xff] }
 0x184   : > { %v10236_v13 = vperm.slane %v15088_v36, 2  ;;  %v1902_v3 = vmax.f32 %v1774_v16, 0.0  ;;  %v1907_v29 = vmax.f32 %v1779_v20, 0.0  ;;  %v10242_v9 = vadd.f32 %v1653_v7, %v1437_v31  ;;  %v15098_v7 = vld [vmem:[#allocation82_spill] sm:$0xff] }
 0x185   : > { %15087 = vst [vmem:[#allocation108_spill] sm:$0xff] %v10232_v62  ;;  %v613_v21 = vmul.f32 %v14932_v33, %v15064_v48  ;;  %v1849_v50 = vmax.f32 %v1721_v0, 0.0  ;;  %v10246_v15 = vadd.f32 %v1661_v17, %v1445_v43  ;;  %v750_v4 = vadd.f32 %v15002_v61, %v605_v47  ;;  %3760 = vmatpush.bf16.msrb.mxu0 %v7119_v37  ;;  %v15099_v43 = vld [vmem:[#allocation103_spill] sm:$0xff]  ;;  %v7454_v36 = vld [vmem:[%s14395_s3 + $0x740] sm:$0xf] }
 0x186   : > { %15089 = vst [vmem:[#allocation111_spill] sm:$0xff] %v10238_v63  ;;  %v966_v14 = vmul.f32 %v15006_v24, %v15058_v18  ;;  %v10251_v52 = vpack.c.bf16 %v1902_v3, %v1894_v41  ;;  %v974_v35 = vmul.f32 %v15006_v24, %v15066_v45  ;;  %v618_v23 = vmul.f32 %v14944_v39, %v15094_v38  ;;  %v15100_v41 = vld [vmem:[#allocation106_spill] sm:$0xff]  ;;  %v15105_v17 = vld [vmem:[#allocation67_spill] sm:$0xff] }
 0x187   : > { %15090 = vst [vmem:[#allocation110_spill] sm:$0xff] %v10240_v60  ;;  %v1548_v16 = vperm.slane %v10087_v19, 3  ;;  %v10258_v30 = vpack.c.bf16 %v1849_v50, %v1841_v44  ;;  %v10266_v49 = vpack.c.bf16 %v1915_v26, %v1907_v29  ;;  %v1310_v56 = vmul.f32 %v14942_v5, %v15070_v32  ;;  %v8136_v44 = vld [vmem:[%s14395_s3 + $0x74c] sm:$0xf0]  ;;  %v7086_v26 = vld [vmem:[%s14395_s3 + $0x460] sm:$0xf] }
 0x188   : > { %15091 = vst [vmem:[#allocation68_spill] sm:$0xff] %v10242_v9  ;;  %v626_v6 = vmul.f32 %v14944_v39, %v15097_v55  ;;  %v7103_v20 = vor.u32 %v8048_v10, %v7102_v40  ;;  %v758_v31 = vadd.f32 %v15002_v61, %v613_v21  ;;  %v979_v0 = vmul.f32 %v15059_v59, %v15098_v7  ;;  %v15101_v29 = vld [vmem:[#allocation104_spill] sm:$0xff]  ;;  %v15102_v21 = vld [vmem:[#allocation105_spill] sm:$0xff]  ;;  %v15126_v9 = vld [vmem:[#allocation135_spill] sm:$0xff] }
 0x189   : > { %15092 = vst [vmem:[#allocation22_spill] sm:$0xff] %v10246_v15  ;;  %3624 = vmatmul.bf16.gmra.mxu0 %v10258_v30  ;;  %3732 = vmatmul.bf16.gmra.mxu3 %v15099_v43  ;;  %v1094_v47 = vadd.f32 %v966_v14, %v750_v4  ;;  %v1318_v58 = vmul.f32 %v14942_v5, %v15073_v8  ;;  %v15103_v4 = vld [vmem:[#allocation121_spill] sm:$0xff]  ;;  %v15104_v14 = vld [vmem:[#allocation23_spill] sm:$0xff]  ;;  %v8044_v10 = vld [vmem:[%s14395_s3 + $0x46c] sm:$0xf0] }
 0x18a   : > { %15093 = vst [vmem:[#allocation109_spill] sm:$0xff] %v10251_v52  ;;  %v1654_v27 = vmul.f32 %v14948_v22, %v15074_v2  ;;  %3830 = vmatmul.bf16.gmra.mxu1 %v15100_v41  ;;  %3879 = vmatmul.bf16.gmra.mxu2 %v10232_v62  ;;  %v1102_v37 = vadd.f32 %v974_v35, %v758_v31  ;;  %v15106_v41 = vld [vmem:[#allocation73_spill] sm:$0xff]  ;;  %v15107_v43 = vld [vmem:[#allocation84_spill] sm:$0xff] }
 0x18b   : > { %15095 = vst [vmem:[#allocation113_spill] sm:$0xff] %v10258_v30  ;;  %v763_v3 = vadd.f32 %v15057_v42, %v618_v23  ;;  %v531_v50 = vmul.f32 %v15102_v21, %v15101_v29  ;;  %3761 = vmatpush.bf16.msrb.mxu0 %v7103_v20  ;;  %v537_v35 = vmul.f32 %v15104_v14, %v15103_v4  ;;  %v7070_v23 = vld [vmem:[%s14395_s3 + $0x440] sm:$0xf]  ;;  %v8040_v20 = vld [vmem:[%s14395_s3 + $0x44c] sm:$0xf0]  ;;  %v15110_v32 = vld [vmem:[#allocation97_spill] sm:$0xff] }
 0x18c   : > { %15096 = vst [vmem:[#allocation112_spill] sm:$0xff] %v10266_v49  ;;  %v7455_v40 = vor.u32 %v8136_v44, %v7454_v36  ;;  %v771_v31 = vadd.f32 %v15057_v42, %v626_v6  ;;  %v620_v19 = vmul.f32 %v15105_v17, %v15094_v38  ;;  %v7087_v62 = vor.u32 %v8044_v10, %v7086_v26  ;;  %v15109_v6 = vld [vmem:[#allocation71_spill] sm:$0xff]  ;;  %v15114_v30 = vld [vmem:[#allocation58_spill] sm:$0xff]  ;;  %v15115_v4 = vld [vmem:[#allocation29_spill] sm:$0xff] }
 0x18d   : > { %v987_v36 = vmul.f32 %v15059_v59, %v15106_v41  ;;  %v1107_v44 = vadd.f32 %v979_v0, %v763_v3  ;;  %v1323_v2 = vmul.f32 %v15108_v11, %v15107_v43  ;;  %v10317_v8 = vmul.f32 %v15110_v32, %v15109_v6  ;;  %v15113_v3 = vld [vmem:[#allocation107_spill] sm:$0xff]  ;;  %v15116_v6 = vld [vmem:[#allocation124_spill] sm:$0xff] }
 0x18e   : > { %3910 = vmatpush.bf16.msra.mxu3 %v7455_v40  ;;  %v10319_v26 = vperm.slane %v1548_v16, 3  ;;  %v628_v10 = vmul.f32 %v15105_v17, %v15097_v55  ;;  %v981_v45 = vmul.f32 %v15077_v46, %v15098_v7  ;;  %v1438_v18 = vadd.f32 %v1310_v56, %v1094_v47  ;;  %v7054_v56 = vld [vmem:[%s14395_s3 + $0x420] sm:$0xf]  ;;  %v8036_v47 = vld [vmem:[%s14395_s3 + $0x42c] sm:$0xf0] }
 0x18f   : > { %15111 = vst [vmem:[#allocation114_spill] sm:$0xff] %v10317_v8  ;;  %v1446_v48 = vadd.f32 %v1318_v58, %v1102_v37  ;;  %v676_v0 = vadd.f32 %v15112_v34, %v531_v50  ;;  %v892_v21 = vmul.f32 %v15114_v30, %v15113_v3  ;;  %v682_v49 = vadd.f32 %v15115_v4, %v537_v35  ;;  %v15117_v8 = vld [vmem:[#allocation30_spill] sm:$0xff]  ;;  %v10347_v34 = vpop.f32.mrf.mxu3  ;;  %v15121_v30 = vld [vmem:[#allocation133_spill] sm:$0xff] }
 0x190   : > { %v898_v40 = vmul.f32 %v15117_v8, %v15116_v6  ;;  %3762 = vmatpush.bf16.msrb.mxu0 %v7087_v62  ;;  %v7071_v16 = vor.u32 %v8040_v20, %v7070_v23  ;;  %v765_v59 = vadd.f32 %v15076_v12, %v620_v19  ;;  %v1662_v42 = vmul.f32 %v14948_v22, %v15083_v25  ;;  %v15118_v37 = vld [vmem:[#allocation86_spill] sm:$0xff]  ;;  %v15119_v62 = vld [vmem:[#allocation79_spill] sm:$0xff] }
 0x191   : > { %v1115_v58 = vadd.f32 %v987_v36, %v771_v31  ;;  %v1331_v50 = vmul.f32 %v15108_v11, %v15118_v37  ;;  %v1451_v35 = vadd.f32 %v1323_v2, %v1107_v44  ;;  %v1667_v23 = vmul.f32 %v9221_v53, %v15119_v62  ;;  %15120 = vst [vmem:[#allocation69_spill] sm:$0xff] %v10347_v34  ;;  %v15122_v31 = vld [vmem:[#allocation102_spill] sm:$0xff]  ;;  %v15123_v11 = vld [vmem:[#allocation31_spill] sm:$0xff]  ;;  %v10359_v34 = vpop.f32.mrf.mxu1 }
 0x192   : > { %v773_v19 = vadd.f32 %v15076_v12, %v628_v10  ;;  %v1109_v20 = vadd.f32 %v981_v45, %v765_v59  ;;  %v1325_v25 = vmul.f32 %v9161_v51, %v15107_v43  ;;  %v545_v6 = vmul.f32 %v15104_v14, %v15121_v30  ;;  %v15124_v45 = vld [vmem:[#allocation89_spill] sm:$0xff]  ;;  %15125 = vst [vmem:[#allocation130_spill] sm:$0xff] %v10359_v34 }
 0x193   : > { %v1020_v15 = vadd.f32 %v892_v21, %v676_v0  ;;  %v1236_v36 = vmul.f32 %v10236_v13, %v15122_v31  ;;  %v989_v2 = vmul.f32 %v15077_v46, %v15106_v41  ;;  %v1026_v44 = vadd.f32 %v898_v40, %v682_v49 }
 0x194   : > { %v1242_v10 = vmul.f32 %v15123_v11, %v15078_v1  ;;  %3763 = vmatpush.bf16.msrb.mxu0 %v7071_v16  ;;  %v7055_v59 = vor.u32 %v8036_v47, %v7054_v56  ;;  %v1675_v12 = vmul.f32 %v9221_v53, %v15124_v45  ;;  %v906_v21 = vmul.f32 %v15117_v8, %v15126_v9  ;;  %v10373_v47 = vpop.f32.mrf.mxu2  ;;  %v15128_v8 = vld [vmem:[#allocation118_spill] sm:$0xff] }
 0x195   : > { %v10363_v14 = vadd.f32 %v1654_v27, %v1438_v18  ;;  %v10365_v0 = vadd.f32 %v1662_v42, %v1446_v48  ;;  %v1333_v49 = vmul.f32 %v9161_v51, %v15118_v37  ;;  %v1459_v40 = vadd.f32 %v1331_v50, %v1115_v58  ;;  %15127 = vst [vmem:[#allocation104_spill] sm:$0xff] %v10373_v47  ;;  %v15129_v47 = vld [vmem:[#allocation117_spill] sm:$0xff] }
 0x196   : > { %v1453_v31 = vadd.f32 %v1325_v25, %v1109_v20  ;;  %v1669_v16 = vmul.f32 %v9235_v28, %v15119_v62  ;;  %v621_v56 = vmul.f32 %v14932_v33, %v15094_v38  ;;  %v690_v34 = vadd.f32 %v15115_v4, %v545_v6  ;;  %v15130_v38 = vld [vmem:[#allocation28_spill] sm:$0xff] }
 0x197   : > { %v1228_v18 = vmul.f32 %v10236_v13, %v15128_v8  ;;  %v1364_v42 = vadd.f32 %v1236_v36, %v1020_v15  ;;  %v1117_v48 = vadd.f32 %v989_v2, %v773_v19  ;;  %v1370_v27 = vadd.f32 %v1242_v10, %v1026_v44  ;;  %v8032_v19 = vld [vmem:[%s14395_s3 + $0x40c] sm:$0xf0]  ;;  %v15132_v44 = vld [vmem:[#allocation122_spill] sm:$0xff] }
 0x198   : > { %3764 = vmatpush.bf16.msrb.mxu0 %v7055_v59  ;;  %v10378_v1 = vadd.f32 %v1667_v23, %v1451_v35  ;;  %v10380_v25 = vadd.f32 %v1675_v12, %v1459_v40  ;;  %v629_v58 = vmul.f32 %v14932_v33, %v15097_v55  ;;  %v1034_v50 = vadd.f32 %v906_v21, %v690_v34  ;;  %v7038_v23 = vld [vmem:[%s14395_s3 + $0x400] sm:$0xf]  ;;  %v15131_v36 = vld [vmem:[#allocation136_spill] sm:$0xff]  ;;  %v15134_v40 = vld [vmem:[#allocation7_spill] sm:$0xff] }
 0x199   : > { %v1250_v20 = vmul.f32 %v15123_v11, %v15080_v57  ;;  %v1580_v4 = vmul.f32 %v10319_v26, %v15129_v47  ;;  %v1461_v6 = vadd.f32 %v1333_v49, %v1117_v48  ;;  %3668 = vmatmul.bf16.vlgmr.msra.gmra.mxu0 %v15130_v38  ;;  %3737 = vmatmul.bf16.gmra.mxu3 %v10238_v63  ;;  %v3601_v11 = vpop.f32.mrf.mxu3  ;;  %v7438_v59 = vld [vmem:[%s14395_s3 + $0x720] sm:$0xf]  ;;  %v15133_v21 = vld [vmem:[#allocation116_spill] sm:$0xff] }
 0x19a   : > { %v1677_v12 = vmul.f32 %v9235_v28, %v15124_v45  ;;  %v10393_v35 = vadd.f32 %v1669_v16, %v1453_v31  ;;  %v766_v34 = vadd.f32 %v15002_v61, %v621_v56  ;;  %3835 = vmatmul.bf16.gmra.mxu1 %v10240_v60  ;;  %3884 = vmatmul.bf16.gmra.mxu2 %v10251_v52  ;;  %v15135_v16 = vld [vmem:[#allocation34_spill] sm:$0xff]  ;;  %v6896_v63 = vld [vmem:[%s14395_s3 + $0x2f0] sm:$0xf0] }
 0x19b   : > { %v1356_v2 = vadd.f32 %v1228_v18, %v15131_v36  ;;  %v1572_v31 = vmul.f32 %v10319_v26, %v15132_v44  ;;  %v1708_v10 = vadd.f32 %v1580_v4, %v1364_v42  ;;  %v3602_v49 = vadd.f32 %v3601_v11, %v15133_v21  ;;  %v8132_v18 = vld [vmem:[%s14395_s3 + $0x72c] sm:$0xf0]  ;;  %v7962_v42 = vld [vmem:[%s14395_s3 + $0x1e4] sm:$0xf]  ;;  %v6768_v4 = vld [vmem:[%s14395_s3 + $0x1f0] sm:$0xf0]  ;;  %v3650_v11 = vpop.f32.mrf.mxu1 }
 0x19c   : > { %v1586_v56 = vmul.f32 %v15135_v16, %v15134_v40  ;;  %v7039_v48 = vor.u32 %v8032_v19, %v7038_v23  ;;  %v982_v15 = vmul.f32 %v15006_v24, %v15098_v7  ;;  %v1378_v36 = vadd.f32 %v1250_v20, %v1034_v50  ;;  %v7994_v19 = vld [vmem:[%s14395_s3 + $0x2e4] sm:$0xf]  ;;  %v3699_v44 = vpop.f32.mrf.mxu2 }
 0x19d   : > { %v1700_v52 = vadd.f32 %v1572_v31, %v1356_v2  ;;  %v7439_v60 = vor.u32 %v8132_v18, %v7438_v59  ;;  %v6771_v23 = vor.u32 %v7962_v42, %v6768_v4  ;;  %v3651_v7 = vadd.f32 %v3650_v11, %v3602_v49  ;;  %v7954_v42 = vld [vmem:[%s14395_s3 + $0x1a4] sm:$0xf] }
 0x19e   : > { %v1594_v55 = vmul.f32 %v15135_v16, %v9984_v54  ;;  %3765 = vmatpush.bf16.msrb.mxu0 %v7039_v48  ;;  %v1805_v38 = vadd.f32 %v1677_v12, %v1461_v6  ;;  %v6899_v47 = vor.u32 %v7994_v19, %v6896_v63  ;;  %v1836_v20 = vmax.f32 %v1708_v10, 0.0  ;;  %v6880_v48 = vld [vmem:[%s14395_s3 + $0x2d0] sm:$0xf0] }
 0x19f   : > { %v1828_v50 = vmax.f32 %v1700_v52, 0.0  ;;  %v774_v2 = vadd.f32 %v15002_v61, %v629_v58  ;;  %v990_v31 = vmul.f32 %v15006_v24, %v15106_v41  ;;  %3911 = vmatpush.bf16.msra.mxu3 %v7439_v60  ;;  %4003 = vmatpush.bf16.msra.mxu1 %v6771_v23  ;;  %v10435_v59 = vadd.f32 %v3699_v44, %v3651_v7  ;;  %v7986_v23 = vld [vmem:[%s14395_s3 + $0x2a4] sm:$0xf]  ;;  %v6864_v19 = vld [vmem:[%s14395_s3 + $0x2b0] sm:$0xf0] }
 0x1a0   : > { %v1714_v18 = vadd.f32 %v1586_v56, %v1370_v27  ;;  %v1110_v49 = vadd.f32 %v982_v15, %v766_v34  ;;  %v1326_v16 = vmul.f32 %v14942_v5, %v15107_v43  ;;  %4052 = vmatpush.bf16.msra.mxu2 %v6899_v47  ;;  %v1918_v63 = vmax.f32 %v10365_v0, 0.0  ;;  %v15138_v15 = vld [vmem:[#allocation100_spill] sm:$0xff] }
 0x1a1   : > { %15136 = vst [vmem:[#allocation23_spill] sm:$0xff] %v10435_v59  ;;  %v1923_v52 = vmax.f32 %v10378_v1, 0.0  ;;  %v10441_v6 = vpack.c.bf16 %v1836_v20, %v1828_v50  ;;  %v1334_v58 = vmul.f32 %v14942_v5, %v15118_v37  ;;  %v1722_v12 = vadd.f32 %v1594_v55, %v1378_v36  ;;  %v15139_v34 = vld [vmem:[#allocation16_spill] sm:$0xff]  ;;  %v7958_v55 = vld [vmem:[%s14395_s3 + $0x1c4] sm:$0xf]  ;;  %v15140_v50 = vld [vmem:[#allocation91_spill] sm:$0xff] }
 0x1a2   : > { %v1931_v60 = vmax.f32 %v10380_v25, 0.0  ;;  %v1925_v7 = vmax.f32 %v10393_v35, 0.0  ;;  %v1933_v27 = vmax.f32 %v1805_v38, 0.0  ;;  %v10449_v44 = vmul.f32 %v15139_v34, %v15138_v15  ;;  %v6752_v38 = vld [vmem:[%s14395_s3 + $0x1d0] sm:$0xf0] }
 0x1a3   : > { %15137 = vst [vmem:[#allocation67_spill] sm:$0xff] %v10441_v6  ;;  %v10453_v0 = vmul.f32 %v15139_v34, %v15113_v3  ;;  %v1118_v1 = vadd.f32 %v990_v31, %v774_v2  ;;  %v1678_v47 = vmul.f32 %v14948_v22, %v15124_v45  ;;  %v7990_v25 = vld [vmem:[%s14395_s3 + $0x2c4] sm:$0xf]  ;;  %v1842_v35 = vmax.f32 %v1714_v18, 0.0  ;;  %v6736_v36 = vld [vmem:[%s14395_s3 + $0x1b0] sm:$0xf0] }
 0x1a4   : > { %v1454_v10 = vadd.f32 %v1326_v16, %v1110_v49  ;;  %v1670_v3 = vmul.f32 %v14948_v22, %v15119_v62  ;;  %v6755_v56 = vor.u32 %v7958_v55, %v6752_v38  ;;  %v6883_v11 = vor.u32 %v7990_v25, %v6880_v48  ;;  %v15141_v49 = vld [vmem:[#allocation68_spill] sm:$0xff] }
 0x1a5   : > { %v1462_v4 = vadd.f32 %v1334_v58, %v1118_v1  ;;  %v642_v20 = vmul.f32 %v14944_v39, %v15140_v50  ;;  %v644_v2 = vmul.f32 %v15105_v17, %v15140_v50  ;;  %v10489_v31 = vmul.f32 %v15110_v32, %v15101_v29  ;;  %v15143_v58 = vld [vmem:[#allocation22_spill] sm:$0xff]  ;;  %v15150_v29 = vld [vmem:[#allocation83_spill] sm:$0xff] }
 0x1a6   : > { %v1850_v18 = vmax.f32 %v1722_v12, 0.0  ;;  %v15142_v16 = vmax.f32 %v15141_v49, 0.0  ;;  %v15144_v15 = vmax.f32 %v15143_v58, 0.0  ;;  %v15146_v55 = vmax.f32 %v10363_v14, 0.0  ;;  %4004 = vmatpush.bf16.msra.mxu1 %v6755_v56  ;;  %4053 = vmatpush.bf16.msra.mxu2 %v6883_v11  ;;  %v7950_v14 = vld [vmem:[%s14395_s3 + $0x184] sm:$0xf] }
 0x1a7   : > { %v10501_v25 = vpack.c.bf16 %v1931_v60, %v1923_v52  ;;  %v10503_v48 = vpack.c.bf16 %v1933_v27, %v1925_v7  ;;  %v1806_v59 = vadd.f32 %v1678_v47, %v1462_v4  ;;  %v634_v12 = vmul.f32 %v14944_v39, %v15150_v29  ;;  %v7982_v52 = vld [vmem:[%s14395_s3 + $0x284] sm:$0xf]  ;;  %v6848_v39 = vld [vmem:[%s14395_s3 + $0x290] sm:$0xf0]  ;;  %v15154_v47 = vld [vmem:[#allocation63_spill] sm:$0xff] }
 0x1a8   : > { %v10495_v1 = vpack.c.bf16 %v15144_v15, %v15142_v16  ;;  %v10499_v38 = vpack.c.bf16 %v1918_v63, %v15146_v55  ;;  %v10507_v62 = vpack.c.bf16 %v1850_v18, %v1842_v35  ;;  %v1798_v49 = vadd.f32 %v1670_v3, %v1454_v10  ;;  %v6720_v63 = vld [vmem:[%s14395_s3 + $0x190] sm:$0xf0]  ;;  %v15152_v60 = vld [vmem:[#allocation62_spill] sm:$0xff]  ;;  %v15155_v10 = vld [vmem:[#allocation65_spill] sm:$0xff] }
 0x1a9   : > { %15148 = vst [vmem:[#allocation107_spill] sm:$0xff] %v10501_v25  ;;  %v6739_v58 = vor.u32 %v7954_v42, %v6736_v36  ;;  %v6867_v16 = vor.u32 %v7986_v23, %v6864_v19  ;;  %v787_v7 = vadd.f32 %v15152_v60, %v642_v20  ;;  %v15153_v27 = vld [vmem:[#allocation88_spill] sm:$0xff]  ;;  %v789_v3 = vadd.f32 %v15155_v10, %v644_v2  ;;  %v15157_v23 = vld [vmem:[#allocation131_spill] sm:$0xff] }
 0x1aa   : > { %15145 = vst [vmem:[#allocation71_spill] sm:$0xff] %v10495_v1  ;;  %v1003_v35 = vmul.f32 %v15154_v47, %v15153_v27  ;;  %v1005_v56 = vmul.f32 %v15077_v46, %v15153_v27  ;;  %3673 = vmatmul.bf16.gmra.mxu0 %v10507_v62  ;;  %v15156_v42 = vld [vmem:[#allocation112_spill] sm:$0xff]  ;;  %v636_v4 = vmul.f32 %v15105_v17, %v15150_v29  ;;  %v10536_v19 = vperm.slane %v15157_v23, 7  ;;  %v15158_v18 = vld [vmem:[#allocation95_spill] sm:$0xff] }
 0x1ab   : > { %15147 = vst [vmem:[#allocation97_spill] sm:$0xff] %v10499_v38  ;;  %3742 = vmatmul.bf16.gmra.mxu3 %v15156_v42  ;;  %v637_v11 = vmul.f32 %v14932_v33, %v15150_v29  ;;  %v645_v36 = vmul.f32 %v14932_v33, %v15140_v50  ;;  %3840 = vmatmul.bf16.gmra.mxu1 %v10495_v1  ;;  %v1934_v20 = vmax.f32 %v1806_v59, 0.0  ;;  %v7422_v33 = vld [vmem:[%s14395_s3 + $0x700] sm:$0xf]  ;;  %v8128_v55 = vld [vmem:[%s14395_s3 + $0x70c] sm:$0xf0] }
 0x1ac   : > { %15149 = vst [vmem:[#allocation29_spill] sm:$0xff] %v10503_v48  ;;  %3889 = vmatmul.bf16.gmra.mxu2 %v10499_v38  ;;  %v779_v2 = vadd.f32 %v15152_v60, %v634_v12  ;;  %v995_v15 = vmul.f32 %v15154_v47, %v15158_v18  ;;  %v997_v17 = vmul.f32 %v15077_v46, %v15158_v18  ;;  %v1926_v23 = vmax.f32 %v1798_v49, 0.0  ;;  %v15159_v12 = vld [vmem:[#allocation90_spill] sm:$0xff]  ;;  %v15160_v60 = vld [vmem:[#allocation64_spill] sm:$0xff] }
 0x1ad   : > { %15151 = vst [vmem:[#allocation30_spill] sm:$0xff] %v10507_v62  ;;  %4005 = vmatpush.bf16.msra.mxu1 %v6739_v58  ;;  %4054 = vmatpush.bf16.msra.mxu2 %v6867_v16  ;;  %v6723_v59 = vor.u32 %v7950_v14, %v6720_v63  ;;  %v6851_v38 = vor.u32 %v7982_v52, %v6848_v39  ;;  %v7946_v46 = vld [vmem:[%s14395_s3 + $0x164] sm:$0xf]  ;;  %v6704_v49 = vld [vmem:[%s14395_s3 + $0x170] sm:$0xf0]  ;;  %v10567_v14 = vpop.f32.mrf.mxu3 }
 0x1ae   : > { %v1347_v1 = vmul.f32 %v15160_v60, %v15159_v12  ;;  %v1131_v47 = vadd.f32 %v1003_v35, %v787_v7  ;;  %v1133_v42 = vadd.f32 %v1005_v56, %v789_v3  ;;  %v1349_v29 = vmul.f32 %v9161_v51, %v15159_v12  ;;  %v7978_v58 = vld [vmem:[%s14395_s3 + $0x264] sm:$0xf]  ;;  %v6832_v16 = vld [vmem:[%s14395_s3 + $0x270] sm:$0xf0]  ;;  %15161 = vst [vmem:[#allocation31_spill] sm:$0xff] %v10567_v14  ;;  %v15163_v56 = vld [vmem:[#allocation99_spill] sm:$0xff]  ;;  %v10580_v14 = vpop.f32.mrf.mxu1 }
 0x1af   : > { %v7423_v50 = vor.u32 %v8128_v55, %v7422_v33  ;;  %v781_v63 = vadd.f32 %v15155_v10, %v636_v4  ;;  %v790_v52 = vadd.f32 %v15002_v61, %v645_v36  ;;  %v998_v39 = vmul.f32 %v15006_v24, %v15158_v18  ;;  %15164 = vst [vmem:[#allocation136_spill] sm:$0xff] %v10580_v14  ;;  %v15165_v10 = vld [vmem:[#allocation121_spill] sm:$0xff] }
 0x1b0   : > { %v1006_v7 = vmul.f32 %v15006_v24, %v15153_v27  ;;  %v10575_v35 = vpack.c.bf16 %v1934_v20, %v1926_v23  ;;  %v1123_v3 = vadd.f32 %v995_v15, %v779_v2  ;;  %v1339_v33 = vmul.f32 %v15160_v60, %v15163_v56  ;;  %v15166_v4 = vld [vmem:[#allocation105_spill] sm:$0xff]  ;;  %v7942_v24 = vld [vmem:[%s14395_s3 + $0x144] sm:$0xf]  ;;  %v6688_v15 = vld [vmem:[%s14395_s3 + $0x150] sm:$0xf0] }
 0x1b1   : > { %v782_v55 = vadd.f32 %v15002_v61, %v637_v11  ;;  %3912 = vmatpush.bf16.msra.mxu3 %v7423_v50  ;;  %4006 = vmatpush.bf16.msra.mxu1 %v6723_v59  ;;  %v539_v36 = vmul.f32 %v15166_v4, %v15165_v10  ;;  %v6707_v18 = vor.u32 %v7946_v46, %v6704_v49  ;;  %v8391_v20 = vld [vmem:[%s14393_s1 + $0x18] sm:$0xff]  ;;  %v7974_v23 = vld [vmem:[%s14395_s3 + $0x244] sm:$0xf]  ;;  %v6816_v59 = vld [vmem:[%s14395_s3 + $0x250] sm:$0xf0] }
 0x1b2   : > { %15162 = vst [vmem:[#allocation118_spill] sm:$0xff] %v10575_v35  ;;  %4055 = vmatpush.bf16.msra.mxu2 %v6851_v38  ;;  %v6835_v45 = vor.u32 %v7978_v58, %v6832_v16  ;;  %v1207_v2 = vperm.slane %v8391_v20, 6  ;;  %v10590_v61 = vadd.f32 %v1347_v1, %v1131_v47  ;;  %v1125_v50 = vadd.f32 %v997_v17, %v781_v63  ;;  %v10605_v1 = vpop.f32.mrf.mxu2  ;;  %v15168_v47 = vld [vmem:[#allocation124_spill] sm:$0xff]  ;;  %v15169_v49 = vld [vmem:[#allocation58_spill] sm:$0xff] }
 0x1b3   : > { %v1341_v38 = vmul.f32 %v9161_v51, %v15163_v56  ;;  %v10594_v11 = vadd.f32 %v1349_v29, %v1133_v42  ;;  %15167 = vst [vmem:[#allocation34_spill] sm:$0xff] %v10605_v1  ;;  %v1126_v17 = vadd.f32 %v998_v39, %v782_v55  ;;  %v10607_v60 = vadd.f32 %v1006_v7, %v790_v52  ;;  %v15170_v63 = vld [vmem:[#allocation132_spill] sm:$0xff]  ;;  %v15171_v55 = vld [vmem:[#allocation98_spill] sm:$0xff] }
 0x1b4   : > { %v1342_v51 = vmul.f32 %v14942_v5, %v15163_v56  ;;  %v10613_v29 = vmul.f32 %v14942_v5, %v15159_v12  ;;  %v10615_v42 = vadd.f32 %v1339_v33, %v1123_v3  ;;  %v547_v46 = vmul.f32 %v15166_v4, %v15121_v30  ;;  %v7938_v5 = vld [vmem:[%s14395_s3 + $0x124] sm:$0xf]  ;;  %v6672_v3 = vld [vmem:[%s14395_s3 + $0x130] sm:$0xf0] }
 0x1b5   : > { %v900_v58 = vmul.f32 %v15169_v49, %v15168_v47  ;;  %v1551_v16 = vperm.slane %v8391_v20, 7  ;;  %v684_v39 = vadd.f32 %v15170_v63, %v539_v36  ;;  %4007 = vmatpush.bf16.msra.mxu1 %v6707_v18  ;;  %v6691_v52 = vor.u32 %v7942_v24, %v6688_v15  ;;  %v7970_v24 = vld [vmem:[%s14395_s3 + $0x224] sm:$0xf]  ;;  %v6800_v20 = vld [vmem:[%s14395_s3 + $0x230] sm:$0xf0]  ;;  %v3606_v15 = vpop.f32.mrf.mxu3 }
 0x1b6   : > { %4056 = vmatpush.bf16.msra.mxu2 %v6835_v45  ;;  %v6819_v7 = vor.u32 %v7974_v23, %v6816_v59  ;;  %v10628_v33 = vperm.slane %v1207_v2, 2  ;;  %v10632_v1 = vmul.f32 %v9221_v53, %v15171_v55  ;;  %v908_v18 = vmul.f32 %v15169_v49, %v15126_v9  ;;  %v7934_v2 = vld [vmem:[%s14395_s3 + $0x104] sm:$0xf]  ;;  %v15172_v23 = vld [vmem:[#allocation101_spill] sm:$0xff]  ;;  %v6656_v56 = vld [vmem:[%s14395_s3 + $0x110] sm:$0xf0] }
 0x1b7   : > { %v10636_v45 = vadd.f32 %v1341_v38, %v1125_v50  ;;  %v10640_v36 = vmul.f32 %v9235_v28, %v15171_v55  ;;  %v1691_v50 = vmul.f32 %v9221_v53, %v15172_v23  ;;  %v15173_v38 = vld [vmem:[#allocation134_spill] sm:$0xff]  ;;  %v1693_v14 = vmul.f32 %v9235_v28, %v15172_v23  ;;  %v6784_v53 = vld [vmem:[%s14395_s3 + $0x210] sm:$0xf0] }
 0x1b8   : > { %v1244_v59 = vmul.f32 %v10236_v13, %v15173_v38  ;;  %v10657_v12 = vadd.f32 %v1342_v51, %v1126_v17  ;;  %v7966_v27 = vld [vmem:[%s14395_s3 + $0x204] sm:$0xf]  ;;  %v3607_v37 = vadd.f32 %v3606_v15, %v15133_v21  ;;  %v692_v43 = vadd.f32 %v15170_v63, %v547_v46  ;;  %v3655_v51 = vpop.f32.mrf.mxu1 }
 0x1b9   : > { %v1252_v28 = vmul.f32 %v10236_v13, %v15080_v57  ;;  %v1588_v17 = vmul.f32 %v10319_v26, %v15134_v40  ;;  %v1028_v41 = vadd.f32 %v900_v58, %v684_v39  ;;  %4008 = vmatpush.bf16.msra.mxu1 %v6691_v52  ;;  %v6675_v62 = vor.u32 %v7938_v5, %v6672_v3  ;;  %v15174_v46 = vld [vmem:[#allocation114_spill] sm:$0xff]  ;;  %v15177_v5 = vld [vmem:[#allocation117_spill] sm:$0xff] }
 0x1ba   : > { %4057 = vmatpush.bf16.msra.mxu2 %v6819_v7  ;;  %v6803_v38 = vor.u32 %v7970_v24, %v6800_v20  ;;  %v10674_v9 = vperm.slane %v1551_v16, 3  ;;  %v3656_v34 = vadd.f32 %v3655_v51, %v3607_v37  ;;  %v1036_v47 = vadd.f32 %v908_v18, %v692_v43  ;;  %v3704_v21 = vpop.f32.mrf.mxu2  ;;  %3766 = vmatmul.bf16.vlgmr.msrb.gmra.mxu0 %v10441_v6  ;;  %v7930_v43 = vld [vmem:[%s14395_s3 + $0xe4] sm:$0xf]  ;;  %v6640_v37 = vld [vmem:[%s14395_s3 + $0xf0] sm:$0xf0] }
 0x1bb   : > { %v6659_v30 = vor.u32 %v7934_v2, %v6656_v56  ;;  %v6787_v15 = vor.u32 %v7966_v27, %v6784_v53  ;;  %3747 = vmatmul.bf16.gmra.mxu3 %v10501_v25  ;;  %v671_v40 = vadd.f32 %v10536_v19, %v15174_v46  ;;  %v679_v58 = vadd.f32 %v10536_v19, %v10489_v31  ;;  %v15175_v56 = vld [vmem:[#allocation102_spill] sm:$0xff]  ;;  %v7024_v7 = vld [vmem:[%s14395_s3 + $0x3f0] sm:$0xf0] }
 0x1bc   : > { %v1231_v39 = vmul.f32 %v10628_v33, %v15128_v8  ;;  %v10690_v27 = vadd.f32 %v3704_v21, %v3656_v34  ;;  %3845 = vmatmul.bf16.gmra.mxu1 %v10503_v48  ;;  %3894 = vmatmul.bf16.gmra.mxu2 %v10575_v35  ;;  %v1239_v31 = vmul.f32 %v10628_v33, %v15175_v56  ;;  %v15176_v16 = vld [vmem:[#allocation122_spill] sm:$0xff] }
 0x1bd   : > { %v1575_v8 = vmul.f32 %v10674_v9, %v15176_v16  ;;  %v8026_v52 = vld [vmem:[%s14395_s3 + $0x3e4] sm:$0xf]  ;;  %4009 = vmatpush.bf16.msra.mxu1 %v6675_v62  ;;  %v1015_v21 = vadd.f32 %v10449_v44, %v671_v40  ;;  %v1023_v34 = vadd.f32 %v10453_v0, %v679_v58  ;;  %v1583_v3 = vmul.f32 %v10674_v9, %v15177_v5  ;;  %v15186_v5 = vld [vmem:[#allocation13_spill] sm:$0xff] }
 0x1be   : > { %4058 = vmatpush.bf16.msra.mxu2 %v6803_v38  ;;  %v1596_v18 = vmul.f32 %v10319_v26, %v9984_v54  ;;  %v1694_v24 = vmul.f32 %v14948_v22, %v15172_v23  ;;  %v6643_v20 = vor.u32 %v7930_v43, %v6640_v37  ;;  %v7027_v2 = vor.u32 %v8026_v52, %v7024_v7 }
 0x1bf   : > { %v1372_v53 = vadd.f32 %v1244_v59, %v1028_v41  ;;  %v1380_v51 = vadd.f32 %v1252_v28, %v1036_v47  ;;  %v1359_v46 = vadd.f32 %v1231_v39, %v1015_v21  ;;  %v1367_v62 = vadd.f32 %v1239_v31, %v1023_v34  ;;  %v15178_v59 = vld [vmem:[#allocation9_spill] sm:$0xff]  ;;  %v15179_v39 = vld [vmem:[#allocation14_spill] sm:$0xff] }
 0x1c0   : > { %v1819_v38 = vadd.f32 %v1691_v50, %v10590_v61  ;;  %v1478_v40 = vadd.f32 %v10613_v29, %v10607_v60  ;;  %v1686_v44 = vmul.f32 %v14948_v22, %v15171_v55  ;;  %3954 = vmatpush.bf16.msra.mxu0 %v6643_v20  ;;  %4101 = vmatpush.bf16.msrb.mxu3 %v7027_v2  ;;  %v6624_v20 = vld [vmem:[%s14395_s3 + $0xd0] sm:$0xf0]  ;;  %v8022_v2 = vld [vmem:[%s14395_s3 + $0x3c4] sm:$0xf] }
 0x1c1   : > { %v1716_v0 = vadd.f32 %v1588_v17, %v1372_v53  ;;  %4010 = vmatpush.bf16.msra.mxu1 %v6659_v30  ;;  %v1703_v58 = vadd.f32 %v1575_v8, %v1359_v46  ;;  %v1711_v43 = vadd.f32 %v1583_v3, %v1367_v62  ;;  %v1821_v41 = vadd.f32 %v1693_v14, %v10594_v11  ;;  %v7008_v53 = vld [vmem:[%s14395_s3 + $0x3d0] sm:$0xf0]  ;;  %v15187_v46 = vld [vmem:[#allocation2_spill] sm:$0xff] }
 0x1c2   : > { %4059 = vmatpush.bf16.msra.mxu2 %v6787_v15  ;;  %v1822_v47 = vadd.f32 %v1694_v24, %v1478_v40  ;;  %v555_v28 = vmul.f32 %v15166_v4, %v15178_v59  ;;  %v1811_v61 = vadd.f32 %v10632_v1, %v10615_v42  ;;  %v1724_v60 = vadd.f32 %v1596_v18, %v1380_v51  ;;  %v7926_v24 = vld [vmem:[%s14395_s3 + $0xc4] sm:$0xf] }
 0x1c3   : > { %v1831_v29 = vmax.f32 %v1703_v58, 0.0  ;;  %v1839_v50 = vmax.f32 %v1711_v43, 0.0  ;;  %v1813_v22 = vadd.f32 %v10640_v36, %v10636_v45  ;;  %v1814_v30 = vadd.f32 %v1686_v44, %v10657_v12  ;;  %v15183_v36 = vld [vmem:[#allocation8_spill] sm:$0xff]  ;;  %v10763_v58 = vpop.f32.mrf.mxu1  ;;  %v15190_v43 = vld [vmem:[#allocation3_spill] sm:$0xff] }
 0x1c4   : > { %v1947_v17 = vmax.f32 %v1819_v38, 0.0  ;;  %v1844_v15 = vmax.f32 %v1716_v0, 0.0  ;;  %v563_v14 = vmul.f32 %v15166_v4, %v15179_v39  ;;  %v1949_v37 = vmax.f32 %v1821_v41, 0.0  ;;  %v15188_v38 = vld [vmem:[#allocation37_spill] sm:$0xff]  ;;  %15189 = vst [vmem:[#allocation65_spill] sm:$0xff] %v10763_v58 }
 0x1c5   : > { %v10727_v11 = vpack.c.bf16 %v1839_v50, %v1831_v29  ;;  %v1950_v56 = vmax.f32 %v1822_v47, 0.0  ;;  %v1939_v31 = vmax.f32 %v1811_v61, 0.0  ;;  %v1852_v16 = vmax.f32 %v1724_v60, 0.0  ;;  %v15192_v50 = vld [vmem:[#allocation25_spill] sm:$0xff] }
 0x1c6   : > { %v700_v1 = vadd.f32 %v15170_v63, %v555_v28  ;;  %v1941_v42 = vmax.f32 %v1813_v22, 0.0  ;;  %v1942_v8 = vmax.f32 %v1814_v30, 0.0  ;;  %v708_v12 = vadd.f32 %v15170_v63, %v563_v14  ;;  %v15191_v28 = vld [vmem:[#allocation19_spill] sm:$0xff]  ;;  %v15194_v14 = vld [vmem:[#allocation6_spill] sm:$0xff] }
 0x1c7   : > { %15180 = vst [vmem:[#allocation100_spill] sm:$0xff] %v10727_v11  ;;  %v10730_v52 = vpack.c.bf16 %v1947_v17, %v1939_v31  ;;  %v10732_v45 = vpack.c.bf16 %v1852_v16, %v1844_v15  ;;  %v916_v7 = vmul.f32 %v15169_v49, %v15183_v36  ;;  %v924_v3 = vmul.f32 %v15169_v49, %v15186_v5  ;;  %v10773_v15 = vpop.f32.mrf.mxu3  ;;  %v15196_v16 = vld [vmem:[#allocation133_spill] sm:$0xff] }
 0x1c8   : > { %v10737_v21 = vpack.c.bf16 %v1949_v37, %v1941_v42  ;;  %v10739_v34 = vpack.c.bf16 %v1950_v56, %v1942_v8  ;;  %v1260_v62 = vmul.f32 %v10236_v13, %v15187_v46  ;;  %v1604_v40 = vmul.f32 %v10319_v26, %v15188_v38  ;;  %15193 = vst [vmem:[#allocation131_spill] sm:$0xff] %v10773_v15  ;;  %v10777_v56 = vpop.f32.mrf.mxu2  ;;  %v10781_v42 = vpop.f32.mrf.mxu0 }
 0x1c9   : > { %15181 = vst [vmem:[#allocation68_spill] sm:$0xff] %v10730_v52  ;;  %v1044_v18 = vadd.f32 %v916_v7, %v700_v1  ;;  %v1052_v51 = vadd.f32 %v924_v3, %v708_v12  ;;  %v6627_v44 = vor.u32 %v7926_v24, %v6624_v20  ;;  %v7011_v0 = vor.u32 %v8022_v2, %v7008_v53  ;;  %v15197_v12 = vld [vmem:[#allocation24_spill] sm:$0xff]  ;;  %v15201_v53 = vld [vmem:[#allocation135_spill] sm:$0xff] }
 0x1ca   : > { %15182 = vst [vmem:[#allocation22_spill] sm:$0xff] %v10732_v45  ;;  %3771 = vmatmul.bf16.gmra.mxu0 %v10732_v45  ;;  %v1268_v41 = vmul.f32 %v10236_v13, %v15190_v43  ;;  %v1612_v61 = vmul.f32 %v10319_v26, %v15191_v28  ;;  %v579_v22 = vmul.f32 %v15166_v4, %v15192_v50  ;;  %v15199_v24 = vld [vmem:[#allocation124_spill] sm:$0xff] }
 0x1cb   : > { %15184 = vst [vmem:[#allocation62_spill] sm:$0xff] %v10737_v21  ;;  %3752 = vmatmul.bf16.gmra.mxu3 %v10730_v52  ;;  %v1388_v47 = vadd.f32 %v1260_v62, %v1044_v18  ;;  %3955 = vmatpush.bf16.msra.mxu0 %v6627_v44  ;;  %v542_v17 = vmul.f32 %v15110_v32, %v15165_v10  ;;  %v10786_v3 = vpop.f32.mrf.mxu1  ;;  %v15200_v20 = vld [vmem:[#allocation16_spill] sm:$0xff] }
 0x1cc   : > { %15185 = vst [vmem:[#allocation63_spill] sm:$0xff] %v10739_v34  ;;  %3850 = vmatmul.bf16.gmra.mxu1 %v10737_v21  ;;  %3899 = vmatmul.bf16.gmra.mxu2 %v10739_v34  ;;  %v1396_v60 = vadd.f32 %v1268_v41, %v1052_v51  ;;  %v571_v37 = vmul.f32 %v15166_v4, %v15194_v14 }
 0x1cd   : > { %4102 = vmatpush.bf16.msrb.mxu3 %v7011_v0  ;;  %v1732_v29 = vadd.f32 %v1604_v40, %v1388_v47  ;;  %15195 = vst [vmem:[#allocation64_spill] sm:$0xff] %v10777_v56  ;;  %v550_v1 = vmul.f32 %v15110_v32, %v15196_v16  ;;  %v724_v8 = vadd.f32 %v15170_v63, %v579_v22  ;;  %v15202_v40 = vld [vmem:[#allocation11_spill] sm:$0xff] }
 0x1ce   : > { %v1740_v30 = vadd.f32 %v1612_v61, %v1396_v60  ;;  %v940_v7 = vmul.f32 %v15169_v49, %v15197_v12  ;;  %15198 = vst [vmem:[#allocation121_spill] sm:$0xff] %v10786_v3  ;;  %v687_v18 = vadd.f32 %v10536_v19, %v542_v17  ;;  %v903_v2 = vmul.f32 %v15200_v20, %v15199_v24  ;;  %v15204_v61 = vld [vmem:[#allocation36_spill] sm:$0xff] }
 0x1cf   : > { %v1860_v31 = vmax.f32 %v1732_v29, 0.0  ;;  %v911_v51 = vmul.f32 %v15200_v20, %v15201_v53  ;;  %v716_v62 = vadd.f32 %v15170_v63, %v571_v37  ;;  %v932_v44 = vmul.f32 %v15169_v49, %v15202_v40  ;;  %v15205_v29 = vld [vmem:[#allocation17_spill] sm:$0xff]  ;;  %v15208_v24 = vld [vmem:[#allocation28_spill] sm:$0xff] }
 0x1d0   : > { %v1868_v10 = vmax.f32 %v1740_v30, 0.0  ;;  %v695_v41 = vadd.f32 %v10536_v19, %v550_v1  ;;  %v1068_v47 = vadd.f32 %v940_v7, %v724_v8  ;;  %v1276_v60 = vmul.f32 %v10236_v13, %v15204_v61  ;;  %v15206_v30 = vld [vmem:[#allocation134_spill] sm:$0xff]  ;;  %v6608_v8 = vld [vmem:[%s14395_s3 + $0xb0] sm:$0xf0]  ;;  %v10815_v7 = vpop.f32.mrf.mxu3  ;;  %v10835_v45 = vpop.f32.mrf.mxu0 }
 0x1d1   : > { %v1284_v22 = vmul.f32 %v10236_v13, %v15205_v29  ;;  %v1247_v17 = vmul.f32 %v10628_v33, %v15206_v30  ;;  %v1031_v37 = vadd.f32 %v903_v2, %v687_v18  ;;  %v7922_v1 = vld [vmem:[%s14395_s3 + $0xa4] sm:$0xf]  ;;  %v1060_v53 = vadd.f32 %v932_v44, %v716_v62  ;;  %v6992_v2 = vld [vmem:[%s14395_s3 + $0x3b0] sm:$0xf0]  ;;  %v15212_v62 = vld [vmem:[#allocation21_spill] sm:$0xff] }
 0x1d2   : > { %v10796_v0 = vpack.c.bf16 %v1868_v10, %v1860_v31  ;;  %v1039_v16 = vadd.f32 %v911_v51, %v695_v41  ;;  %v1255_v31 = vmul.f32 %v10628_v33, %v15080_v57  ;;  %v15207_v10 = vld [vmem:[#allocation115_spill] sm:$0xff]  ;;  %v6611_v18 = vor.u32 %v7922_v1, %v6608_v8  ;;  %v8018_v57 = vld [vmem:[%s14395_s3 + $0x3a4] sm:$0xf]  ;;  %v10825_v51 = vpop.f32.mrf.mxu2 }
 0x1d3   : > { %15209 = vst [vmem:[#allocation58_spill] sm:$0xff] %v10825_v51  ;;  %v15210_v41 = vld [vmem:[#allocation39_spill] sm:$0xff]  ;;  %v1628_v44 = vmul.f32 %v10319_v26, %v15212_v62  ;;  %v1412_v1 = vadd.f32 %v1284_v22, %v1068_v47  ;;  %v1375_v8 = vadd.f32 %v1247_v17, %v1031_v37  ;;  %v1599_v21 = vmul.f32 %v10674_v9, %v9984_v54  ;;  %v10837_v52 = vpop.f32.mrf.mxu1  ;;  %v15215_v22 = vld [vmem:[#allocation44_spill] sm:$0xff] }
 0x1d4   : > { %15203 = vst [vmem:[#allocation105_spill] sm:$0xff] %v10796_v0  ;;  %v1620_v30 = vmul.f32 %v10319_v26, %v15210_v41  ;;  %3956 = vmatpush.bf16.msra.mxu0 %v6611_v18  ;;  %v1383_v34 = vadd.f32 %v1255_v31, %v1039_v16  ;;  %v595_v17 = vmul.f32 %v15166_v4, %v15215_v22  ;;  %v15216_v31 = vld [vmem:[#allocation46_spill] sm:$0xff] }
 0x1d5   : > { %15213 = vst [vmem:[#allocation132_spill] sm:$0xff] %v10837_v52  ;;  %v566_v54 = vmul.f32 %v15110_v32, %v15179_v39  ;;  %v919_v39 = vmul.f32 %v15200_v20, %v15183_v36  ;;  %v927_v6 = vmul.f32 %v15200_v20, %v15186_v5  ;;  %v15223_v36 = vld [vmem:[#allocation38_spill] sm:$0xff]  ;;  %v6592_v5 = vld [vmem:[%s14395_s3 + $0x90] sm:$0xf0] }
 0x1d8   : > { %v10847_v16 = vpop.f32.mrf.mxu3 }
 0x1da   : > { %3776 = vmatmul.bf16.gmra.mxu0 %v10796_v0  ;;  %v6995_v0 = vor.u32 %v8018_v57, %v6992_v2  ;;  %v15214_v57 = vld [vmem:[#allocation18_spill] sm:$0xff]  ;;  %v15218_v2 = vld [vmem:[#allocation33_spill] sm:$0xff] }
 0x1db   : > { %3913 = vmatmul.bf16.vlgmr.msra.gmra.mxu3 %v10727_v11  ;;  %v15211_v11 = vld [vmem:[#allocation7_spill] sm:$0xff]  ;;  %v587_v47 = vmul.f32 %v15166_v4, %v15214_v57 }
 0x1dc   : > { %4011 = vmatmul.bf16.vlgmr.msra.gmra.mxu1 %v15207_v10  ;;  %4060 = vmatmul.bf16.vlgmr.msra.gmra.mxu2 %v15208_v24  ;;  %v1591_v10 = vmul.f32 %v10674_v9, %v15211_v11  ;;  %v1404_v24 = vadd.f32 %v1276_v60, %v1060_v53  ;;  %v558_v11 = vmul.f32 %v15110_v32, %v15178_v59 }
 0x1dd   : > { %4103 = vmatpush.bf16.msrb.mxu3 %v6995_v0  ;;  %v1756_v60 = vadd.f32 %v1628_v44, %v1412_v1  ;;  %v1727_v53 = vadd.f32 %v1599_v21, %v1383_v34  ;;  %v732_v18 = vadd.f32 %v15170_v63, %v587_v47 }
 0x1de   : > { %v1748_v35 = vadd.f32 %v1620_v30, %v1404_v24  ;;  %v1719_v48 = vadd.f32 %v1591_v10, %v1375_v8  ;;  %v956_v10 = vmul.f32 %v15169_v49, %v15216_v31  ;;  %v703_v59 = vadd.f32 %v10536_v19, %v558_v11  ;;  %v10852_v24 = vpop.f32.mrf.mxu2 }
 0x1df   : > { %15217 = vst [vmem:[#allocation98_spill] sm:$0xff] %v10852_v24  ;;  %v1884_v21 = vmax.f32 %v1756_v60, 0.0  ;;  %v1855_v34 = vmax.f32 %v1727_v53, 0.0  ;;  %v948_v30 = vmul.f32 %v15169_v49, %v15218_v2  ;;  %v15222_v53 = vld [vmem:[#allocation47_spill] sm:$0xff] }
 0x1e0   : > { %v1876_v0 = vmax.f32 %v1748_v35, 0.0  ;;  %v1847_v37 = vmax.f32 %v1719_v48, 0.0  ;;  %v740_v48 = vadd.f32 %v15170_v63, %v595_v17  ;;  %v711_v35 = vadd.f32 %v10536_v19, %v566_v54 }
 0x1e1   : > { %v1300_v47 = vmul.f32 %v10236_v13, %v15222_v53  ;;  %v1047_v25 = vadd.f32 %v919_v39, %v703_v59  ;;  %v1076_v17 = vadd.f32 %v948_v30, %v732_v18  ;;  %v1292_v54 = vmul.f32 %v10236_v13, %v15223_v36  ;;  %v15225_v59 = vld [vmem:[#allocation30_spill] sm:$0xff]  ;;  %v6976_v30 = vld [vmem:[%s14395_s3 + $0x390] sm:$0xf0] }
 0x1e2   : > { %v10865_v8 = vpack.c.bf16 %v1884_v21, %v1876_v0  ;;  %v10867_v11 = vpack.c.bf16 %v1855_v34, %v1847_v37  ;;  %v1084_v60 = vadd.f32 %v956_v10, %v740_v48  ;;  %v1263_v0 = vmul.f32 %v10628_v33, %v15187_v46  ;;  %v7918_v37 = vld [vmem:[%s14395_s3 + $0x84] sm:$0xf]  ;;  %v15224_v10 = vld [vmem:[#allocation113_spill] sm:$0xff]  ;;  %v15226_v48 = vld [vmem:[#allocation52_spill] sm:$0xff] }
 0x1e3   : > { %v1055_v21 = vadd.f32 %v927_v6, %v711_v35  ;;  %v1607_v34 = vmul.f32 %v10674_v9, %v15188_v38  ;;  %v6595_v18 = vor.u32 %v7918_v37, %v6592_v5  ;;  %v8014_v46 = vld [vmem:[%s14395_s3 + $0x384] sm:$0xf]  ;;  %v1636_v39 = vmul.f32 %v10319_v26, %v15226_v48  ;;  %v15227_v38 = vld [vmem:[#allocation43_spill] sm:$0xff] }
 0x1e4   : > { %15220 = vst [vmem:[#allocation114_spill] sm:$0xff] %v10865_v8  ;;  %v1428_v35 = vadd.f32 %v1300_v47, %v1084_v60  ;;  %v1644_v37 = vmul.f32 %v10319_v26, %v15227_v38  ;;  %v1391_v5 = vadd.f32 %v1263_v0, %v1047_v25  ;;  %v1420_v56 = vadd.f32 %v1292_v54, %v1076_v17  ;;  %v15230_v0 = vld [vmem:[#allocation54_spill] sm:$0xff] }
 0x1e5   : > { %15221 = vst [vmem:[#allocation102_spill] sm:$0xff] %v10867_v11  ;;  %3957 = vmatpush.bf16.msra.mxu0 %v6595_v18  ;;  %v603_v18 = vmul.f32 %v15166_v4, %v15230_v0 }
 0x1e6   : > { %v10857_v44 = vpop.f32.mrf.mxu0  ;;  %v10863_v1 = vpop.f32.mrf.mxu1  ;;  %v1764_v47 = vadd.f32 %v1636_v39, %v1420_v56  ;;  %v15232_v39 = vld [vmem:[#allocation116_spill] sm:$0xff] }
 0x1e7   : > { %15219 = vst [vmem:[#allocation101_spill] sm:$0xff] %v10863_v1  ;;  %v15239_v1 = vld [vmem:[#allocation72_spill] sm:$0xff] }
 0x1e8   : > { %v1316_v24 = vmul.f32 %v10236_v13, %v15239_v1 }
 0x1ea   : > { %3781 = vmatmul.bf16.gmra.mxu0 %v10865_v8 }
 0x1eb   : > { %3918 = vmatmul.bf16.gmra.mxu3 %v10867_v11  ;;  %v10899_v6 = vpop.f32.mrf.mxu3  ;;  %v1615_v11 = vmul.f32 %v10674_v9, %v15191_v28  ;;  %v574_v28 = vmul.f32 %v15110_v32, %v15194_v14  ;;  %v935_v14 = vmul.f32 %v15200_v20, %v15202_v40  ;;  %v1279_v40 = vmul.f32 %v10628_v33, %v15204_v61 }
 0x1ec   : > { %4016 = vmatmul.bf16.gmra.mxu1 %v15224_v10  ;;  %4065 = vmatmul.bf16.gmra.mxu2 %v15225_v59  ;;  %v1271_v10 = vmul.f32 %v10628_v33, %v15190_v43  ;;  %v6979_v59 = vor.u32 %v8014_v46, %v6976_v30  ;;  %v1735_v43 = vadd.f32 %v1607_v34, %v1391_v5  ;;  %v15234_v5 = vld [vmem:[#allocation35_spill] sm:$0xff] }
 0x1ed   : > { %v10905_v8 = vpop.f32.mrf.mxu2  ;;  %v582_v46 = vmul.f32 %v15110_v32, %v15192_v50  ;;  %v1772_v30 = vadd.f32 %v1644_v37, %v1428_v35  ;;  %v3572_v35 = vadd.f32 %v10781_v42, %v15232_v39  ;;  %v1287_v42 = vmul.f32 %v10628_v33, %v15205_v29 }
 0x1ee   : > { %15228 = vst [vmem:[#allocation122_spill] sm:$0xff] %v10905_v8  ;;  %4104 = vmatpush.bf16.msrb.mxu3 %v6979_v59  ;;  %v10907_v58 = vpop.f32.mrf.mxu0  ;;  %v1399_v15 = vadd.f32 %v1271_v10, %v1055_v21  ;;  %v10911_v60 = vpop.f32.mrf.mxu1  ;;  %v1863_v17 = vmax.f32 %v1735_v43, 0.0  ;;  %v943_v10 = vmul.f32 %v15200_v20, %v15197_v12  ;;  %v1892_v59 = vmax.f32 %v1764_v47, 0.0  ;;  %v15231_v21 = vld [vmem:[#allocation48_spill] sm:$0xff] }
 0x1ef   : > { %15229 = vst [vmem:[#allocation117_spill] sm:$0xff] %v10911_v60  ;;  %v727_v54 = vadd.f32 %v10536_v19, %v582_v46  ;;  %v611_v50 = vmul.f32 %v15166_v4, %v15231_v21  ;;  %v1900_v56 = vmax.f32 %v1772_v30, 0.0  ;;  %v748_v12 = vadd.f32 %v15170_v63, %v603_v18  ;;  %v15235_v46 = vld [vmem:[#allocation66_spill] sm:$0xff] }
 0x1f0   : > { %v1743_v25 = vadd.f32 %v1615_v11, %v1399_v15  ;;  %v719_v11 = vadd.f32 %v10536_v19, %v574_v28  ;;  %v964_v43 = vmul.f32 %v15169_v49, %v15234_v5  ;;  %v972_v47 = vmul.f32 %v15169_v49, %v15235_v46 }
 0x1f1   : > { %v1071_v28 = vadd.f32 %v943_v10, %v727_v54  ;;  %v10946_v18 = vpack.c.bf16 %v1900_v56, %v1892_v59  ;;  %v756_v8 = vadd.f32 %v15170_v63, %v611_v50  ;;  %v1623_v54 = vmul.f32 %v10674_v9, %v15210_v41  ;;  %v15240_v10 = vld [vmem:[#allocation53_spill] sm:$0xff]  ;;  %v7914_v59 = vld [vmem:[%s14395_s3 + $0x64] sm:$0xf]  ;;  %v6576_v50 = vld [vmem:[%s14395_s3 + $0x70] sm:$0xf0] }
 0x1f2   : > { %v1871_v15 = vmax.f32 %v1743_v25, 0.0  ;;  %v1092_v61 = vadd.f32 %v964_v43, %v748_v12  ;;  %v15241_v56 = vld [vmem:[#allocation41_spill] sm:$0xff]  ;;  %v15242_v41 = vld [vmem:[#allocation42_spill] sm:$0xff]  ;;  %v6960_v12 = vld [vmem:[%s14395_s3 + $0x370] sm:$0xf0] }
 0x1f3   : > { %v10922_v34 = vpop.f32.mrf.mxu3  ;;  %15238 = vst [vmem:[#allocation13_spill] sm:$0xff] %v10946_v18  ;;  %v1100_v29 = vadd.f32 %v972_v47, %v756_v8  ;;  %v6579_v8 = vor.u32 %v7914_v59, %v6576_v50  ;;  %v15243_v47 = vld [vmem:[#allocation45_spill] sm:$0xff]  ;;  %v15247_v50 = vld [vmem:[#allocation59_spill] sm:$0xff] }
 0x1f4   : > { %v10936_v25 = vpack.c.bf16 %v1871_v15, %v1863_v17  ;;  %v1063_v17 = vadd.f32 %v935_v14, %v719_v11  ;;  %v1308_v15 = vmul.f32 %v10236_v13, %v15240_v10  ;;  %v1631_v14 = vmul.f32 %v10674_v9, %v15212_v62 }
 0x1f5   : > { %v10929_v37 = vpop.f32.mrf.mxu2  ;;  %v1444_v43 = vadd.f32 %v1316_v24, %v1100_v29  ;;  %3958 = vmatpush.bf16.msra.mxu0 %v6579_v8  ;;  %v590_v24 = vmul.f32 %v15110_v32, %v15214_v57  ;;  %v15250_v57 = vld [vmem:[#allocation70_spill] sm:$0xff] }
 0x1f6   : > { %15233 = vst [vmem:[#allocation9_spill] sm:$0xff] %v10929_v37  ;;  %v3620_v30 = vpop.f32.mrf.mxu0  ;;  %v1407_v11 = vadd.f32 %v1279_v40, %v1063_v17  ;;  %v15244_v40 = vld [vmem:[#allocation120_spill] sm:$0xff]  ;;  %v1436_v59 = vadd.f32 %v1308_v15, %v1092_v61  ;;  %v598_v61 = vmul.f32 %v15110_v32, %v15215_v22  ;;  %v3577_v22 = vadd.f32 %v10857_v44, %v15232_v39 }
 0x1f7   : > { %15236 = vst [vmem:[#allocation14_spill] sm:$0xff] %v10936_v25  ;;  %v10942_v60 = vadd.f32 %v3620_v30, %v3572_v35  ;;  %v10944_v37 = vpop.f32.mrf.mxu1  ;;  %v8010_v35 = vld [vmem:[%s14395_s3 + $0x364] sm:$0xf]  ;;  %v1660_v30 = vmul.f32 %v10319_v26, %v15243_v47 }
 0x1f8   : > { %15237 = vst [vmem:[#allocation8_spill] sm:$0xff] %v10944_v37  ;;  %v1751_v37 = vadd.f32 %v1623_v54, %v1407_v11  ;;  %v735_v54 = vadd.f32 %v10536_v19, %v590_v24 }
 0x1fa   : > { %3786 = vmatmul.bf16.gmra.mxu0 %v10946_v18  ;;  %v1652_v18 = vmul.f32 %v10319_v26, %v15247_v50 }
 0x1fb   : > { %3923 = vmatmul.bf16.gmra.mxu3 %v10936_v25  ;;  %v6963_v25 = vor.u32 %v8010_v35, %v6960_v12  ;;  %v15249_v35 = vld [vmem:[#allocation74_spill] sm:$0xff] }
 0x1fc   : > { %4021 = vmatmul.bf16.gmra.mxu1 %v15241_v56  ;;  %4070 = vmatmul.bf16.gmra.mxu2 %v15242_v41  ;;  %v1415_v56 = vadd.f32 %v1287_v42, %v1071_v28  ;;  %v3728_v41 = vpop.f32.mrf.mxu3  ;;  %v1788_v42 = vadd.f32 %v1660_v30, %v1444_v43  ;;  %v1780_v8 = vadd.f32 %v1652_v18, %v1436_v59  ;;  %v15252_v18 = vld [vmem:[#allocation82_spill] sm:$0xff] }
 0x1fd   : > { %v10976_v17 = vadd.f32 %v3728_v41, %v15244_v40  ;;  %v10978_v62 = vpop.f32.mrf.mxu2  ;;  %4105 = vmatpush.bf16.msrb.mxu3 %v6963_v25  ;;  %v1879_v41 = vmax.f32 %v1751_v37, 0.0  ;;  %v619_v12 = vmul.f32 %v15166_v4, %v15249_v35  ;;  %v951_v25 = vmul.f32 %v15200_v20, %v15218_v2 }
 0x1fe   : > { %15246 = vst [vmem:[#allocation37_spill] sm:$0xff] %v10978_v62  ;;  %v10982_v52 = vpop.f32.mrf.mxu0  ;;  %v1759_v29 = vadd.f32 %v1631_v14, %v1415_v56  ;;  %v1916_v15 = vmax.f32 %v1788_v42, 0.0  ;;  %v627_v40 = vmul.f32 %v15166_v4, %v15250_v57  ;;  %v980_v37 = vmul.f32 %v15169_v49, %v15252_v18 }
 0x1ff   : > { %15245 = vst [vmem:[#allocation2_spill] sm:$0xff] %v10976_v17  ;;  %v10986_v28 = vpop.f32.mrf.mxu1  ;;  %v959_v56 = vmul.f32 %v15200_v20, %v15216_v31  ;;  %v1908_v30 = vmax.f32 %v1780_v8, 0.0  ;;  %v764_v24 = vadd.f32 %v15170_v63, %v619_v12  ;;  %v743_v42 = vadd.f32 %v10536_v19, %v598_v61  ;;  %v15257_v8 = vld [vmem:[#allocation73_spill] sm:$0xff] }
 0x200   : > { %15248 = vst [vmem:[#allocation3_spill] sm:$0xff] %v10986_v28  ;;  %v1887_v11 = vmax.f32 %v1759_v29, 0.0  ;;  %v1079_v29 = vadd.f32 %v951_v25, %v735_v54  ;;  %v1295_v28 = vmul.f32 %v10628_v33, %v15223_v36  ;;  %v772_v44 = vadd.f32 %v15170_v63, %v627_v40  ;;  %v15259_v36 = vld [vmem:[#allocation86_spill] sm:$0xff]  ;;  %v6560_v40 = vld [vmem:[%s14395_s3 + $0x50] sm:$0xf0] }
 0x201   : > { %v1087_v61 = vadd.f32 %v959_v56, %v743_v42  ;;  %v1303_v54 = vmul.f32 %v10628_v33, %v15222_v53  ;;  %v1332_v25 = vmul.f32 %v10236_v13, %v15259_v36  ;;  %v15261_v56 = vld [vmem:[#allocation51_spill] sm:$0xff]  ;;  %v1639_v53 = vmul.f32 %v10674_v9, %v15226_v48  ;;  %v15262_v42 = vld [vmem:[#allocation89_spill] sm:$0xff] }
 0x202   : > { %v11007_v2 = vpack.c.bf16 %v1887_v11, %v1879_v41  ;;  %v988_v41 = vmul.f32 %v15169_v49, %v15257_v8  ;;  %v1108_v11 = vadd.f32 %v980_v37, %v764_v24  ;;  %v15260_v37 = vld [vmem:[#allocation50_spill] sm:$0xff]  ;;  %v1647_v48 = vmul.f32 %v10674_v9, %v15227_v38 }
 0x203   : > { %v1431_v51 = vadd.f32 %v1303_v54, %v1087_v61  ;;  %v7906_v61 = vld [vmem:[%s14395_s3 + $0x24] sm:$0xf]  ;;  %v6544_v54 = vld [vmem:[%s14395_s3 + $0x30] sm:$0xf0] }
 0x204   : > { %v10997_v43 = vpop.f32.mrf.mxu3  ;;  %15254 = vst [vmem:[#allocation6_spill] sm:$0xff] %v11007_v2  ;;  %v1116_v24 = vadd.f32 %v988_v41, %v772_v44  ;;  %v15264_v41 = vld [vmem:[#allocation79_spill] sm:$0xff] }
 0x205   : > { %15251 = vst [vmem:[#allocation19_spill] sm:$0xff] %v10997_v43  ;;  %v11005_v14 = vpop.f32.mrf.mxu2  ;;  %v11017_v43 = vpack.c.bf16 %v1916_v15, %v1908_v30  ;;  %v7910_v15 = vld [vmem:[%s14395_s3 + $0x44] sm:$0xf] }
 0x206   : > { %15253 = vst [vmem:[#allocation25_spill] sm:$0xff] %v11005_v14  ;;  %v3625_v59 = vpop.f32.mrf.mxu0  ;;  %v15258_v14 = vld [vmem:[#allocation84_spill] sm:$0xff]  ;;  %v8006_v30 = vld [vmem:[%s14395_s3 + $0x344] sm:$0xf]  ;;  %v1460_v44 = vadd.f32 %v1332_v25, %v1116_v24  ;;  %v1775_v25 = vadd.f32 %v1647_v48, %v1431_v51 }
 0x207   : > { %v11013_v62 = vadd.f32 %v3625_v59, %v3577_v22  ;;  %v11015_v31 = vpop.f32.mrf.mxu1  ;;  %15256 = vst [vmem:[#allocation24_spill] sm:$0xff] %v11017_v43  ;;  %v1324_v12 = vmul.f32 %v10236_v13, %v15258_v14  ;;  %v6563_v22 = vor.u32 %v7910_v15, %v6560_v40  ;;  %v6944_v59 = vld [vmem:[%s14395_s3 + $0x350] sm:$0xf0]  ;;  %v3579_v15 = vadd.f32 %v10907_v58, %v15232_v39  ;;  %v15263_v40 = vld [vmem:[#allocation78_spill] sm:$0xff] }
 0x208   : > { %15255 = vst [vmem:[#allocation133_spill] sm:$0xff] %v11015_v31  ;;  %v606_v58 = vmul.f32 %v15110_v32, %v15230_v0  ;;  %v975_v0 = vmul.f32 %v15200_v20, %v15235_v46  ;;  %v1903_v48 = vmax.f32 %v1775_v25, 0.0 }
 0x209   : > { %v1452_v31 = vadd.f32 %v1324_v12, %v1108_v11  ;;  %3959 = vmatpush.bf16.msra.mxu0 %v6563_v22 }
 0x20a   : > { %3791 = vmatmul.bf16.gmra.mxu0 %v11017_v43  ;;  %v6947_v43 = vor.u32 %v8006_v30, %v6944_v59  ;;  %v1668_v30 = vmul.f32 %v10319_v26, %v15264_v41  ;;  %v751_v24 = vadd.f32 %v10536_v19, %v606_v58 }
 0x20b   : > { %3928 = vmatmul.bf16.gmra.mxu3 %v11007_v2  ;;  %v1676_v2 = vmul.f32 %v10319_v26, %v15262_v42 }
 0x20c   : > { %4026 = vmatmul.bf16.gmra.mxu1 %v15260_v37  ;;  %4075 = vmatmul.bf16.gmra.mxu2 %v15261_v56  ;;  %v3733_v37 = vpop.f32.mrf.mxu3  ;;  %v1423_v56 = vadd.f32 %v1295_v28, %v1079_v29 }
 0x20d   : > { %v11053_v17 = vadd.f32 %v3733_v37, %v15263_v40  ;;  %v11055_v3 = vpop.f32.mrf.mxu2  ;;  %4106 = vmatpush.bf16.msrb.mxu3 %v6947_v43  ;;  %v1804_v38 = vadd.f32 %v1676_v2, %v1460_v44  ;;  %v614_v43 = vmul.f32 %v15110_v32, %v15231_v21  ;;  %v6547_v37 = vor.u32 %v7906_v61, %v6544_v54  ;;  %v15266_v21 = vld [vmem:[#allocation83_spill] sm:$0xff] }
 0x20e   : > { %v3627_v11 = vpop.f32.mrf.mxu0  ;;  %v1767_v28 = vadd.f32 %v1639_v53, %v1423_v56  ;;  %v1796_v56 = vadd.f32 %v1668_v30, %v1452_v31  ;;  %v15265_v53 = vld [vmem:[#allocation91_spill] sm:$0xff]  ;;  %v635_v31 = vmul.f32 %v15166_v4, %v15266_v21  ;;  %v1319_v44 = vmul.f32 %v10628_v33, %v15239_v1 }
 0x20f   : > { %v11059_v29 = vadd.f32 %v3627_v11, %v3579_v15  ;;  %v11061_v12 = vpop.f32.mrf.mxu1  ;;  %v643_v2 = vmul.f32 %v15166_v4, %v15265_v53  ;;  %3960 = vmatpush.bf16.msra.mxu0 %v6547_v37  ;;  %v1932_v59 = vmax.f32 %v1804_v38, 0.0  ;;  %v967_v15 = vmul.f32 %v15200_v20, %v15234_v5 }
 0x210   : > { %v1895_v22 = vmax.f32 %v1767_v28, 0.0  ;;  %v759_v40 = vadd.f32 %v10536_v19, %v614_v43  ;;  %v1924_v46 = vmax.f32 %v1796_v56, 0.0  ;;  %v15268_v28 = vld [vmem:[#allocation88_spill] sm:$0xff]  ;;  %v1311_v4 = vmul.f32 %v10628_v33, %v15240_v10  ;;  %v15272_v43 = vld [vmem:[#allocation95_spill] sm:$0xff] }
 0x211   : > { %v788_v11 = vadd.f32 %v15170_v63, %v643_v2  ;;  %v1004_v38 = vmul.f32 %v15169_v49, %v15268_v28  ;;  %v996_v37 = vmul.f32 %v15169_v49, %v15272_v43  ;;  %v1095_v56 = vadd.f32 %v967_v15, %v751_v24  ;;  %v15273_v10 = vld [vmem:[#allocation99_spill] sm:$0xff]  ;;  %v7902_v49 = vld [vmem:[%s14395_s3 + $0x4] sm:$0xf]  ;;  %v15275_v24 = vld [vmem:[#allocation56_spill] sm:$0xff] }
 0x212   : > { %v11092_v58 = vpack.c.bf16 %v1903_v48, %v1895_v22  ;;  %v1103_v61 = vadd.f32 %v975_v0, %v759_v40  ;;  %v11101_v1 = vpack.c.bf16 %v1932_v59, %v1924_v46  ;;  %v780_v2 = vadd.f32 %v15170_v63, %v635_v31  ;;  %v15274_v59 = vld [vmem:[#allocation90_spill] sm:$0xff]  ;;  %v6528_v63 = vld [vmem:[%s14395_s3 + $0x10] sm:$0xf0]  ;;  %v15276_v15 = vld [vmem:[#allocation57_spill] sm:$0xff] }
 0x213   : > { %v1663_v22 = vmul.f32 %v10674_v9, %v15243_v47  ;;  %v1340_v0 = vmul.f32 %v10236_v13, %v15273_v10  ;;  %v1348_v48 = vmul.f32 %v10236_v13, %v15274_v59  ;;  %v3574_v47 = vadd.f32 %v10835_v45, %v15232_v39  ;;  %v8002_v13 = vld [vmem:[%s14395_s3 + $0x324] sm:$0xf] }
 0x214   : > { %v11080_v51 = vpop.f32.mrf.mxu3  ;;  %15269 = vst [vmem:[#allocation16_spill] sm:$0xff] %v11092_v58  ;;  %v1655_v31 = vmul.f32 %v10674_v9, %v15247_v50  ;;  %v6531_v40 = vor.u32 %v7902_v49, %v6528_v63  ;;  %v8090_v45 = vld [vmem:[%s14395_s3 + $0x5e4] sm:$0xf]  ;;  %v1124_v46 = vadd.f32 %v996_v37, %v780_v2  ;;  %v7280_v50 = vld [vmem:[%s14395_s3 + $0x5f0] sm:$0xf0] }
 0x215   : > { %v11087_v30 = vpop.f32.mrf.mxu2  ;;  %15271 = vst [vmem:[#allocation11_spill] sm:$0xff] %v11101_v1  ;;  %v7408_v49 = vld [vmem:[%s14395_s3 + $0x6f0] sm:$0xf0]  ;;  %v3623_v63 = vadd.f32 %v10982_v52, %v3574_v47 }
 0x216   : > { %15267 = vst [vmem:[#allocation124_spill] sm:$0xff] %v11087_v30  ;;  %v3669_v5 = vpop.f32.mrf.mxu0  ;;  %v1447_v30 = vadd.f32 %v1319_v44, %v1103_v61  ;;  %v6928_v44 = vld [vmem:[%s14395_s3 + $0x330] sm:$0xf0]  ;;  %v8122_v61 = vld [vmem:[%s14395_s3 + $0x6e4] sm:$0xf]  ;;  %3961 = vmatpush.bf16.msra.mxu0 %v6531_v40 }
 0x217   : > { %v11097_v54 = vadd.f32 %v3669_v5, %v10942_v60  ;;  %v11099_v25 = vpop.f32.mrf.mxu1  ;;  %v1132_v60 = vadd.f32 %v1004_v38, %v788_v11  ;;  %v1692_v11 = vmul.f32 %v10319_v26, %v15172_v23  ;;  %v1439_v38 = vadd.f32 %v1311_v4, %v1095_v56  ;;  %v15277_v56 = vld [vmem:[#allocation10_spill] sm:$0xff] }
 0x218   : > { %15270 = vst [vmem:[#allocation135_spill] sm:$0xff] %v11099_v25  ;;  %v6931_v5 = vor.u32 %v8002_v13, %v6928_v44  ;;  %v1791_v2 = vadd.f32 %v1663_v22, %v1447_v30  ;;  %v7411_v4 = vor.u32 %v8122_v61, %v7408_v49 }
 0x219   : > { %v1783_v22 = vadd.f32 %v1655_v31, %v1439_v38  ;;  %v8114_v38 = vld [vmem:[%s14395_s3 + $0x6a4] sm:$0xf] }
 0x21a   : > { %3796 = vmatmul.bf16.gmra.mxu0 %v11101_v1  ;;  %v1684_v1 = vmul.f32 %v10319_v26, %v15171_v55  ;;  %4107 = vmatpush.bf16.msrb.mxu3 %v6931_v5  ;;  %v1919_v40 = vmax.f32 %v1791_v2, 0.0  ;;  %v7264_v26 = vld [vmem:[%s14395_s3 + $0x5d0] sm:$0xf0] }
 0x21b   : > { %3933 = vmatmul.bf16.gmra.mxu3 %v11092_v58  ;;  %v1476_v58 = vadd.f32 %v1348_v48, %v1132_v60  ;;  %4248 = vmatpush.bf16.msrb.mxu2 %v7411_v4  ;;  %v8086_v60 = vld [vmem:[%s14395_s3 + $0x5c4] sm:$0xf]  ;;  %v7376_v5 = vld [vmem:[%s14395_s3 + $0x6b0] sm:$0xf0] }
 0x21c   : > { %4031 = vmatmul.bf16.gmra.mxu1 %v15275_v24  ;;  %4080 = vmatmul.bf16.gmra.mxu2 %v15276_v15  ;;  %v3738_v37 = vpop.f32.mrf.mxu3  ;;  %v7283_v15 = vor.u32 %v8090_v45, %v7280_v50  ;;  %v1468_v24 = vadd.f32 %v1340_v0, %v1124_v46  ;;  %v7392_v0 = vld [vmem:[%s14395_s3 + $0x6d0] sm:$0xf0]  ;;  %v8082_v48 = vld [vmem:[%s14395_s3 + $0x5a4] sm:$0xf] }
 0x21d   : > { %v11148_v13 = vadd.f32 %v3738_v37, %v15277_v56  ;;  %v11150_v44 = vpop.f32.mrf.mxu2  ;;  %v1820_v30 = vadd.f32 %v1692_v11, %v1476_v58  ;;  %v622_v58 = vmul.f32 %v15110_v32, %v15249_v35  ;;  %v1911_v35 = vmax.f32 %v1783_v22, 0.0 }
 0x21e   : > { %v3671_v25 = vpop.f32.mrf.mxu0  ;;  %4199 = vmatpush.bf16.msrb.mxu1 %v7283_v15  ;;  %v1812_v45 = vadd.f32 %v1684_v1, %v1468_v24  ;;  %v630_v1 = vmul.f32 %v15110_v32, %v15250_v57  ;;  %v7248_v24 = vld [vmem:[%s14395_s3 + $0x5b0] sm:$0xf0]  ;;  %v983_v57 = vmul.f32 %v15200_v20, %v15252_v18  ;;  %v7379_v22 = vor.u32 %v8114_v38, %v7376_v5  ;;  %v8106_v38 = vld [vmem:[%s14395_s3 + $0x664] sm:$0xf] }
 0x21f   : > { %v3672_v52 = vadd.f32 %v3671_v25, %v3623_v63  ;;  %v11154_v47 = vpop.f32.mrf.mxu1  ;;  %v8118_v25 = vld [vmem:[%s14395_s3 + $0x6c4] sm:$0xf]  ;;  %v1948_v15 = vmax.f32 %v1820_v30, 0.0  ;;  %v7251_v11 = vor.u32 %v8082_v48, %v7248_v24  ;;  %v11193_v37 = vpack.c.bf16 %v1919_v40, %v1911_v35  ;;  %v7216_v35 = vld [vmem:[%s14395_s3 + $0x570] sm:$0xf0] }
 0x220   : > { %v7395_v31 = vor.u32 %v8118_v25, %v7392_v0  ;;  %v1940_v49 = vmax.f32 %v1812_v45, 0.0  ;;  %v767_v2 = vadd.f32 %v10536_v19, %v622_v58  ;;  %v775_v18 = vadd.f32 %v10536_v19, %v630_v1  ;;  %v8110_v25 = vld [vmem:[%s14395_s3 + $0x684] sm:$0xf]  ;;  %v15280_v58 = vld [vmem:[#allocation76_spill] sm:$0xff] }
 0x221   : > { %v11157_v50 = vadd.f32 %v10847_v16, %v3672_v52  ;;  %v7267_v16 = vor.u32 %v8086_v60, %v7264_v26  ;;  %15278 = vst [vmem:[#allocation36_spill] sm:$0xff] %v11193_v37  ;;  %v991_v30 = vmul.f32 %v15200_v20, %v15257_v8  ;;  %v1327_v40 = vmul.f32 %v10628_v33, %v15258_v14  ;;  %v8078_v8 = vld [vmem:[%s14395_s3 + $0x584] sm:$0xf]  ;;  %v7232_v26 = vld [vmem:[%s14395_s3 + $0x590] sm:$0xf0]  ;;  %v15281_v14 = vld [vmem:[#allocation77_spill] sm:$0xff] }
 0x222   : > { %4249 = vmatpush.bf16.msrb.mxu2 %v7395_v31  ;;  %v11200_v52 = vpack.c.bf16 %v1948_v15, %v1940_v49  ;;  %v1111_v60 = vadd.f32 %v983_v57, %v767_v2  ;;  %v7998_v1 = vld [vmem:[%s14395_s3 + $0x304] sm:$0xf]  ;;  %v1679_v48 = vmul.f32 %v10674_v9, %v15262_v42  ;;  %v7344_v42 = vld [vmem:[%s14395_s3 + $0x670] sm:$0xf0] }
 0x223   : > { %4200 = vmatpush.bf16.msrb.mxu1 %v7267_v16  ;;  %v6912_v16 = vld [vmem:[%s14395_s3 + $0x310] sm:$0xf0]  ;;  %v1119_v0 = vadd.f32 %v991_v30, %v775_v18  ;;  %v8074_v31 = vld [vmem:[%s14395_s3 + $0x564] sm:$0xf] }
 0x224   : > { %v11181_v46 = vpop.f32.mrf.mxu3  ;;  %15279 = vst [vmem:[#allocation17_spill] sm:$0xff] %v11200_v52  ;;  %v6915_v15 = vor.u32 %v7998_v1, %v6912_v16  ;;  %v15282_v5 = vld [vmem:[#allocation20_spill] sm:$0xff]  ;;  %v1455_v2 = vadd.f32 %v1327_v40, %v1111_v60  ;;  %v8102_v40 = vld [vmem:[%s14395_s3 + $0x644] sm:$0xf] }
 0x225   : > { %v11191_v61 = vpop.f32.mrf.mxu2  ;;  %v7184_v1 = vld [vmem:[%s14395_s3 + $0x530] sm:$0xf0] }
 0x226   : > { %4250 = vmatpush.bf16.msrb.mxu2 %v7379_v22  ;;  %4108 = vmatpush.bf16.msrb.mxu3 %v6915_v15 }
 0x227   : > { %v3674_v63 = vpop.f32.mrf.mxu0  ;;  %4201 = vmatpush.bf16.msrb.mxu1 %v7251_v11  ;;  %v7219_v11 = vor.u32 %v8074_v31, %v7216_v35  ;;  %v8098_v31 = vld [vmem:[%s14395_s3 + $0x624] sm:$0xf]  ;;  %v7312_v35 = vld [vmem:[%s14395_s3 + $0x630] sm:$0xf0] }
 0x228   : > { %v3675_v4 = vadd.f32 %v3674_v63, %v11013_v62  ;;  %v11198_v56 = vpop.f32.mrf.mxu1  ;;  %v1335_v62 = vmul.f32 %v10628_v33, %v15259_v36  ;;  %v7235_v36 = vor.u32 %v8078_v8, %v7232_v26 }
 0x22a   : > { %3801 = vmatmul.bf16.gmra.mxu0 %v11200_v52  ;;  %v11211_v45 = vadd.f32 %v10899_v6, %v3675_v4  ;;  %v7360_v6 = vld [vmem:[%s14395_s3 + $0x690] sm:$0xf0]  ;;  %v1463_v18 = vadd.f32 %v1335_v62, %v1119_v0  ;;  %v1671_v4 = vmul.f32 %v10674_v9, %v15264_v41  ;;  %v8070_v41 = vld [vmem:[%s14395_s3 + $0x544] sm:$0xf] }
 0x22b   : > { %3938 = vmatmul.bf16.gmra.mxu3 %v11193_v37  ;;  %v7363_v24 = vor.u32 %v8110_v25, %v7360_v6  ;;  %4202 = vmatpush.bf16.msrb.mxu1 %v7235_v36  ;;  %v7347_v25 = vor.u32 %v8106_v38, %v7344_v42  ;;  %v646_v6 = vmul.f32 %v15110_v32, %v15265_v53  ;;  %v7328_v53 = vld [vmem:[%s14395_s3 + $0x650] sm:$0xf0] }
 0x22c   : > { %4036 = vmatmul.bf16.gmra.mxu1 %v15280_v58  ;;  %4085 = vmatmul.bf16.gmra.mxu2 %v15281_v14  ;;  %v1807_v26 = vadd.f32 %v1679_v48, %v1463_v18  ;;  %v1799_v36 = vadd.f32 %v1671_v4, %v1455_v2  ;;  %v7331_v0 = vor.u32 %v8102_v40, %v7328_v53  ;;  %v8154_v53 = vld [vmem:[%s14395_s3 + $0x7e4] sm:$0xf] }
 0x22d   : > { %4251 = vmatpush.bf16.msrb.mxu2 %v7363_v24  ;;  %v638_v24 = vmul.f32 %v15110_v32, %v15266_v21  ;;  %v791_v42 = vadd.f32 %v10536_v19, %v646_v6  ;;  %v1007_v32 = vmul.f32 %v15200_v20, %v15268_v28  ;;  %v999_v4 = vmul.f32 %v15200_v20, %v15272_v43  ;;  %v8062_v20 = vld [vmem:[%s14395_s3 + $0x504] sm:$0xf]  ;;  %v7152_v6 = vld [vmem:[%s14395_s3 + $0x4f0] sm:$0xf0] }
 0x22e   : > { %v3743_v57 = vpop.f32.mrf.mxu3  ;;  %v1935_v16 = vmax.f32 %v1807_v26, 0.0  ;;  %v1927_v38 = vmax.f32 %v1799_v36, 0.0  ;;  %v1351_v26 = vmul.f32 %v10628_v33, %v15274_v59  ;;  %v8094_v43 = vld [vmem:[%s14395_s3 + $0x604] sm:$0xf] }
 0x22f   : > { %v11248_v49 = vadd.f32 %v3743_v57, %v15282_v5  ;;  %v11250_v63 = vpop.f32.mrf.mxu2  ;;  %v3676_v30 = vpop.f32.mrf.mxu0  ;;  %4203 = vmatpush.bf16.msrb.mxu1 %v7219_v11  ;;  %v3719_v11 = vadd.f32 %v10815_v7, %v11097_v54  ;;  %v783_v7 = vadd.f32 %v10536_v19, %v638_v24  ;;  %v15284_v54 = vld [vmem:[#allocation126_spill] sm:$0xff]  ;;  %v1135_v28 = vadd.f32 %v1007_v32, %v791_v42  ;;  %v7168_v19 = vld [vmem:[%s14395_s3 + $0x510] sm:$0xf0] }
 0x230   : > { %v3677_v22 = vadd.f32 %v3676_v30, %v11059_v29  ;;  %v11255_v8 = vpop.f32.mrf.mxu1  ;;  %v7200_v29 = vld [vmem:[%s14395_s3 + $0x550] sm:$0xf0]  ;;  %v11301_v18 = vpack.c.bf16 %v1935_v16, %v1927_v38  ;;  %v7315_v30 = vor.u32 %v8098_v31, %v7312_v35  ;;  %v15286_v36 = vld [vmem:[#allocation94_spill] sm:$0xff]  ;;  %v1687_v35 = vmul.f32 %v10674_v9, %v15171_v55 }
 0x231   : > { %v7203_v62 = vor.u32 %v8070_v41, %v7200_v29  ;;  %4252 = vmatpush.bf16.msrb.mxu2 %v7347_v25  ;;  %v15285_v25 = vld [vmem:[#allocation93_spill] sm:$0xff]  ;;  %v8058_v59 = vld [vmem:[%s14395_s3 + $0x4e4] sm:$0xf]  ;;  %v1127_v41 = vadd.f32 %v999_v4, %v783_v7  ;;  %v1695_v29 = vmul.f32 %v10674_v9, %v15172_v23  ;;  %v1479_v31 = vadd.f32 %v1351_v26, %v1135_v28 }
 0x232   : > { %v11260_v60 = vadd.f32 %v10922_v34, %v3677_v22  ;;  %v8066_v34 = vld [vmem:[%s14395_s3 + $0x524] sm:$0xf]  ;;  %15283 = vst [vmem:[#allocation134_spill] sm:$0xff] %v11301_v18  ;;  %v1343_v22 = vmul.f32 %v10628_v33, %v15273_v10  ;;  %v7171_v10 = vor.u32 %v8062_v20, %v7168_v19  ;;  %v7296_v33 = vld [vmem:[%s14395_s3 + $0x610] sm:$0xf0] }
 0x233   : > { %4204 = vmatpush.bf16.msrb.mxu1 %v7203_v62  ;;  %v7187_v15 = vor.u32 %v8066_v34, %v7184_v1  ;;  %v7299_v40 = vor.u32 %v8094_v43, %v7296_v33  ;;  %v7155_v62 = vor.u32 %v8058_v59, %v7152_v6  ;;  %v7536_v34 = vld [vmem:[%s14395_s3 + $0x7f0] sm:$0xf0]  ;;  %v1823_v32 = vadd.f32 %v1695_v29, %v1479_v31  ;;  %v8054_v20 = vld [vmem:[%s14395_s3 + $0x4c4] sm:$0xf]  ;;  %v15290_v43 = vld [vmem:[#allocation61_spill] sm:$0xff] }
 0x234   : > { %v7539_v16 = vor.u32 %v8154_v53, %v7536_v34  ;;  %v1471_v23 = vadd.f32 %v1343_v22, %v1127_v41  ;;  %v7136_v19 = vld [vmem:[%s14395_s3 + $0x4d0] sm:$0xf0]  ;;  %v8150_v33 = vld [vmem:[%s14395_s3 + $0x7c4] sm:$0xf] }
 0x235   : > { %4253 = vmatpush.bf16.msrb.mxu2 %v7331_v0  ;;  %v15287_v0 = vld [vmem:[#allocation23_spill] sm:$0xff]  ;;  %4150 = vmatpush.bf16.msrb.mxu0 %v7155_v62  ;;  %v1951_v4 = vmax.f32 %v1823_v32, 0.0  ;;  %v7520_v59 = vld [vmem:[%s14395_s3 + $0x7d0] sm:$0xf0] }
 0x236   : > { %v11280_v48 = vpop.f32.mrf.mxu3  ;;  %4297 = vmatpush.bf16.msra.mxu3 %v7539_v16  ;;  %v7523_v6 = vor.u32 %v8150_v33, %v7520_v59  ;;  %v8146_v59 = vld [vmem:[%s14395_s3 + $0x7a4] sm:$0xf] }
 0x237   : > { %v11290_v57 = vpop.f32.mrf.mxu2  ;;  %v3767_v21 = vpop.f32.mrf.mxu0  ;;  %4205 = vmatpush.bf16.msrb.mxu1 %v7187_v15 }
 0x238   : > { %v11297_v5 = vadd.f32 %v3767_v21, %v3719_v11  ;;  %v1815_v21 = vadd.f32 %v1687_v35, %v1471_v23  ;;  %v15293_v35 = vld [vmem:[#allocation119_spill] sm:$0xff] }
 0x239   : > { %v11299_v2 = vpop.f32.mrf.mxu1  ;;  %4254 = vmatpush.bf16.msrb.mxu2 %v7315_v30 }
 0x23a   : > { %3962 = vmatmul.bf16.vlgmr.msra.gmra.mxu0 %v15284_v54  ;;  %v1943_v22 = vmax.f32 %v1815_v21, 0.0  ;;  %4298 = vmatpush.bf16.msra.mxu3 %v7523_v6  ;;  %v15295_v21 = vld [vmem:[#allocation2_spill] sm:$0xff]  ;;  %v7504_v6 = vld [vmem:[%s14395_s3 + $0x7b0] sm:$0xf0] }
 0x23b   : > { %3943 = vmatmul.bf16.gmra.mxu3 %v11301_v18  ;;  %4206 = vmatpush.bf16.msrb.mxu1 %v7171_v10  ;;  %v15291_v10 = vld [vmem:[#allocation81_spill] sm:$0xff] }
 0x23c   : > { %4041 = vmatmul.bf16.gmra.mxu1 %v15285_v25  ;;  %4090 = vmatmul.bf16.gmra.mxu2 %v15286_v36  ;;  %v11357_v55 = vpack.c.bf16 %v1951_v4, %v1943_v22  ;;  %v15296_v22 = vld [vmem:[#allocation40_spill] sm:$0xff] }
 0x23d   : > { %4255 = vmatpush.bf16.msrb.mxu2 %v7299_v40 }
 0x23e   : > { %v3748_v1 = vpop.f32.mrf.mxu3  ;;  %15288 = vst [vmem:[#allocation39_spill] sm:$0xff] %v11357_v55 }
 0x23f   : > { %v11341_v24 = vadd.f32 %v3748_v1, %v15287_v0  ;;  %v11343_v15 = vpop.f32.mrf.mxu2  ;;  %v3769_v11 = vpop.f32.mrf.mxu0  ;;  %v15292_v1 = vld [vmem:[#allocation123_spill] sm:$0xff] }
 0x240   : > { %v3770_v38 = vadd.f32 %v3769_v11, %v11157_v50  ;;  %v15289_v50 = vld [vmem:[#allocation26_spill] sm:$0xff]  ;;  %v3584_v16 = vadd.f32 %v15292_v1, %v15232_v39  ;;  %v15294_v11 = vld [vmem:[#allocation121_spill] sm:$0xff] }
 0x241   : > { %v11348_v42 = vpop.f32.mrf.mxu1  ;;  %v3817_v32 = vadd.f32 %v15294_v11, %v11297_v5  ;;  %v15299_v5 = vld [vmem:[#allocation129_spill] sm:$0xff]  ;;  %v15301_v1 = vld [vmem:[#allocation58_spill] sm:$0xff]  ;;  %v15302_v11 = vld [vmem:[#allocation19_spill] sm:$0xff] }
 0x246   : > { %v11350_v30 = vpop.f32.mrf.mxu3 }
 0x247   : > { %v11352_v7 = vpop.f32.mrf.mxu2  ;;  %v3772_v28 = vpop.f32.mrf.mxu0 }
 0x248   : > { %v3773_v26 = vadd.f32 %v3772_v28, %v11211_v45  ;;  %v7139_v45 = vor.u32 %v8054_v20, %v7136_v19  ;;  %v15297_v28 = vld [vmem:[#allocation127_spill] sm:$0xff]  ;;  %v8050_v20 = vld [vmem:[%s14395_s3 + $0x4a4] sm:$0xf]  ;;  %v7120_v19 = vld [vmem:[%s14395_s3 + $0x4b0] sm:$0xf0] }
 0x249   : > { %v11355_v9 = vpop.f32.mrf.mxu1  ;;  %v7123_v33 = vor.u32 %v8050_v20, %v7120_v19  ;;  %v15303_v19 = vld [vmem:[#allocation132_spill] sm:$0xff] }
 0x24a   : > { %3967 = vmatmul.bf16.gmra.mxu0 %v15289_v50 }
 0x24b   : > { %3948 = vmatmul.bf16.gmra.mxu3 %v11357_v55  ;;  %4151 = vmatpush.bf16.msrb.mxu0 %v7139_v45  ;;  %v15298_v45 = vld [vmem:[#allocation128_spill] sm:$0xff] }
 0x24c   : > { %4046 = vmatmul.bf16.gmra.mxu1 %v15290_v43  ;;  %4095 = vmatmul.bf16.gmra.mxu2 %v15291_v10 }
 0x24e   : > { %v3753_v41 = vpop.f32.mrf.mxu3 }
 0x24f   : > { %v11376_v29 = vadd.f32 %v3753_v41, %v10690_v27  ;;  %v11378_v40 = vpop.f32.mrf.mxu2  ;;  %v3774_v62 = vpop.f32.mrf.mxu0  ;;  %v3633_v27 = vadd.f32 %v15293_v35, %v3584_v16  ;;  %v15300_v41 = vld [vmem:[#allocation125_spill] sm:$0xff]  ;;  %v3866_v16 = vadd.f32 %v15301_v1, %v3817_v32  ;;  %4152 = vmatpush.bf16.msrb.mxu0 %v7123_v33  ;;  %v15305_v32 = vld [vmem:[#allocation98_spill] sm:$0xff] }
 0x250   : > { %v11381_v53 = vadd.f32 %v3774_v62, %v11260_v60 }
 0x251   : > { %v11383_v34 = vpop.f32.mrf.mxu1  ;;  %v3682_v62 = vadd.f32 %v15300_v41, %v3633_v27  ;;  %v15304_v27 = vld [vmem:[#allocation5_spill] sm:$0xff] }
 0x252   : > { %v3589_v41 = vadd.f32 %v15304_v27, %v15232_v39  ;;  %v15309_v27 = vld [vmem:[#allocation49_spill] sm:$0xff] }
 0x256   : > { %v11387_v0 = vpop.f32.mrf.mxu3 }
 0x257   : > { %v11389_v23 = vpop.f32.mrf.mxu2  ;;  %v3777_v31 = vpop.f32.mrf.mxu0 }
 0x258   : > { %v11395_v4 = vadd.f32 %v3777_v31, %v15295_v21  ;;  %v7507_v31 = vor.u32 %v8146_v59, %v7504_v6  ;;  %v3731_v21 = vadd.f32 %v15302_v11, %v3682_v62  ;;  %v15306_v62 = vld [vmem:[#allocation4_spill] sm:$0xff] }
 0x259   : > { %v11397_v60 = vpop.f32.mrf.mxu1 }
 0x25a   : > { %3972 = vmatmul.bf16.gmra.mxu0 %v15296_v22  ;;  %4299 = vmatpush.bf16.msra.mxu3 %v7507_v31  ;;  %v15307_v31 = vld [vmem:[#allocation101_spill] sm:$0xff] }
 0x25b   : > { %4109 = vmatmul.bf16.vlgmr.msrb.gmra.mxu3 %v15297_v28  ;;  %v3819_v28 = vadd.f32 %v15303_v19, %v3770_v38  ;;  %v3822_v11 = vadd.f32 %v15307_v31, %v3773_v26  ;;  %v7104_v26 = vld [vmem:[%s14395_s3 + $0x490] sm:$0xf0] }
 0x25c   : > { %4207 = vmatmul.bf16.vlgmr.msrb.gmra.mxu1 %v15298_v45  ;;  %4256 = vmatmul.bf16.vlgmr.msrb.gmra.mxu2 %v15299_v5 }
 0x25d   : > { %v3868_v59 = vadd.f32 %v15305_v32, %v3819_v28  ;;  %v15310_v28 = vld [vmem:[#allocation12_spill] sm:$0xff] }
 0x25e   : > { %v3914_v35 = vpop.f32.mrf.mxu3 }
 0x25f   : > { %v3915_v45 = vadd.f32 %v3914_v35, %v3866_v16  ;;  %v11418_v5 = vpop.f32.mrf.mxu2  ;;  %v3779_v20 = vpop.f32.mrf.mxu0  ;;  %v3638_v16 = vadd.f32 %v15306_v62, %v3589_v41  ;;  %v8046_v41 = vld [vmem:[%s14395_s3 + $0x484] sm:$0xf] }
 0x260   : > { %v11421_v22 = vadd.f32 %v3779_v20, %v3731_v21  ;;  %v7107_v32 = vor.u32 %v8046_v41, %v7104_v26  ;;  %v15314_v62 = vld [vmem:[#allocation122_spill] sm:$0xff] }
 0x261   : > { %v11423_v10 = vpop.f32.mrf.mxu1  ;;  %v5130_v43 = vmax.f32 %v3915_v45, 0.0  ;;  %v15311_v45 = vld [vmem:[#allocation15_spill] sm:$0xff] }
 0x262   : > { %4153 = vmatpush.bf16.msrb.mxu0 %v7107_v32 }
 0x266   : > { %v3916_v6 = vpop.f32.mrf.mxu3 }
 0x267   : > { %v3917_v33 = vadd.f32 %v3916_v6, %v3868_v59  ;;  %v11428_v1 = vpop.f32.mrf.mxu2  ;;  %v3782_v35 = vpop.f32.mrf.mxu0  ;;  %v7488_v59 = vld [vmem:[%s14395_s3 + $0x790] sm:$0xf0]  ;;  %v15313_v6 = vld [vmem:[#allocation137_spill] sm:$0xff] }
 0x268   : > { %v11433_v21 = vadd.f32 %v3782_v35, %v11053_v17  ;;  %v15312_v17 = vld [vmem:[#allocation138_spill] sm:$0xff]  ;;  %v3871_v35 = vadd.f32 %v15314_v62, %v3822_v11  ;;  %v15320_v62 = vld [vmem:[#allocation27_spill] sm:$0xff] }
 0x269   : > { %v5134_v38 = vmax.f32 %v3917_v33, 0.0  ;;  %v11435_v20 = vpop.f32.mrf.mxu1  ;;  %v3687_v33 = vadd.f32 %v15313_v6, %v3638_v16  ;;  %v15317_v16 = vld [vmem:[#allocation60_spill] sm:$0xff] }
 0x26a   : > { %3977 = vmatmul.bf16.gmra.mxu0 %v15309_v27  ;;  %v3594_v11 = vadd.f32 %v15317_v16, %v15232_v39  ;;  %v7088_v16 = vld [vmem:[%s14395_s3 + $0x470] sm:$0xf0] }
 0x26b   : > { %v11437_v19 = vpack.c.bf16 %v5134_v38, %v5130_v43  ;;  %4114 = vmatmul.bf16.gmra.mxu3 %v15310_v28  ;;  %v8142_v43 = vld [vmem:[%s14395_s3 + $0x784] sm:$0xf] }
 0x26c   : > { %4212 = vmatmul.bf16.gmra.mxu1 %v15311_v45  ;;  %4261 = vmatmul.bf16.gmra.mxu2 %v15312_v17  ;;  %v7491_v31 = vor.u32 %v8142_v43, %v7488_v59  ;;  %v15316_v17 = vld [vmem:[#allocation117_spill] sm:$0xff] }
 0x26d   : > { %15308 = vst [vmem:[#allocation7_spill] sm:$0xff] %v11437_v19  ;;  %v3736_v19 = vadd.f32 %v11080_v51, %v3687_v33  ;;  %v3824_v28 = vadd.f32 %v15316_v17, %v11381_v53  ;;  %v15318_v43 = vld [vmem:[#allocation9_spill] sm:$0xff] }
 0x26e   : > { %v3919_v38 = vpop.f32.mrf.mxu3  ;;  %4300 = vmatpush.bf16.msra.mxu3 %v7491_v31  ;;  %v15321_v31 = vld [vmem:[#allocation8_spill] sm:$0xff] }
 0x26f   : > { %v11458_v45 = vadd.f32 %v3919_v38, %v3871_v35  ;;  %v11460_v41 = vpop.f32.mrf.mxu2  ;;  %v3784_v26 = vpop.f32.mrf.mxu0  ;;  %v3873_v32 = vadd.f32 %v15318_v43, %v3824_v28  ;;  %v3643_v35 = vadd.f32 %v15320_v62, %v3594_v11  ;;  %v3827_v53 = vadd.f32 %v15321_v31, %v11395_v4  ;;  %v15322_v38 = vld [vmem:[#allocation55_spill] sm:$0xff]  ;;  %v8042_v28 = vld [vmem:[%s14395_s3 + $0x464] sm:$0xf]  ;;  %v15325_v4 = vld [vmem:[#allocation96_spill] sm:$0xff] }
 0x270   : > { %v11464_v27 = vadd.f32 %v3784_v26, %v3736_v19  ;;  %v15323_v26 = vld [vmem:[#allocation85_spill] sm:$0xff]  ;;  %v15324_v11 = vld [vmem:[#allocation87_spill] sm:$0xff]  ;;  %v8138_v43 = vld [vmem:[%s14395_s3 + $0x764] sm:$0xf] }
 0x271   : > { %15315 = vst [vmem:[#allocation21_spill] sm:$0xff] %v11458_v45  ;;  %v11466_v50 = vpop.f32.mrf.mxu1  ;;  %v15327_v62 = vld [vmem:[#allocation37_spill] sm:$0xff] }
 0x272   : > { %v3876_v31 = vadd.f32 %v15327_v62, %v3827_v53  ;;  %v15334_v62 = vld [vmem:[#allocation133_spill] sm:$0xff] }
 0x276   : > { %v3921_v59 = vpop.f32.mrf.mxu3 }
 0x277   : > { %v11471_v51 = vadd.f32 %v3921_v59, %v3873_v32  ;;  %v11473_v6 = vpop.f32.mrf.mxu2  ;;  %v3787_v33 = vpop.f32.mrf.mxu0  ;;  %v7472_v32 = vld [vmem:[%s14395_s3 + $0x770] sm:$0xf0] }
 0x278   : > { %v11479_v19 = vadd.f32 %v3787_v33, %v11148_v13  ;;  %v7091_v13 = vor.u32 %v8042_v28, %v7088_v16  ;;  %v15326_v59 = vld [vmem:[#allocation32_spill] sm:$0xff] }
 0x279   : > { %15319 = vst [vmem:[#allocation18_spill] sm:$0xff] %v11471_v51  ;;  %v11481_v17 = vpop.f32.mrf.mxu1  ;;  %v3692_v33 = vadd.f32 %v15326_v59, %v3643_v35  ;;  %v15330_v35 = vld [vmem:[#allocation69_spill] sm:$0xff] }
 0x27a   : > { %3982 = vmatmul.bf16.gmra.mxu0 %v15322_v38  ;;  %v3599_v53 = vadd.f32 %v15330_v35, %v15232_v39  ;;  %v7072_v35 = vld [vmem:[%s14395_s3 + $0x450] sm:$0xf0] }
 0x27b   : > { %4119 = vmatmul.bf16.gmra.mxu3 %v15323_v26  ;;  %v7475_v26 = vor.u32 %v8138_v43, %v7472_v32  ;;  %4154 = vmatpush.bf16.msrb.mxu0 %v7091_v13  ;;  %v15331_v43 = vld [vmem:[#allocation25_spill] sm:$0xff] }
 0x27c   : > { %4217 = vmatmul.bf16.gmra.mxu1 %v15324_v11  ;;  %4266 = vmatmul.bf16.gmra.mxu2 %v15325_v4  ;;  %v3741_v11 = vadd.f32 %v11181_v46, %v3692_v33  ;;  %v15329_v4 = vld [vmem:[#allocation3_spill] sm:$0xff] }
 0x27d   : > { %4301 = vmatpush.bf16.msra.mxu3 %v7475_v26  ;;  %v3829_v51 = vadd.f32 %v15329_v4, %v11421_v22  ;;  %v15333_v26 = vld [vmem:[#allocation130_spill] sm:$0xff]  ;;  %v3832_v22 = vadd.f32 %v15334_v62, %v11433_v21  ;;  %v15338_v21 = vld [vmem:[#allocation108_spill] sm:$0xff] }
 0x27e   : > { %v3924_v38 = vpop.f32.mrf.mxu3  ;;  %v3648_v33 = vadd.f32 %v15333_v26, %v3599_v53  ;;  %v15337_v53 = vld [vmem:[#allocation106_spill] sm:$0xff] }
 0x27f   : > { %v11502_v45 = vadd.f32 %v3924_v38, %v3876_v31  ;;  %v11504_v28 = vpop.f32.mrf.mxu2  ;;  %v3789_v16 = vpop.f32.mrf.mxu0  ;;  %v3878_v13 = vadd.f32 %v15331_v43, %v3829_v51  ;;  %v15335_v31 = vld [vmem:[#allocation75_spill] sm:$0xff]  ;;  %v8038_v51 = vld [vmem:[%s14395_s3 + $0x444] sm:$0xf]  ;;  %v3881_v26 = vadd.f32 %v11055_v3, %v3832_v22 }
 0x280   : > { %v11508_v55 = vadd.f32 %v3789_v16, %v3741_v11  ;;  %v15336_v16 = vld [vmem:[#allocation103_spill] sm:$0xff]  ;;  %v8134_v43 = vld [vmem:[%s14395_s3 + $0x744] sm:$0xf] }
 0x281   : > { %15328 = vst [vmem:[#allocation44_spill] sm:$0xff] %v11502_v45  ;;  %v11510_v36 = vpop.f32.mrf.mxu1  ;;  %v8034_v3 = vld [vmem:[%s14395_s3 + $0x424] sm:$0xf]  ;;  %v15341_v22 = vld [vmem:[#allocation31_spill] sm:$0xff] }
 0x286   : > { %v3926_v32 = vpop.f32.mrf.mxu3 }
 0x287   : > { %v11515_v46 = vadd.f32 %v3926_v32, %v3878_v13  ;;  %v11517_v38 = vpop.f32.mrf.mxu2  ;;  %v3792_v59 = vpop.f32.mrf.mxu0  ;;  %v7456_v13 = vld [vmem:[%s14395_s3 + $0x750] sm:$0xf0] }
 0x288   : > { %v11523_v11 = vadd.f32 %v3792_v59, %v11248_v49  ;;  %v7075_v49 = vor.u32 %v8038_v51, %v7072_v35  ;;  %v15339_v32 = vld [vmem:[#allocation104_spill] sm:$0xff]  ;;  %v7459_v62 = vor.u32 %v8134_v43, %v7456_v13 }
 0x289   : > { %15332 = vst [vmem:[#allocation46_spill] sm:$0xff] %v11515_v46  ;;  %v11525_v4 = vpop.f32.mrf.mxu1  ;;  %v3697_v59 = vadd.f32 %v15339_v32, %v3648_v33  ;;  %v15344_v32 = vld [vmem:[#allocation136_spill] sm:$0xff] }
 0x28a   : > { %3987 = vmatmul.bf16.gmra.mxu0 %v15335_v31  ;;  %4302 = vmatpush.bf16.msra.mxu3 %v7459_v62 }
 0x28b   : > { %4124 = vmatmul.bf16.gmra.mxu3 %v15336_v16  ;;  %4155 = vmatpush.bf16.msrb.mxu0 %v7075_v49  ;;  %v15342_v49 = vld [vmem:[#allocation124_spill] sm:$0xff] }
 0x28c   : > { %4222 = vmatmul.bf16.gmra.mxu1 %v15337_v53  ;;  %4271 = vmatmul.bf16.gmra.mxu2 %v15338_v21  ;;  %v3746_v53 = vadd.f32 %v11280_v48, %v3697_v59  ;;  %v3834_v21 = vadd.f32 %v11061_v12, %v11464_v27  ;;  %v7056_v48 = vld [vmem:[%s14395_s3 + $0x430] sm:$0xf0] }
 0x28d   : > { %v7059_v33 = vor.u32 %v8034_v3, %v7056_v48  ;;  %v15346_v48 = vld [vmem:[#allocation92_spill] sm:$0xff] }
 0x28e   : > { %v3929_v16 = vpop.f32.mrf.mxu3  ;;  %v3883_v43 = vadd.f32 %v15342_v49, %v3834_v21  ;;  %v15347_v21 = vld [vmem:[#allocation111_spill] sm:$0xff]  ;;  %v8130_v49 = vld [vmem:[%s14395_s3 + $0x724] sm:$0xf] }
 0x28f   : > { %v11546_v31 = vadd.f32 %v3929_v16, %v3881_v26  ;;  %v11548_v51 = vpop.f32.mrf.mxu2  ;;  %v3794_v35 = vpop.f32.mrf.mxu0  ;;  %v3604_v16 = vadd.f32 %v15341_v22, %v15232_v39  ;;  %4156 = vmatpush.bf16.msrb.mxu0 %v7059_v33  ;;  %v15345_v26 = vld [vmem:[#allocation135_spill] sm:$0xff]  ;;  %v8030_v33 = vld [vmem:[%s14395_s3 + $0x404] sm:$0xf]  ;;  %v7040_v22 = vld [vmem:[%s14395_s3 + $0x410] sm:$0xf0] }
 0x290   : > { %v11552_v45 = vadd.f32 %v3794_v35, %v3746_v53  ;;  %v3837_v62 = vadd.f32 %v15345_v26, %v11479_v19  ;;  %v15349_v19 = vld [vmem:[#allocation109_spill] sm:$0xff] }
 0x291   : > { %15340 = vst [vmem:[#allocation33_spill] sm:$0xff] %v11546_v31  ;;  %v11554_v46 = vpop.f32.mrf.mxu1  ;;  %v3653_v59 = vadd.f32 %v15344_v32, %v3604_v16  ;;  %v15348_v16 = vld [vmem:[#allocation110_spill] sm:$0xff] }
 0x292   : > { %v3886_v26 = vadd.f32 %v11150_v44, %v3837_v62 }
 0x296   : > { %v3931_v13 = vpop.f32.mrf.mxu3 }
 0x297   : > { %v11565_v12 = vadd.f32 %v3931_v13, %v3883_v43  ;;  %v11567_v27 = vpop.f32.mrf.mxu2  ;;  %v3797_v53 = vpop.f32.mrf.mxu0  ;;  %v7440_v43 = vld [vmem:[%s14395_s3 + $0x730] sm:$0xf0]  ;;  %v6774_v13 = vld [vmem:[%s14395_s3 + $0x1e8] sm:$0xf] }
 0x298   : > { %v11573_v35 = vadd.f32 %v3797_v53, %v11341_v24  ;;  %v7043_v24 = vor.u32 %v8030_v33, %v7040_v22  ;;  %v15350_v53 = vld [vmem:[#allocation34_spill] sm:$0xff]  ;;  %v7965_v33 = vld [vmem:[%s14395_s3 + $0x1f4] sm:$0xf0]  ;;  %v6902_v22 = vld [vmem:[%s14395_s3 + $0x2e8] sm:$0xf] }
 0x299   : > { %15343 = vst [vmem:[#allocation47_spill] sm:$0xff] %v11565_v12  ;;  %v11575_v3 = vpop.f32.mrf.mxu1  ;;  %v3702_v32 = vadd.f32 %v15350_v53, %v3653_v59 }
 0x29a   : > { %3992 = vmatmul.bf16.gmra.mxu0 %v15346_v48  ;;  %v6775_v48 = vor.u32 %v7965_v33, %v6774_v13 }
 0x29b   : > { %4129 = vmatmul.bf16.gmra.mxu3 %v15347_v21  ;;  %4157 = vmatpush.bf16.msrb.mxu0 %v7043_v24  ;;  %v3751_v59 = vadd.f32 %v11350_v30, %v3702_v32  ;;  %v7961_v30 = vld [vmem:[%s14395_s3 + $0x1d4] sm:$0xf0] }
 0x29c   : > { %4227 = vmatmul.bf16.gmra.mxu1 %v15348_v16  ;;  %4276 = vmatmul.bf16.gmra.mxu2 %v15349_v19  ;;  %v7443_v16 = vor.u32 %v8130_v49, %v7440_v43  ;;  %v7997_v19 = vld [vmem:[%s14395_s3 + $0x2f4] sm:$0xf0]  ;;  %v3839_v43 = vadd.f32 %v11154_v47, %v11508_v55  ;;  %v6742_v55 = vld [vmem:[%s14395_s3 + $0x1a8] sm:$0xf] }
 0x29d   : > { %v6903_v31 = vor.u32 %v7997_v19, %v6902_v22  ;;  %4395 = vmatpush.bf16.msra.mxu1 %v6775_v48  ;;  %v6758_v19 = vld [vmem:[%s14395_s3 + $0x1c8] sm:$0xf]  ;;  %v7993_v47 = vld [vmem:[%s14395_s3 + $0x2d4] sm:$0xf0] }
 0x29e   : > { %v3934_v21 = vpop.f32.mrf.mxu3  ;;  %4303 = vmatpush.bf16.msra.mxu3 %v7443_v16  ;;  %v6886_v48 = vld [vmem:[%s14395_s3 + $0x2c8] sm:$0xf]  ;;  %v3888_v13 = vadd.f32 %v11191_v61, %v3839_v43  ;;  %v3842_v43 = vadd.f32 %v11198_v56, %v11523_v11  ;;  %v15358_v11 = vld [vmem:[#allocation97_spill] sm:$0xff] }
 0x29f   : > { %v11608_v44 = vadd.f32 %v3934_v21, %v3886_v26  ;;  %v11610_v62 = vpop.f32.mrf.mxu2  ;;  %v3799_v49 = vpop.f32.mrf.mxu0  ;;  %4444 = vmatpush.bf16.msra.mxu2 %v6903_v31  ;;  %v6759_v31 = vor.u32 %v7961_v30, %v6758_v19  ;;  %v7957_v21 = vld [vmem:[%s14395_s3 + $0x1b4] sm:$0xf0]  ;;  %v15352_v16 = vld [vmem:[#allocation131_spill] sm:$0xff]  ;;  %v6887_v32 = vor.u32 %v7993_v47, %v6886_v48 }
 0x2a0   : > { %v11614_v53 = vadd.f32 %v3799_v49, %v3751_v59  ;;  %v3609_v24 = vadd.f32 %v15352_v16, %v15232_v39  ;;  %v6743_v33 = vor.u32 %v7957_v21, %v6742_v55  ;;  %v6870_v22 = vld [vmem:[%s14395_s3 + $0x2a8] sm:$0xf]  ;;  %v7989_v59 = vld [vmem:[%s14395_s3 + $0x2b4] sm:$0xf0]  ;;  %v15355_v55 = vld [vmem:[#allocation80_spill] sm:$0xff] }
 0x2a1   : > { %15351 = vst [vmem:[#allocation38_spill] sm:$0xff] %v11608_v44  ;;  %v11616_v12 = vpop.f32.mrf.mxu1  ;;  %4396 = vmatpush.bf16.msra.mxu1 %v6759_v31  ;;  %v15354_v30 = vld [vmem:[#allocation65_spill] sm:$0xff]  ;;  %v6871_v47 = vor.u32 %v7989_v59, %v6870_v22  ;;  %v15356_v21 = vld [vmem:[#allocation112_spill] sm:$0xff]  ;;  %v6726_v16 = vld [vmem:[%s14395_s3 + $0x188] sm:$0xf] }
 0x2a2   : > { %v3658_v61 = vadd.f32 %v15354_v30, %v3609_v24  ;;  %v7953_v24 = vld [vmem:[%s14395_s3 + $0x194] sm:$0xf0]  ;;  %v6854_v56 = vld [vmem:[%s14395_s3 + $0x288] sm:$0xf]  ;;  %v15359_v22 = vld [vmem:[#allocation64_spill] sm:$0xff] }
 0x2a3   : > { %4445 = vmatpush.bf16.msra.mxu2 %v6887_v32  ;;  %v7985_v32 = vld [vmem:[%s14395_s3 + $0x294] sm:$0xf0] }
 0x2a4   : > { %v3707_v59 = vadd.f32 %v15359_v22, %v3658_v61  ;;  %v6855_v30 = vor.u32 %v7985_v32, %v6854_v56  ;;  %v6838_v61 = vld [vmem:[%s14395_s3 + $0x268] sm:$0xf] }
 0x2a5   : > { %4397 = vmatpush.bf16.msra.mxu1 %v6743_v33  ;;  %v7424_v33 = vld [vmem:[%s14395_s3 + $0x710] sm:$0xf0] }
 0x2a6   : > { %v3936_v26 = vpop.f32.mrf.mxu3 }
 0x2a7   : > { %v11645_v49 = vadd.f32 %v3936_v26, %v3888_v13  ;;  %v11647_v19 = vpop.f32.mrf.mxu2  ;;  %v3802_v39 = vpop.f32.mrf.mxu0  ;;  %v6727_v13 = vor.u32 %v7953_v24, %v6726_v16  ;;  %v8126_v26 = vld [vmem:[%s14395_s3 + $0x704] sm:$0xf]  ;;  %4446 = vmatpush.bf16.msra.mxu2 %v6871_v47  ;;  %v6710_v16 = vld [vmem:[%s14395_s3 + $0x168] sm:$0xf]  ;;  %v7949_v24 = vld [vmem:[%s14395_s3 + $0x174] sm:$0xf0] }
 0x2a8   : > { %v11653_v48 = vadd.f32 %v3802_v39, %v11376_v29  ;;  %v15357_v29 = vld [vmem:[#allocation71_spill] sm:$0xff]  ;;  %v3891_v39 = vadd.f32 %v11250_v63, %v3842_v43  ;;  %v7981_v63 = vld [vmem:[%s14395_s3 + $0x274] sm:$0xf0]  ;;  %v3756_v43 = vadd.f32 %v11387_v0, %v3707_v59 }
 0x2a9   : > { %15353 = vst [vmem:[#allocation52_spill] sm:$0xff] %v11645_v49  ;;  %v11655_v31 = vpop.f32.mrf.mxu1  ;;  %4398 = vmatpush.bf16.msra.mxu1 %v6727_v13  ;;  %v3844_v13 = vadd.f32 %v11255_v8, %v11552_v45  ;;  %v6839_v22 = vor.u32 %v7981_v63, %v6838_v61  ;;  %v6694_v0 = vld [vmem:[%s14395_s3 + $0x148] sm:$0xf]  ;;  %v7977_v45 = vld [vmem:[%s14395_s3 + $0x254] sm:$0xf0] }
 0x2aa   : > { %3997 = vmatmul.bf16.gmra.mxu0 %v15355_v55  ;;  %v7941_v59 = vld [vmem:[%s14395_s3 + $0x134] sm:$0xf0]  ;;  %v6806_v61 = vld [vmem:[%s14395_s3 + $0x228] sm:$0xf] }
 0x2ab   : > { %4134 = vmatmul.bf16.gmra.mxu3 %v15356_v21  ;;  %v6711_v21 = vor.u32 %v7949_v24, %v6710_v16  ;;  %4447 = vmatpush.bf16.msra.mxu2 %v6855_v30  ;;  %v7973_v63 = vld [vmem:[%s14395_s3 + $0x234] sm:$0xf0] }
 0x2ac   : > { %4232 = vmatmul.bf16.gmra.mxu1 %v15357_v29  ;;  %4281 = vmatmul.bf16.gmra.mxu2 %v15358_v11  ;;  %v7427_v11 = vor.u32 %v8126_v26, %v7424_v33 }
 0x2ad   : > { %4399 = vmatpush.bf16.msra.mxu1 %v6711_v21  ;;  %v6678_v21 = vld [vmem:[%s14395_s3 + $0x128] sm:$0xf] }
 0x2ae   : > { %v3939_v29 = vpop.f32.mrf.mxu3  ;;  %4304 = vmatpush.bf16.msra.mxu3 %v7427_v11  ;;  %v6822_v11 = vld [vmem:[%s14395_s3 + $0x248] sm:$0xf]  ;;  %v6679_v24 = vor.u32 %v7941_v59, %v6678_v21  ;;  %v15365_v21 = vld [vmem:[#allocation118_spill] sm:$0xff] }
 0x2af   : > { %v11694_v47 = vadd.f32 %v3939_v29, %v3891_v39  ;;  %v11696_v56 = vpop.f32.mrf.mxu2  ;;  %v3804_v32 = vpop.f32.mrf.mxu0  ;;  %v7945_v29 = vld [vmem:[%s14395_s3 + $0x154] sm:$0xf0]  ;;  %v3893_v39 = vadd.f32 %v11290_v57, %v3844_v13  ;;  %4448 = vmatpush.bf16.msra.mxu2 %v6839_v22  ;;  %v6823_v30 = vor.u32 %v7977_v45, %v6822_v11  ;;  %v3847_v57 = vadd.f32 %v11299_v2, %v11573_v35  ;;  %v15363_v11 = vld [vmem:[#allocation67_spill] sm:$0xff] }
 0x2b0   : > { %v11700_v26 = vadd.f32 %v3804_v32, %v3756_v43  ;;  %v6695_v8 = vor.u32 %v7945_v29, %v6694_v0  ;;  %v6807_v22 = vor.u32 %v7973_v63, %v6806_v61  ;;  %v15362_v29 = vld [vmem:[#allocation107_spill] sm:$0xff]  ;;  %v7937_v45 = vld [vmem:[%s14395_s3 + $0x114] sm:$0xf0] }
 0x2b1   : > { %15360 = vst [vmem:[#allocation43_spill] sm:$0xff] %v11694_v47  ;;  %v11702_v33 = vpop.f32.mrf.mxu1  ;;  %v6790_v2 = vld [vmem:[%s14395_s3 + $0x208] sm:$0xf]  ;;  %v15364_v35 = vld [vmem:[#allocation29_spill] sm:$0xff] }
 0x2b2   : > { %4400 = vmatpush.bf16.msra.mxu1 %v6695_v8  ;;  %v6662_v8 = vld [vmem:[%s14395_s3 + $0x108] sm:$0xf] }
 0x2b3   : > { %4449 = vmatpush.bf16.msra.mxu2 %v6823_v30  ;;  %v6663_v59 = vor.u32 %v7937_v45, %v6662_v8  ;;  %v6646_v30 = vld [vmem:[%s14395_s3 + $0xe8] sm:$0xf]  ;;  %v8029_v45 = vld [vmem:[%s14395_s3 + $0x3f4] sm:$0xf0] }
 0x2b4   : > { %v7030_v8 = vld [vmem:[%s14395_s3 + $0x3e8] sm:$0xf] }
 0x2b6   : > { %v3941_v16 = vpop.f32.mrf.mxu3  ;;  %4401 = vmatpush.bf16.msra.mxu1 %v6679_v24  ;;  %v3896_v24 = vadd.f32 %v11343_v15, %v3847_v57  ;;  %v3849_v57 = vadd.f32 %v11348_v42, %v11614_v53  ;;  %v6630_v42 = vld [vmem:[%s14395_s3 + $0xc8] sm:$0xf]  ;;  %v15370_v53 = vld [vmem:[#allocation62_spill] sm:$0xff] }
 0x2b7   : > { %v11729_v43 = vadd.f32 %v3941_v16, %v3893_v39  ;;  %v11731_v32 = vpop.f32.mrf.mxu2  ;;  %v3963_v0 = vpop.f32.mrf.mxu0  ;;  %v7969_v39 = vld [vmem:[%s14395_s3 + $0x214] sm:$0xf0]  ;;  %4450 = vmatpush.bf16.msra.mxu2 %v6807_v22 }
 0x2b8   : > { %v7933_v16 = vld [vmem:[%s14395_s3 + $0xf4] sm:$0xf0]  ;;  %v6791_v61 = vor.u32 %v7969_v39, %v6790_v2  ;;  %v3898_v2 = vadd.f32 %v11352_v7, %v3849_v57 }
 0x2b9   : > { %15361 = vst [vmem:[#allocation54_spill] sm:$0xff] %v11729_v43  ;;  %v11735_v13 = vpop.f32.mrf.mxu1  ;;  %v6647_v63 = vor.u32 %v7933_v16, %v6646_v30  ;;  %v3852_v16 = vadd.f32 %v11355_v9, %v11653_v48  ;;  %v7929_v7 = vld [vmem:[%s14395_s3 + $0xd4] sm:$0xf0]  ;;  %v7014_v9 = vld [vmem:[%s14395_s3 + $0x3c8] sm:$0xf] }
 0x2ba   : > { %4158 = vmatmul.bf16.vlgmr.msrb.gmra.mxu0 %v15363_v11  ;;  %4402 = vmatpush.bf16.msra.mxu1 %v6663_v59  ;;  %v8025_v48 = vld [vmem:[%s14395_s3 + $0x3d4] sm:$0xf0] }
 0x2bb   : > { %4139 = vmatmul.bf16.gmra.mxu3 %v15362_v29  ;;  %4346 = vmatpush.bf16.msra.mxu0 %v6647_v63  ;;  %v15369_v63 = vld [vmem:[#allocation22_spill] sm:$0xff]  ;;  %v7015_v57 = vor.u32 %v8025_v48, %v7014_v9 }
 0x2bc   : > { %4237 = vmatmul.bf16.gmra.mxu1 %v15364_v35  ;;  %4286 = vmatmul.bf16.gmra.mxu2 %v15365_v21  ;;  %v7031_v35 = vor.u32 %v8029_v45, %v7030_v8  ;;  %v6631_v8 = vor.u32 %v7929_v7, %v6630_v42  ;;  %v3901_v45 = vadd.f32 %v11378_v40, %v3852_v16  ;;  %v8392_v7 = vld [vmem:[%s14396_s4] sm:$0xf] }
 0x2bd   : > { %4451 = vmatpush.bf16.msra.mxu2 %v6791_v61  ;;  %v15371_v61 = vld [vmem:[#allocation63_spill] sm:$0xff]  ;;  %v3854_v42 = vadd.f32 %v11383_v34, %v11700_v26 }
 0x2be   : > { %v3944_v21 = vpop.f32.mrf.mxu3  ;;  %4493 = vmatpush.bf16.msrb.mxu3 %v7031_v35  ;;  %v15368_v35 = vld [vmem:[#allocation68_spill] sm:$0xff] }
 0x2bf   : > { %v11766_v11 = vadd.f32 %v3944_v21, %v3896_v24  ;;  %v11768_v29 = vpop.f32.mrf.mxu2  ;;  %v3965_v15 = vpop.f32.mrf.mxu0  ;;  %4347 = vmatpush.bf16.msra.mxu0 %v6631_v8  ;;  %v3903_v16 = vadd.f32 %v11389_v23, %v3854_v42  ;;  %v7925_v23 = vld [vmem:[%s14395_s3 + $0xb4] sm:$0xf0]  ;;  %v15376_v42 = vld [vmem:[#allocation115_spill] sm:$0xff] }
 0x2c1   : > { %15366 = vst [vmem:[#allocation48_spill] sm:$0xff] %v11766_v11  ;;  %v11772_v22 = vpop.f32.mrf.mxu1 }
 0x2c2   : > { %4494 = vmatpush.bf16.msrb.mxu3 %v7015_v57  ;;  %v15374_v57 = vld [vmem:[#allocation105_spill] sm:$0xff] }
 0x2c6   : > { %v3946_v39 = vpop.f32.mrf.mxu3 }
 0x2c7   : > { %v11775_v30 = vadd.f32 %v3946_v39, %v3898_v2  ;;  %v11777_v59 = vpop.f32.mrf.mxu2  ;;  %v3968_v21 = vpop.f32.mrf.mxu0 }
 0x2c9   : > { %15367 = vst [vmem:[#allocation116_spill] sm:$0xff] %v11775_v30  ;;  %v11781_v24 = vpop.f32.mrf.mxu1 }
 0x2ca   : > { %4163 = vmatmul.bf16.gmra.mxu0 %v15369_v63 }
 0x2cb   : > { %4144 = vmatmul.bf16.gmra.mxu3 %v15368_v35 }
 0x2cc   : > { %4242 = vmatmul.bf16.gmra.mxu1 %v15370_v53  ;;  %4291 = vmatmul.bf16.gmra.mxu2 %v15371_v61  ;;  %v11809_v53 = vperm.slane %v8392_v7, 1  ;;  %v15377_v7 = vld [vmem:[#allocation28_spill] sm:$0xff] }
 0x2ce   : > { %v3949_v2 = vpop.f32.mrf.mxu3  ;;  %v3964_v40 = vadd.f32 %v3963_v0, %v11809_v53  ;;  %v6614_v0 = vld [vmem:[%s14395_s3 + $0xa8] sm:$0xf]  ;;  %v3969_v11 = vadd.f32 %v3968_v21, %v11809_v53  ;;  %v15381_v21 = vld [vmem:[#allocation30_spill] sm:$0xff] }
 0x2cf   : > { %v11800_v39 = vadd.f32 %v3949_v2, %v3901_v45  ;;  %v11802_v63 = vpop.f32.mrf.mxu2  ;;  %v3970_v61 = vpop.f32.mrf.mxu0  ;;  %v15375_v2 = vld [vmem:[#allocation100_spill] sm:$0xff] }
 0x2d0   : > { %v4013_v34 = vadd.f32 %v11397_v60, %v3964_v40  ;;  %v6998_v60 = vld [vmem:[%s14395_s3 + $0x3a8] sm:$0xf]  ;;  %v8021_v40 = vld [vmem:[%s14395_s3 + $0x3b4] sm:$0xf0] }
 0x2d1   : > { %15372 = vst [vmem:[#allocation35_spill] sm:$0xff] %v11800_v39  ;;  %v11811_v35 = vpop.f32.mrf.mxu1 }
 0x2d6   : > { %v3951_v8 = vpop.f32.mrf.mxu3 }
 0x2d7   : > { %v11815_v9 = vadd.f32 %v3951_v8, %v3903_v16  ;;  %v11817_v48 = vpop.f32.mrf.mxu2  ;;  %v3973_v45 = vpop.f32.mrf.mxu0  ;;  %v6615_v16 = vor.u32 %v7925_v23, %v6614_v0  ;;  %v3966_v8 = vadd.f32 %v3965_v15, %v11809_v53 }
 0x2d9   : > { %15373 = vst [vmem:[#allocation66_spill] sm:$0xff] %v11815_v9  ;;  %v11820_v26 = vpop.f32.mrf.mxu1  ;;  %4348 = vmatpush.bf16.msra.mxu0 %v6615_v16  ;;  %v4015_v23 = vadd.f32 %v11423_v10, %v3966_v8  ;;  %v15379_v16 = vld [vmem:[#allocation102_spill] sm:$0xff]  ;;  %v6598_v10 = vld [vmem:[%s14395_s3 + $0x88] sm:$0xf] }
 0x2da   : > { %4168 = vmatmul.bf16.gmra.mxu0 %v15374_v57  ;;  %v6999_v57 = vor.u32 %v8021_v40, %v6998_v60  ;;  %v3971_v40 = vadd.f32 %v3970_v61, %v11809_v53 }
 0x2db   : > { %4305 = vmatmul.bf16.vlgmr.msra.gmra.mxu3 %v15375_v2  ;;  %v4062_v2 = vadd.f32 %v11418_v5, %v4013_v34  ;;  %v4064_v30 = vadd.f32 %v11428_v1, %v4015_v23  ;;  %v7921_v1 = vld [vmem:[%s14395_s3 + $0x94] sm:$0xf0] }
 0x2dc   : > { %4403 = vmatmul.bf16.vlgmr.msra.gmra.mxu1 %v15376_v42  ;;  %4452 = vmatmul.bf16.vlgmr.msra.gmra.mxu2 %v15377_v7  ;;  %v6599_v60 = vor.u32 %v7921_v1, %v6598_v10  ;;  %v4020_v1 = vadd.f32 %v11466_v50, %v3971_v40  ;;  %v6582_v50 = vld [vmem:[%s14395_s3 + $0x68] sm:$0xf] }
 0x2dd   : > { %4495 = vmatpush.bf16.msrb.mxu3 %v6999_v57  ;;  %v15378_v57 = vld [vmem:[#allocation114_spill] sm:$0xff] }
 0x2de   : > { %v4110_v39 = vpop.f32.mrf.mxu3  ;;  %4349 = vmatpush.bf16.msra.mxu0 %v6599_v60  ;;  %v4069_v47 = vadd.f32 %v11473_v6, %v4020_v1  ;;  %v7917_v6 = vld [vmem:[%s14395_s3 + $0x74] sm:$0xf0] }
 0x2df   : > { %v11840_v9 = vadd.f32 %v4110_v39, %v4062_v2  ;;  %v11842_v42 = vpop.f32.mrf.mxu2  ;;  %v3975_v0 = vpop.f32.mrf.mxu0  ;;  %v4018_v39 = vadd.f32 %v11435_v20, %v3969_v11  ;;  %v6982_v20 = vld [vmem:[%s14395_s3 + $0x388] sm:$0xf]  ;;  %v8017_v11 = vld [vmem:[%s14395_s3 + $0x394] sm:$0xf0]  ;;  %v6583_v40 = vor.u32 %v7917_v6, %v6582_v50 }
 0x2e0   : > { %v6983_v23 = vor.u32 %v8017_v11, %v6982_v20  ;;  %v15382_v11 = vld [vmem:[#allocation13_spill] sm:$0xff] }
 0x2e1   : > { %v11845_v7 = vpop.f32.mrf.mxu1  ;;  %v4067_v8 = vadd.f32 %v11460_v41, %v4018_v39 }
 0x2e2   : > { %4496 = vmatpush.bf16.msrb.mxu3 %v6983_v23  ;;  %v3976_v23 = vadd.f32 %v3975_v0, %v11809_v53  ;;  %4350 = vmatpush.bf16.msra.mxu0 %v6583_v40 }
 0x2e4   : > { %v4025_v6 = vadd.f32 %v11510_v36, %v3976_v23  ;;  %v15387_v36 = vld [vmem:[#allocation6_spill] sm:$0xff]  ;;  %v15389_v23 = vld [vmem:[#allocation51_spill] sm:$0xff] }
 0x2e6   : > { %v4112_v15 = vpop.f32.mrf.mxu3  ;;  %v4074_v44 = vadd.f32 %v11517_v38, %v4025_v6  ;;  %v7913_v38 = vld [vmem:[%s14395_s3 + $0x54] sm:$0xf0] }
 0x2e7   : > { %v11849_v55 = vadd.f32 %v4112_v15, %v4064_v30  ;;  %v11851_v5 = vpop.f32.mrf.mxu2  ;;  %v3978_v34 = vpop.f32.mrf.mxu0  ;;  %v15380_v30 = vld [vmem:[#allocation113_spill] sm:$0xff] }
 0x2e9   : > { %v11854_v2 = vpop.f32.mrf.mxu1 }
 0x2ea   : > { %4173 = vmatmul.bf16.gmra.mxu0 %v15378_v57  ;;  %v3974_v57 = vadd.f32 %v3973_v45, %v11809_v53  ;;  %v15385_v45 = vld [vmem:[#allocation42_spill] sm:$0xff] }
 0x2eb   : > { %4310 = vmatmul.bf16.gmra.mxu3 %v15379_v16 }
 0x2ec   : > { %4408 = vmatmul.bf16.gmra.mxu1 %v15380_v30  ;;  %4457 = vmatmul.bf16.gmra.mxu2 %v15381_v21  ;;  %v4023_v60 = vadd.f32 %v11481_v17, %v3974_v57  ;;  %v6966_v17 = vld [vmem:[%s14395_s3 + $0x368] sm:$0xf]  ;;  %v8013_v57 = vld [vmem:[%s14395_s3 + $0x374] sm:$0xf0] }
 0x2ed   : > { %v6967_v1 = vor.u32 %v8013_v57, %v6966_v17  ;;  %v15386_v57 = vld [vmem:[#allocation24_spill] sm:$0xff] }
 0x2ee   : > { %v4115_v15 = vpop.f32.mrf.mxu3 }
 0x2ef   : > { %v11874_v16 = vadd.f32 %v4115_v15, %v4067_v8  ;;  %v11876_v30 = vpop.f32.mrf.mxu2  ;;  %v3980_v10 = vpop.f32.mrf.mxu0  ;;  %v15383_v8 = vld [vmem:[#allocation14_spill] sm:$0xff]  ;;  %v4072_v15 = vadd.f32 %v11504_v28, %v4023_v60  ;;  %4497 = vmatpush.bf16.msrb.mxu3 %v6967_v1 }
 0x2f0   : > { %v3981_v1 = vadd.f32 %v3980_v10, %v11809_v53  ;;  %v6550_v10 = vld [vmem:[%s14395_s3 + $0x28] sm:$0xf] }
 0x2f1   : > { %v11879_v21 = vpop.f32.mrf.mxu1 }
 0x2f6   : > { %v4117_v61 = vpop.f32.mrf.mxu3 }
 0x2f7   : > { %v11883_v43 = vadd.f32 %v4117_v61, %v4069_v47  ;;  %v11885_v41 = vpop.f32.mrf.mxu2  ;;  %v3983_v39 = vpop.f32.mrf.mxu0  ;;  %v15384_v47 = vld [vmem:[#allocation41_spill] sm:$0xff] }
 0x2f9   : > { %v11888_v20 = vpop.f32.mrf.mxu1 }
 0x2fa   : > { %4178 = vmatmul.bf16.gmra.mxu0 %v15382_v11  ;;  %v3979_v11 = vadd.f32 %v3978_v34, %v11809_v53  ;;  %v6566_v34 = vld [vmem:[%s14395_s3 + $0x48] sm:$0xf] }
 0x2fb   : > { %4315 = vmatmul.bf16.gmra.mxu3 %v15383_v8 }
 0x2fc   : > { %4413 = vmatmul.bf16.gmra.mxu1 %v15384_v47  ;;  %4462 = vmatmul.bf16.gmra.mxu2 %v15385_v45  ;;  %v4028_v40 = vadd.f32 %v11525_v4, %v3979_v11  ;;  %v6950_v4 = vld [vmem:[%s14395_s3 + $0x348] sm:$0xf]  ;;  %v8009_v11 = vld [vmem:[%s14395_s3 + $0x354] sm:$0xf0] }
 0x2fd   : > { %v6951_v6 = vor.u32 %v8009_v11, %v6950_v4 }
 0x2fe   : > { %v4120_v61 = vpop.f32.mrf.mxu3 }
 0x2ff   : > { %v11908_v8 = vadd.f32 %v4120_v61, %v4072_v15  ;;  %v11910_v47 = vpop.f32.mrf.mxu2  ;;  %v3985_v50 = vpop.f32.mrf.mxu0  ;;  %v6567_v15 = vor.u32 %v7913_v38, %v6566_v34  ;;  %v4077_v61 = vadd.f32 %v11548_v51, %v4028_v40  ;;  %4498 = vmatpush.bf16.msrb.mxu3 %v6951_v6  ;;  %v4030_v38 = vadd.f32 %v11554_v46, %v3981_v1  ;;  %v7909_v51 = vld [vmem:[%s14395_s3 + $0x34] sm:$0xf0] }
 0x300   : > { %v6551_v40 = vor.u32 %v7909_v51, %v6550_v10  ;;  %v15396_v10 = vld [vmem:[#allocation57_spill] sm:$0xff] }
 0x301   : > { %v11913_v45 = vpop.f32.mrf.mxu1  ;;  %4351 = vmatpush.bf16.msra.mxu0 %v6567_v15  ;;  %v3984_v15 = vadd.f32 %v3983_v39, %v11809_v53  ;;  %v4079_v4 = vadd.f32 %v11567_v27, %v4030_v38  ;;  %v6534_v27 = vld [vmem:[%s14395_s3 + $0x8] sm:$0xf]  ;;  %v7905_v39 = vld [vmem:[%s14395_s3 + $0x14] sm:$0xf0]  ;;  %v15395_v38 = vld [vmem:[#allocation56_spill] sm:$0xff] }
 0x302   : > { %v6535_v51 = vor.u32 %v7905_v39, %v6534_v27  ;;  %v8093_v27 = vld [vmem:[%s14395_s3 + $0x5f4] sm:$0xf0]  ;;  %v7414_v39 = vld [vmem:[%s14395_s3 + $0x6e8] sm:$0xf] }
 0x303   : > { %v4033_v6 = vadd.f32 %v11575_v3, %v3984_v15  ;;  %v6934_v3 = vld [vmem:[%s14395_s3 + $0x328] sm:$0xf] }
 0x304   : > { %v7286_v15 = vld [vmem:[%s14395_s3 + $0x5e8] sm:$0xf] }
 0x305   : > { %4352 = vmatpush.bf16.msra.mxu0 %v6551_v40  ;;  %v8005_v40 = vld [vmem:[%s14395_s3 + $0x334] sm:$0xf0] }
 0x306   : > { %v4122_v0 = vpop.f32.mrf.mxu3 }
 0x307   : > { %v11917_v49 = vadd.f32 %v4122_v0, %v4074_v44  ;;  %v11919_v28 = vpop.f32.mrf.mxu2  ;;  %v11921_v60 = vpop.f32.mrf.mxu0  ;;  %v15388_v44 = vld [vmem:[#allocation50_spill] sm:$0xff] }
 0x309   : > { %v11924_v17 = vpop.f32.mrf.mxu1  ;;  %4353 = vmatpush.bf16.msra.mxu0 %v6535_v51  ;;  %v3989_v51 = vadd.f32 %v11921_v60, %v11809_v53 }
 0x30a   : > { %4183 = vmatmul.bf16.gmra.mxu0 %v15386_v57  ;;  %v15393_v57 = vld [vmem:[#allocation11_spill] sm:$0xff] }
 0x30b   : > { %4320 = vmatmul.bf16.gmra.mxu3 %v15387_v36 }
 0x30c   : > { %4418 = vmatmul.bf16.gmra.mxu1 %v15388_v44  ;;  %4467 = vmatmul.bf16.gmra.mxu2 %v15389_v23 }
 0x30e   : > { %v4125_v0 = vpop.f32.mrf.mxu3 }
 0x30f   : > { %v11944_v36 = vadd.f32 %v4125_v0, %v4077_v61  ;;  %v11946_v44 = vpop.f32.mrf.mxu2  ;;  %v11948_v34 = vpop.f32.mrf.mxu0 }
 0x311   : > { %v11951_v23 = vpop.f32.mrf.mxu1 }
 0x312   : > { %15390 = vst [vmem:[#allocation72_spill] sm:$0xff] %v11951_v23  ;;  %v15394_v23 = vld [vmem:[#allocation16_spill] sm:$0xff] }
 0x316   : > { %v4127_v11 = vpop.f32.mrf.mxu3 }
 0x317   : > { %v11961_v61 = vadd.f32 %v4127_v11, %v4079_v4  ;;  %v11963_v46 = vpop.f32.mrf.mxu2  ;;  %v11965_v1 = vpop.f32.mrf.mxu0  ;;  %v3986_v4 = vadd.f32 %v3985_v50, %v11809_v53  ;;  %v4082_v11 = vadd.f32 %v11610_v62, %v4033_v6 }
 0x318   : > { %15391 = vst [vmem:[#allocation53_spill] sm:$0xff] %v11963_v46  ;;  %v7270_v46 = vld [vmem:[%s14395_s3 + $0x5c8] sm:$0xf] }
 0x319   : > { %v11968_v0 = vpop.f32.mrf.mxu1 }
 0x31a   : > { %15392 = vst [vmem:[#allocation45_spill] sm:$0xff] %v11968_v0  ;;  %4188 = vmatmul.bf16.gmra.mxu0 %v15393_v57  ;;  %v7287_v57 = vor.u32 %v8093_v27, %v7286_v15  ;;  %v7382_v27 = vld [vmem:[%s14395_s3 + $0x6a8] sm:$0xf] }
 0x31b   : > { %4325 = vmatmul.bf16.gmra.mxu3 %v15394_v23 }
 0x31c   : > { %4423 = vmatmul.bf16.gmra.mxu1 %v15395_v38  ;;  %4472 = vmatmul.bf16.gmra.mxu2 %v15396_v10  ;;  %v6935_v38 = vor.u32 %v8005_v40, %v6934_v3  ;;  %v8125_v10 = vld [vmem:[%s14395_s3 + $0x6f4] sm:$0xf0]  ;;  %v4035_v3 = vadd.f32 %v11616_v12, %v3986_v4  ;;  %v7254_v12 = vld [vmem:[%s14395_s3 + $0x5a8] sm:$0xf] }
 0x31d   : > { %v7415_v0 = vor.u32 %v8125_v10, %v7414_v39  ;;  %4591 = vmatpush.bf16.msrb.mxu1 %v7287_v57  ;;  %v8121_v57 = vld [vmem:[%s14395_s3 + $0x6d4] sm:$0xf0] }
 0x31e   : > { %v4130_v23 = vpop.f32.mrf.mxu3  ;;  %4499 = vmatpush.bf16.msrb.mxu3 %v6935_v38  ;;  %v7398_v38 = vld [vmem:[%s14395_s3 + $0x6c8] sm:$0xf]  ;;  %v4084_v15 = vadd.f32 %v11647_v19, %v4035_v3  ;;  %v8117_v39 = vld [vmem:[%s14395_s3 + $0x6b4] sm:$0xf0]  ;;  %v4038_v19 = vadd.f32 %v11655_v31, %v3989_v51 }
 0x31f   : > { %v12000_v50 = vadd.f32 %v4130_v23, %v4082_v11  ;;  %v12002_v62 = vpop.f32.mrf.mxu2  ;;  %v12004_v6 = vpop.f32.mrf.mxu0  ;;  %4640 = vmatpush.bf16.msrb.mxu2 %v7415_v0  ;;  %v8089_v23 = vld [vmem:[%s14395_s3 + $0x5d4] sm:$0xf0]  ;;  %v7399_v4 = vor.u32 %v8121_v57, %v7398_v38  ;;  %v7383_v38 = vor.u32 %v8117_v39, %v7382_v27  ;;  %v7366_v31 = vld [vmem:[%s14395_s3 + $0x688] sm:$0xf] }
 0x320   : > { %v7271_v10 = vor.u32 %v8089_v23, %v7270_v46  ;;  %v8085_v0 = vld [vmem:[%s14395_s3 + $0x5b4] sm:$0xf0]  ;;  %v6918_v51 = vld [vmem:[%s14395_s3 + $0x308] sm:$0xf] }
 0x321   : > { %v12007_v40 = vpop.f32.mrf.mxu1  ;;  %v7255_v46 = vor.u32 %v8085_v0, %v7254_v12  ;;  %v8081_v57 = vld [vmem:[%s14395_s3 + $0x594] sm:$0xf0]  ;;  %v7222_v39 = vld [vmem:[%s14395_s3 + $0x568] sm:$0xf] }
 0x322   : > { %15397 = vst [vmem:[#allocation120_spill] sm:$0xff] %v12007_v40  ;;  %4592 = vmatpush.bf16.msrb.mxu1 %v7271_v10  ;;  %v7238_v10 = vld [vmem:[%s14395_s3 + $0x588] sm:$0xf]  ;;  %v8113_v0 = vld [vmem:[%s14395_s3 + $0x694] sm:$0xf0] }
 0x323   : > { %4641 = vmatpush.bf16.msrb.mxu2 %v7399_v4  ;;  %v7239_v12 = vor.u32 %v8081_v57, %v7238_v10  ;;  %v3991_v4 = vadd.f32 %v11948_v34, %v11809_v53  ;;  %v8077_v10 = vld [vmem:[%s14395_s3 + $0x574] sm:$0xf0]  ;;  %v7350_v34 = vld [vmem:[%s14395_s3 + $0x668] sm:$0xf] }
 0x326   : > { %v4132_v11 = vpop.f32.mrf.mxu3  ;;  %4593 = vmatpush.bf16.msrb.mxu1 %v7255_v46  ;;  %v7367_v46 = vor.u32 %v8113_v0, %v7366_v31  ;;  %v4040_v0 = vadd.f32 %v11702_v33, %v3991_v4  ;;  %v8105_v33 = vld [vmem:[%s14395_s3 + $0x654] sm:$0xf0] }
 0x327   : > { %v12036_v23 = vadd.f32 %v4132_v11, %v4084_v15  ;;  %v12038_v40 = vpop.f32.mrf.mxu2  ;;  %v12040_v60 = vpop.f32.mrf.mxu0  ;;  %v8001_v15 = vld [vmem:[%s14395_s3 + $0x314] sm:$0xf0]  ;;  %v4087_v11 = vadd.f32 %v11696_v56, %v4038_v19  ;;  %4642 = vmatpush.bf16.msrb.mxu2 %v7383_v38 }
 0x328   : > { %v6919_v27 = vor.u32 %v8001_v15, %v6918_v51  ;;  %v8109_v56 = vld [vmem:[%s14395_s3 + $0x674] sm:$0xf0]  ;;  %v7206_v15 = vld [vmem:[%s14395_s3 + $0x548] sm:$0xf] }
 0x329   : > { %v12043_v3 = vpop.f32.mrf.mxu1  ;;  %v8069_v4 = vld [vmem:[%s14395_s3 + $0x534] sm:$0xf0] }
 0x32a   : > { %4193 = vmatmul.bf16.gmra.mxu0 %v11200_v52  ;;  %4594 = vmatpush.bf16.msrb.mxu1 %v7239_v12  ;;  %v7351_v12 = vor.u32 %v8109_v56, %v7350_v34 }
 0x32b   : > { %4330 = vmatmul.bf16.gmra.mxu3 %v11193_v37  ;;  %4643 = vmatpush.bf16.msrb.mxu2 %v7367_v46  ;;  %v3994_v46 = vadd.f32 %v11965_v1, %v11809_v53 }
 0x32c   : > { %4428 = vmatmul.bf16.gmra.mxu1 %v15280_v58  ;;  %4477 = vmatmul.bf16.gmra.mxu2 %v15281_v14  ;;  %v7223_v14 = vor.u32 %v8077_v10, %v7222_v39  ;;  %v4089_v10 = vadd.f32 %v11731_v32, %v4040_v0 }
 0x32d   : > { %4500 = vmatpush.bf16.msrb.mxu3 %v6919_v27  ;;  %v7334_v27 = vld [vmem:[%s14395_s3 + $0x648] sm:$0xf]  ;;  %v4043_v32 = vadd.f32 %v11735_v13, %v3994_v46  ;;  %v8065_v13 = vld [vmem:[%s14395_s3 + $0x514] sm:$0xf0] }
 0x32e   : > { %v4135_v57 = vpop.f32.mrf.mxu3  ;;  %4595 = vmatpush.bf16.msrb.mxu1 %v7223_v14  ;;  %v7190_v14 = vld [vmem:[%s14395_s3 + $0x528] sm:$0xf] }
 0x32f   : > { %v12082_v19 = vadd.f32 %v4135_v57, %v4087_v11  ;;  %v12084_v38 = vpop.f32.mrf.mxu2  ;;  %v12086_v31 = vpop.f32.mrf.mxu0  ;;  %v8073_v11 = vld [vmem:[%s14395_s3 + $0x554] sm:$0xf0]  ;;  %4644 = vmatpush.bf16.msrb.mxu2 %v7351_v12  ;;  %v7335_v57 = vor.u32 %v8105_v33, %v7334_v27  ;;  %v7191_v56 = vor.u32 %v8069_v4, %v7190_v14  ;;  %v15398_v33 = vld [vmem:[#allocation94_spill] sm:$0xff]  ;;  %v7158_v46 = vld [vmem:[%s14395_s3 + $0x4e8] sm:$0xf] }
 0x330   : > { %v7207_v39 = vor.u32 %v8073_v11, %v7206_v15  ;;  %v7318_v15 = vld [vmem:[%s14395_s3 + $0x628] sm:$0xf]  ;;  %v8101_v11 = vld [vmem:[%s14395_s3 + $0x634] sm:$0xf0] }
 0x331   : > { %v12089_v51 = vpop.f32.mrf.mxu1  ;;  %v7319_v27 = vor.u32 %v8101_v11, %v7318_v15  ;;  %v8097_v4 = vld [vmem:[%s14395_s3 + $0x614] sm:$0xf0]  ;;  %v7542_v11 = vld [vmem:[%s14395_s3 + $0x7e8] sm:$0xf] }
 0x332   : > { %4596 = vmatpush.bf16.msrb.mxu1 %v7207_v39  ;;  %v7174_v39 = vld [vmem:[%s14395_s3 + $0x508] sm:$0xf] }
 0x333   : > { %4645 = vmatpush.bf16.msrb.mxu2 %v7335_v57  ;;  %v7175_v14 = vor.u32 %v8065_v13, %v7174_v39  ;;  %v3996_v57 = vadd.f32 %v12004_v6, %v11809_v53 }
 0x335   : > { %v4045_v6 = vadd.f32 %v11772_v22, %v3996_v57 }
 0x336   : > { %v4137_v34 = vpop.f32.mrf.mxu3  ;;  %4597 = vmatpush.bf16.msrb.mxu1 %v7191_v56 }
 0x337   : > { %v12118_v58 = vadd.f32 %v4137_v34, %v4089_v10  ;;  %v12120_v37 = vpop.f32.mrf.mxu2  ;;  %v4159_v1 = vpop.f32.mrf.mxu0  ;;  %v8061_v10 = vld [vmem:[%s14395_s3 + $0x4f4] sm:$0xf0]  ;;  %v4092_v34 = vadd.f32 %v11768_v29, %v4043_v32  ;;  %4646 = vmatpush.bf16.msrb.mxu2 %v7319_v27 }
 0x338   : > { %v12124_v0 = vadd.f32 %v4159_v1, %v11840_v9  ;;  %v7302_v9 = vld [vmem:[%s14395_s3 + $0x608] sm:$0xf]  ;;  %v7159_v15 = vor.u32 %v8061_v10, %v7158_v46  ;;  %v8157_v1 = vld [vmem:[%s14395_s3 + $0x7f4] sm:$0xf0] }
 0x339   : > { %v12126_v12 = vpop.f32.mrf.mxu1  ;;  %v7303_v56 = vor.u32 %v8097_v4, %v7302_v9  ;;  %v7543_v13 = vor.u32 %v8157_v1, %v7542_v11  ;;  %v3999_v9 = vadd.f32 %v12040_v60, %v11809_v53  ;;  %v8057_v60 = vld [vmem:[%s14395_s3 + $0x4d4] sm:$0xf0] }
 0x33a   : > { %4354 = vmatmul.bf16.vlgmr.msra.gmra.mxu0 %v15284_v54  ;;  %4598 = vmatpush.bf16.msrb.mxu1 %v7175_v14  ;;  %v4094_v14 = vadd.f32 %v11777_v59, %v4045_v6  ;;  %v7142_v59 = vld [vmem:[%s14395_s3 + $0x4c8] sm:$0xf]  ;;  %v15401_v11 = vld [vmem:[#allocation61_spill] sm:$0xff] }
 0x33b   : > { %4335 = vmatmul.bf16.gmra.mxu3 %v11301_v18  ;;  %4542 = vmatpush.bf16.msrb.mxu0 %v7159_v15  ;;  %v4048_v15 = vadd.f32 %v11781_v24, %v3999_v9  ;;  %v15402_v1 = vld [vmem:[#allocation81_spill] sm:$0xff]  ;;  %v7143_v24 = vor.u32 %v8057_v60, %v7142_v59 }
 0x33c   : > { %4433 = vmatmul.bf16.gmra.mxu1 %v15285_v25  ;;  %4482 = vmatmul.bf16.gmra.mxu2 %v15398_v33 }
 0x33d   : > { %4689 = vmatpush.bf16.msra.mxu3 %v7543_v13  ;;  %4647 = vmatpush.bf16.msrb.mxu2 %v7303_v56  ;;  %v15400_v56 = vld [vmem:[#allocation26_spill] sm:$0xff]  ;;  %v4001_v13 = vadd.f32 %v12086_v31, %v11809_v53 }
 0x33e   : > { %v4140_v39 = vpop.f32.mrf.mxu3 }
 0x33f   : > { %v12159_v33 = vadd.f32 %v4140_v39, %v4092_v34  ;;  %v12161_v25 = vpop.f32.mrf.mxu2  ;;  %v4161_v29 = vpop.f32.mrf.mxu0  ;;  %v8153_v39 = vld [vmem:[%s14395_s3 + $0x7d4] sm:$0xf0]  ;;  %4543 = vmatpush.bf16.msrb.mxu0 %v7143_v24  ;;  %v4050_v59 = vadd.f32 %v11811_v35, %v4001_v13  ;;  %v15404_v13 = vld [vmem:[#allocation127_spill] sm:$0xff] }
 0x340   : > { %v4162_v32 = vadd.f32 %v4161_v29, %v11849_v55  ;;  %v15399_v55 = vld [vmem:[#allocation39_spill] sm:$0xff]  ;;  %v4097_v29 = vadd.f32 %v11802_v63, %v4048_v15 }
 0x341   : > { %v12165_v27 = vpop.f32.mrf.mxu1  ;;  %v4099_v53 = vadd.f32 %v11817_v48, %v4050_v59  ;;  %v7126_v48 = vld [vmem:[%s14395_s3 + $0x4a8] sm:$0xf] }
 0x346   : > { %v4142_v4 = vpop.f32.mrf.mxu3 }
 0x347   : > { %v12170_v46 = vadd.f32 %v4142_v4, %v4094_v14  ;;  %v12172_v10 = vpop.f32.mrf.mxu2  ;;  %v4164_v34 = vpop.f32.mrf.mxu0 }
 0x348   : > { %v4165_v22 = vadd.f32 %v4164_v34, %v11874_v16  ;;  %v7526_v16 = vld [vmem:[%s14395_s3 + $0x7c8] sm:$0xf] }
 0x349   : > { %v12176_v57 = vpop.f32.mrf.mxu1  ;;  %v7527_v6 = vor.u32 %v8153_v39, %v7526_v16  ;;  %v4209_v16 = vadd.f32 %v11820_v26, %v12124_v0  ;;  %v15406_v26 = vld [vmem:[#allocation129_spill] sm:$0xff]  ;;  %v7510_v0 = vld [vmem:[%s14395_s3 + $0x7a8] sm:$0xf] }
 0x34a   : > { %4359 = vmatmul.bf16.gmra.mxu0 %v15400_v56 }
 0x34b   : > { %4340 = vmatmul.bf16.gmra.mxu3 %v15399_v55 }
 0x34c   : > { %4438 = vmatmul.bf16.gmra.mxu1 %v15401_v11  ;;  %4487 = vmatmul.bf16.gmra.mxu2 %v15402_v1 }
 0x34d   : > { %4690 = vmatpush.bf16.msra.mxu3 %v7527_v6  ;;  %v15405_v6 = vld [vmem:[#allocation128_spill] sm:$0xff] }
 0x34e   : > { %v4145_v9 = vpop.f32.mrf.mxu3 }
 0x34f   : > { %v12197_v14 = vadd.f32 %v4145_v9, %v4097_v29  ;;  %v12199_v4 = vpop.f32.mrf.mxu2  ;;  %v4166_v34 = vpop.f32.mrf.mxu0  ;;  %v8053_v29 = vld [vmem:[%s14395_s3 + $0x4b4] sm:$0xf0] }
 0x350   : > { %v12203_v60 = vadd.f32 %v4166_v34, %v11883_v43  ;;  %v15403_v43 = vld [vmem:[#allocation40_spill] sm:$0xff]  ;;  %v8149_v9 = vld [vmem:[%s14395_s3 + $0x7b4] sm:$0xf0]  ;;  %v4258_v34 = vadd.f32 %v11842_v42, %v4209_v16 }
 0x351   : > { %v12205_v1 = vpop.f32.mrf.mxu1  ;;  %v7511_v59 = vor.u32 %v8149_v9, %v7510_v0 }
 0x353   : > { %4691 = vmatpush.bf16.msra.mxu3 %v7511_v59  ;;  %v4214_v59 = vadd.f32 %v11854_v2, %v4165_v22  ;;  %v8049_v2 = vld [vmem:[%s14395_s3 + $0x494] sm:$0xf0]  ;;  %v15413_v22 = vld [vmem:[#allocation15_spill] sm:$0xff] }
 0x356   : > { %v4147_v31 = vpop.f32.mrf.mxu3 }
 0x357   : > { %v12208_v63 = vadd.f32 %v4147_v31, %v4099_v53  ;;  %v12210_v15 = vpop.f32.mrf.mxu2  ;;  %v4169_v24 = vpop.f32.mrf.mxu0  ;;  %v15407_v31 = vld [vmem:[#allocation18_spill] sm:$0xff] }
 0x358   : > { %v12215_v39 = vadd.f32 %v4169_v24, %v11908_v8  ;;  %v7127_v8 = vor.u32 %v8053_v29, %v7126_v48  ;;  %v5142_v24 = vmax.f32 %v15407_v31, 0.0  ;;  %v15408_v29 = vld [vmem:[#allocation21_spill] sm:$0xff] }
 0x359   : > { %v12217_v35 = vpop.f32.mrf.mxu1 }
 0x35a   : > { %4364 = vmatmul.bf16.gmra.mxu0 %v15403_v43  ;;  %v4211_v43 = vadd.f32 %v11845_v7, %v4162_v32 }
 0x35b   : > { %4501 = vmatmul.bf16.vlgmr.msrb.gmra.mxu3 %v15404_v13  ;;  %4544 = vmatpush.bf16.msrb.mxu0 %v7127_v8 }
 0x35c   : > { %4599 = vmatmul.bf16.vlgmr.msrb.gmra.mxu1 %v15405_v6  ;;  %4648 = vmatmul.bf16.vlgmr.msrb.gmra.mxu2 %v15406_v26  ;;  %v5138_v26 = vmax.f32 %v15408_v29, 0.0  ;;  %v4260_v16 = vadd.f32 %v11851_v5, %v4211_v43  ;;  %v7110_v5 = vld [vmem:[%s14395_s3 + $0x488] sm:$0xf]  ;;  %v15414_v43 = vld [vmem:[#allocation138_spill] sm:$0xff]  ;;  %v4263_v29 = vadd.f32 %v11876_v30, %v4214_v59 }
 0x35e   : > { %v4306_v53 = vpop.f32.mrf.mxu3  ;;  %v12246_v42 = vpack.c.bf16 %v5142_v24, %v5138_v26  ;;  %v15412_v26 = vld [vmem:[#allocation12_spill] sm:$0xff]  ;;  %v8145_v24 = vld [vmem:[%s14395_s3 + $0x794] sm:$0xf0] }
 0x35f   : > { %v4307_v13 = vadd.f32 %v4306_v53, %v4258_v34  ;;  %v12237_v6 = vpop.f32.mrf.mxu2  ;;  %v4171_v48 = vpop.f32.mrf.mxu0 }
 0x360   : > { %v12242_v11 = vadd.f32 %v4171_v48, %v11917_v49  ;;  %15409 = vst [vmem:[#allocation59_spill] sm:$0xff] %v12246_v42  ;;  %v15411_v48 = vld [vmem:[#allocation49_spill] sm:$0xff] }
 0x361   : > { %v12244_v56 = vpop.f32.mrf.mxu1  ;;  %v5131_v53 = vmax.f32 %v4307_v13, 0.0  ;;  %v7494_v13 = vld [vmem:[%s14395_s3 + $0x788] sm:$0xf] }
 0x366   : > { %v4308_v8 = vpop.f32.mrf.mxu3 }
 0x367   : > { %v4309_v0 = vadd.f32 %v4308_v8, %v4260_v16  ;;  %v12249_v9 = vpop.f32.mrf.mxu2  ;;  %v4174_v34 = vpop.f32.mrf.mxu0  ;;  %v7495_v16 = vor.u32 %v8145_v24, %v7494_v13 }
 0x368   : > { %v4175_v7 = vadd.f32 %v4174_v34, %v11944_v36  ;;  %v7111_v36 = vor.u32 %v8049_v2, %v7110_v5  ;;  %v15416_v2 = vld [vmem:[#allocation44_spill] sm:$0xff] }
 0x369   : > { %v5135_v31 = vmax.f32 %v4309_v0, 0.0  ;;  %v12253_v32 = vpop.f32.mrf.mxu1  ;;  %v15415_v0 = vld [vmem:[#allocation46_spill] sm:$0xff]  ;;  %4692 = vmatpush.bf16.msra.mxu3 %v7495_v16  ;;  %v5146_v42 = vmax.f32 %v15416_v2, 0.0  ;;  %v4219_v16 = vadd.f32 %v11888_v20, %v12215_v39  ;;  %v15421_v20 = vld [vmem:[#allocation96_spill] sm:$0xff]  ;;  %v7478_v39 = vld [vmem:[%s14395_s3 + $0x768] sm:$0xf] }
 0x36a   : > { %4369 = vmatmul.bf16.gmra.mxu0 %v15411_v48  ;;  %v5150_v34 = vmax.f32 %v15415_v0, 0.0  ;;  %v8141_v0 = vld [vmem:[%s14395_s3 + $0x774] sm:$0xf0] }
 0x36b   : > { %v12255_v49 = vpack.c.bf16 %v5135_v31, %v5131_v53  ;;  %4506 = vmatmul.bf16.gmra.mxu3 %v15412_v26  ;;  %4545 = vmatpush.bf16.msrb.mxu0 %v7111_v36 }
 0x36c   : > { %4604 = vmatmul.bf16.gmra.mxu1 %v15413_v22  ;;  %4653 = vmatmul.bf16.gmra.mxu2 %v15414_v43  ;;  %v12285_v30 = vpack.c.bf16 %v5150_v34, %v5146_v42  ;;  %v8045_v42 = vld [vmem:[%s14395_s3 + $0x474] sm:$0xf0]  ;;  %v4268_v34 = vadd.f32 %v11910_v47, %v4219_v16 }
 0x36d   : > { %15410 = vst [vmem:[#allocation74_spill] sm:$0xff] %v12255_v49  ;;  %v4216_v49 = vadd.f32 %v11879_v21, %v12203_v60  ;;  %v15419_v60 = vld [vmem:[#allocation85_spill] sm:$0xff] }
 0x36e   : > { %v4311_v8 = vpop.f32.mrf.mxu3  ;;  %15417 = vst [vmem:[#allocation70_spill] sm:$0xff] %v12285_v30 }
 0x36f   : > { %v12275_v53 = vadd.f32 %v4311_v8, %v4263_v29  ;;  %v12277_v31 = vpop.f32.mrf.mxu2  ;;  %v4176_v5 = vpop.f32.mrf.mxu0  ;;  %v4265_v59 = vadd.f32 %v11885_v41, %v4216_v49  ;;  %v7094_v41 = vld [vmem:[%s14395_s3 + $0x468] sm:$0xf] }
 0x370   : > { %v4177_v43 = vadd.f32 %v4176_v5, %v11961_v61  ;;  %v15418_v61 = vld [vmem:[#allocation55_spill] sm:$0xff]  ;;  %v7479_v5 = vor.u32 %v8141_v0, %v7478_v39 }
 0x371   : > { %v12283_v22 = vpop.f32.mrf.mxu1  ;;  %v15420_v49 = vld [vmem:[#allocation87_spill] sm:$0xff] }
 0x372   : > { %4693 = vmatpush.bf16.msra.mxu3 %v7479_v5 }
 0x376   : > { %v4313_v36 = vpop.f32.mrf.mxu3 }
 0x377   : > { %v12288_v13 = vadd.f32 %v4313_v36, %v4265_v59  ;;  %v12290_v24 = vpop.f32.mrf.mxu2  ;;  %v4179_v29 = vpop.f32.mrf.mxu0  ;;  %v15422_v59 = vld [vmem:[#allocation47_spill] sm:$0xff] }
 0x378   : > { %v12295_v8 = vadd.f32 %v4179_v29, %v12000_v50  ;;  %v7095_v50 = vor.u32 %v8045_v42, %v7094_v41  ;;  %v5158_v36 = vmax.f32 %v15422_v59, 0.0  ;;  %v15424_v42 = vld [vmem:[#allocation33_spill] sm:$0xff] }
 0x379   : > { %v12297_v21 = vpop.f32.mrf.mxu1 }
 0x37a   : > { %4374 = vmatmul.bf16.gmra.mxu0 %v15418_v61 }
 0x37b   : > { %4511 = vmatmul.bf16.gmra.mxu3 %v15419_v60  ;;  %4546 = vmatpush.bf16.msrb.mxu0 %v7095_v50 }
 0x37c   : > { %4609 = vmatmul.bf16.gmra.mxu1 %v15420_v49  ;;  %4658 = vmatmul.bf16.gmra.mxu2 %v15421_v20  ;;  %v5154_v20 = vmax.f32 %v15424_v42, 0.0  ;;  %v4221_v49 = vadd.f32 %v11913_v45, %v12242_v11  ;;  %v15428_v11 = vld [vmem:[#allocation103_spill] sm:$0xff] }
 0x37e   : > { %v4316_v2 = vpop.f32.mrf.mxu3  ;;  %v12329_v16 = vpack.c.bf16 %v5158_v36, %v5154_v20  ;;  %v4270_v50 = vadd.f32 %v11919_v28, %v4221_v49  ;;  %v7078_v28 = vld [vmem:[%s14395_s3 + $0x448] sm:$0xf]  ;;  %v8041_v49 = vld [vmem:[%s14395_s3 + $0x454] sm:$0xf0]  ;;  %v15429_v20 = vld [vmem:[#allocation106_spill] sm:$0xff] }
 0x37f   : > { %v12317_v29 = vadd.f32 %v4316_v2, %v4268_v34  ;;  %v12319_v30 = vpop.f32.mrf.mxu2  ;;  %v4181_v41 = vpop.f32.mrf.mxu0  ;;  %v4224_v2 = vadd.f32 %v11924_v17, %v4175_v7  ;;  %v15430_v17 = vld [vmem:[#allocation108_spill] sm:$0xff]  ;;  %v7462_v7 = vld [vmem:[%s14395_s3 + $0x748] sm:$0xf]  ;;  %v8137_v36 = vld [vmem:[%s14395_s3 + $0x754] sm:$0xf0] }
 0x380   : > { %v12325_v60 = vadd.f32 %v4181_v41, %v12036_v23  ;;  %15425 = vst [vmem:[#allocation73_spill] sm:$0xff] %v12329_v16  ;;  %v15427_v23 = vld [vmem:[#allocation75_spill] sm:$0xff]  ;;  %v7463_v42 = vor.u32 %v8137_v36, %v7462_v7  ;;  %v15436_v36 = vld [vmem:[#allocation53_spill] sm:$0xff] }
 0x381   : > { %15423 = vst [vmem:[#allocation82_spill] sm:$0xff] %v12317_v29  ;;  %v12327_v47 = vpop.f32.mrf.mxu1  ;;  %v4273_v41 = vadd.f32 %v11946_v44, %v4224_v2  ;;  %v7062_v44 = vld [vmem:[%s14395_s3 + $0x428] sm:$0xf]  ;;  %v8037_v2 = vld [vmem:[%s14395_s3 + $0x434] sm:$0xf0] }
 0x382   : > { %4694 = vmatpush.bf16.msra.mxu3 %v7463_v42  ;;  %v7063_v7 = vor.u32 %v8037_v2, %v7062_v44  ;;  %v8033_v44 = vld [vmem:[%s14395_s3 + $0x414] sm:$0xf0]  ;;  %v15441_v2 = vld [vmem:[#allocation110_spill] sm:$0xff] }
 0x386   : > { %v4318_v39 = vpop.f32.mrf.mxu3 }
 0x387   : > { %v12332_v0 = vadd.f32 %v4318_v39, %v4270_v50  ;;  %v12334_v34 = vpop.f32.mrf.mxu2  ;;  %v4184_v5 = vpop.f32.mrf.mxu0  ;;  %v15431_v39 = vld [vmem:[#allocation52_spill] sm:$0xff] }
 0x388   : > { %v12338_v59 = vadd.f32 %v4184_v5, %v12082_v19  ;;  %v7079_v19 = vor.u32 %v8041_v49, %v7078_v28  ;;  %v5166_v5 = vmax.f32 %v15431_v39, 0.0  ;;  %v15433_v49 = vld [vmem:[#allocation38_spill] sm:$0xff] }
 0x389   : > { %15426 = vst [vmem:[#allocation84_spill] sm:$0xff] %v12332_v0  ;;  %v12340_v45 = vpop.f32.mrf.mxu1 }
 0x38a   : > { %4379 = vmatmul.bf16.gmra.mxu0 %v15427_v23 }
 0x38b   : > { %4516 = vmatmul.bf16.gmra.mxu3 %v15428_v11  ;;  %4547 = vmatpush.bf16.msrb.mxu0 %v7079_v19  ;;  %v15434_v11 = vld [vmem:[#allocation72_spill] sm:$0xff] }
 0x38c   : > { %4614 = vmatmul.bf16.gmra.mxu1 %v15429_v20  ;;  %4663 = vmatmul.bf16.gmra.mxu2 %v15430_v17  ;;  %v5162_v17 = vmax.f32 %v15433_v49, 0.0  ;;  %v4226_v23 = vadd.f32 %v15434_v11, %v4177_v43 }
 0x38e   : > { %v4321_v50 = vpop.f32.mrf.mxu3  ;;  %v12377_v19 = vpack.c.bf16 %v5166_v5, %v5162_v17  ;;  %v15439_v17 = vld [vmem:[#allocation92_spill] sm:$0xff]  ;;  %v15440_v5 = vld [vmem:[#allocation111_spill] sm:$0xff] }
 0x38f   : > { %v12360_v16 = vadd.f32 %v4321_v50, %v4273_v41  ;;  %v12362_v20 = vpop.f32.mrf.mxu2  ;;  %v4186_v28 = vpop.f32.mrf.mxu0  ;;  %v4275_v41 = vadd.f32 %v15436_v36, %v4226_v23  ;;  %4548 = vmatpush.bf16.msrb.mxu0 %v7063_v7  ;;  %v15438_v50 = vld [vmem:[#allocation45_spill] sm:$0xff]  ;;  %v7046_v23 = vld [vmem:[%s14395_s3 + $0x408] sm:$0xf] }
 0x390   : > { %v12367_v61 = vadd.f32 %v4186_v28, %v12118_v58  ;;  %15435 = vst [vmem:[#allocation89_spill] sm:$0xff] %v12377_v19  ;;  %v4229_v39 = vadd.f32 %v15438_v50, %v12295_v8  ;;  %v15442_v8 = vld [vmem:[#allocation109_spill] sm:$0xff]  ;;  %v7446_v7 = vld [vmem:[%s14395_s3 + $0x728] sm:$0xf] }
 0x391   : > { %15432 = vst [vmem:[#allocation86_spill] sm:$0xff] %v12360_v16  ;;  %v12369_v29 = vpop.f32.mrf.mxu1  ;;  %v8133_v36 = vld [vmem:[%s14395_s3 + $0x734] sm:$0xf0]  ;;  %v6776_v50 = vld [vmem:[%s14395_s3 + $0x1f8] sm:$0xf0] }
 0x396   : > { %v4323_v42 = vpop.f32.mrf.mxu3 }
 0x397   : > { %v12380_v43 = vadd.f32 %v4323_v42, %v4275_v41  ;;  %v12382_v58 = vpop.f32.mrf.mxu2  ;;  %v4189_v11 = vpop.f32.mrf.mxu0  ;;  %v7963_v41 = vld [vmem:[%s14395_s3 + $0x1ec] sm:$0xf]  ;;  %v4278_v42 = vadd.f32 %v12002_v62, %v4229_v39 }
 0x398   : > { %v12387_v28 = vadd.f32 %v4189_v11, %v12159_v33  ;;  %v7047_v33 = vor.u32 %v8033_v44, %v7046_v23  ;;  %v7447_v11 = vor.u32 %v8133_v36, %v7446_v7  ;;  %v7995_v23 = vld [vmem:[%s14395_s3 + $0x2ec] sm:$0xf]  ;;  %v6904_v44 = vld [vmem:[%s14395_s3 + $0x2f8] sm:$0xf0] }
 0x399   : > { %15437 = vst [vmem:[#allocation78_spill] sm:$0xff] %v12380_v43  ;;  %v12389_v49 = vpop.f32.mrf.mxu1  ;;  %v15445_v36 = vld [vmem:[#allocation43_spill] sm:$0xff]  ;;  %v15446_v43 = vld [vmem:[#allocation120_spill] sm:$0xff] }
 0x39a   : > { %4384 = vmatmul.bf16.gmra.mxu0 %v15439_v17  ;;  %4695 = vmatpush.bf16.msra.mxu3 %v7447_v11  ;;  %v5170_v16 = vmax.f32 %v15445_v36, 0.0  ;;  %v4231_v0 = vadd.f32 %v15446_v43, %v12325_v60  ;;  %v7955_v43 = vld [vmem:[%s14395_s3 + $0x1ac] sm:$0xf] }
 0x39b   : > { %4521 = vmatmul.bf16.gmra.mxu3 %v15440_v5  ;;  %4549 = vmatpush.bf16.msrb.mxu0 %v7047_v33  ;;  %v15443_v5 = vld [vmem:[#allocation54_spill] sm:$0xff] }
 0x39c   : > { %4619 = vmatmul.bf16.gmra.mxu1 %v15441_v2  ;;  %4668 = vmatmul.bf16.gmra.mxu2 %v15442_v8  ;;  %v6779_v8 = vor.u32 %v7963_v41, %v6776_v50  ;;  %v6907_v2 = vor.u32 %v7995_v23, %v6904_v44  ;;  %v5174_v17 = vmax.f32 %v15443_v5, 0.0  ;;  %v6760_v5 = vld [vmem:[%s14395_s3 + $0x1d8] sm:$0xf0] }
 0x39d   : > { %v6744_v41 = vld [vmem:[%s14395_s3 + $0x1b8] sm:$0xf0] }
 0x39e   : > { %v4326_v19 = vpop.f32.mrf.mxu3  ;;  %4787 = vmatpush.bf16.msra.mxu1 %v6779_v8  ;;  %4836 = vmatpush.bf16.msra.mxu2 %v6907_v2  ;;  %v7991_v2 = vld [vmem:[%s14395_s3 + $0x2cc] sm:$0xf]  ;;  %v12442_v8 = vpack.c.bf16 %v5174_v17, %v5170_v16  ;;  %v6747_v16 = vor.u32 %v7955_v43, %v6744_v41  ;;  %v6872_v23 = vld [vmem:[%s14395_s3 + $0x2b8] sm:$0xf0] }
 0x39f   : > { %v12421_v62 = vadd.f32 %v4326_v19, %v4278_v42  ;;  %v12423_v39 = vpop.f32.mrf.mxu2  ;;  %v4191_v7 = vpop.f32.mrf.mxu0  ;;  %v7959_v19 = vld [vmem:[%s14395_s3 + $0x1cc] sm:$0xf]  ;;  %v4280_v42 = vadd.f32 %v12038_v40, %v4231_v0  ;;  %v4234_v40 = vadd.f32 %v12043_v3, %v12338_v59  ;;  %v6728_v43 = vld [vmem:[%s14395_s3 + $0x198] sm:$0xf0] }
 0x3a0   : > { %v12429_v26 = vadd.f32 %v4191_v7, %v12170_v46  ;;  %15447 = vst [vmem:[#allocation91_spill] sm:$0xff] %v12442_v8  ;;  %v6763_v60 = vor.u32 %v7959_v19, %v6760_v5  ;;  %v6888_v46 = vld [vmem:[%s14395_s3 + $0x2d8] sm:$0xf0]  ;;  %v7987_v17 = vld [vmem:[%s14395_s3 + $0x2ac] sm:$0xf] }
 0x3a1   : > { %15444 = vst [vmem:[#allocation79_spill] sm:$0xff] %v12421_v62  ;;  %v12431_v33 = vpop.f32.mrf.mxu1  ;;  %v6891_v11 = vor.u32 %v7991_v2, %v6888_v46  ;;  %v6875_v5 = vor.u32 %v7987_v17, %v6872_v23  ;;  %v15449_v2 = vld [vmem:[#allocation80_spill] sm:$0xff]  ;;  %v7951_v46 = vld [vmem:[%s14395_s3 + $0x18c] sm:$0xf]  ;;  %v15452_v59 = vld [vmem:[#allocation97_spill] sm:$0xff] }
 0x3a2   : > { %4788 = vmatpush.bf16.msra.mxu1 %v6763_v60  ;;  %v15450_v60 = vld [vmem:[#allocation112_spill] sm:$0xff]  ;;  %v7983_v3 = vld [vmem:[%s14395_s3 + $0x28c] sm:$0xf]  ;;  %v6731_v41 = vor.u32 %v7951_v46, %v6728_v43  ;;  %v6712_v46 = vld [vmem:[%s14395_s3 + $0x178] sm:$0xf0] }
 0x3a3   : > { %4837 = vmatpush.bf16.msra.mxu2 %v6891_v11  ;;  %v7430_v11 = vld [vmem:[%s14395_s3 + $0x708] sm:$0xf] }
 0x3a6   : > { %v4328_v50 = vpop.f32.mrf.mxu3  ;;  %4789 = vmatpush.bf16.msra.mxu1 %v6747_v16  ;;  %v4283_v16 = vadd.f32 %v12084_v38, %v4234_v40  ;;  %v6840_v38 = vld [vmem:[%s14395_s3 + $0x278] sm:$0xf0]  ;;  %v15453_v40 = vld [vmem:[#allocation116_spill] sm:$0xff] }
 0x3a7   : > { %v12460_v44 = vadd.f32 %v4328_v50, %v4280_v42  ;;  %v12462_v7 = vpop.f32.mrf.mxu2  ;;  %v4194_v36 = vpop.f32.mrf.mxu0  ;;  %v6856_v42 = vld [vmem:[%s14395_s3 + $0x298] sm:$0xf0]  ;;  %v8129_v50 = vld [vmem:[%s14395_s3 + $0x714] sm:$0xf0]  ;;  %4838 = vmatpush.bf16.msra.mxu2 %v6875_v5  ;;  %v5182_v5 = vmax.f32 %v15453_v40, 0.0 }
 0x3a8   : > { %v12467_v0 = vadd.f32 %v4194_v36, %v12197_v14  ;;  %v15451_v14 = vld [vmem:[#allocation71_spill] sm:$0xff]  ;;  %v6859_v17 = vor.u32 %v7983_v3, %v6856_v42  ;;  %v7431_v23 = vor.u32 %v8129_v50, %v7430_v11  ;;  %v15455_v50 = vld [vmem:[#allocation48_spill] sm:$0xff] }
 0x3a9   : > { %15448 = vst [vmem:[#allocation83_spill] sm:$0xff] %v12460_v44  ;;  %v12469_v19 = vpop.f32.mrf.mxu1  ;;  %v7947_v36 = vld [vmem:[%s14395_s3 + $0x16c] sm:$0xf] }
 0x3aa   : > { %4389 = vmatmul.bf16.gmra.mxu0 %v15449_v2  ;;  %4790 = vmatpush.bf16.msra.mxu1 %v6731_v41  ;;  %v6715_v8 = vor.u32 %v7947_v36, %v6712_v46  ;;  %v4236_v41 = vadd.f32 %v12089_v51, %v12367_v61  ;;  %v7975_v51 = vld [vmem:[%s14395_s3 + $0x24c] sm:$0xf] }
 0x3ab   : > { %4526 = vmatmul.bf16.gmra.mxu3 %v15450_v60  ;;  %4839 = vmatpush.bf16.msra.mxu2 %v6859_v17  ;;  %v6680_v17 = vld [vmem:[%s14395_s3 + $0x138] sm:$0xf0] }
 0x3ac   : > { %4624 = vmatmul.bf16.gmra.mxu1 %v15451_v14  ;;  %4673 = vmatmul.bf16.gmra.mxu2 %v15452_v59  ;;  %v7979_v59 = vld [vmem:[%s14395_s3 + $0x26c] sm:$0xf]  ;;  %v5178_v14 = vmax.f32 %v15455_v50, 0.0 }
 0x3ad   : > { %4696 = vmatpush.bf16.msra.mxu3 %v7431_v23  ;;  %v6843_v60 = vor.u32 %v7979_v59, %v6840_v38  ;;  %v6696_v23 = vld [vmem:[%s14395_s3 + $0x158] sm:$0xf0] }
 0x3ae   : > { %v4331_v43 = vpop.f32.mrf.mxu3  ;;  %4791 = vmatpush.bf16.msra.mxu1 %v6715_v8  ;;  %v12528_v61 = vpack.c.bf16 %v5182_v5, %v5178_v14  ;;  %v6824_v59 = vld [vmem:[%s14395_s3 + $0x258] sm:$0xf0]  ;;  %v7939_v8 = vld [vmem:[%s14395_s3 + $0x12c] sm:$0xf] }
 0x3af   : > { %v12507_v3 = vadd.f32 %v4331_v43, %v4283_v16  ;;  %v12509_v42 = vpop.f32.mrf.mxu2  ;;  %v4196_v11 = vpop.f32.mrf.mxu0  ;;  %v7943_v16 = vld [vmem:[%s14395_s3 + $0x14c] sm:$0xf]  ;;  %v4285_v43 = vadd.f32 %v12120_v37, %v4236_v41  ;;  %4840 = vmatpush.bf16.msra.mxu2 %v6843_v60  ;;  %v6827_v38 = vor.u32 %v7975_v51, %v6824_v59  ;;  %v6683_v14 = vor.u32 %v7939_v8, %v6680_v17  ;;  %v6664_v8 = vld [vmem:[%s14395_s3 + $0x118] sm:$0xf0]  ;;  %v15461_v17 = vld [vmem:[#allocation118_spill] sm:$0xff] }
 0x3b0   : > { %v12515_v36 = vadd.f32 %v4196_v11, %v12208_v63  ;;  %15456 = vst [vmem:[#allocation95_spill] sm:$0xff] %v12528_v61  ;;  %v6699_v63 = vor.u32 %v7943_v16, %v6696_v23  ;;  %v7971_v5 = vld [vmem:[%s14395_s3 + $0x22c] sm:$0xf]  ;;  %v6808_v11 = vld [vmem:[%s14395_s3 + $0x238] sm:$0xf0]  ;;  %v4239_v37 = vadd.f32 %v12126_v12, %v12387_v28 }
 0x3b1   : > { %15454 = vst [vmem:[#allocation88_spill] sm:$0xff] %v12507_v3  ;;  %v12517_v46 = vpop.f32.mrf.mxu1  ;;  %v6811_v41 = vor.u32 %v7971_v5, %v6808_v11  ;;  %v15458_v51 = vld [vmem:[#allocation107_spill] sm:$0xff]  ;;  %v15460_v28 = vld [vmem:[#allocation29_spill] sm:$0xff] }
 0x3b2   : > { %4792 = vmatpush.bf16.msra.mxu1 %v6699_v63  ;;  %v15459_v63 = vld [vmem:[#allocation67_spill] sm:$0xff]  ;;  %v4288_v5 = vadd.f32 %v12161_v25, %v4239_v37 }
 0x3b3   : > { %4841 = vmatpush.bf16.msra.mxu2 %v6827_v38  ;;  %v7935_v59 = vld [vmem:[%s14395_s3 + $0x10c] sm:$0xf]  ;;  %v6792_v38 = vld [vmem:[%s14395_s3 + $0x218] sm:$0xf0] }
 0x3b4   : > { %v7967_v12 = vld [vmem:[%s14395_s3 + $0x20c] sm:$0xf] }
 0x3b5   : > { %v6795_v11 = vor.u32 %v7967_v12, %v6792_v38  ;;  %v15464_v37 = vld [vmem:[#allocation35_spill] sm:$0xff]  ;;  %v4241_v12 = vadd.f32 %v12165_v27, %v12429_v26  ;;  %v15468_v27 = vld [vmem:[#allocation22_spill] sm:$0xff] }
 0x3b6   : > { %v4333_v40 = vpop.f32.mrf.mxu3  ;;  %4793 = vmatpush.bf16.msra.mxu1 %v6683_v14  ;;  %v6648_v14 = vld [vmem:[%s14395_s3 + $0xf8] sm:$0xf0]  ;;  %v7927_v26 = vld [vmem:[%s14395_s3 + $0xcc] sm:$0xf] }
 0x3b7   : > { %v12546_v50 = vadd.f32 %v4333_v40, %v4285_v43  ;;  %v12548_v16 = vpop.f32.mrf.mxu2  ;;  %v12550_v23 = vpop.f32.mrf.mxu0  ;;  %v6667_v43 = vor.u32 %v7935_v59, %v6664_v8  ;;  %v7931_v40 = vld [vmem:[%s14395_s3 + $0xec] sm:$0xf]  ;;  %4842 = vmatpush.bf16.msra.mxu2 %v6811_v41  ;;  %v7032_v8 = vld [vmem:[%s14395_s3 + $0x3f8] sm:$0xf0]  ;;  %v5186_v41 = vmax.f32 %v15464_v37, 0.0 }
 0x3b8   : > { %v6651_v61 = vor.u32 %v7931_v40, %v6648_v14  ;;  %v8027_v59 = vld [vmem:[%s14395_s3 + $0x3ec] sm:$0xf] }
 0x3b9   : > { %15457 = vst [vmem:[#allocation99_spill] sm:$0xff] %v12546_v50  ;;  %v12554_v60 = vpop.f32.mrf.mxu1 }
 0x3ba   : > { %4550 = vmatmul.bf16.vlgmr.msrb.gmra.mxu0 %v15459_v63  ;;  %4794 = vmatpush.bf16.msra.mxu1 %v6667_v43  ;;  %v15462_v63 = vld [vmem:[#allocation66_spill] sm:$0xff]  ;;  %v4290_v43 = vadd.f32 %v12172_v10, %v4241_v12  ;;  %v6632_v10 = vld [vmem:[%s14395_s3 + $0xd8] sm:$0xf0] }
 0x3bb   : > { %4531 = vmatmul.bf16.gmra.mxu3 %v15458_v51  ;;  %v5190_v51 = vmax.f32 %v15462_v63, 0.0  ;;  %4738 = vmatpush.bf16.msra.mxu0 %v6651_v61 }
 0x3bc   : > { %4629 = vmatmul.bf16.gmra.mxu1 %v15460_v28  ;;  %4678 = vmatmul.bf16.gmra.mxu2 %v15461_v17  ;;  %v7035_v28 = vor.u32 %v8027_v59, %v7032_v8  ;;  %v15467_v59 = vld [vmem:[#allocation68_spill] sm:$0xff]  ;;  %v6635_v8 = vor.u32 %v7927_v26, %v6632_v10  ;;  %v4246_v26 = vadd.f32 %v12205_v1, %v12515_v36  ;;  %v8393_v10 = vld [vmem:[%s14396_s4] sm:$0xf] }
 0x3bd   : > { %4843 = vmatpush.bf16.msra.mxu2 %v6795_v11  ;;  %v12595_v40 = vpack.c.bf16 %v5190_v51, %v5186_v41  ;;  %v15469_v51 = vld [vmem:[#allocation62_spill] sm:$0xff]  ;;  %v15470_v11 = vld [vmem:[#allocation63_spill] sm:$0xff] }
 0x3be   : > { %v4336_v17 = vpop.f32.mrf.mxu3  ;;  %4885 = vmatpush.bf16.msrb.mxu3 %v7035_v28  ;;  %v4244_v28 = vadd.f32 %v12176_v57, %v12467_v0  ;;  %v8023_v57 = vld [vmem:[%s14395_s3 + $0x3cc] sm:$0xf]  ;;  %v7016_v0 = vld [vmem:[%s14395_s3 + $0x3d8] sm:$0xf0] }
 0x3bf   : > { %v12586_v2 = vadd.f32 %v4336_v17, %v4288_v5  ;;  %v12588_v3 = vpop.f32.mrf.mxu2  ;;  %v4357_v25 = vpop.f32.mrf.mxu0  ;;  %15465 = vst [vmem:[#allocation10_spill] sm:$0xff] %v12595_v40  ;;  %v7019_v41 = vor.u32 %v8023_v57, %v7016_v0  ;;  %4739 = vmatpush.bf16.msra.mxu0 %v6635_v8 }
 0x3c0   : > { %v4293_v37 = vadd.f32 %v12199_v4, %v4244_v28  ;;  %v4295_v28 = vadd.f32 %v12210_v15, %v4246_v26  ;;  %v6616_v15 = vld [vmem:[%s14395_s3 + $0xb8] sm:$0xf0]  ;;  %v15475_v26 = vld [vmem:[#allocation115_spill] sm:$0xff] }
 0x3c1   : > { %15463 = vst [vmem:[#allocation90_spill] sm:$0xff] %v12586_v2  ;;  %v12593_v38 = vpop.f32.mrf.mxu1 }
 0x3c2   : > { %4886 = vmatpush.bf16.msrb.mxu3 %v7019_v41  ;;  %v15473_v41 = vld [vmem:[#allocation105_spill] sm:$0xff] }
 0x3c6   : > { %v4338_v63 = vpop.f32.mrf.mxu3 }
 0x3c7   : > { %v12598_v17 = vadd.f32 %v4338_v63, %v4290_v43  ;;  %v12600_v14 = vpop.f32.mrf.mxu2  ;;  %v4360_v61 = vpop.f32.mrf.mxu0 }
 0x3c9   : > { %15466 = vst [vmem:[#allocation20_spill] sm:$0xff] %v12598_v17  ;;  %v12604_v5 = vpop.f32.mrf.mxu1 }
 0x3ca   : > { %4555 = vmatmul.bf16.gmra.mxu0 %v15468_v27 }
 0x3cb   : > { %4536 = vmatmul.bf16.gmra.mxu3 %v15467_v59 }
 0x3cc   : > { %4634 = vmatmul.bf16.gmra.mxu1 %v15469_v51  ;;  %4683 = vmatmul.bf16.gmra.mxu2 %v15470_v11  ;;  %v12632_v11 = vperm.slane %v8393_v10, 2  ;;  %v15476_v10 = vld [vmem:[#allocation28_spill] sm:$0xff] }
 0x3ce   : > { %v4341_v12 = vpop.f32.mrf.mxu3  ;;  %v4356_v4 = vadd.f32 %v12550_v23, %v12632_v11  ;;  %v7923_v23 = vld [vmem:[%s14395_s3 + $0xac] sm:$0xf] }
 0x3cf   : > { %v12623_v43 = vadd.f32 %v4341_v12, %v4293_v37  ;;  %v12625_v63 = vpop.f32.mrf.mxu2  ;;  %v4362_v40 = vpop.f32.mrf.mxu0  ;;  %v15474_v12 = vld [vmem:[#allocation100_spill] sm:$0xff] }
 0x3d0   : > { %v4405_v1 = vadd.f32 %v12217_v35, %v4356_v4  ;;  %v8019_v35 = vld [vmem:[%s14395_s3 + $0x3ac] sm:$0xf]  ;;  %v7000_v4 = vld [vmem:[%s14395_s3 + $0x3b8] sm:$0xf0] }
 0x3d1   : > { %15471 = vst [vmem:[#allocation126_spill] sm:$0xff] %v12623_v43  ;;  %v12634_v51 = vpop.f32.mrf.mxu1  ;;  %v4361_v43 = vadd.f32 %v4360_v61, %v12632_v11  ;;  %v15479_v61 = vld [vmem:[#allocation113_spill] sm:$0xff] }
 0x3d6   : > { %v4343_v8 = vpop.f32.mrf.mxu3 }
 0x3d7   : > { %v12639_v57 = vadd.f32 %v4343_v8, %v4295_v28  ;;  %v12641_v0 = vpop.f32.mrf.mxu2  ;;  %v4365_v37 = vpop.f32.mrf.mxu0  ;;  %v6619_v28 = vor.u32 %v7923_v23, %v6616_v15  ;;  %v4358_v8 = vadd.f32 %v4357_v25, %v12632_v11 }
 0x3d9   : > { %15472 = vst [vmem:[#allocation23_spill] sm:$0xff] %v12639_v57  ;;  %v12644_v36 = vpop.f32.mrf.mxu1  ;;  %4740 = vmatpush.bf16.msra.mxu0 %v6619_v28  ;;  %v4407_v15 = vadd.f32 %v12244_v56, %v4358_v8  ;;  %v15478_v28 = vld [vmem:[#allocation102_spill] sm:$0xff]  ;;  %v7919_v56 = vld [vmem:[%s14395_s3 + $0x8c] sm:$0xf] }
 0x3da   : > { %4560 = vmatmul.bf16.gmra.mxu0 %v15473_v41  ;;  %v7003_v41 = vor.u32 %v8019_v35, %v7000_v4  ;;  %v4363_v4 = vadd.f32 %v4362_v40, %v12632_v11 }
 0x3db   : > { %4697 = vmatmul.bf16.vlgmr.msra.gmra.mxu3 %v15474_v12  ;;  %v4454_v12 = vadd.f32 %v12237_v6, %v4405_v1  ;;  %v4456_v57 = vadd.f32 %v12249_v9, %v4407_v15  ;;  %v6600_v9 = vld [vmem:[%s14395_s3 + $0x98] sm:$0xf0] }
 0x3dc   : > { %4795 = vmatmul.bf16.vlgmr.msra.gmra.mxu1 %v15475_v26  ;;  %4844 = vmatmul.bf16.vlgmr.msra.gmra.mxu2 %v15476_v10  ;;  %v6603_v35 = vor.u32 %v7919_v56, %v6600_v9  ;;  %v4412_v9 = vadd.f32 %v12283_v22, %v4363_v4  ;;  %v7915_v22 = vld [vmem:[%s14395_s3 + $0x6c] sm:$0xf] }
 0x3dd   : > { %4887 = vmatpush.bf16.msrb.mxu3 %v7003_v41  ;;  %v15477_v41 = vld [vmem:[#allocation114_spill] sm:$0xff] }
 0x3de   : > { %v4502_v27 = vpop.f32.mrf.mxu3  ;;  %4741 = vmatpush.bf16.msra.mxu0 %v6603_v35  ;;  %v4461_v17 = vadd.f32 %v12290_v24, %v4412_v9  ;;  %v6584_v24 = vld [vmem:[%s14395_s3 + $0x78] sm:$0xf0] }
 0x3df   : > { %v12664_v59 = vadd.f32 %v4502_v27, %v4454_v12  ;;  %v12666_v26 = vpop.f32.mrf.mxu2  ;;  %v4367_v23 = vpop.f32.mrf.mxu0  ;;  %v4410_v27 = vadd.f32 %v12253_v32, %v4361_v43  ;;  %v8015_v32 = vld [vmem:[%s14395_s3 + $0x38c] sm:$0xf]  ;;  %v6984_v43 = vld [vmem:[%s14395_s3 + $0x398] sm:$0xf0]  ;;  %v6587_v4 = vor.u32 %v7915_v22, %v6584_v24 }
 0x3e0   : > { %v6987_v15 = vor.u32 %v8015_v32, %v6984_v43  ;;  %v15481_v43 = vld [vmem:[#allocation13_spill] sm:$0xff] }
 0x3e1   : > { %v12669_v10 = vpop.f32.mrf.mxu1  ;;  %v4459_v8 = vadd.f32 %v12277_v31, %v4410_v27 }
 0x3e2   : > { %4888 = vmatpush.bf16.msrb.mxu3 %v6987_v15  ;;  %v4368_v15 = vadd.f32 %v4367_v23, %v12632_v11  ;;  %4742 = vmatpush.bf16.msra.mxu0 %v6587_v4 }
 0x3e4   : > { %v4417_v24 = vadd.f32 %v12327_v47, %v4368_v15  ;;  %v15486_v47 = vld [vmem:[#allocation6_spill] sm:$0xff]  ;;  %v15488_v15 = vld [vmem:[#allocation51_spill] sm:$0xff] }
 0x3e6   : > { %v4504_v25 = vpop.f32.mrf.mxu3  ;;  %v4466_v62 = vadd.f32 %v12334_v34, %v4417_v24  ;;  %v6568_v34 = vld [vmem:[%s14395_s3 + $0x58] sm:$0xf0] }
 0x3e7   : > { %v12673_v2 = vadd.f32 %v4504_v25, %v4456_v57  ;;  %v12675_v6 = vpop.f32.mrf.mxu2  ;;  %v4370_v1 = vpop.f32.mrf.mxu0  ;;  %v15480_v57 = vld [vmem:[#allocation30_spill] sm:$0xff] }
 0x3e9   : > { %v12678_v12 = vpop.f32.mrf.mxu1 }
 0x3ea   : > { %4565 = vmatmul.bf16.gmra.mxu0 %v15477_v41  ;;  %v4366_v41 = vadd.f32 %v4365_v37, %v12632_v11  ;;  %v15484_v37 = vld [vmem:[#allocation42_spill] sm:$0xff] }
 0x3eb   : > { %4702 = vmatmul.bf16.gmra.mxu3 %v15478_v28 }
 0x3ec   : > { %4800 = vmatmul.bf16.gmra.mxu1 %v15479_v61  ;;  %4849 = vmatmul.bf16.gmra.mxu2 %v15480_v57  ;;  %v4415_v35 = vadd.f32 %v12297_v21, %v4366_v41  ;;  %v8011_v21 = vld [vmem:[%s14395_s3 + $0x36c] sm:$0xf]  ;;  %v6968_v41 = vld [vmem:[%s14395_s3 + $0x378] sm:$0xf0] }
 0x3ed   : > { %v6971_v9 = vor.u32 %v8011_v21, %v6968_v41  ;;  %v15485_v41 = vld [vmem:[#allocation24_spill] sm:$0xff] }
 0x3ee   : > { %v4507_v25 = vpop.f32.mrf.mxu3 }
 0x3ef   : > { %v12698_v28 = vadd.f32 %v4507_v25, %v4459_v8  ;;  %v12700_v61 = vpop.f32.mrf.mxu2  ;;  %v4372_v56 = vpop.f32.mrf.mxu0  ;;  %v15482_v8 = vld [vmem:[#allocation14_spill] sm:$0xff]  ;;  %v4464_v25 = vadd.f32 %v12319_v30, %v4415_v35  ;;  %4889 = vmatpush.bf16.msrb.mxu3 %v6971_v9 }
 0x3f0   : > { %v4373_v9 = vadd.f32 %v4372_v56, %v12632_v11  ;;  %v7907_v56 = vld [vmem:[%s14395_s3 + $0x2c] sm:$0xf] }
 0x3f1   : > { %v12703_v57 = vpop.f32.mrf.mxu1 }
 0x3f6   : > { %v4509_v40 = vpop.f32.mrf.mxu3 }
 0x3f7   : > { %v12707_v50 = vadd.f32 %v4509_v40, %v4461_v17  ;;  %v12709_v31 = vpop.f32.mrf.mxu2  ;;  %v4375_v27 = vpop.f32.mrf.mxu0  ;;  %v15483_v17 = vld [vmem:[#allocation41_spill] sm:$0xff] }
 0x3f9   : > { %v12712_v32 = vpop.f32.mrf.mxu1 }
 0x3fa   : > { %4570 = vmatmul.bf16.gmra.mxu0 %v15481_v43  ;;  %v4371_v43 = vadd.f32 %v4370_v1, %v12632_v11  ;;  %v7911_v1 = vld [vmem:[%s14395_s3 + $0x4c] sm:$0xf] }
 0x3fb   : > { %4707 = vmatmul.bf16.gmra.mxu3 %v15482_v8 }
 0x3fc   : > { %4805 = vmatmul.bf16.gmra.mxu1 %v15483_v17  ;;  %4854 = vmatmul.bf16.gmra.mxu2 %v15484_v37  ;;  %v4420_v4 = vadd.f32 %v12340_v45, %v4371_v43  ;;  %v8007_v45 = vld [vmem:[%s14395_s3 + $0x34c] sm:$0xf]  ;;  %v6952_v43 = vld [vmem:[%s14395_s3 + $0x358] sm:$0xf0] }
 0x3fd   : > { %v6955_v24 = vor.u32 %v8007_v45, %v6952_v43 }
 0x3fe   : > { %v4512_v40 = vpop.f32.mrf.mxu3 }
 0x3ff   : > { %v12732_v8 = vadd.f32 %v4512_v40, %v4464_v25  ;;  %v12734_v17 = vpop.f32.mrf.mxu2  ;;  %v4377_v22 = vpop.f32.mrf.mxu0  ;;  %v6571_v25 = vor.u32 %v7911_v1, %v6568_v34  ;;  %v4469_v40 = vadd.f32 %v12362_v20, %v4420_v4  ;;  %4890 = vmatpush.bf16.msrb.mxu3 %v6955_v24  ;;  %v4422_v34 = vadd.f32 %v12369_v29, %v4373_v9  ;;  %v6552_v20 = vld [vmem:[%s14395_s3 + $0x38] sm:$0xf0] }
 0x400   : > { %v6555_v4 = vor.u32 %v7907_v56, %v6552_v20  ;;  %v15495_v56 = vld [vmem:[#allocation57_spill] sm:$0xff] }
 0x401   : > { %v12737_v37 = vpop.f32.mrf.mxu1  ;;  %4743 = vmatpush.bf16.msra.mxu0 %v6571_v25  ;;  %v4376_v25 = vadd.f32 %v4375_v27, %v12632_v11  ;;  %v4471_v45 = vadd.f32 %v12382_v58, %v4422_v34  ;;  %v7903_v58 = vld [vmem:[%s14395_s3 + $0xc] sm:$0xf]  ;;  %v6536_v27 = vld [vmem:[%s14395_s3 + $0x18] sm:$0xf0]  ;;  %v15494_v34 = vld [vmem:[#allocation56_spill] sm:$0xff] }
 0x402   : > { %v6539_v20 = vor.u32 %v7903_v58, %v6536_v27  ;;  %v7288_v58 = vld [vmem:[%s14395_s3 + $0x5f8] sm:$0xf0]  ;;  %v8123_v27 = vld [vmem:[%s14395_s3 + $0x6ec] sm:$0xf] }
 0x403   : > { %v4425_v24 = vadd.f32 %v12389_v49, %v4376_v25  ;;  %v8003_v49 = vld [vmem:[%s14395_s3 + $0x32c] sm:$0xf] }
 0x404   : > { %v8091_v25 = vld [vmem:[%s14395_s3 + $0x5ec] sm:$0xf] }
 0x405   : > { %4744 = vmatpush.bf16.msra.mxu0 %v6555_v4  ;;  %v6936_v4 = vld [vmem:[%s14395_s3 + $0x338] sm:$0xf0] }
 0x406   : > { %v4514_v23 = vpop.f32.mrf.mxu3 }
 0x407   : > { %v12741_v44 = vadd.f32 %v4514_v23, %v4466_v62  ;;  %v12743_v30 = vpop.f32.mrf.mxu2  ;;  %v12745_v35 = vpop.f32.mrf.mxu0  ;;  %v15487_v62 = vld [vmem:[#allocation50_spill] sm:$0xff] }
 0x409   : > { %v12748_v21 = vpop.f32.mrf.mxu1  ;;  %4745 = vmatpush.bf16.msra.mxu0 %v6539_v20  ;;  %v8119_v20 = vld [vmem:[%s14395_s3 + $0x6cc] sm:$0xf] }
 0x40a   : > { %4575 = vmatmul.bf16.gmra.mxu0 %v15485_v41  ;;  %v15492_v41 = vld [vmem:[#allocation11_spill] sm:$0xff] }
 0x40b   : > { %4712 = vmatmul.bf16.gmra.mxu3 %v15486_v47 }
 0x40c   : > { %4810 = vmatmul.bf16.gmra.mxu1 %v15487_v62  ;;  %4859 = vmatmul.bf16.gmra.mxu2 %v15488_v15 }
 0x40e   : > { %v4517_v23 = vpop.f32.mrf.mxu3 }
 0x40f   : > { %v12768_v47 = vadd.f32 %v4517_v23, %v4469_v40  ;;  %v12770_v62 = vpop.f32.mrf.mxu2  ;;  %v12772_v1 = vpop.f32.mrf.mxu0 }
 0x411   : > { %v12775_v15 = vpop.f32.mrf.mxu1 }
 0x412   : > { %15489 = vst [vmem:[#allocation123_spill] sm:$0xff] %v12775_v15  ;;  %v15493_v15 = vld [vmem:[#allocation16_spill] sm:$0xff] }
 0x416   : > { %v4519_v43 = vpop.f32.mrf.mxu3 }
 0x417   : > { %v12785_v40 = vadd.f32 %v4519_v43, %v4471_v45  ;;  %v12787_v29 = vpop.f32.mrf.mxu2  ;;  %v12789_v9 = vpop.f32.mrf.mxu0  ;;  %v4378_v45 = vadd.f32 %v4377_v22, %v12632_v11  ;;  %v4474_v43 = vadd.f32 %v12423_v39, %v4425_v24 }
 0x418   : > { %15490 = vst [vmem:[#allocation119_spill] sm:$0xff] %v12787_v29  ;;  %v8087_v29 = vld [vmem:[%s14395_s3 + $0x5cc] sm:$0xf] }
 0x419   : > { %v12792_v23 = vpop.f32.mrf.mxu1 }
 0x41a   : > { %15491 = vst [vmem:[#allocation121_spill] sm:$0xff] %v12792_v23  ;;  %4580 = vmatmul.bf16.gmra.mxu0 %v15492_v41  ;;  %v7291_v41 = vor.u32 %v8091_v25, %v7288_v58 }
 0x41b   : > { %4717 = vmatmul.bf16.gmra.mxu3 %v15493_v15 }
 0x41c   : > { %4815 = vmatmul.bf16.gmra.mxu1 %v15494_v34  ;;  %4864 = vmatmul.bf16.gmra.mxu2 %v15495_v56  ;;  %v6939_v34 = vor.u32 %v8003_v49, %v6936_v4  ;;  %v7416_v56 = vld [vmem:[%s14395_s3 + $0x6f8] sm:$0xf0]  ;;  %v4427_v49 = vadd.f32 %v12431_v33, %v4378_v45  ;;  %v8083_v33 = vld [vmem:[%s14395_s3 + $0x5ac] sm:$0xf]  ;;  %v4381_v45 = vadd.f32 %v12745_v35, %v12632_v11 }
 0x41d   : > { %v7419_v23 = vor.u32 %v8123_v27, %v7416_v56  ;;  %4983 = vmatpush.bf16.msrb.mxu1 %v7291_v41  ;;  %v7400_v41 = vld [vmem:[%s14395_s3 + $0x6d8] sm:$0xf0]  ;;  %v8115_v27 = vld [vmem:[%s14395_s3 + $0x6ac] sm:$0xf] }
 0x41e   : > { %v4522_v15 = vpop.f32.mrf.mxu3  ;;  %4891 = vmatpush.bf16.msrb.mxu3 %v6939_v34  ;;  %v7403_v34 = vor.u32 %v8119_v20, %v7400_v41  ;;  %v7384_v56 = vld [vmem:[%s14395_s3 + $0x6b8] sm:$0xf0]  ;;  %v8079_v41 = vld [vmem:[%s14395_s3 + $0x58c] sm:$0xf] }
 0x41f   : > { %v12824_v22 = vadd.f32 %v4522_v15, %v4474_v43  ;;  %v12826_v39 = vpop.f32.mrf.mxu2  ;;  %v12828_v24 = vpop.f32.mrf.mxu0  ;;  %5032 = vmatpush.bf16.msrb.mxu2 %v7419_v23  ;;  %v7272_v15 = vld [vmem:[%s14395_s3 + $0x5d8] sm:$0xf0]  ;;  %v4476_v43 = vadd.f32 %v12462_v7, %v4427_v49  ;;  %v4430_v7 = vadd.f32 %v12469_v19, %v4381_v45  ;;  %v7387_v20 = vor.u32 %v8115_v27, %v7384_v56  ;;  %v8111_v19 = vld [vmem:[%s14395_s3 + $0x68c] sm:$0xf] }
 0x420   : > { %v7275_v25 = vor.u32 %v8087_v29, %v7272_v15  ;;  %v7256_v23 = vld [vmem:[%s14395_s3 + $0x5b8] sm:$0xf0]  ;;  %v4383_v27 = vadd.f32 %v12772_v1, %v12632_v11  ;;  %v8107_v1 = vld [vmem:[%s14395_s3 + $0x66c] sm:$0xf] }
 0x421   : > { %v12831_v4 = vpop.f32.mrf.mxu1  ;;  %v7259_v29 = vor.u32 %v8083_v33, %v7256_v23  ;;  %v7240_v33 = vld [vmem:[%s14395_s3 + $0x598] sm:$0xf0]  ;;  %v15498_v23 = vld [vmem:[#allocation76_spill] sm:$0xff]  ;;  %v4479_v56 = vadd.f32 %v12509_v42, %v4430_v7 }
 0x422   : > { %15496 = vst [vmem:[#allocation2_spill] sm:$0xff] %v12831_v4  ;;  %4984 = vmatpush.bf16.msrb.mxu1 %v7275_v25  ;;  %v15497_v25 = vld [vmem:[#allocation36_spill] sm:$0xff]  ;;  %v15499_v45 = vld [vmem:[#allocation77_spill] sm:$0xff] }
 0x423   : > { %5033 = vmatpush.bf16.msrb.mxu2 %v7403_v34  ;;  %v7368_v34 = vld [vmem:[%s14395_s3 + $0x698] sm:$0xf0] }
 0x424   : > { %v7352_v42 = vld [vmem:[%s14395_s3 + $0x678] sm:$0xf0] }
 0x426   : > { %v4524_v58 = vpop.f32.mrf.mxu3  ;;  %4985 = vmatpush.bf16.msrb.mxu1 %v7259_v29  ;;  %v6920_v29 = vld [vmem:[%s14395_s3 + $0x318] sm:$0xf0] }
 0x427   : > { %v12860_v15 = vadd.f32 %v4524_v58, %v4476_v43  ;;  %v12862_v4 = vpop.f32.mrf.mxu2  ;;  %v12864_v35 = vpop.f32.mrf.mxu0  ;;  %v7243_v43 = vor.u32 %v8079_v41, %v7240_v33  ;;  %v7999_v58 = vld [vmem:[%s14395_s3 + $0x30c] sm:$0xf]  ;;  %5034 = vmatpush.bf16.msrb.mxu2 %v7387_v20 }
 0x428   : > { %v6923_v41 = vor.u32 %v7999_v58, %v6920_v29  ;;  %v8075_v33 = vld [vmem:[%s14395_s3 + $0x56c] sm:$0xf] }
 0x429   : > { %v12867_v49 = vpop.f32.mrf.mxu1  ;;  %v8071_v29 = vld [vmem:[%s14395_s3 + $0x54c] sm:$0xf] }
 0x42a   : > { %4585 = vmatmul.bf16.gmra.mxu0 %v11200_v52  ;;  %4986 = vmatpush.bf16.msrb.mxu1 %v7243_v43  ;;  %v7355_v43 = vor.u32 %v8107_v1, %v7352_v42 }
 0x42b   : > { %4722 = vmatmul.bf16.gmra.mxu3 %v15497_v25 }
 0x42c   : > { %4820 = vmatmul.bf16.gmra.mxu1 %v15498_v23  ;;  %4869 = vmatmul.bf16.gmra.mxu2 %v15499_v45  ;;  %v7371_v23 = vor.u32 %v8111_v19, %v7368_v34  ;;  %v7224_v45 = vld [vmem:[%s14395_s3 + $0x578] sm:$0xf0]  ;;  %v4432_v34 = vadd.f32 %v12517_v46, %v4383_v27 }
 0x42d   : > { %v7227_v52 = vor.u32 %v8075_v33, %v7224_v45  ;;  %4892 = vmatpush.bf16.msrb.mxu3 %v6923_v41  ;;  %v7336_v46 = vld [vmem:[%s14395_s3 + $0x658] sm:$0xf0] }
 0x42e   : > { %v4527_v25 = vpop.f32.mrf.mxu3  ;;  %5035 = vmatpush.bf16.msrb.mxu2 %v7371_v23  ;;  %v7192_v27 = vld [vmem:[%s14395_s3 + $0x538] sm:$0xf0]  ;;  %v4386_v23 = vadd.f32 %v12789_v9, %v12632_v11  ;;  %v4481_v33 = vadd.f32 %v12548_v16, %v4432_v34 }
 0x42f   : > { %v12906_v7 = vadd.f32 %v4527_v25, %v4479_v56  ;;  %v12908_v20 = vpop.f32.mrf.mxu2  ;;  %v12910_v19 = vpop.f32.mrf.mxu0  ;;  %4987 = vmatpush.bf16.msrb.mxu1 %v7227_v52  ;;  %v7208_v25 = vld [vmem:[%s14395_s3 + $0x558] sm:$0xf0]  ;;  %v8103_v56 = vld [vmem:[%s14395_s3 + $0x64c] sm:$0xf] }
 0x430   : > { %15500 = vst [vmem:[#allocation125_spill] sm:$0xff] %v12908_v20  ;;  %v7211_v41 = vor.u32 %v8071_v29, %v7208_v25  ;;  %v8067_v52 = vld [vmem:[%s14395_s3 + $0x52c] sm:$0xf]  ;;  %v7339_v45 = vor.u32 %v8103_v56, %v7336_v46  ;;  %v7320_v25 = vld [vmem:[%s14395_s3 + $0x638] sm:$0xf0]  ;;  %v4435_v16 = vadd.f32 %v12554_v60, %v4386_v23 }
 0x431   : > { %v12913_v58 = vpop.f32.mrf.mxu1  ;;  %v7195_v42 = vor.u32 %v8067_v52, %v7192_v27  ;;  %v8099_v29 = vld [vmem:[%s14395_s3 + $0x62c] sm:$0xf]  ;;  %v7176_v60 = vld [vmem:[%s14395_s3 + $0x518] sm:$0xf0]  ;;  %v15503_v52 = vld [vmem:[#allocation94_spill] sm:$0xff] }
 0x432   : > { %15501 = vst [vmem:[#allocation58_spill] sm:$0xff] %v12913_v58  ;;  %5036 = vmatpush.bf16.msrb.mxu2 %v7355_v43  ;;  %v7323_v56 = vor.u32 %v8099_v29, %v7320_v25  ;;  %v15502_v46 = vld [vmem:[#allocation93_spill] sm:$0xff]  ;;  %v8059_v23 = vld [vmem:[%s14395_s3 + $0x4ec] sm:$0xf] }
 0x433   : > { %4988 = vmatpush.bf16.msrb.mxu1 %v7211_v41  ;;  %v8063_v41 = vld [vmem:[%s14395_s3 + $0x50c] sm:$0xf] }
 0x434   : > { %v7179_v27 = vor.u32 %v8063_v41, %v7176_v60  ;;  %v8155_v25 = vld [vmem:[%s14395_s3 + $0x7ec] sm:$0xf] }
 0x436   : > { %v4529_v1 = vpop.f32.mrf.mxu3  ;;  %5037 = vmatpush.bf16.msrb.mxu2 %v7339_v45  ;;  %v4388_v45 = vadd.f32 %v12828_v24, %v12632_v11 }
 0x437   : > { %v12942_v58 = vadd.f32 %v4529_v1, %v4481_v33  ;;  %v12944_v20 = vpop.f32.mrf.mxu2  ;;  %v4551_v9 = vpop.f32.mrf.mxu0  ;;  %4989 = vmatpush.bf16.msrb.mxu1 %v7195_v42  ;;  %v7160_v33 = vld [vmem:[%s14395_s3 + $0x4f8] sm:$0xf0]  ;;  %v4484_v1 = vadd.f32 %v12588_v3, %v4435_v16 }
 0x438   : > { %v12948_v34 = vadd.f32 %v4551_v9, %v12664_v59  ;;  %v8095_v59 = vld [vmem:[%s14395_s3 + $0x60c] sm:$0xf]  ;;  %v7163_v29 = vor.u32 %v8059_v23, %v7160_v33  ;;  %v7544_v9 = vld [vmem:[%s14395_s3 + $0x7f8] sm:$0xf0]  ;;  %v4437_v24 = vadd.f32 %v12593_v38, %v4388_v45 }
 0x439   : > { %v12950_v43 = vpop.f32.mrf.mxu1  ;;  %v7547_v60 = vor.u32 %v8155_v25, %v7544_v9  ;;  %v15506_v25 = vld [vmem:[#allocation81_spill] sm:$0xff] }
 0x43a   : > { %4746 = vmatmul.bf16.vlgmr.msra.gmra.mxu0 %v15284_v54  ;;  %v7304_v54 = vld [vmem:[%s14395_s3 + $0x618] sm:$0xf0]  ;;  %5038 = vmatpush.bf16.msrb.mxu2 %v7323_v56 }
 0x43b   : > { %4727 = vmatmul.bf16.gmra.mxu3 %v11301_v18  ;;  %v7307_v42 = vor.u32 %v8095_v59, %v7304_v54  ;;  %4990 = vmatpush.bf16.msrb.mxu1 %v7179_v27  ;;  %v4391_v59 = vadd.f32 %v12864_v35, %v12632_v11  ;;  %v4486_v27 = vadd.f32 %v12600_v14, %v4437_v24  ;;  %v8055_v14 = vld [vmem:[%s14395_s3 + $0x4cc] sm:$0xf]  ;;  %v7144_v35 = vld [vmem:[%s14395_s3 + $0x4d8] sm:$0xf0]  ;;  %v15539_v18 = vld [vmem:[#allocation2_spill] sm:$0xff] }
 0x43c   : > { %4825 = vmatmul.bf16.gmra.mxu1 %v15502_v46  ;;  %4874 = vmatmul.bf16.gmra.mxu2 %v15503_v52  ;;  %v7528_v9 = vld [vmem:[%s14395_s3 + $0x7d8] sm:$0xf0] }
 0x43d   : > { %4934 = vmatpush.bf16.msrb.mxu0 %v7163_v29  ;;  %5081 = vmatpush.bf16.msra.mxu3 %v7547_v60  ;;  %v4440_v29 = vadd.f32 %v12604_v5, %v4391_v59  ;;  %v7147_v5 = vor.u32 %v8055_v14, %v7144_v35 }
 0x43e   : > { %v4532_v41 = vpop.f32.mrf.mxu3  ;;  %5039 = vmatpush.bf16.msrb.mxu2 %v7307_v42  ;;  %v15505_v42 = vld [vmem:[#allocation61_spill] sm:$0xff] }
 0x43f   : > { %v12983_v46 = vadd.f32 %v4532_v41, %v4484_v1  ;;  %v12985_v52 = vpop.f32.mrf.mxu2  ;;  %v4553_v3 = vpop.f32.mrf.mxu0  ;;  %v4393_v41 = vadd.f32 %v12910_v19, %v12632_v11  ;;  %v4489_v60 = vadd.f32 %v12625_v63, %v4440_v29 }
 0x440   : > { %v4554_v16 = vadd.f32 %v4553_v3, %v12673_v2  ;;  %v15504_v2 = vld [vmem:[#allocation26_spill] sm:$0xff] }
 0x441   : > { %v12989_v56 = vpop.f32.mrf.mxu1  ;;  %4935 = vmatpush.bf16.msrb.mxu0 %v7147_v5  ;;  %v15508_v5 = vld [vmem:[#allocation127_spill] sm:$0xff] }
 0x446   : > { %v4534_v54 = vpop.f32.mrf.mxu3 }
 0x447   : > { %v12994_v23 = vadd.f32 %v4534_v54, %v4486_v27  ;;  %v12996_v33 = vpop.f32.mrf.mxu2  ;;  %v4556_v1 = vpop.f32.mrf.mxu0 }
 0x448   : > { %v4557_v38 = vadd.f32 %v4556_v1, %v12698_v28  ;;  %v8151_v28 = vld [vmem:[%s14395_s3 + $0x7cc] sm:$0xf]  ;;  %v4442_v1 = vadd.f32 %v12634_v51, %v4393_v41  ;;  %v7512_v41 = vld [vmem:[%s14395_s3 + $0x7b8] sm:$0xf0] }
 0x449   : > { %v13000_v45 = vpop.f32.mrf.mxu1  ;;  %v7531_v3 = vor.u32 %v8151_v28, %v7528_v9  ;;  %v7128_v28 = vld [vmem:[%s14395_s3 + $0x4b8] sm:$0xf0]  ;;  %v15509_v9 = vld [vmem:[#allocation128_spill] sm:$0xff] }
 0x44a   : > { %4751 = vmatmul.bf16.gmra.mxu0 %v15504_v2  ;;  %v4491_v11 = vadd.f32 %v12641_v0, %v4442_v1  ;;  %v8051_v0 = vld [vmem:[%s14395_s3 + $0x4ac] sm:$0xf] }
 0x44b   : > { %4732 = vmatmul.bf16.gmra.mxu3 %v15399_v55 }
 0x44c   : > { %4830 = vmatmul.bf16.gmra.mxu1 %v15505_v42  ;;  %4879 = vmatmul.bf16.gmra.mxu2 %v15506_v25  ;;  %v4601_v42 = vadd.f32 %v12644_v36, %v12948_v34  ;;  %v15510_v36 = vld [vmem:[#allocation129_spill] sm:$0xff]  ;;  %v8147_v34 = vld [vmem:[%s14395_s3 + $0x7ac] sm:$0xf] }
 0x44d   : > { %5082 = vmatpush.bf16.msra.mxu3 %v7531_v3  ;;  %v7515_v3 = vor.u32 %v8147_v34, %v7512_v41  ;;  %v15511_v41 = vld [vmem:[#allocation12_spill] sm:$0xff] }
 0x44e   : > { %v4537_v24 = vpop.f32.mrf.mxu3 }
 0x44f   : > { %v13021_v59 = vadd.f32 %v4537_v24, %v4489_v60  ;;  %v13023_v27 = vpop.f32.mrf.mxu2  ;;  %v4558_v54 = vpop.f32.mrf.mxu0  ;;  %v4650_v60 = vadd.f32 %v12666_v26, %v4601_v42 }
 0x450   : > { %v13027_v2 = vadd.f32 %v4558_v54, %v12707_v50  ;;  %v15507_v50 = vld [vmem:[#allocation40_spill] sm:$0xff]  ;;  %v5143_v54 = vmax.f32 %v12288_v13, 0.0 }
 0x451   : > { %v13029_v14 = vpop.f32.mrf.mxu1  ;;  %5083 = vmatpush.bf16.msra.mxu3 %v7515_v3  ;;  %v8143_v3 = vld [vmem:[%s14395_s3 + $0x78c] sm:$0xf] }
 0x456   : > { %v4539_v19 = vpop.f32.mrf.mxu3 }
 0x457   : > { %v13032_v63 = vadd.f32 %v4539_v19, %v4491_v11  ;;  %v13034_v29 = vpop.f32.mrf.mxu2  ;;  %v4561_v35 = vpop.f32.mrf.mxu0 }
 0x458   : > { %v13039_v25 = vadd.f32 %v4561_v35, %v12732_v8  ;;  %v7131_v8 = vor.u32 %v8051_v0, %v7128_v28  ;;  %v5139_v35 = vmax.f32 %v12275_v53, 0.0 }
 0x459   : > { %v13041_v51 = vpop.f32.mrf.mxu1 }
 0x45a   : > { %4756 = vmatmul.bf16.gmra.mxu0 %v15507_v50  ;;  %v4603_v50 = vadd.f32 %v12669_v10, %v4554_v16  ;;  %v13070_v26 = vpack.c.bf16 %v5143_v54, %v5139_v35 }
 0x45b   : > { %4893 = vmatmul.bf16.vlgmr.msrb.gmra.mxu3 %v15508_v5  ;;  %4936 = vmatpush.bf16.msrb.mxu0 %v7131_v8  ;;  %v4606_v8 = vadd.f32 %v12678_v12, %v4557_v38  ;;  %v7112_v12 = vld [vmem:[%s14395_s3 + $0x498] sm:$0xf0]  ;;  %v15512_v38 = vld [vmem:[#allocation15_spill] sm:$0xff] }
 0x45c   : > { %4991 = vmatmul.bf16.vlgmr.msrb.gmra.mxu1 %v15509_v9  ;;  %5040 = vmatmul.bf16.vlgmr.msrb.gmra.mxu2 %v15510_v36  ;;  %v4652_v42 = vadd.f32 %v12675_v6, %v4603_v50  ;;  %v8047_v6 = vld [vmem:[%s14395_s3 + $0x48c] sm:$0xf] }
 0x45e   : > { %v4698_v24 = vpop.f32.mrf.mxu3 }
 0x45f   : > { %v4699_v1 = vadd.f32 %v4698_v24, %v4650_v60  ;;  %v13061_v11 = vpop.f32.mrf.mxu2  ;;  %v4563_v19 = vpop.f32.mrf.mxu0  ;;  %v15513_v60 = vld [vmem:[#allocation138_spill] sm:$0xff]  ;;  %v4655_v24 = vadd.f32 %v12700_v61, %v4606_v8 }
 0x460   : > { %v13066_v5 = vadd.f32 %v4563_v19, %v12741_v44  ;;  %v15514_v19 = vld [vmem:[#allocation84_spill] sm:$0xff] }
 0x461   : > { %v13068_v0 = vpop.f32.mrf.mxu1  ;;  %v5132_v34 = vmax.f32 %v4699_v1, 0.0  ;;  %v5151_v35 = vmax.f32 %v15514_v19, 0.0 }
 0x466   : > { %v4700_v28 = vpop.f32.mrf.mxu3 }
 0x467   : > { %v4701_v13 = vadd.f32 %v4700_v28, %v4652_v42  ;;  %v13073_v9 = vpop.f32.mrf.mxu2  ;;  %v4566_v36 = vpop.f32.mrf.mxu0 }
 0x468   : > { %v4567_v10 = vadd.f32 %v4566_v36, %v12768_v47  ;;  %v7115_v47 = vor.u32 %v8047_v6, %v7112_v12 }
 0x469   : > { %v5136_v53 = vmax.f32 %v4701_v13, 0.0  ;;  %v13077_v16 = vpop.f32.mrf.mxu1  ;;  %v15515_v13 = vld [vmem:[#allocation82_spill] sm:$0xff] }
 0x46a   : > { %4761 = vmatmul.bf16.gmra.mxu0 %v15411_v48  ;;  %v7496_v48 = vld [vmem:[%s14395_s3 + $0x798] sm:$0xf0]  ;;  %v5147_v36 = vmax.f32 %v15515_v13, 0.0 }
 0x46b   : > { %v13079_v44 = vpack.c.bf16 %v5136_v53, %v5132_v34  ;;  %4898 = vmatmul.bf16.gmra.mxu3 %v15511_v41  ;;  %v7499_v54 = vor.u32 %v8143_v3, %v7496_v48  ;;  %4937 = vmatpush.bf16.msrb.mxu0 %v7115_v47  ;;  %v4608_v34 = vadd.f32 %v12703_v57, %v13027_v2  ;;  %v15517_v2 = vld [vmem:[#allocation85_spill] sm:$0xff] }
 0x46c   : > { %4996 = vmatmul.bf16.gmra.mxu1 %v15512_v38  ;;  %5045 = vmatmul.bf16.gmra.mxu2 %v15513_v60  ;;  %v13109_v61 = vpack.c.bf16 %v5151_v35, %v5147_v36  ;;  %v4611_v47 = vadd.f32 %v12712_v32, %v13039_v25  ;;  %v7096_v48 = vld [vmem:[%s14395_s3 + $0x478] sm:$0xf0]  ;;  %v15519_v32 = vld [vmem:[#allocation96_spill] sm:$0xff]  ;;  %v8139_v25 = vld [vmem:[%s14395_s3 + $0x76c] sm:$0xf] }
 0x46d   : > { %5084 = vmatpush.bf16.msra.mxu3 %v7499_v54  ;;  %v4657_v8 = vadd.f32 %v12709_v31, %v4608_v34  ;;  %v8043_v31 = vld [vmem:[%s14395_s3 + $0x46c] sm:$0xf]  ;;  %v7480_v54 = vld [vmem:[%s14395_s3 + $0x778] sm:$0xf0] }
 0x46e   : > { %v4703_v1 = vpop.f32.mrf.mxu3  ;;  %v7483_v19 = vor.u32 %v8139_v25, %v7480_v54  ;;  %v4616_v25 = vadd.f32 %v12748_v21, %v4567_v10  ;;  %v15525_v21 = vld [vmem:[#allocation108_spill] sm:$0xff]  ;;  %v8135_v10 = vld [vmem:[%s14395_s3 + $0x74c] sm:$0xf] }
 0x46f   : > { %v13099_v50 = vadd.f32 %v4703_v1, %v4655_v24  ;;  %v13101_v42 = vpop.f32.mrf.mxu2  ;;  %v4568_v28 = vpop.f32.mrf.mxu0  ;;  %v15518_v24 = vld [vmem:[#allocation87_spill] sm:$0xff]  ;;  %v4660_v1 = vadd.f32 %v12734_v17, %v4611_v47 }
 0x470   : > { %v4569_v53 = vadd.f32 %v4568_v28, %v12785_v40  ;;  %v15516_v40 = vld [vmem:[#allocation55_spill] sm:$0xff]  ;;  %v15520_v28 = vld [vmem:[#allocation78_spill] sm:$0xff] }
 0x471   : > { %v13107_v41 = vpop.f32.mrf.mxu1  ;;  %v5159_v13 = vmax.f32 %v15520_v28, 0.0  ;;  %5085 = vmatpush.bf16.msra.mxu3 %v7483_v19  ;;  %v15524_v19 = vld [vmem:[#allocation106_spill] sm:$0xff]  ;;  %v4665_v28 = vadd.f32 %v12770_v62, %v4616_v25  ;;  %v8035_v62 = vld [vmem:[%s14395_s3 + $0x42c] sm:$0xf]  ;;  %v7064_v25 = vld [vmem:[%s14395_s3 + $0x438] sm:$0xf0] }
 0x476   : > { %v4705_v6 = vpop.f32.mrf.mxu3 }
 0x477   : > { %v13112_v12 = vadd.f32 %v4705_v6, %v4657_v8  ;;  %v13114_v38 = vpop.f32.mrf.mxu2  ;;  %v4571_v60 = vpop.f32.mrf.mxu0  ;;  %v15521_v6 = vld [vmem:[#allocation86_spill] sm:$0xff] }
 0x478   : > { %v13119_v3 = vadd.f32 %v4571_v60, %v12824_v22  ;;  %v7099_v22 = vor.u32 %v8043_v31, %v7096_v48  ;;  %v5155_v60 = vmax.f32 %v15521_v6, 0.0  ;;  %v15526_v6 = vld [vmem:[#allocation83_spill] sm:$0xff] }
 0x479   : > { %v13121_v57 = vpop.f32.mrf.mxu1 }
 0x47a   : > { %4766 = vmatmul.bf16.gmra.mxu0 %v15516_v40  ;;  %v4613_v40 = vadd.f32 %v12737_v37, %v13066_v5  ;;  %v13153_v47 = vpack.c.bf16 %v5159_v13, %v5155_v60  ;;  %v15523_v5 = vld [vmem:[#allocation103_spill] sm:$0xff]  ;;  %v5167_v60 = vmax.f32 %v15526_v6, 0.0 }
 0x47b   : > { %4903 = vmatmul.bf16.gmra.mxu3 %v15517_v2  ;;  %4938 = vmatpush.bf16.msrb.mxu0 %v7099_v22 }
 0x47c   : > { %5001 = vmatmul.bf16.gmra.mxu1 %v15518_v24  ;;  %5050 = vmatmul.bf16.gmra.mxu2 %v15519_v32  ;;  %v4662_v31 = vadd.f32 %v12743_v30, %v4613_v40  ;;  %v8039_v30 = vld [vmem:[%s14395_s3 + $0x44c] sm:$0xf] }
 0x47e   : > { %v4708_v35 = vpop.f32.mrf.mxu3 }
 0x47f   : > { %v13141_v36 = vadd.f32 %v4708_v35, %v4660_v1  ;;  %v13143_v34 = vpop.f32.mrf.mxu2  ;;  %v4573_v8 = vpop.f32.mrf.mxu0  ;;  %v7080_v1 = vld [vmem:[%s14395_s3 + $0x458] sm:$0xf0] }
 0x480   : > { %v13149_v2 = vadd.f32 %v4573_v8, %v12860_v15  ;;  %v15522_v15 = vld [vmem:[#allocation75_spill] sm:$0xff]  ;;  %v7464_v35 = vld [vmem:[%s14395_s3 + $0x758] sm:$0xf0] }
 0x481   : > { %v13151_v17 = vpop.f32.mrf.mxu1  ;;  %v7467_v13 = vor.u32 %v8135_v10, %v7464_v35  ;;  %v15530_v10 = vld [vmem:[#allocation119_spill] sm:$0xff] }
 0x483   : > { %5086 = vmatpush.bf16.msra.mxu3 %v7467_v13 }
 0x486   : > { %v4710_v48 = vpop.f32.mrf.mxu3 }
 0x487   : > { %v13156_v24 = vadd.f32 %v4710_v48, %v4662_v31  ;;  %v13158_v32 = vpop.f32.mrf.mxu2  ;;  %v4576_v22 = vpop.f32.mrf.mxu0 }
 0x488   : > { %v13162_v54 = vadd.f32 %v4576_v22, %v12906_v7  ;;  %v7083_v7 = vor.u32 %v8039_v30, %v7080_v1  ;;  %v15527_v22 = vld [vmem:[#allocation79_spill] sm:$0xff] }
 0x489   : > { %v13164_v37 = vpop.f32.mrf.mxu1 }
 0x48a   : > { %4771 = vmatmul.bf16.gmra.mxu0 %v15522_v15  ;;  %v5163_v15 = vmax.f32 %v15527_v22, 0.0 }
 0x48b   : > { %4908 = vmatmul.bf16.gmra.mxu3 %v15523_v5  ;;  %4939 = vmatpush.bf16.msrb.mxu0 %v7083_v7  ;;  %v15528_v5 = vld [vmem:[#allocation123_spill] sm:$0xff]  ;;  %v7067_v7 = vor.u32 %v8035_v62, %v7064_v25  ;;  %v15535_v62 = vld [vmem:[#allocation110_spill] sm:$0xff] }
 0x48c   : > { %5006 = vmatmul.bf16.gmra.mxu1 %v15524_v19  ;;  %5055 = vmatmul.bf16.gmra.mxu2 %v15525_v21  ;;  %v4618_v30 = vadd.f32 %v15528_v5, %v4569_v53  ;;  %v13201_v21 = vpack.c.bf16 %v5167_v60, %v5163_v15  ;;  %v15533_v60 = vld [vmem:[#allocation92_spill] sm:$0xff]  ;;  %v15534_v15 = vld [vmem:[#allocation111_spill] sm:$0xff] }
 0x48d   : > { %v8031_v5 = vld [vmem:[%s14395_s3 + $0x40c] sm:$0xf] }
 0x48e   : > { %v4713_v8 = vpop.f32.mrf.mxu3  ;;  %15529 = vst [vmem:[#allocation19_spill] sm:$0xff] %v13201_v21  ;;  %v4667_v35 = vadd.f32 %v15530_v10, %v4618_v30  ;;  %v7048_v30 = vld [vmem:[%s14395_s3 + $0x418] sm:$0xf0]  ;;  %v8131_v25 = vld [vmem:[%s14395_s3 + $0x72c] sm:$0xf]  ;;  %v4623_v21 = vadd.f32 %v15539_v18, %v13149_v2 }
 0x48f   : > { %v13184_v40 = vadd.f32 %v4713_v8, %v4665_v28  ;;  %v13186_v31 = vpop.f32.mrf.mxu2  ;;  %v4578_v48 = vpop.f32.mrf.mxu0  ;;  %4940 = vmatpush.bf16.msrb.mxu0 %v7067_v7  ;;  %v15531_v8 = vld [vmem:[#allocation121_spill] sm:$0xff]  ;;  %v7670_v10 = vld [vmem:[%s14397_s5 + $0xf0] sm:$0xf] }
 0x490   : > { %v13191_v1 = vadd.f32 %v4578_v48, %v12942_v58  ;;  %v4621_v6 = vadd.f32 %v15531_v8, %v13119_v3  ;;  %v15536_v3 = vld [vmem:[#allocation109_spill] sm:$0xff]  ;;  %v7734_v8 = vld [vmem:[%s14397_s5 + $0x170] sm:$0xf] }
 0x491   : > { %v13193_v19 = vpop.f32.mrf.mxu1  ;;  %v7448_v7 = vld [vmem:[%s14395_s3 + $0x738] sm:$0xf0]  ;;  %v7654_v2 = vld [vmem:[%s14397_s5 + $0xd0] sm:$0xf] }
 0x496   : > { %v4715_v28 = vpop.f32.mrf.mxu3 }
 0x497   : > { %v13204_v53 = vadd.f32 %v4715_v28, %v4667_v35  ;;  %v13206_v58 = vpop.f32.mrf.mxu2  ;;  %v4581_v13 = vpop.f32.mrf.mxu0  ;;  %v4670_v35 = vadd.f32 %v12826_v39, %v4621_v6  ;;  %v7451_v28 = vor.u32 %v8131_v25, %v7448_v7  ;;  %v15538_v7 = vld [vmem:[#allocation88_spill] sm:$0xff] }
 0x498   : > { %v13211_v48 = vadd.f32 %v4581_v13, %v12983_v46  ;;  %v7051_v46 = vor.u32 %v8031_v5, %v7048_v30  ;;  %v8189_v13 = vld [vmem:[%s14397_s5 + $0xf4] sm:$0xf0]  ;;  %v5171_v55 = vmax.f32 %v15538_v7, 0.0 }
 0x499   : > { %v13213_v22 = vpop.f32.mrf.mxu1  ;;  %v7671_v5 = vor.u32 %v8189_v13, %v7670_v10  ;;  %5087 = vmatpush.bf16.msra.mxu3 %v7451_v28  ;;  %v7662_v10 = vld [vmem:[%s14397_s5 + $0xe0] sm:$0xf] }
 0x49a   : > { %15532 = vst [vmem:[#allocation132_spill] sm:$0xff] %v13213_v22  ;;  %4776 = vmatmul.bf16.gmra.mxu0 %v15533_v60  ;;  %v8205_v60 = vld [vmem:[%s14397_s5 + $0x174] sm:$0xf0]  ;;  %v7726_v28 = vld [vmem:[%s14397_s5 + $0x160] sm:$0xf] }
 0x49b   : > { %4913 = vmatmul.bf16.gmra.mxu3 %v15534_v15  ;;  %4941 = vmatpush.bf16.msrb.mxu0 %v7051_v46  ;;  %v7735_v30 = vor.u32 %v8205_v60, %v7734_v8  ;;  %v8185_v8 = vld [vmem:[%s14397_s5 + $0xd4] sm:$0xf0]  ;;  %v4672_v60 = vadd.f32 %v12862_v4, %v4623_v21  ;;  %v4626_v4 = vadd.f32 %v12867_v49, %v13162_v54  ;;  %v7710_v49 = vld [vmem:[%s14397_s5 + $0x140] sm:$0xf] }
 0x49c   : > { %5011 = vmatmul.bf16.gmra.mxu1 %v15535_v62  ;;  %5060 = vmatmul.bf16.gmra.mxu2 %v15536_v3  ;;  %v15537_v62 = vld [vmem:[#allocation99_spill] sm:$0xff]  ;;  %v15546_v54 = vld [vmem:[#allocation97_spill] sm:$0xff] }
 0x49d   : > { %v5175_v3 = vmax.f32 %v15537_v62, 0.0  ;;  %5665 = vmatpush.bf16.msra.mxu1 %v7671_v5  ;;  %5714 = vmatpush.bf16.msra.mxu2 %v7735_v30  ;;  %v7718_v30 = vld [vmem:[%s14397_s5 + $0x150] sm:$0xf]  ;;  %v8201_v62 = vld [vmem:[%s14397_s5 + $0x154] sm:$0xf0] }
 0x49e   : > { %v4718_v15 = vpop.f32.mrf.mxu3 }
 0x49f   : > { %v13245_v39 = vadd.f32 %v4718_v15, %v4670_v35  ;;  %v13247_v6 = vpop.f32.mrf.mxu2  ;;  %v4583_v25 = vpop.f32.mrf.mxu0  ;;  %v8187_v35 = vld [vmem:[%s14397_s5 + $0xe4] sm:$0xf0]  ;;  %v13266_v13 = vpack.c.bf16 %v5175_v3, %v5171_v55  ;;  %v7655_v55 = vor.u32 %v8185_v8, %v7654_v2 }
 0x4a0   : > { %v13253_v22 = vadd.f32 %v4583_v25, %v12994_v23  ;;  %v7663_v18 = vor.u32 %v8187_v35, %v7662_v10  ;;  %v8203_v23 = vld [vmem:[%s14397_s5 + $0x164] sm:$0xf0]  ;;  %v7719_v35 = vor.u32 %v8201_v62, %v7718_v30 }
 0x4a1   : > { %v13255_v46 = vpop.f32.mrf.mxu1  ;;  %15541 = vst [vmem:[#allocation98_spill] sm:$0xff] %v13266_v13  ;;  %v7727_v15 = vor.u32 %v8203_v23, %v7726_v28  ;;  %v15543_v28 = vld [vmem:[#allocation80_spill] sm:$0xff]  ;;  %v7646_v23 = vld [vmem:[%s14397_s5 + $0xc0] sm:$0xf]  ;;  %v8183_v2 = vld [vmem:[%s14397_s5 + $0xc4] sm:$0xf0] }
 0x4a2   : > { %15540 = vst [vmem:[#allocation5_spill] sm:$0xff] %v13255_v46  ;;  %5666 = vmatpush.bf16.msra.mxu1 %v7663_v18  ;;  %v15544_v18 = vld [vmem:[#allocation112_spill] sm:$0xff]  ;;  %v7647_v8 = vor.u32 %v8183_v2, %v7646_v23 }
 0x4a3   : > { %5715 = vmatpush.bf16.msra.mxu2 %v7727_v15  ;;  %v8127_v15 = vld [vmem:[%s14395_s3 + $0x70c] sm:$0xf] }
 0x4a6   : > { %v4720_v5 = vpop.f32.mrf.mxu3  ;;  %5667 = vmatpush.bf16.msra.mxu1 %v7655_v55  ;;  %v15547_v55 = vld [vmem:[#allocation125_spill] sm:$0xff] }
 0x4a7   : > { %v13284_v3 = vadd.f32 %v4720_v5, %v4672_v60  ;;  %v13286_v25 = vpop.f32.mrf.mxu2  ;;  %v4586_v7 = vpop.f32.mrf.mxu0  ;;  %v8199_v60 = vld [vmem:[%s14397_s5 + $0x144] sm:$0xf0]  ;;  %v7432_v5 = vld [vmem:[%s14395_s3 + $0x718] sm:$0xf0]  ;;  %v4675_v30 = vadd.f32 %v15547_v55, %v4626_v4  ;;  %5716 = vmatpush.bf16.msra.mxu2 %v7719_v35  ;;  %v8197_v4 = vld [vmem:[%s14397_s5 + $0x134] sm:$0xf0] }
 0x4a8   : > { %15542 = vst [vmem:[#allocation4_spill] sm:$0xff] %v13286_v25  ;;  %v13291_v21 = vadd.f32 %v4586_v7, %v13021_v59  ;;  %v15545_v59 = vld [vmem:[#allocation71_spill] sm:$0xff]  ;;  %v7711_v62 = vor.u32 %v8199_v60, %v7710_v49  ;;  %v7435_v7 = vor.u32 %v8127_v15, %v7432_v5  ;;  %v15548_v35 = vld [vmem:[#allocation20_spill] sm:$0xff]  ;;  %v15549_v5 = vld [vmem:[#allocation90_spill] sm:$0xff] }
 0x4a9   : > { %v13293_v10 = vpop.f32.mrf.mxu1  ;;  %v5183_v49 = vmax.f32 %v15548_v35, 0.0  ;;  %v5179_v55 = vmax.f32 %v15549_v5, 0.0  ;;  %v7686_v5 = vld [vmem:[%s14397_s5 + $0x110] sm:$0xf] }
 0x4aa   : > { %4781 = vmatmul.bf16.gmra.mxu0 %v15543_v28  ;;  %v7638_v28 = vld [vmem:[%s14397_s5 + $0xb0] sm:$0xf]  ;;  %5668 = vmatpush.bf16.msra.mxu1 %v7647_v8  ;;  %v15550_v8 = vld [vmem:[#allocation58_spill] sm:$0xff] }
 0x4ab   : > { %4918 = vmatmul.bf16.gmra.mxu3 %v15544_v18  ;;  %v8181_v18 = vld [vmem:[%s14397_s5 + $0xb4] sm:$0xf0]  ;;  %5717 = vmatpush.bf16.msra.mxu2 %v7711_v62  ;;  %v8195_v62 = vld [vmem:[%s14397_s5 + $0x124] sm:$0xf0] }
 0x4ac   : > { %5016 = vmatmul.bf16.gmra.mxu1 %v15545_v59  ;;  %5065 = vmatmul.bf16.gmra.mxu2 %v15546_v54  ;;  %v7639_v2 = vor.u32 %v8181_v18, %v7638_v28  ;;  %v7702_v59 = vld [vmem:[%s14397_s5 + $0x130] sm:$0xf]  ;;  %v4628_v28 = vadd.f32 %v15550_v8, %v13191_v1  ;;  %v7694_v1 = vld [vmem:[%s14397_s5 + $0x120] sm:$0xf] }
 0x4ad   : > { %5088 = vmatpush.bf16.msra.mxu3 %v7435_v7  ;;  %v7703_v25 = vor.u32 %v8197_v4, %v7702_v59  ;;  %v8179_v7 = vld [vmem:[%s14397_s5 + $0xa4] sm:$0xf0]  ;;  %v8177_v59 = vld [vmem:[%s14397_s5 + $0x94] sm:$0xf0]  ;;  %v7695_v35 = vor.u32 %v8195_v62, %v7694_v1 }
 0x4ae   : > { %v4723_v23 = vpop.f32.mrf.mxu3  ;;  %5669 = vmatpush.bf16.msra.mxu1 %v7639_v2  ;;  %v7622_v2 = vld [vmem:[%s14397_s5 + $0x90] sm:$0xf]  ;;  %v4677_v4 = vadd.f32 %v12944_v20, %v4628_v28  ;;  %v4631_v20 = vadd.f32 %v12950_v43, %v13211_v48  ;;  %v15554_v28 = vld [vmem:[#allocation107_spill] sm:$0xff]  ;;  %v15556_v43 = vld [vmem:[#allocation29_spill] sm:$0xff] }
 0x4af   : > { %v13331_v54 = vadd.f32 %v4723_v23, %v4675_v30  ;;  %v13333_v60 = vpop.f32.mrf.mxu2  ;;  %v4588_v15 = vpop.f32.mrf.mxu0  ;;  %v7630_v30 = vld [vmem:[%s14397_s5 + $0xa0] sm:$0xf]  ;;  %v13352_v23 = vpack.c.bf16 %v5183_v49, %v5179_v55  ;;  %5718 = vmatpush.bf16.msra.mxu2 %v7703_v25  ;;  %v7623_v49 = vor.u32 %v8177_v59, %v7622_v2  ;;  %v8193_v55 = vld [vmem:[%s14397_s5 + $0x114] sm:$0xf0]  ;;  %v15555_v1 = vld [vmem:[#allocation67_spill] sm:$0xff] }
 0x4b0   : > { %v13339_v18 = vadd.f32 %v4588_v15, %v13032_v63  ;;  %v7631_v63 = vor.u32 %v8179_v7, %v7630_v30  ;;  %v7687_v25 = vor.u32 %v8193_v55, %v7686_v5  ;;  %v8175_v62 = vld [vmem:[%s14397_s5 + $0x84] sm:$0xf0]  ;;  %v7678_v2 = vld [vmem:[%s14397_s5 + $0x100] sm:$0xf] }
 0x4b1   : > { %v13341_v46 = vpop.f32.mrf.mxu1  ;;  %15552 = vst [vmem:[#allocation137_spill] sm:$0xff] %v13352_v23  ;;  %v15557_v48 = vld [vmem:[#allocation118_spill] sm:$0xff]  ;;  %v15558_v55 = vld [vmem:[#allocation23_spill] sm:$0xff] }
 0x4b2   : > { %15551 = vst [vmem:[#allocation101_spill] sm:$0xff] %v13341_v46  ;;  %5670 = vmatpush.bf16.msra.mxu1 %v7631_v63  ;;  %v7614_v63 = vld [vmem:[%s14397_s5 + $0x80] sm:$0xf] }
 0x4b3   : > { %5719 = vmatpush.bf16.msra.mxu2 %v7695_v35  ;;  %v7615_v59 = vor.u32 %v8175_v62, %v7614_v63  ;;  %v15559_v63 = vld [vmem:[#allocation126_spill] sm:$0xff] }
 0x4b4   : > { %v5187_v62 = vmax.f32 %v15559_v63, 0.0  ;;  %v8221_v63 = vld [vmem:[%s14397_s5 + $0x1f4] sm:$0xf0] }
 0x4b6   : > { %v4725_v15 = vpop.f32.mrf.mxu3  ;;  %5671 = vmatpush.bf16.msra.mxu1 %v7623_v49 }
 0x4b7   : > { %v13370_v8 = vadd.f32 %v4725_v15, %v4677_v4  ;;  %v13372_v30 = vpop.f32.mrf.mxu2  ;;  %v4747_v7 = vpop.f32.mrf.mxu0  ;;  %v8191_v4 = vld [vmem:[%s14397_s5 + $0x104] sm:$0xf0]  ;;  %v4680_v15 = vadd.f32 %v12985_v52, %v4631_v20  ;;  %5720 = vmatpush.bf16.msra.mxu2 %v7687_v25 }
 0x4b8   : > { %15553 = vst [vmem:[#allocation122_spill] sm:$0xff] %v13372_v30  ;;  %v7679_v49 = vor.u32 %v8191_v4, %v7678_v2  ;;  %v4633_v30 = vadd.f32 %v12989_v56, %v13253_v22  ;;  %v5140_v56 = vmax.f32 %v13099_v50, 0.0  ;;  %v15563_v22 = vld [vmem:[#allocation68_spill] sm:$0xff] }
 0x4b9   : > { %v13392_v35 = vpop.f32.mrf.mxu1  ;;  %v7798_v50 = vld [vmem:[%s14397_s5 + $0x1f0] sm:$0xf] }
 0x4ba   : > { %4942 = vmatmul.bf16.vlgmr.msrb.gmra.mxu0 %v15555_v1  ;;  %5672 = vmatpush.bf16.msra.mxu1 %v7615_v59  ;;  %v4682_v52 = vadd.f32 %v12996_v33, %v4633_v30  ;;  %v5144_v59 = vmax.f32 %v13112_v12, 0.0  ;;  %v15565_v33 = vld [vmem:[#allocation62_spill] sm:$0xff]  ;;  %v15566_v30 = vld [vmem:[#allocation63_spill] sm:$0xff]  ;;  %v7606_v12 = vld [vmem:[%s14397_s5 + $0x70] sm:$0xf] }
 0x4bb   : > { %4923 = vmatmul.bf16.gmra.mxu3 %v15554_v28  ;;  %v5191_v28 = vmax.f32 %v15558_v55, 0.0  ;;  %5721 = vmatpush.bf16.msra.mxu2 %v7679_v49  ;;  %v15564_v49 = vld [vmem:[#allocation22_spill] sm:$0xff] }
 0x4bc   : > { %5021 = vmatmul.bf16.gmra.mxu1 %v15556_v43  ;;  %5070 = vmatmul.bf16.gmra.mxu2 %v15557_v48  ;;  %v13420_v55 = vpack.c.bf16 %v5144_v59, %v5140_v56  ;;  %v4638_v56 = vadd.f32 %v13029_v14, %v13339_v18 }
 0x4bd   : > { %v13403_v46 = vpack.c.bf16 %v5191_v28, %v5187_v62 }
 0x4be   : > { %v4728_v5 = vpop.f32.mrf.mxu3 }
 0x4bf   : > { %v13396_v1 = vadd.f32 %v4728_v5, %v4680_v15  ;;  %v13398_v43 = vpop.f32.mrf.mxu2  ;;  %v4749_v48 = vpop.f32.mrf.mxu0  ;;  %15560 = vst [vmem:[#allocation117_spill] sm:$0xff] %v13403_v46  ;;  %v4636_v5 = vadd.f32 %v13000_v45, %v13291_v21  ;;  %v8173_v45 = vld [vmem:[%s14397_s5 + $0x74] sm:$0xf0] }
 0x4c0   : > { %v7607_v28 = vor.u32 %v8173_v45, %v7606_v12 }
 0x4c1   : > { %v13406_v25 = vpop.f32.mrf.mxu1  ;;  %v4685_v21 = vadd.f32 %v13023_v27, %v4636_v5 }
 0x4c2   : > { %15561 = vst [vmem:[#allocation60_spill] sm:$0xff] %v13406_v25  ;;  %5616 = vmatpush.bf16.msra.mxu0 %v7607_v28 }
 0x4c6   : > { %v4730_v20 = vpop.f32.mrf.mxu3 }
 0x4c7   : > { %v13408_v2 = vadd.f32 %v4730_v20, %v4682_v52  ;;  %v13411_v4 = vpop.f32.mrf.mxu2  ;;  %v4752_v15 = vpop.f32.mrf.mxu0  ;;  %v7799_v52 = vor.u32 %v8221_v63, %v7798_v50  ;;  %v5152_v50 = vmax.f32 %v13156_v24, 0.0  ;;  %v15568_v63 = vld [vmem:[#allocation105_spill] sm:$0xff]  ;;  %v7790_v24 = vld [vmem:[%s14397_s5 + $0x1e0] sm:$0xf] }
 0x4c8   : > { %15562 = vst [vmem:[#allocation9_spill] sm:$0xff] %v13411_v4  ;;  %v5180_v4 = vmax.f32 %v13396_v1, 0.0  ;;  %v8188_v1 = vld [vmem:[%s14397_s5 + $0xf4] sm:$0xf] }
 0x4c9   : > { %5763 = vmatpush.bf16.msrb.mxu3 %v7799_v52  ;;  %v13444_v5 = vpop.f32.mrf.mxu1 }
 0x4ca   : > { %4947 = vmatmul.bf16.gmra.mxu0 %v15564_v49 }
 0x4cb   : > { %4928 = vmatmul.bf16.gmra.mxu3 %v15563_v22  ;;  %v8394_v22 = vld [vmem:[%s14396_s4] sm:$0xf] }
 0x4cc   : > { %5026 = vmatmul.bf16.gmra.mxu1 %v15565_v33  ;;  %5075 = vmatmul.bf16.gmra.mxu2 %v15566_v30  ;;  %v13442_v27 = vperm.slane %v8394_v22, 3  ;;  %v4687_v30 = vadd.f32 %v13034_v29, %v4638_v56 }
 0x4ce   : > { %v4733_v62 = vpop.f32.mrf.mxu3  ;;  %v4748_v33 = vadd.f32 %v4747_v7, %v13442_v27  ;;  %v15571_v7 = vld [vmem:[#allocation74_spill] sm:$0xff]  ;;  %v4750_v56 = vadd.f32 %v4749_v48, %v13442_v27 }
 0x4cf   : > { %v13435_v20 = vadd.f32 %v4733_v62, %v4685_v21  ;;  %v4754_v59 = vpop.f32.mrf.mxu0  ;;  %v13446_v49 = vpop.f32.mrf.mxu2  ;;  %v5148_v21 = vmax.f32 %v13141_v36, 0.0  ;;  %v15569_v62 = vld [vmem:[#allocation100_spill] sm:$0xff]  ;;  %v8171_v36 = vld [vmem:[%s14397_s5 + $0x64] sm:$0xf0] }
 0x4d0   : > { %v4797_v18 = vadd.f32 %v13041_v51, %v4748_v33  ;;  %v7598_v51 = vld [vmem:[%s14397_s5 + $0x60] sm:$0xf] }
 0x4d1   : > { %v13455_v28 = vpop.f32.mrf.mxu1  ;;  %v13463_v29 = vpack.c.bf16 %v5152_v50, %v5148_v21  ;;  %v7599_v33 = vor.u32 %v8171_v36, %v7598_v51  ;;  %v5160_v36 = vmax.f32 %v13204_v53, 0.0  ;;  %v4755_v53 = vadd.f32 %v4754_v59, %v13442_v27 }
 0x4d2   : > { %15567 = vst [vmem:[#allocation27_spill] sm:$0xff] %v13455_v28  ;;  %v4846_v22 = vadd.f32 %v13061_v11, %v4797_v18 }
 0x4d3   : > { %5617 = vmatpush.bf16.msra.mxu0 %v7599_v33  ;;  %v5156_v33 = vmax.f32 %v13184_v40, 0.0  ;;  %v7782_v40 = vld [vmem:[%s14397_s5 + $0x1d0] sm:$0xf]  ;;  %v4804_v59 = vadd.f32 %v13107_v41, %v4755_v53  ;;  %v15575_v41 = vld [vmem:[#allocation14_spill] sm:$0xff] }
 0x4d6   : > { %v4735_v12 = vpop.f32.mrf.mxu3 }
 0x4d7   : > { %v13450_v45 = vadd.f32 %v4735_v12, %v4687_v30  ;;  %v4757_v14 = vpop.f32.mrf.mxu0  ;;  %v13459_v52 = vpop.f32.mrf.mxu2  ;;  %v8219_v30 = vld [vmem:[%s14397_s5 + $0x1e4] sm:$0xf0] }
 0x4d8   : > { %15570 = vst [vmem:[#allocation8_spill] sm:$0xff] %v13459_v52  ;;  %v7791_v50 = vor.u32 %v8219_v30, %v7790_v24  ;;  %v4753_v52 = vadd.f32 %v4752_v15, %v13442_v27  ;;  %v15572_v30 = vld [vmem:[#allocation114_spill] sm:$0xff]  ;;  %v7590_v15 = vld [vmem:[%s14397_s5 + $0x50] sm:$0xf] }
 0x4d9   : > { %v13483_v28 = vpop.f32.mrf.mxu1  ;;  %v5192_v25 = vmax.f32 %v13450_v45, 0.0  ;;  %v7648_v45 = vld [vmem:[%s14397_s5 + $0xc8] sm:$0xf0] }
 0x4da   : > { %4952 = vmatmul.bf16.gmra.mxu0 %v15568_v63  ;;  %5764 = vmatpush.bf16.msrb.mxu3 %v7791_v50 }
 0x4db   : > { %5089 = vmatmul.bf16.vlgmr.msra.gmra.mxu3 %v15569_v62  ;;  %v4799_v62 = vadd.f32 %v13068_v0, %v4750_v56  ;;  %v15573_v0 = vld [vmem:[#allocation102_spill] sm:$0xff] }
 0x4dc   : > { %5673 = vmatmul.bf16.vlgmr.msra.gmra.mxu1 %v15571_v7  ;;  %5722 = vmatmul.bf16.vlgmr.msra.gmra.mxu2 %v13079_v44 }
 0x4dd   : > { %v4848_v11 = vadd.f32 %v13073_v9, %v4799_v62  ;;  %v13497_v9 = vpack.c.bf16 %v5160_v36, %v5156_v33 }
 0x4de   : > { %v4894_v12 = vpop.f32.mrf.mxu3 }
 0x4df   : > { %v13479_v21 = vadd.f32 %v4894_v12, %v4846_v22  ;;  %v4759_v63 = vpop.f32.mrf.mxu0  ;;  %v13486_v48 = vpop.f32.mrf.mxu2  ;;  %v4802_v22 = vadd.f32 %v13077_v16, %v4753_v52  ;;  %v8169_v16 = vld [vmem:[%s14397_s5 + $0x54] sm:$0xf0] }
 0x4e0   : > { %v7591_v56 = vor.u32 %v8169_v16, %v7590_v15  ;;  %v8217_v12 = vld [vmem:[%s14397_s5 + $0x1d4] sm:$0xf0]  ;;  %v5168_v15 = vmax.f32 %v13284_v3, 0.0  ;;  %v7774_v3 = vld [vmem:[%s14397_s5 + $0x1c0] sm:$0xf] }
 0x4e1   : > { %v4851_v52 = vadd.f32 %v13101_v42, %v4802_v22  ;;  %v7783_v62 = vor.u32 %v8217_v12, %v7782_v40  ;;  %v4758_v42 = vadd.f32 %v4757_v14, %v13442_v27  ;;  %v4853_v22 = vadd.f32 %v13114_v38, %v4804_v59  ;;  %v8215_v59 = vld [vmem:[%s14397_s5 + $0x1c4] sm:$0xf0] }
 0x4e2   : > { %5618 = vmatpush.bf16.msra.mxu0 %v7591_v56  ;;  %v5164_v56 = vmax.f32 %v13245_v39, 0.0  ;;  %v8167_v39 = vld [vmem:[%s14397_s5 + $0x44] sm:$0xf0]  ;;  %v4760_v14 = vadd.f32 %v4759_v63, %v13442_v27 }
 0x4e3   : > { %5765 = vmatpush.bf16.msrb.mxu3 %v7783_v62  ;;  %v4807_v40 = vadd.f32 %v13121_v57, %v4758_v42  ;;  %v7582_v57 = vld [vmem:[%s14397_s5 + $0x40] sm:$0xf] }
 0x4e4   : > { %v13535_v38 = vpack.c.bf16 %v5168_v15, %v5164_v56  ;;  %v7583_v62 = vor.u32 %v8167_v39, %v7582_v57  ;;  %v4809_v56 = vadd.f32 %v13151_v17, %v4760_v14  ;;  %v5176_v39 = vmax.f32 %v13370_v8, 0.0  ;;  %v15576_v17 = vld [vmem:[#allocation24_spill] sm:$0xff]  ;;  %v15577_v14 = vld [vmem:[#allocation6_spill] sm:$0xff] }
 0x4e5   : > { %v4856_v53 = vadd.f32 %v13143_v34, %v4807_v40  ;;  %v7574_v8 = vld [vmem:[%s14397_s5 + $0x30] sm:$0xf] }
 0x4e6   : > { %v4896_v18 = vpop.f32.mrf.mxu3  ;;  %5619 = vmatpush.bf16.msra.mxu0 %v7583_v62  ;;  %v4858_v40 = vadd.f32 %v13158_v32, %v4809_v56  ;;  %v5172_v62 = vmax.f32 %v13331_v54, 0.0  ;;  %v7766_v54 = vld [vmem:[%s14397_s5 + $0x1b0] sm:$0xf]  ;;  %v8213_v56 = vld [vmem:[%s14397_s5 + $0x1b4] sm:$0xf0] }
 0x4e7   : > { %v13488_v51 = vadd.f32 %v4896_v18, %v4848_v11  ;;  %v4762_v24 = vpop.f32.mrf.mxu0  ;;  %v13513_v11 = vpop.f32.mrf.mxu1 }
 0x4e8   : > { %v13517_v36 = vpop.f32.mrf.mxu2  ;;  %v4763_v34 = vadd.f32 %v4762_v24, %v13442_v27  ;;  %v13573_v32 = vpack.c.bf16 %v5176_v39, %v5172_v62 }
 0x4ea   : > { %4957 = vmatmul.bf16.gmra.mxu0 %v15572_v30  ;;  %15578 = vst [vmem:[#allocation32_spill] sm:$0xff] %v13573_v32 }
 0x4eb   : > { %5094 = vmatmul.bf16.gmra.mxu3 %v15573_v0 }
 0x4ec   : > { %5678 = vmatmul.bf16.gmra.mxu1 %v13070_v26  ;;  %5727 = vmatmul.bf16.gmra.mxu2 %v13420_v55 }
 0x4ee   : > { %v4899_v50 = vpop.f32.mrf.mxu3 }
 0x4ef   : > { %v13515_v18 = vadd.f32 %v4899_v50, %v4851_v52  ;;  %v4764_v33 = vpop.f32.mrf.mxu0  ;;  %v13526_v52 = vpop.f32.mrf.mxu1  ;;  %v15574_v50 = vld [vmem:[#allocation13_spill] sm:$0xff] }
 0x4f0   : > { %v13529_v12 = vpop.f32.mrf.mxu2  ;;  %v4765_v24 = vadd.f32 %v4764_v33, %v13442_v27 }
 0x4f2   : > { %v4814_v33 = vadd.f32 %v13193_v19, %v4765_v24 }
 0x4f4   : > { %v4863_v19 = vadd.f32 %v13206_v58, %v4814_v33  ;;  %v15581_v58 = vld [vmem:[#allocation16_spill] sm:$0xff]  ;;  %v7550_v33 = vld [vmem:[%s14397_s5] sm:$0xf] }
 0x4f6   : > { %v4901_v30 = vpop.f32.mrf.mxu3 }
 0x4f7   : > { %v13522_v0 = vadd.f32 %v4901_v30, %v4853_v22  ;;  %v4767_v16 = vpop.f32.mrf.mxu0  ;;  %v7775_v22 = vor.u32 %v8215_v59, %v7774_v3 }
 0x4f8   : > { %v13558_v63 = vpop.f32.mrf.mxu2 }
 0x4f9   : > { %5766 = vmatpush.bf16.msrb.mxu3 %v7775_v22 }
 0x4fa   : > { %4962 = vmatmul.bf16.gmra.mxu0 %v15574_v50  ;;  %v13556_v50 = vpop.f32.mrf.mxu1 }
 0x4fb   : > { %5099 = vmatmul.bf16.gmra.mxu3 %v15575_v41 }
 0x4fc   : > { %5683 = vmatmul.bf16.gmra.mxu1 %v13109_v61  ;;  %5732 = vmatmul.bf16.gmra.mxu2 %v13463_v29 }
 0x4fe   : > { %v4904_v42 = vpop.f32.mrf.mxu3 }
 0x4ff   : > { %v13551_v30 = vadd.f32 %v4904_v42, %v4856_v53  ;;  %v13553_v15 = vpop.f32.mrf.mxu0  ;;  %v4812_v53 = vadd.f32 %v13164_v37, %v4763_v34  ;;  %v8165_v37 = vld [vmem:[%s14397_s5 + $0x34] sm:$0xf0] }
 0x500   : > { %v7575_v22 = vor.u32 %v8165_v37, %v7574_v8  ;;  %v13591_v34 = vpop.f32.mrf.mxu2  ;;  %v8161_v8 = vld [vmem:[%s14397_s5 + $0x14] sm:$0xf0]  ;;  %v4768_v37 = vadd.f32 %v4767_v16, %v13442_v27  ;;  %v15580_v16 = vld [vmem:[#allocation11_spill] sm:$0xff] }
 0x501   : > { %v4861_v42 = vadd.f32 %v13186_v31, %v4812_v53  ;;  %v7566_v31 = vld [vmem:[%s14397_s5 + $0x20] sm:$0xf]  ;;  %v8163_v53 = vld [vmem:[%s14397_s5 + $0x24] sm:$0xf0] }
 0x502   : > { %v13585_v59 = vpop.f32.mrf.mxu1  ;;  %5620 = vmatpush.bf16.msra.mxu0 %v7575_v22 }
 0x506   : > { %v4906_v41 = vpop.f32.mrf.mxu3 }
 0x507   : > { %v13562_v57 = vadd.f32 %v4906_v41, %v4858_v40  ;;  %v13565_v3 = vpop.f32.mrf.mxu0  ;;  %v7767_v41 = vor.u32 %v8213_v56, %v7766_v54  ;;  %v5184_v56 = vmax.f32 %v13408_v2, 0.0  ;;  %v8159_v2 = vld [vmem:[%s14397_s5 + $0x4] sm:$0xf0] }
 0x509   : > { %5767 = vmatpush.bf16.msrb.mxu3 %v7767_v41 }
 0x50a   : > { %4967 = vmatmul.bf16.gmra.mxu0 %v15576_v17  ;;  %v7558_v17 = vld [vmem:[%s14397_s5 + $0x10] sm:$0xf] }
 0x50b   : > { %5104 = vmatmul.bf16.gmra.mxu3 %v15577_v14  ;;  %v7567_v14 = vor.u32 %v8163_v53, %v7566_v31  ;;  %v7559_v24 = vor.u32 %v8161_v8, %v7558_v17  ;;  %v15579_v31 = vld [vmem:[#allocation132_spill] sm:$0xff]  ;;  %v15582_v17 = vld [vmem:[#allocation19_spill] sm:$0xff]  ;;  %v13633_v8 = vpack.c.bf16 %v5184_v56, %v5180_v4  ;;  %v7736_v4 = vld [vmem:[%s14397_s5 + $0x178] sm:$0xf0] }
 0x50c   : > { %5688 = vmatmul.bf16.gmra.mxu1 %v13153_v47  ;;  %5737 = vmatmul.bf16.gmra.mxu2 %v13497_v9  ;;  %v4817_v53 = vadd.f32 %v15579_v31, %v4768_v37  ;;  %v7672_v37 = vld [vmem:[%s14397_s5 + $0xf8] sm:$0xf0]  ;;  %v7758_v56 = vld [vmem:[%s14397_s5 + $0x1a0] sm:$0xf]  ;;  %v8211_v31 = vld [vmem:[%s14397_s5 + $0x1a4] sm:$0xf0] }
 0x50d   : > { %5621 = vmatpush.bf16.msra.mxu0 %v7567_v14  ;;  %v7551_v14 = vor.u32 %v8159_v2, %v7550_v33  ;;  %15583 = vst [vmem:[#allocation37_spill] sm:$0xff] %v13633_v8  ;;  %v7759_v33 = vor.u32 %v8211_v31, %v7758_v56  ;;  %v7656_v56 = vld [vmem:[%s14397_s5 + $0xd8] sm:$0xf0]  ;;  %v4773_v31 = vadd.f32 %v13565_v3, %v13442_v27 }
 0x50e   : > { %v4909_v40 = vpop.f32.mrf.mxu3 }
 0x50f   : > { %v13593_v39 = vadd.f32 %v4909_v40, %v4861_v42  ;;  %v13595_v62 = vpop.f32.mrf.mxu0  ;;  %v13612_v42 = vpop.f32.mrf.mxu1  ;;  %5768 = vmatpush.bf16.msrb.mxu3 %v7759_v33  ;;  %v4822_v3 = vadd.f32 %v13293_v10, %v4773_v31  ;;  %v8198_v10 = vld [vmem:[%s14397_s5 + $0x144] sm:$0xf] }
 0x510   : > { %v13617_v40 = vpop.f32.mrf.mxu2 }
 0x511   : > { %5622 = vmatpush.bf16.msra.mxu0 %v7559_v24  ;;  %v7675_v24 = vor.u32 %v8188_v1, %v7672_v37  ;;  %v8186_v37 = vld [vmem:[%s14397_s5 + $0xe4] sm:$0xf] }
 0x513   : > { %5861 = vmatpush.bf16.msrb.mxu1 %v7675_v24  ;;  %v7728_v24 = vld [vmem:[%s14397_s5 + $0x168] sm:$0xf0] }
 0x515   : > { %5623 = vmatpush.bf16.msra.mxu0 %v7551_v14  ;;  %v7664_v14 = vld [vmem:[%s14397_s5 + $0xe8] sm:$0xf0] }
 0x516   : > { %v4911_v54 = vpop.f32.mrf.mxu3 }
 0x517   : > { %v13614_v22 = vadd.f32 %v4911_v54, %v4863_v19  ;;  %v13619_v41 = vpop.f32.mrf.mxu0  ;;  %v8204_v19 = vld [vmem:[%s14397_s5 + $0x174] sm:$0xf]  ;;  %v4866_v54 = vadd.f32 %v13247_v6, %v4817_v53  ;;  %v13658_v53 = vpop.f32.mrf.mxu1 }
 0x518   : > { %v13660_v1 = vpop.f32.mrf.mxu2 }
 0x51a   : > { %4972 = vmatmul.bf16.gmra.mxu0 %v15580_v16 }
 0x51b   : > { %5109 = vmatmul.bf16.gmra.mxu3 %v15581_v58  ;;  %v7739_v58 = vor.u32 %v8204_v19, %v7736_v4  ;;  %v8202_v19 = vld [vmem:[%s14397_s5 + $0x164] sm:$0xf]  ;;  %v8184_v4 = vld [vmem:[%s14397_s5 + $0xd4] sm:$0xf] }
 0x51c   : > { %5693 = vmatmul.bf16.gmra.mxu1 %v15582_v17  ;;  %5742 = vmatmul.bf16.gmra.mxu2 %v13535_v38  ;;  %v7659_v33 = vor.u32 %v8184_v4, %v7656_v56  ;;  %v15585_v4 = vld [vmem:[#allocation17_spill] sm:$0xff]  ;;  %v15586_v56 = vld [vmem:[#allocation36_spill] sm:$0xff] }
 0x51d   : > { %5910 = vmatpush.bf16.msrb.mxu2 %v7739_v58 }
 0x51e   : > { %v4914_v16 = vpop.f32.mrf.mxu3 }
 0x51f   : > { %v13654_v2 = vadd.f32 %v4914_v16, %v4866_v54  ;;  %v13656_v6 = vpop.f32.mrf.mxu0  ;;  %v7667_v54 = vor.u32 %v8186_v37, %v7664_v14  ;;  %v7731_v16 = vor.u32 %v8202_v19, %v7728_v24  ;;  %v8200_v37 = vld [vmem:[%s14397_s5 + $0x154] sm:$0xf]  ;;  %v7720_v14 = vld [vmem:[%s14397_s5 + $0x158] sm:$0xf0]  ;;  %v5188_v24 = vmax.f32 %v13435_v20, 0.0 }
 0x520   : > { %15584 = vst [vmem:[#allocation3_spill] sm:$0xff] %v13656_v6  ;;  %v7723_v19 = vor.u32 %v8200_v37, %v7720_v14  ;;  %v13708_v20 = vpop.f32.mrf.mxu2  ;;  %v8180_v14 = vld [vmem:[%s14397_s5 + $0xb4] sm:$0xf] }
 0x521   : > { %5862 = vmatpush.bf16.msrb.mxu1 %v7667_v54  ;;  %5911 = vmatpush.bf16.msrb.mxu2 %v7731_v16  ;;  %v13695_v54 = vpop.f32.mrf.mxu1  ;;  %v8182_v16 = vld [vmem:[%s14397_s5 + $0xc4] sm:$0xf]  ;;  %v13715_v37 = vpack.c.bf16 %v5192_v25, %v5188_v24  ;;  %v8196_v24 = vld [vmem:[%s14397_s5 + $0x134] sm:$0xf] }
 0x522   : > { %v7651_v31 = vor.u32 %v8182_v16, %v7648_v45  ;;  %v7750_v16 = vld [vmem:[%s14397_s5 + $0x190] sm:$0xf] }
 0x523   : > { %15587 = vst [vmem:[#allocation69_spill] sm:$0xff] %v13715_v37 }
 0x525   : > { %5863 = vmatpush.bf16.msrb.mxu1 %v7659_v33  ;;  %v7712_v33 = vld [vmem:[%s14397_s5 + $0x148] sm:$0xf0]  ;;  %5912 = vmatpush.bf16.msrb.mxu2 %v7723_v19 }
 0x526   : > { %v13682_v58 = vpop.f32.mrf.mxu3 }
 0x527   : > { %v13691_v6 = vpop.f32.mrf.mxu0 }
 0x529   : > { %5864 = vmatpush.bf16.msrb.mxu1 %v7651_v31 }
 0x52a   : > { %4977 = vmatmul.bf16.gmra.mxu0 %v15585_v4  ;;  %v7640_v4 = vld [vmem:[%s14397_s5 + $0xb8] sm:$0xf0] }
 0x52b   : > { %5114 = vmatmul.bf16.gmra.mxu3 %v15586_v56  ;;  %v4871_v56 = vadd.f32 %v13333_v60, %v4822_v3  ;;  %v7643_v25 = vor.u32 %v8180_v14, %v7640_v4  ;;  %v8209_v60 = vld [vmem:[%s14397_s5 + $0x194] sm:$0xf0]  ;;  %v7632_v14 = vld [vmem:[%s14397_s5 + $0xa8] sm:$0xf0]  ;;  %v8194_v4 = vld [vmem:[%s14397_s5 + $0x124] sm:$0xf] }
 0x52c   : > { %5698 = vmatmul.bf16.gmra.mxu1 %v13266_v13  ;;  %5747 = vmatmul.bf16.gmra.mxu2 %v13573_v32  ;;  %v7715_v13 = vor.u32 %v8198_v10, %v7712_v33  ;;  %v7704_v32 = vld [vmem:[%s14397_s5 + $0x138] sm:$0xf0]  ;;  %v7751_v19 = vor.u32 %v8209_v60, %v7750_v16  ;;  %v8178_v33 = vld [vmem:[%s14397_s5 + $0xa4] sm:$0xf]  ;;  %v13762_v60 = vpop.f32.mrf.mxu2 }
 0x52d   : > { %v7707_v31 = vor.u32 %v8196_v24, %v7704_v32  ;;  %5865 = vmatpush.bf16.msrb.mxu1 %v7643_v25  ;;  %v8176_v32 = vld [vmem:[%s14397_s5 + $0x94] sm:$0xf]  ;;  %v7624_v16 = vld [vmem:[%s14397_s5 + $0x98] sm:$0xf0]  ;;  %v13760_v25 = vpop.f32.mrf.mxu1  ;;  %15590 = vst [vmem:[#allocation133_spill] sm:$0xff] %v13762_v60 }
 0x52e   : > { %v4919_v45 = vpop.f32.mrf.mxu3  ;;  %5913 = vmatpush.bf16.msrb.mxu2 %v7715_v13  ;;  %5769 = vmatpush.bf16.msrb.mxu3 %v7751_v19  ;;  %v7696_v13 = vld [vmem:[%s14397_s5 + $0x128] sm:$0xf0] }
 0x52f   : > { %v13736_v3 = vadd.f32 %v4919_v45, %v4871_v56  ;;  %v13738_v10 = vpop.f32.mrf.mxu0  ;;  %v7635_v56 = vor.u32 %v8178_v33, %v7632_v14  ;;  %v4778_v45 = vadd.f32 %v13619_v41, %v13442_v27  ;;  %v7699_v24 = vor.u32 %v8194_v4, %v7696_v13  ;;  %v8192_v14 = vld [vmem:[%s14397_s5 + $0x114] sm:$0xf]  ;;  %v15592_v4 = vld [vmem:[#allocation134_spill] sm:$0xff]  ;;  %v15593_v13 = vld [vmem:[#allocation7_spill] sm:$0xff] }
 0x530   : > { %15589 = vst [vmem:[#allocation130_spill] sm:$0xff] %v13738_v10  ;;  %v7627_v33 = vor.u32 %v8176_v32, %v7624_v16  ;;  %v7688_v10 = vld [vmem:[%s14397_s5 + $0x118] sm:$0xf0]  ;;  %v7616_v32 = vld [vmem:[%s14397_s5 + $0x88] sm:$0xf0] }
 0x531   : > { %15588 = vst [vmem:[#allocation25_spill] sm:$0xff] %v13736_v3  ;;  %5866 = vmatpush.bf16.msrb.mxu1 %v7635_v56  ;;  %v4827_v41 = vadd.f32 %v13392_v35, %v4778_v45  ;;  %v8174_v56 = vld [vmem:[%s14397_s5 + $0x84] sm:$0xf]  ;;  %v7742_v45 = vld [vmem:[%s14397_s5 + $0x180] sm:$0xf] }
 0x532   : > { %5914 = vmatpush.bf16.msrb.mxu2 %v7707_v31  ;;  %v7691_v31 = vor.u32 %v8192_v14, %v7688_v10  ;;  %v8190_v16 = vld [vmem:[%s14397_s5 + $0x104] sm:$0xf]  ;;  %v7619_v35 = vor.u32 %v8174_v56, %v7616_v32  ;;  %v7680_v10 = vld [vmem:[%s14397_s5 + $0x108] sm:$0xf0] }
 0x533   : > { %v7683_v14 = vor.u32 %v8190_v16, %v7680_v10 }
 0x535   : > { %5867 = vmatpush.bf16.msrb.mxu1 %v7627_v33  ;;  %v4876_v33 = vadd.f32 %v13398_v43, %v4827_v41  ;;  %v13796_v56 = vpop.f32.mrf.mxu1 }
 0x536   : > { %v13764_v19 = vpop.f32.mrf.mxu3  ;;  %5915 = vmatpush.bf16.msrb.mxu2 %v7699_v24  ;;  %v8207_v24 = vld [vmem:[%s14397_s5 + $0x184] sm:$0xf0] }
 0x537   : > { %15591 = vst [vmem:[#allocation104_spill] sm:$0xff] %v13764_v19  ;;  %v4943_v3 = vpop.f32.mrf.mxu0  ;;  %v4783_v19 = vadd.f32 %v13691_v6, %v13442_v27  ;;  %v8172_v6 = vld [vmem:[%s14397_s5 + $0x74] sm:$0xf] }
 0x539   : > { %5868 = vmatpush.bf16.msrb.mxu1 %v7619_v35  ;;  %v4832_v41 = vadd.f32 %v13444_v5, %v4783_v19  ;;  %v15595_v35 = vld [vmem:[#allocation39_spill] sm:$0xff]  ;;  %v7608_v5 = vld [vmem:[%s14397_s5 + $0x78] sm:$0xf0]  ;;  %v8220_v19 = vld [vmem:[%s14397_s5 + $0x1f4] sm:$0xf] }
 0x53a   : > { %5624 = vmatmul.bf16.vlgmr.msra.gmra.mxu0 %v15593_v13  ;;  %5916 = vmatpush.bf16.msrb.mxu2 %v7691_v31 }
 0x53b   : > { %5119 = vmatmul.bf16.gmra.mxu3 %v15592_v4  ;;  %v7743_v4 = vor.u32 %v8207_v24, %v7742_v45  ;;  %v4881_v10 = vadd.f32 %v13446_v49, %v4832_v41  ;;  %v7611_v24 = vor.u32 %v8172_v6, %v7608_v5  ;;  %v15599_v6 = vld [vmem:[#allocation70_spill] sm:$0xff] }
 0x53c   : > { %5703 = vmatmul.bf16.gmra.mxu1 %v13352_v23  ;;  %5752 = vmatmul.bf16.gmra.mxu2 %v13633_v8  ;;  %v13800_v8 = vpop.f32.mrf.mxu2 }
 0x53d   : > { %5770 = vmatpush.bf16.msrb.mxu3 %v7743_v4  ;;  %v13807_v31 = vpop.f32.mrf.mxu1  ;;  %5812 = vmatpush.bf16.msrb.mxu0 %v7611_v24 }
 0x53e   : > { %v4924_v23 = vpop.f32.mrf.mxu3  ;;  %5917 = vmatpush.bf16.msrb.mxu2 %v7683_v14 }
 0x53f   : > { %v13798_v32 = vadd.f32 %v4924_v23, %v4876_v33  ;;  %v4945_v13 = vpop.f32.mrf.mxu0  ;;  %v15596_v23 = vld [vmem:[#allocation59_spill] sm:$0xff]  ;;  %v7800_v33 = vld [vmem:[%s14397_s5 + $0x1f8] sm:$0xf0] }
 0x540   : > { %v7803_v49 = vor.u32 %v8220_v19, %v7800_v33  ;;  %v4946_v5 = vadd.f32 %v4945_v13, %v13488_v51  ;;  %v8170_v19 = vld [vmem:[%s14397_s5 + $0x64] sm:$0xf]  ;;  %v7792_v51 = vld [vmem:[%s14397_s5 + $0x1e8] sm:$0xf0] }
 0x541   : > { %15594 = vst [vmem:[#allocation31_spill] sm:$0xff] %v13798_v32 }
 0x542   : > { %5959 = vmatpush.bf16.msra.mxu3 %v7803_v49  ;;  %v4995_v49 = vadd.f32 %v13513_v11, %v4946_v5  ;;  %v15602_v11 = vld [vmem:[#allocation73_spill] sm:$0xff] }
 0x544   : > { %v13809_v16 = vpop.f32.mrf.mxu2 }
 0x545   : > { %v13830_v41 = vpop.f32.mrf.mxu1 }
 0x546   : > { %v13804_v60 = vpop.f32.mrf.mxu3 }
 0x547   : > { %v4948_v43 = vpop.f32.mrf.mxu0 }
 0x54a   : > { %5629 = vmatmul.bf16.gmra.mxu0 %v15596_v23  ;;  %v4944_v23 = vadd.f32 %v4943_v3, %v13479_v21  ;;  %v8218_v21 = vld [vmem:[%s14397_s5 + $0x1e4] sm:$0xf] }
 0x54b   : > { %5124 = vmatmul.bf16.gmra.mxu3 %v15595_v35  ;;  %v7795_v24 = vor.u32 %v8218_v21, %v7792_v51  ;;  %v4949_v21 = vadd.f32 %v4948_v43, %v13515_v18  ;;  %v7592_v18 = vld [vmem:[%s14397_s5 + $0x58] sm:$0xf0] }
 0x54c   : > { %5708 = vmatmul.bf16.gmra.mxu1 %v13403_v46  ;;  %5757 = vmatmul.bf16.gmra.mxu2 %v13715_v37  ;;  %v13832_v35 = vpop.f32.mrf.mxu2  ;;  %v4993_v13 = vadd.f32 %v13483_v28, %v4944_v23 }
 0x54d   : > { %5960 = vmatpush.bf16.msra.mxu3 %v7795_v24 }
 0x54e   : > { %v4929_v45 = vpop.f32.mrf.mxu3 }
 0x54f   : > { %v13828_v14 = vadd.f32 %v4929_v45, %v4881_v10  ;;  %v4950_v4 = vpop.f32.mrf.mxu0  ;;  %v13840_v10 = vpop.f32.mrf.mxu1  ;;  %v7600_v45 = vld [vmem:[%s14397_s5 + $0x68] sm:$0xf0] }
 0x550   : > { %15600 = vst [vmem:[#allocation135_spill] sm:$0xff] %v13840_v10 }
 0x551   : > { %15597 = vst [vmem:[#allocation124_spill] sm:$0xff] %v13828_v14 }
 0x554   : > { %v13852_v3 = vpop.f32.mrf.mxu2 }
 0x555   : > { %15601 = vst [vmem:[#allocation34_spill] sm:$0xff] %v13852_v3 }
 0x556   : > { %v13834_v37 = vpop.f32.mrf.mxu3 }
 0x557   : > { %15598 = vst [vmem:[#allocation136_spill] sm:$0xff] %v13834_v37  ;;  %v4953_v46 = vpop.f32.mrf.mxu0  ;;  %v5044_v37 = vadd.f32 %v13517_v36, %v4995_v49  ;;  %v13861_v10 = vpop.f32.mrf.mxu1  ;;  %v8168_v36 = vld [vmem:[%s14397_s5 + $0x54] sm:$0xf] }
 0x55a   : > { %5634 = vmatmul.bf16.gmra.mxu0 %v15599_v6  ;;  %v5042_v6 = vadd.f32 %v13486_v48, %v4993_v13  ;;  %v4951_v48 = vadd.f32 %v4950_v4, %v13522_v0  ;;  %v4998_v0 = vadd.f32 %v13526_v52, %v4949_v21  ;;  %v4954_v21 = vadd.f32 %v4953_v46, %v13551_v30  ;;  %v7584_v46 = vld [vmem:[%s14397_s5 + $0x48] sm:$0xf0]  ;;  %v8214_v30 = vld [vmem:[%s14397_s5 + $0x1c4] sm:$0xf] }
 0x55c   : > { %5869 = vmatmul.bf16.vlgmr.msrb.gmra.mxu1 %v15571_v7  ;;  %5918 = vmatmul.bf16.vlgmr.msrb.gmra.mxu2 %v13079_v44  ;;  %v7603_v44 = vor.u32 %v8170_v19, %v7600_v45  ;;  %v13863_v45 = vpop.f32.mrf.mxu2  ;;  %v5000_v5 = vadd.f32 %v13556_v50, %v4951_v48 }
 0x55e   : > { %v5090_v7 = vpop.f32.mrf.mxu3  ;;  %5813 = vmatpush.bf16.msrb.mxu0 %v7603_v44  ;;  %v5049_v13 = vadd.f32 %v13558_v63, %v5000_v5  ;;  %v8166_v63 = vld [vmem:[%s14397_s5 + $0x44] sm:$0xf] }
 0x55f   : > { %v4955_v33 = vpop.f32.mrf.mxu0  ;;  %v5091_v14 = vadd.f32 %v5090_v7, %v5042_v6  ;;  %v13888_v6 = vpop.f32.mrf.mxu1  ;;  %v5047_v7 = vadd.f32 %v13529_v12, %v4998_v0 }
 0x560   : > { %v4956_v12 = vadd.f32 %v4955_v33, %v13562_v57  ;;  %v5003_v57 = vadd.f32 %v13585_v59, %v4954_v21 }
 0x561   : > { %v5133_v28 = vmax.f32 %v5091_v14, 0.0 }
 0x566   : > { %v5092_v3 = vpop.f32.mrf.mxu3 }
 0x567   : > { %v5093_v19 = vadd.f32 %v5092_v3, %v5044_v37  ;;  %v13865_v32 = vpop.f32.mrf.mxu0  ;;  %v8216_v37 = vld [vmem:[%s14397_s5 + $0x1d4] sm:$0xf]  ;;  %v13891_v3 = vpop.f32.mrf.mxu2 }
 0x569   : > { %v5137_v23 = vmax.f32 %v5093_v19, 0.0 }
 0x56a   : > { %5639 = vmatmul.bf16.gmra.mxu0 %v15602_v11 }
 0x56b   : > { %v13868_v44 = vpack.c.bf16 %v5137_v23, %v5133_v28  ;;  %v13897_v23 = vpop.f32.mrf.mxu1 }
 0x56c   : > { %5874 = vmatmul.bf16.gmra.mxu1 %v13070_v26  ;;  %5923 = vmatmul.bf16.gmra.mxu2 %v13420_v55  ;;  %v7595_v26 = vor.u32 %v8168_v36, %v7592_v18  ;;  %v7784_v55 = vld [vmem:[%s14397_s5 + $0x1d8] sm:$0xf0] }
 0x56d   : > { %5771 = vmatmul.bf16.vlgmr.msrb.gmra.mxu3 %v13868_v44  ;;  %v7787_v14 = vor.u32 %v8216_v37, %v7784_v55  ;;  %v15603_v36 = vld [vmem:[#allocation89_spill] sm:$0xff] }
 0x56e   : > { %v5095_v43 = vpop.f32.mrf.mxu3  ;;  %5814 = vmatpush.bf16.msrb.mxu0 %v7595_v26  ;;  %v5052_v26 = vadd.f32 %v13591_v34, %v5003_v57  ;;  %v8164_v34 = vld [vmem:[%s14397_s5 + $0x34] sm:$0xf] }
 0x56f   : > { %v4960_v4 = vpop.f32.mrf.mxu0  ;;  %5961 = vmatpush.bf16.msra.mxu3 %v7787_v14  ;;  %v5096_v51 = vadd.f32 %v5095_v43, %v5047_v7  ;;  %v13903_v48 = vpop.f32.mrf.mxu2  ;;  %v5005_v43 = vadd.f32 %v13612_v42, %v4956_v12  ;;  %v15604_v42 = vld [vmem:[#allocation91_spill] sm:$0xff] }
 0x571   : > { %v5141_v52 = vmax.f32 %v5096_v51, 0.0  ;;  %v5054_v14 = vadd.f32 %v13617_v40, %v5005_v43  ;;  %v7576_v40 = vld [vmem:[%s14397_s5 + $0x38] sm:$0xf0] }
 0x573   : > { %v13926_v55 = vpop.f32.mrf.mxu1 }
 0x576   : > { %v5097_v24 = vpop.f32.mrf.mxu3 }
 0x577   : > { %v5098_v49 = vadd.f32 %v5097_v24, %v5049_v13  ;;  %v13895_v19 = vpop.f32.mrf.mxu0  ;;  %v13929_v5 = vpop.f32.mrf.mxu2 }
 0x579   : > { %v5145_v28 = vmax.f32 %v5098_v49, 0.0  ;;  %v4959_v49 = vadd.f32 %v13865_v32, %v13593_v39  ;;  %v7579_v39 = vor.u32 %v8164_v34, %v7576_v40  ;;  %v8212_v32 = vld [vmem:[%s14397_s5 + $0x1b4] sm:$0xf] }
 0x57a   : > { %5644 = vmatmul.bf16.gmra.mxu0 %v15603_v36 }
 0x57b   : > { %v13901_v50 = vpack.c.bf16 %v5145_v28, %v5141_v52  ;;  %v4961_v28 = vadd.f32 %v4960_v4, %v13614_v22  ;;  %v13954_v12 = vpop.f32.mrf.mxu1  ;;  %v4770_v4 = vadd.f32 %v13553_v15, %v13442_v27  ;;  %v7560_v15 = vld [vmem:[%s14397_s5 + $0x18] sm:$0xf0] }
 0x57c   : > { %5879 = vmatmul.bf16.gmra.mxu1 %v13109_v61  ;;  %5928 = vmatmul.bf16.gmra.mxu2 %v13463_v29  ;;  %v7587_v61 = vor.u32 %v8166_v63, %v7584_v46  ;;  %v7776_v29 = vld [vmem:[%s14397_s5 + $0x1c8] sm:$0xf0]  ;;  %v5008_v63 = vadd.f32 %v13658_v53, %v4959_v49 }
 0x57d   : > { %5776 = vmatmul.bf16.gmra.mxu3 %v13901_v50  ;;  %v7779_v33 = vor.u32 %v8214_v30, %v7776_v29  ;;  %v5010_v30 = vadd.f32 %v13695_v54, %v4961_v28  ;;  %v7568_v53 = vld [vmem:[%s14397_s5 + $0x28] sm:$0xf0]  ;;  %v8160_v29 = vld [vmem:[%s14397_s5 + $0x14] sm:$0xf]  ;;  %v15605_v54 = vld [vmem:[#allocation5_spill] sm:$0xff] }
 0x57e   : > { %v5100_v18 = vpop.f32.mrf.mxu3  ;;  %5815 = vmatpush.bf16.msrb.mxu0 %v7587_v61  ;;  %v8162_v61 = vld [vmem:[%s14397_s5 + $0x24] sm:$0xf] }
 0x57f   : > { %v13922_v37 = vpop.f32.mrf.mxu0  ;;  %5962 = vmatpush.bf16.msra.mxu3 %v7779_v33  ;;  %v5101_v0 = vadd.f32 %v5100_v18, %v5052_v26  ;;  %v13957_v46 = vpop.f32.mrf.mxu2  ;;  %v5057_v18 = vadd.f32 %v13660_v1, %v5008_v63  ;;  %v7571_v57 = vor.u32 %v8162_v61, %v7568_v53  ;;  %v4819_v33 = vadd.f32 %v15605_v54, %v4770_v4  ;;  %v15608_v61 = vld [vmem:[#allocation133_spill] sm:$0xff] }
 0x580   : > { %v5059_v43 = vadd.f32 %v13708_v20, %v5010_v30  ;;  %v4964_v20 = vadd.f32 %v13895_v19, %v13654_v2  ;;  %v8210_v2 = vld [vmem:[%s14397_s5 + $0x1a4] sm:$0xf]  ;;  %v7760_v19 = vld [vmem:[%s14397_s5 + $0x1a8] sm:$0xf0] }
 0x581   : > { %v5149_v59 = vmax.f32 %v5101_v0, 0.0  ;;  %v7563_v0 = vor.u32 %v8160_v29, %v7560_v15  ;;  %v7763_v4 = vor.u32 %v8210_v2, %v7760_v19 }
 0x582   : > { %5816 = vmatpush.bf16.msrb.mxu0 %v7579_v39  ;;  %v15607_v39 = vld [vmem:[#allocation95_spill] sm:$0xff] }
 0x586   : > { %v5102_v7 = vpop.f32.mrf.mxu3  ;;  %5817 = vmatpush.bf16.msrb.mxu0 %v7571_v57  ;;  %v15609_v57 = vld [vmem:[#allocation101_spill] sm:$0xff] }
 0x587   : > { %v5103_v51 = vadd.f32 %v5102_v7, %v5054_v14  ;;  %v13931_v13 = vpop.f32.mrf.mxu0  ;;  %v13984_v40 = vpop.f32.mrf.mxu2 }
 0x589   : > { %v5153_v24 = vmax.f32 %v5103_v51, 0.0  ;;  %v15606_v51 = vld [vmem:[#allocation4_spill] sm:$0xff] }
 0x58a   : > { %5649 = vmatmul.bf16.gmra.mxu0 %v15604_v42 }
 0x58b   : > { %v13936_v52 = vpack.c.bf16 %v5153_v24, %v5149_v59  ;;  %v4868_v59 = vadd.f32 %v15606_v51, %v4819_v33  ;;  %v13982_v24 = vpop.f32.mrf.mxu1  ;;  %5818 = vmatpush.bf16.msrb.mxu0 %v7563_v0 }
 0x58c   : > { %5884 = vmatmul.bf16.gmra.mxu1 %v13153_v47  ;;  %5933 = vmatmul.bf16.gmra.mxu2 %v13497_v9  ;;  %v7768_v47 = vld [vmem:[%s14397_s5 + $0x1b8] sm:$0xf0] }
 0x58d   : > { %5781 = vmatmul.bf16.gmra.mxu3 %v13936_v52  ;;  %v7771_v21 = vor.u32 %v8212_v32, %v7768_v47  ;;  %v4917_v28 = vadd.f32 %v13682_v58, %v4868_v59  ;;  %v8158_v47 = vld [vmem:[%s14397_s5 + $0x4] sm:$0xf]  ;;  %v15612_v59 = vld [vmem:[#allocation25_spill] sm:$0xff] }
 0x58e   : > { %v5105_v9 = vpop.f32.mrf.mxu3 }
 0x58f   : > { %v13959_v22 = vpop.f32.mrf.mxu0  ;;  %5963 = vmatpush.bf16.msra.mxu3 %v7771_v21  ;;  %v5106_v1 = vadd.f32 %v5105_v9, %v5057_v18  ;;  %v7552_v9 = vld [vmem:[%s14397_s5 + $0x8] sm:$0xf0]  ;;  %v4966_v21 = vadd.f32 %v13922_v37, %v4917_v28  ;;  %v14015_v29 = vpop.f32.mrf.mxu2 }
 0x590   : > { %v7555_v58 = vor.u32 %v8158_v47, %v7552_v9 }
 0x591   : > { %v5157_v49 = vmax.f32 %v5106_v1, 0.0  ;;  %v5015_v37 = vadd.f32 %v13796_v56, %v4966_v21  ;;  %v15611_v56 = vld [vmem:[#allocation104_spill] sm:$0xff] }
 0x592   : > { %5819 = vmatpush.bf16.msrb.mxu0 %v7555_v58  ;;  %v8208_v58 = vld [vmem:[%s14397_s5 + $0x194] sm:$0xf] }
 0x593   : > { %5964 = vmatpush.bf16.msra.mxu3 %v7763_v4  ;;  %v14012_v18 = vpop.f32.mrf.mxu1  ;;  %v5064_v33 = vadd.f32 %v13800_v8, %v5015_v37  ;;  %v15615_v8 = vld [vmem:[#allocation32_spill] sm:$0xff] }
 0x596   : > { %v5107_v26 = vpop.f32.mrf.mxu3 }
 0x597   : > { %v5108_v14 = vadd.f32 %v5107_v26, %v5059_v43  ;;  %v13979_v7 = vpop.f32.mrf.mxu0  ;;  %v15610_v26 = vld [vmem:[#allocation122_spill] sm:$0xff]  ;;  %v14040_v21 = vpop.f32.mrf.mxu2 }
 0x599   : > { %v5161_v34 = vmax.f32 %v5108_v14, 0.0 }
 0x59a   : > { %5654 = vmatmul.bf16.gmra.mxu0 %v15607_v39 }
 0x59b   : > { %v13990_v32 = vpack.c.bf16 %v5161_v34, %v5157_v49  ;;  %v4969_v49 = vadd.f32 %v13931_v13, %v15612_v59  ;;  %v15613_v34 = vld [vmem:[#allocation10_spill] sm:$0xff]  ;;  %v14030_v47 = vpop.f32.mrf.mxu1  ;;  %v7752_v13 = vld [vmem:[%s14397_s5 + $0x198] sm:$0xf0] }
 0x59c   : > { %5889 = vmatmul.bf16.gmra.mxu1 %v15582_v17  ;;  %5938 = vmatmul.bf16.gmra.mxu2 %v13535_v38  ;;  %v5013_v17 = vadd.f32 %v13760_v25, %v4964_v20  ;;  %v4775_v38 = vadd.f32 %v13595_v62, %v13442_v27  ;;  %v15614_v20 = vld [vmem:[#allocation98_spill] sm:$0xff]  ;;  %v7755_v19 = vor.u32 %v8208_v58, %v7752_v13  ;;  %v15621_v59 = vld [vmem:[#allocation137_spill] sm:$0xff]  ;;  %v15623_v58 = vld [vmem:[#allocation135_spill] sm:$0xff] }
 0x59d   : > { %5786 = vmatmul.bf16.gmra.mxu3 %v13990_v32 }
 0x59e   : > { %v5110_v63 = vpop.f32.mrf.mxu3  ;;  %v5062_v53 = vadd.f32 %v15608_v61, %v5013_v17  ;;  %v4824_v15 = vadd.f32 %v15609_v57, %v4775_v38  ;;  %5965 = vmatpush.bf16.msra.mxu3 %v7755_v19  ;;  %v15617_v61 = vld [vmem:[#allocation60_spill] sm:$0xff]  ;;  %v15624_v19 = vld [vmem:[#allocation130_spill] sm:$0xff] }
 0x59f   : > { %v4975_v30 = vpop.f32.mrf.mxu0 }
 0x5a0   : > { %v5111_v54 = vadd.f32 %v5110_v63, %v5062_v53  ;;  %v4873_v0 = vadd.f32 %v15610_v26, %v4824_v15  ;;  %v5018_v63 = vadd.f32 %v13807_v31, %v4969_v49  ;;  %v15618_v26 = vld [vmem:[#allocation9_spill] sm:$0xff] }
 0x5a1   : > { %v15622_v49 = vld [vmem:[#allocation37_spill] sm:$0xff] }
 0x5a2   : > { %v5165_v62 = vmax.f32 %v5111_v54, 0.0  ;;  %v4922_v51 = vadd.f32 %v15611_v56, %v4873_v0  ;;  %v5067_v37 = vadd.f32 %v13809_v16, %v5018_v63  ;;  %v15619_v16 = vld [vmem:[#allocation31_spill] sm:$0xff] }
 0x5a3   : > { %v4974_v56 = vadd.f32 %v13979_v7, %v15619_v16  ;;  %v15629_v16 = vld [vmem:[#allocation124_spill] sm:$0xff] }
 0x5a4   : > { %v4971_v9 = vadd.f32 %v13959_v22, %v4922_v51  ;;  %v15616_v22 = vld [vmem:[#allocation3_spill] sm:$0xff] }
 0x5a5   : > { %v4780_v17 = vadd.f32 %v15616_v22, %v13442_v27  ;;  %v15620_v51 = vld [vmem:[#allocation7_spill] sm:$0xff]  ;;  %v5023_v13 = vadd.f32 %v15623_v58, %v4974_v56 }
 0x5a6   : > { %v5112_v1 = vpop.f32.mrf.mxu3  ;;  %v5020_v38 = vadd.f32 %v13830_v41, %v4971_v9 }
 0x5a7   : > { %v5113_v25 = vadd.f32 %v5112_v1, %v5064_v33  ;;  %v14019_v43 = vpop.f32.mrf.mxu0  ;;  %v4829_v53 = vadd.f32 %v15617_v61, %v4780_v17  ;;  %v14049_v33 = vpop.f32.mrf.mxu1  ;;  %v15626_v61 = vld [vmem:[#allocation27_spill] sm:$0xff] }
 0x5a8   : > { %v5069_v15 = vadd.f32 %v13832_v35, %v5020_v38  ;;  %v15625_v38 = vld [vmem:[#allocation34_spill] sm:$0xff]  ;;  %v4979_v56 = vadd.f32 %v14019_v43, %v15629_v16 }
 0x5a9   : > { %v5169_v14 = vmax.f32 %v5113_v25, 0.0  ;;  %v14051_v25 = vpop.f32.mrf.mxu2  ;;  %v4878_v0 = vadd.f32 %v15618_v26, %v4829_v53 }
 0x5aa   : > { %5659 = vmatmul.bf16.gmra.mxu0 %v15613_v34 }
 0x5ab   : > { %v14026_v28 = vpack.c.bf16 %v5169_v14, %v5165_v62  ;;  %v4927_v41 = vadd.f32 %v13804_v60, %v4878_v0  ;;  %v7744_v60 = vld [vmem:[%s14397_s5 + $0x188] sm:$0xf0]  ;;  %v15627_v0 = vld [vmem:[#allocation8_spill] sm:$0xff] }
 0x5ac   : > { %5894 = vmatmul.bf16.gmra.mxu1 %v15614_v20  ;;  %5943 = vmatmul.bf16.gmra.mxu2 %v15615_v8  ;;  %v8206_v8 = vld [vmem:[%s14397_s5 + $0x184] sm:$0xf] }
 0x5ad   : > { %5791 = vmatmul.bf16.gmra.mxu3 %v14026_v28  ;;  %v4976_v20 = vadd.f32 %v4975_v30, %v4927_v41  ;;  %v7747_v9 = vor.u32 %v8206_v8, %v7744_v60  ;;  %v4785_v30 = vadd.f32 %v15624_v19, %v13442_v27  ;;  %v15628_v41 = vld [vmem:[#allocation136_spill] sm:$0xff]  ;;  %v15632_v8 = vld [vmem:[#allocation69_spill] sm:$0xff] }
 0x5ae   : > { %v5115_v2 = vpop.f32.mrf.mxu3 }
 0x5af   : > { %v4980_v4 = vpop.f32.mrf.mxu0  ;;  %v5116_v57 = vadd.f32 %v5115_v2, %v5067_v37  ;;  %5966 = vmatpush.bf16.msra.mxu3 %v7747_v9  ;;  %v5025_v63 = vadd.f32 %v13861_v10, %v4976_v20  ;;  %v14077_v22 = vpop.f32.mrf.mxu1  ;;  %v5072_v37 = vadd.f32 %v15625_v38, %v5023_v13  ;;  %v4834_v53 = vadd.f32 %v15626_v61, %v4785_v30 }
 0x5b0   : > { %v5028_v9 = vadd.f32 %v13888_v6, %v4979_v56  ;;  %v8229_v6 = vld [vmem:[%s14399_s7 + $0x38] sm:$0xff] }
 0x5b1   : > { %v5173_v62 = vmax.f32 %v5116_v57, 0.0  ;;  %v14079_v17 = vpop.f32.mrf.mxu2  ;;  %6188 = vmatpush.bf16.msra.mxu0 %v8229_v6 }
 0x5b2   : > { %v5077_v13 = vadd.f32 %v13891_v3, %v5028_v9  ;;  %v8237_v3 = vld [vmem:[%s14399_s7 + $0x78] sm:$0xff] }
 0x5b3   : > { %6237 = vmatpush.bf16.msra.mxu1 %v8237_v3 }
 0x5b6   : > { %v5117_v54 = vpop.f32.mrf.mxu3 }
 0x5b7   : > { %v5118_v1 = vadd.f32 %v5117_v54, %v5069_v15  ;;  %v14053_v31 = vpop.f32.mrf.mxu0  ;;  %v5074_v15 = vadd.f32 %v13863_v45, %v5025_v63  ;;  %v15631_v45 = vld [vmem:[#allocation117_spill] sm:$0xff] }
 0x5b9   : > { %v5177_v14 = vmax.f32 %v5118_v1, 0.0  ;;  %v14093_v20 = vpop.f32.mrf.mxu2 }
 0x5ba   : > { %5820 = vmatmul.bf16.vlgmr.msrb.gmra.mxu0 %v15620_v51  ;;  %v15630_v51 = vld [vmem:[#allocation59_spill] sm:$0xff] }
 0x5bb   : > { %v14060_v35 = vpack.c.bf16 %v5177_v14, %v5173_v62  ;;  %v4883_v62 = vadd.f32 %v15627_v0, %v4834_v53 }
 0x5bc   : > { %5899 = vmatmul.bf16.gmra.mxu1 %v15621_v59  ;;  %5948 = vmatmul.bf16.gmra.mxu2 %v15622_v49  ;;  %v14091_v49 = vpop.f32.mrf.mxu1 }
 0x5bd   : > { %5796 = vmatmul.bf16.gmra.mxu3 %v14060_v35  ;;  %v4932_v10 = vadd.f32 %v15628_v41, %v4883_v62  ;;  %v8236_v41 = vld [vmem:[%s14399_s7 + $0x70] sm:$0xff] }
 0x5be   : > { %v5120_v7 = vpop.f32.mrf.mxu3  ;;  %6238 = vmatpush.bf16.msra.mxu1 %v8236_v41 }
 0x5bf   : > { %v14072_v2 = vpop.f32.mrf.mxu0  ;;  %v5121_v57 = vadd.f32 %v5120_v7, %v5072_v37  ;;  %v4981_v60 = vadd.f32 %v4980_v4, %v4932_v10  ;;  %v15633_v4 = vld [vmem:[#allocation70_spill] sm:$0xff] }
 0x5c1   : > { %v5181_v14 = vmax.f32 %v5121_v57, 0.0  ;;  %v5030_v43 = vadd.f32 %v13897_v23, %v4981_v60  ;;  %v14117_v23 = vld [vmem:[%s14398_s6] sm:$0x3]  ;;  %v5743_v60 = vpop.f32.mrf.mxu2 }
 0x5c3   : > { %v5079_v30 = vadd.f32 %v13903_v48, %v5030_v43 }
 0x5c4   : > { %v5694_v62 = vpop.f32.mrf.mxu1 }
 0x5c6   : > { %v5122_v54 = vpop.f32.mrf.mxu3 }
 0x5c7   : > { %v5123_v1 = vadd.f32 %v5122_v54, %v5074_v15  ;;  %v5630_v26 = vpop.f32.mrf.mxu0  ;;  %v14122_v15 = vperm.slane %v14117_v23, 0 }
 0x5c9   : > { %v5185_v27 = vmax.f32 %v5123_v1, 0.0  ;;  %v5626_v54 = vadd.f32 %v14053_v31, %v14122_v15 }
 0x5ca   : > { %5825 = vmatmul.bf16.gmra.mxu0 %v15630_v51 }
 0x5cb   : > { %v14089_v59 = vpack.c.bf16 %v5185_v27, %v5181_v14  ;;  %v5675_v0 = vadd.f32 %v13926_v55, %v5626_v54  ;;  %v8228_v14 = vld [vmem:[%s14399_s7 + $0x30] sm:$0xff] }
 0x5cc   : > { %5904 = vmatmul.bf16.gmra.mxu1 %v15631_v45  ;;  %5953 = vmatmul.bf16.gmra.mxu2 %v15632_v8  ;;  %v8227_v8 = vld [vmem:[%s14399_s7 + $0x28] sm:$0xff] }
 0x5cd   : > { %5801 = vmatmul.bf16.gmra.mxu3 %v14089_v59  ;;  %v5724_v27 = vadd.f32 %v13929_v5, %v5675_v0  ;;  %6189 = vmatpush.bf16.msra.mxu0 %v8228_v14  ;;  %v8224_v0 = vld [vmem:[%s14399_s7 + $0x10] sm:$0xff] }
 0x5ce   : > { %v5125_v7 = vpop.f32.mrf.mxu3 }
 0x5cf   : > { %v14099_v58 = vpop.f32.mrf.mxu0  ;;  %v5126_v19 = vadd.f32 %v5125_v7, %v5077_v13 }
 0x5d1   : > { %v5189_v61 = vmax.f32 %v5126_v19, 0.0  ;;  %6190 = vmatpush.bf16.msra.mxu0 %v8227_v8 }
 0x5d6   : > { %v5127_v63 = vpop.f32.mrf.mxu3 }
 0x5d7   : > { %v5128_v38 = vadd.f32 %v5127_v63, %v5079_v30  ;;  %v5635_v37 = vpop.f32.mrf.mxu0  ;;  %v14163_v30 = vpop.f32.mrf.mxu2 }
 0x5d9   : > { %v5193_v53 = vmax.f32 %v5128_v38, 0.0 }
 0x5da   : > { %5830 = vmatmul.bf16.gmra.mxu0 %v15633_v4 }
 0x5db   : > { %v14105_v57 = vpack.c.bf16 %v5193_v53, %v5189_v61  ;;  %v8226_v53 = vld [vmem:[%s14399_s7 + $0x20] sm:$0xff] }
 0x5dc   : > { %6191 = vmatpush.bf16.msra.mxu0 %v8226_v53 }
 0x5dd   : > { %5806 = vmatmul.bf16.gmra.mxu3 %v14105_v57 }
 0x5df   : > { %v14119_v48 = vpop.f32.mrf.mxu0  ;;  %v5748_v54 = vpop.f32.mrf.mxu2 }
 0x5e7   : > { %v5640_v1 = vpop.f32.mrf.mxu0 }
 0x5e8   : > { %v5641_v14 = vadd.f32 %v5640_v1, %v14122_v15 }
 0x5ea   : > { %5835 = vmatmul.bf16.gmra.mxu0 %v15602_v11  ;;  %v14140_v11 = vpop.f32.mrf.mxu1 }
 0x5ed   : > { %5967 = vmatmul.bf16.vlgmr.msra.gmra.mxu3 %v13868_v44  ;;  %v5631_v44 = vadd.f32 %v5630_v26, %v14122_v15  ;;  %v8235_v26 = vld [vmem:[%s14399_s7 + $0x68] sm:$0xff] }
 0x5ee   : > { %6239 = vmatpush.bf16.msra.mxu1 %v8235_v26  ;;  %v5628_v26 = vadd.f32 %v14072_v2, %v14122_v15 }
 0x5ef   : > { %v14136_v31 = vpop.f32.mrf.mxu0  ;;  %v5680_v51 = vadd.f32 %v13982_v24, %v5631_v44  ;;  %v5690_v44 = vadd.f32 %v14077_v22, %v5641_v14  ;;  %v8233_v22 = vld [vmem:[%s14399_s7 + $0x58] sm:$0xff] }
 0x5f0   : > { %v5772_v10 = vpop.f32.mrf.mxu3 }
 0x5f1   : > { %v14138_v55 = vadd.f32 %v5772_v10, %v5724_v27  ;;  %v5729_v7 = vadd.f32 %v13984_v40, %v5680_v51  ;;  %v8222_v51 = vld [vmem:[%s14399_s7] sm:$0xff] }
 0x5f2   : > { %v5699_v43 = vpop.f32.mrf.mxu1 }
 0x5f7   : > { %v5645_v16 = vpop.f32.mrf.mxu0 }
 0x5f8   : > { %v14143_v56 = vpop.f32.mrf.mxu3  ;;  %v5646_v5 = vadd.f32 %v5645_v16, %v14122_v15 }
 0x5fa   : > { %v5695_v45 = vadd.f32 %v5694_v62, %v5646_v5  ;;  %5840 = vmatmul.bf16.gmra.mxu0 %v15603_v36  ;;  %v5636_v36 = vadd.f32 %v5635_v37, %v14122_v15  ;;  %v14166_v63 = vpop.f32.mrf.mxu1  ;;  %v8225_v37 = vld [vmem:[%s14399_s7 + $0x18] sm:$0xff]  ;;  %v14197_v5 = vpop.f32.mrf.mxu2 }
 0x5fb   : > { %6192 = vmatpush.bf16.msra.mxu0 %v8225_v37 }
 0x5fc   : > { %v5685_v38 = vadd.f32 %v14030_v47, %v5636_v36  ;;  %v8234_v47 = vld [vmem:[%s14399_s7 + $0x60] sm:$0xff] }
 0x5fd   : > { %5972 = vmatmul.bf16.gmra.mxu3 %v13901_v50  ;;  %6240 = vmatpush.bf16.msra.mxu1 %v8234_v47 }
 0x5fe   : > { %v5734_v4 = vadd.f32 %v14040_v21, %v5685_v38  ;;  %v8223_v21 = vld [vmem:[%s14399_s7 + $0x8] sm:$0xff] }
 0x5ff   : > { %v14156_v9 = vpop.f32.mrf.mxu0  ;;  %6193 = vmatpush.bf16.msra.mxu0 %v8224_v0 }
 0x600   : > { %v5777_v24 = vpop.f32.mrf.mxu3 }
 0x601   : > { %v14158_v13 = vadd.f32 %v5777_v24, %v5729_v7  ;;  %6241 = vmatpush.bf16.msra.mxu1 %v8233_v22 }
 0x602   : > { %v5704_v62 = vpop.f32.mrf.mxu1 }
 0x603   : > { %6194 = vmatpush.bf16.msra.mxu0 %v8223_v21 }
 0x607   : > { %v5650_v50 = vpop.f32.mrf.mxu0  ;;  %6195 = vmatpush.bf16.msra.mxu0 %v8222_v51  ;;  %v6012_v51 = vmax.f32 %v14158_v13, 0.0 }
 0x608   : > { %v14161_v19 = vpop.f32.mrf.mxu3  ;;  %v5651_v40 = vadd.f32 %v5650_v50, %v14122_v15  ;;  %v5677_v50 = vadd.f32 %v13954_v12, %v5628_v26 }
 0x60a   : > { %v5700_v61 = vadd.f32 %v5699_v43, %v5651_v40  ;;  %5845 = vmatmul.bf16.gmra.mxu0 %v15604_v42  ;;  %v14203_v1 = vpop.f32.mrf.mxu1  ;;  %v5726_v38 = vadd.f32 %v13957_v46, %v5677_v50  ;;  %v6008_v46 = vmax.f32 %v14138_v55, 0.0 }
 0x60c   : > { %v5749_v8 = vadd.f32 %v5748_v54, %v5700_v61  ;;  %v8232_v61 = vld [vmem:[%s14399_s7 + $0x50] sm:$0xff] }
 0x60d   : > { %5977 = vmatmul.bf16.gmra.mxu3 %v13936_v52  ;;  %v5744_v52 = vadd.f32 %v5743_v60, %v5695_v45  ;;  %v5739_v45 = vadd.f32 %v14079_v17, %v5690_v44  ;;  %6242 = vmatpush.bf16.msra.mxu1 %v8232_v61 }
 0x60f   : > { %v14181_v6 = vpop.f32.mrf.mxu0 }
 0x610   : > { %v5782_v42 = vpop.f32.mrf.mxu3 }
 0x611   : > { %v14183_v3 = vadd.f32 %v5782_v42, %v5734_v4  ;;  %v5775_v4 = vadd.f32 %v14143_v56, %v5726_v38  ;;  %v8231_v56 = vld [vmem:[%s14399_s7 + $0x48] sm:$0xff] }
 0x612   : > { %v5709_v36 = vpop.f32.mrf.mxu1  ;;  %6243 = vmatpush.bf16.msra.mxu1 %v8231_v56 }
 0x617   : > { %v5655_v27 = vpop.f32.mrf.mxu0 }
 0x618   : > { %v14192_v41 = vpop.f32.mrf.mxu3  ;;  %v5656_v10 = vadd.f32 %v5655_v27, %v14122_v15 }
 0x61a   : > { %v5705_v16 = vadd.f32 %v5704_v62, %v5656_v10  ;;  %5850 = vmatmul.bf16.gmra.mxu0 %v15607_v39  ;;  %v14246_v10 = vpop.f32.mrf.mxu1 }
 0x61d   : > { %5982 = vmatmul.bf16.gmra.mxu3 %v13990_v32  ;;  %v5753_v32 = vpop.f32.mrf.mxu2 }
 0x61e   : > { %v5754_v2 = vadd.f32 %v5753_v32, %v5705_v16 }
 0x61f   : > { %v14209_v60 = vpop.f32.mrf.mxu0 }
 0x620   : > { %v5787_v39 = vpop.f32.mrf.mxu3 }
 0x621   : > { %v14211_v7 = vadd.f32 %v5787_v39, %v5739_v45 }
 0x625   : > { %v14230_v12 = vpop.f32.mrf.mxu2 }
 0x627   : > { %v5660_v24 = vpop.f32.mrf.mxu0 }
 0x628   : > { %v14215_v43 = vpop.f32.mrf.mxu3  ;;  %v5661_v17 = vadd.f32 %v5660_v24, %v14122_v15 }
 0x62a   : > { %v5710_v40 = vadd.f32 %v5709_v36, %v5661_v17  ;;  %5855 = vmatmul.bf16.gmra.mxu0 %v15613_v34  ;;  %v6010_v34 = vmax.f32 %v5775_v4, 0.0  ;;  %v5643_v36 = vadd.f32 %v14136_v31, %v14122_v15 }
 0x62c   : > { %v6040_v54 = vpack.c.bf16 %v6010_v34, %v6008_v46  ;;  %v5648_v46 = vadd.f32 %v14156_v9, %v14122_v15 }
 0x62d   : > { %5987 = vmatmul.bf16.gmra.mxu3 %v14026_v28  ;;  %v5633_v28 = vadd.f32 %v14099_v58, %v14122_v15  ;;  %v5758_v21 = vpop.f32.mrf.mxu2 }
 0x62f   : > { %v14225_v53 = vpop.f32.mrf.mxu0  ;;  %v5682_v62 = vadd.f32 %v14012_v18, %v5633_v28 }
 0x630   : > { %v5792_v37 = vpop.f32.mrf.mxu3 }
 0x631   : > { %v14228_v47 = vadd.f32 %v5792_v37, %v5744_v52  ;;  %v5759_v52 = vadd.f32 %v5758_v21, %v5710_v40  ;;  %v5731_v14 = vadd.f32 %v14015_v29, %v5682_v62 }
 0x633   : > { %v5780_v55 = vadd.f32 %v14161_v19, %v5731_v14  ;;  %v5870_v19 = vpop.f32.mrf.mxu1 }
 0x635   : > { %v6014_v44 = vmax.f32 %v5780_v55, 0.0  ;;  %v14248_v16 = vpop.f32.mrf.mxu2 }
 0x637   : > { %v5821_v0 = vpop.f32.mrf.mxu0  ;;  %v6042_v29 = vpack.c.bf16 %v6014_v44, %v6012_v51 }
 0x638   : > { %v14235_v42 = vpop.f32.mrf.mxu3 }
 0x63a   : > { %6196 = vmatmul.bf16.vlgmr.msra.gmra.mxu0 %v6040_v54 }
 0x63d   : > { %5992 = vmatmul.bf16.gmra.mxu3 %v14060_v35  ;;  %v5638_v35 = vadd.f32 %v14119_v48, %v14122_v15  ;;  %v5919_v48 = vpop.f32.mrf.mxu2 }
 0x63f   : > { %v5823_v18 = vpop.f32.mrf.mxu0  ;;  %v5687_v22 = vadd.f32 %v14049_v33, %v5638_v35  ;;  %v5872_v33 = vpop.f32.mrf.mxu1 }
 0x640   : > { %v5797_v58 = vpop.f32.mrf.mxu3 }
 0x641   : > { %v14244_v27 = vadd.f32 %v5797_v58, %v5749_v8  ;;  %v8230_v8 = vld [vmem:[%s14399_s7 + $0x40] sm:$0xff]  ;;  %v5736_v32 = vadd.f32 %v14051_v25, %v5687_v22  ;;  %v5692_v25 = vadd.f32 %v14091_v49, %v5643_v36  ;;  %v6020_v49 = vmax.f32 %v14211_v7, 0.0 }
 0x642   : > { %6244 = vmatpush.bf16.msra.mxu1 %v8230_v8  ;;  %v6024_v22 = vmax.f32 %v14228_v47, 0.0 }
 0x643   : > { %v5785_v13 = vadd.f32 %v14192_v41, %v5736_v32  ;;  %v5741_v41 = vadd.f32 %v14093_v20, %v5692_v25 }
 0x645   : > { %v6018_v17 = vmax.f32 %v5785_v13, 0.0  ;;  %v5921_v61 = vpop.f32.mrf.mxu2  ;;  %v5790_v4 = vadd.f32 %v14215_v43, %v5741_v41  ;;  %v5697_v43 = vadd.f32 %v14140_v11, %v5648_v46  ;;  %v6028_v46 = vmax.f32 %v14244_v27, 0.0 }
 0x647   : > { %v5826_v39 = vpop.f32.mrf.mxu0  ;;  %v6022_v28 = vmax.f32 %v5790_v4, 0.0  ;;  %v5746_v7 = vadd.f32 %v14163_v30, %v5697_v43 }
 0x648   : > { %v14253_v45 = vpop.f32.mrf.mxu3 }
 0x649   : > { %v6046_v20 = vpack.c.bf16 %v6022_v28, %v6020_v49  ;;  %v5795_v58 = vadd.f32 %v14235_v42, %v5746_v7  ;;  %v5658_v28 = vadd.f32 %v14209_v60, %v14122_v15  ;;  %v8243_v60 = vld [vmem:[%s14401_s9 + $0x28] sm:$0xff] }
 0x64a   : > { %6201 = vmatmul.bf16.gmra.mxu0 %v6042_v29 }
 0x64b   : > { %v6026_v35 = vmax.f32 %v5795_v58, 0.0  ;;  %v5707_v7 = vadd.f32 %v14203_v1, %v5658_v28 }
 0x64d   : > { %5997 = vmatmul.bf16.gmra.mxu3 %v14089_v59  ;;  %v6016_v59 = vmax.f32 %v14183_v3, 0.0  ;;  %v5924_v3 = vpop.f32.mrf.mxu2  ;;  %v5756_v27 = vadd.f32 %v14230_v12, %v5707_v7 }
 0x64f   : > { %v5828_v50 = vpop.f32.mrf.mxu0  ;;  %v6044_v38 = vpack.c.bf16 %v6018_v17, %v6016_v59 }
 0x650   : > { %v5802_v26 = vpop.f32.mrf.mxu3 }
 0x651   : > { %v14262_v24 = vadd.f32 %v5802_v26, %v5754_v2  ;;  %v5875_v2 = vpop.f32.mrf.mxu1  ;;  %v6048_v26 = vpack.c.bf16 %v6026_v35, %v6024_v22  ;;  %v5663_v22 = vadd.f32 %v14225_v53, %v14122_v15 }
 0x655   : > { %v5926_v9 = vpop.f32.mrf.mxu2 }
 0x657   : > { %v14275_v31 = vpop.f32.mrf.mxu0 }
 0x658   : > { %v14267_v40 = vpop.f32.mrf.mxu3 }
 0x659   : > { %v5877_v62 = vpop.f32.mrf.mxu1  ;;  %v5805_v1 = vadd.f32 %v14267_v40, %v5756_v27 }
 0x65a   : > { %6206 = vmatmul.bf16.gmra.mxu0 %v6044_v38 }
 0x65d   : > { %6002 = vmatmul.bf16.gmra.mxu3 %v14105_v57  ;;  %v14283_v57 = vperm.slane %v14117_v23, 1  ;;  %v5929_v32 = vpop.f32.mrf.mxu2 }
 0x65f   : > { %v5833_v21 = vpop.f32.mrf.mxu0  ;;  %v5822_v56 = vadd.f32 %v5821_v0, %v14283_v57  ;;  %v5824_v14 = vadd.f32 %v5823_v18, %v14283_v57  ;;  %v5653_v0 = vadd.f32 %v14181_v6, %v14122_v15  ;;  %v8244_v6 = vld [vmem:[%s14401_s9 + $0x30] sm:$0xff]  ;;  %v5829_v59 = vadd.f32 %v5828_v50, %v14283_v57  ;;  %v8242_v15 = vld [vmem:[%s14401_s9 + $0x20] sm:$0xff] }
 0x660   : > { %v5807_v37 = vpop.f32.mrf.mxu3 }
 0x661   : > { %v14273_v34 = vadd.f32 %v5807_v37, %v5759_v52  ;;  %v8245_v52 = vld [vmem:[%s14401_s9 + $0x38] sm:$0xff]  ;;  %v5871_v55 = vadd.f32 %v5870_v19, %v5822_v56  ;;  %v5873_v44 = vadd.f32 %v5872_v33, %v5824_v14  ;;  %v5880_v11 = vpop.f32.mrf.mxu1  ;;  %v5702_v42 = vadd.f32 %v14166_v63, %v5653_v0 }
 0x662   : > { %6378 = vmatpush.bf16.msra.mxu2 %v8245_v52  ;;  %v5878_v37 = vadd.f32 %v5877_v62, %v5829_v59 }
 0x663   : > { %v5920_v51 = vadd.f32 %v5919_v48, %v5871_v55  ;;  %v5922_v30 = vadd.f32 %v5921_v61, %v5873_v44  ;;  %v5827_v48 = vadd.f32 %v5826_v39, %v14283_v57  ;;  %v5751_v47 = vadd.f32 %v14197_v5, %v5702_v42 }
 0x664   : > { %v5927_v5 = vadd.f32 %v5926_v9, %v5878_v37  ;;  %v5834_v9 = vadd.f32 %v5833_v21, %v14283_v57 }
 0x665   : > { %v5800_v63 = vadd.f32 %v14253_v45, %v5751_v47  ;;  %v5876_v25 = vadd.f32 %v5875_v2, %v5827_v48  ;;  %v5931_v41 = vpop.f32.mrf.mxu2 }
 0x666   : > { %6379 = vmatpush.bf16.msra.mxu2 %v8244_v6 }
 0x667   : > { %v14293_v29 = vpop.f32.mrf.mxu0  ;;  %v6030_v39 = vmax.f32 %v5800_v63, 0.0  ;;  %v5925_v4 = vadd.f32 %v5924_v3, %v5876_v25  ;;  %v5832_v3 = vadd.f32 %v14275_v31, %v14283_v57 }
 0x668   : > { %v14280_v54 = vpop.f32.mrf.mxu3 }
 0x669   : > { %v5882_v36 = vpop.f32.mrf.mxu1  ;;  %v6050_v43 = vpack.c.bf16 %v6030_v39, %v6028_v46  ;;  %v5881_v58 = vadd.f32 %v5880_v11, %v5832_v3 }
 0x66a   : > { %6211 = vmatmul.bf16.gmra.mxu0 %v6046_v20  ;;  %6380 = vmatpush.bf16.msra.mxu2 %v8243_v60  ;;  %v5883_v44 = vadd.f32 %v5882_v36, %v5834_v9 }
 0x66b   : > { %v5930_v31 = vadd.f32 %v5929_v32, %v5881_v58  ;;  %v5837_v32 = vadd.f32 %v14293_v29, %v14283_v57  ;;  %v8240_v58 = vld [vmem:[%s14401_s9 + $0x10] sm:$0xff] }
 0x66d   : > { %v5934_v62 = vpop.f32.mrf.mxu2 }
 0x66e   : > { %6381 = vmatpush.bf16.msra.mxu2 %v8242_v15 }
 0x66f   : > { %v5838_v38 = vpop.f32.mrf.mxu0 }
 0x670   : > { %v5968_v23 = vpop.f32.mrf.mxu3 }
 0x671   : > { %v5969_v8 = vadd.f32 %v5968_v23, %v5920_v51  ;;  %v5885_v20 = vpop.f32.mrf.mxu1  ;;  %v6034_v51 = vmax.f32 %v5805_v1, 0.0 }
 0x672   : > { %v5886_v6 = vadd.f32 %v5885_v20, %v5837_v32  ;;  %v8239_v32 = vld [vmem:[%s14401_s9 + $0x8] sm:$0xff] }
 0x673   : > { %v6009_v19 = vmax.f32 %v5969_v8, 0.0  ;;  %v6032_v8 = vmax.f32 %v14262_v24, 0.0 }
 0x674   : > { %v5935_v29 = vadd.f32 %v5934_v62, %v5886_v6 }
 0x675   : > { %v5936_v0 = vpop.f32.mrf.mxu2 }
 0x677   : > { %v5841_v52 = vpop.f32.mrf.mxu0 }
 0x678   : > { %v5970_v18 = vpop.f32.mrf.mxu3  ;;  %v5842_v46 = vadd.f32 %v5841_v52, %v14283_v57 }
 0x679   : > { %v5971_v13 = vadd.f32 %v5970_v18, %v5922_v30  ;;  %v5887_v55 = vpop.f32.mrf.mxu1  ;;  %v5932_v30 = vadd.f32 %v5931_v41, %v5883_v44  ;;  %v6052_v18 = vpack.c.bf16 %v6034_v51, %v6032_v8 }
 0x67a   : > { %6216 = vmatmul.bf16.gmra.mxu0 %v6048_v26 }
 0x67b   : > { %v6011_v17 = vmax.f32 %v5971_v13, 0.0  ;;  %v5712_v13 = vadd.f32 %v14246_v10, %v5663_v22 }
 0x67d   : > { %v6041_v33 = vpack.c.bf16 %v6011_v17, %v6009_v19  ;;  %v5761_v24 = vadd.f32 %v14248_v16, %v5712_v13  ;;  %v5839_v17 = vadd.f32 %v5838_v38, %v14283_v57  ;;  %v5939_v10 = vpop.f32.mrf.mxu2 }
 0x67f   : > { %6245 = vmatmul.bf16.vlgmr.msra.gmra.mxu1 %v6041_v33  ;;  %v5843_v35 = vpop.f32.mrf.mxu0  ;;  %v5810_v33 = vadd.f32 %v14280_v54, %v5761_v24  ;;  %v5888_v36 = vadd.f32 %v5887_v55, %v5839_v17 }
 0x680   : > { %v5973_v61 = vpop.f32.mrf.mxu3 }
 0x681   : > { %v5974_v49 = vadd.f32 %v5973_v61, %v5925_v4  ;;  %v5890_v42 = vpop.f32.mrf.mxu1  ;;  %v6038_v47 = vmax.f32 %v5810_v33, 0.0  ;;  %v6036_v61 = vmax.f32 %v14273_v34, 0.0  ;;  %v5937_v25 = vadd.f32 %v5936_v0, %v5888_v36 }
 0x683   : > { %v6013_v45 = vmax.f32 %v5974_v49, 0.0  ;;  %v6054_v16 = vpack.c.bf16 %v6038_v47, %v6036_v61  ;;  %v8241_v49 = vld [vmem:[%s14401_s9 + $0x18] sm:$0xff]  ;;  %v8238_v61 = vld [vmem:[%s14401_s9] sm:$0xff] }
 0x684   : > { %6382 = vmatpush.bf16.msra.mxu2 %v8241_v49 }
 0x685   : > { %v5941_v38 = vpop.f32.mrf.mxu2 }
 0x687   : > { %v5846_v53 = vpop.f32.mrf.mxu0 }
 0x688   : > { %v5975_v50 = vpop.f32.mrf.mxu3  ;;  %6383 = vmatpush.bf16.msra.mxu2 %v8240_v58 }
 0x689   : > { %v5976_v56 = vadd.f32 %v5975_v50, %v5927_v5  ;;  %v5892_v59 = vpop.f32.mrf.mxu1  ;;  %v5844_v5 = vadd.f32 %v5843_v35, %v14283_v57  ;;  %v5891_v50 = vadd.f32 %v5890_v42, %v5842_v46 }
 0x68a   : > { %6221 = vmatmul.bf16.gmra.mxu0 %v6050_v43 }
 0x68b   : > { %v6015_v2 = vmax.f32 %v5976_v56, 0.0  ;;  %v5893_v56 = vadd.f32 %v5892_v59, %v5844_v5 }
 0x68c   : > { %6384 = vmatpush.bf16.msra.mxu2 %v8239_v32 }
 0x68d   : > { %v6043_v14 = vpack.c.bf16 %v6015_v2, %v6013_v45  ;;  %v5944_v7 = vpop.f32.mrf.mxu2  ;;  %v5940_v45 = vadd.f32 %v5939_v10, %v5891_v50  ;;  %v5942_v62 = vadd.f32 %v5941_v38, %v5893_v56 }
 0x68f   : > { %6250 = vmatmul.bf16.gmra.mxu1 %v6043_v14  ;;  %v5848_v41 = vpop.f32.mrf.mxu0 }
 0x690   : > { %v5978_v23 = vpop.f32.mrf.mxu3  ;;  %v5849_v44 = vadd.f32 %v5848_v41, %v14283_v57  ;;  %6385 = vmatpush.bf16.msra.mxu2 %v8238_v61 }
 0x691   : > { %v5979_v12 = vadd.f32 %v5978_v23, %v5930_v31  ;;  %v5895_v34 = vpop.f32.mrf.mxu1  ;;  %v5847_v23 = vadd.f32 %v5846_v53, %v14283_v57 }
 0x693   : > { %v6017_v40 = vmax.f32 %v5979_v12, 0.0  ;;  %v5896_v51 = vadd.f32 %v5895_v34, %v5847_v23 }
 0x695   : > { %v5946_v55 = vpop.f32.mrf.mxu2  ;;  %v5945_v22 = vadd.f32 %v5944_v7, %v5896_v51 }
 0x697   : > { %v5851_v43 = vpop.f32.mrf.mxu0 }
 0x698   : > { %v5980_v21 = vpop.f32.mrf.mxu3 }
 0x699   : > { %v5981_v26 = vadd.f32 %v5980_v21, %v5932_v30  ;;  %v5897_v14 = vpop.f32.mrf.mxu1 }
 0x69a   : > { %6226 = vmatmul.bf16.gmra.mxu0 %v6052_v18  ;;  %v5898_v31 = vadd.f32 %v5897_v14, %v5849_v44 }
 0x69b   : > { %v6019_v11 = vmax.f32 %v5981_v26, 0.0 }
 0x69c   : > { %v5947_v30 = vadd.f32 %v5946_v55, %v5898_v31 }
 0x69d   : > { %v6045_v19 = vpack.c.bf16 %v6019_v11, %v6017_v40  ;;  %v5949_v21 = vpop.f32.mrf.mxu2  ;;  %v5852_v11 = vadd.f32 %v5851_v43, %v14283_v57 }
 0x69f   : > { %6255 = vmatmul.bf16.gmra.mxu1 %v6045_v19  ;;  %v5853_v9 = vpop.f32.mrf.mxu0 }
 0x6a0   : > { %v5983_v48 = vpop.f32.mrf.mxu3  ;;  %v5854_v15 = vadd.f32 %v5853_v9, %v14283_v57 }
 0x6a1   : > { %v5984_v63 = vadd.f32 %v5983_v48, %v5935_v29  ;;  %v5900_v0 = vpop.f32.mrf.mxu1 }
 0x6a2   : > { %v5901_v17 = vadd.f32 %v5900_v0, %v5852_v11 }
 0x6a3   : > { %v6021_v4 = vmax.f32 %v5984_v63, 0.0 }
 0x6a4   : > { %v5950_v33 = vadd.f32 %v5949_v21, %v5901_v17 }
 0x6a5   : > { %v5951_v10 = vpop.f32.mrf.mxu2 }
 0x6a7   : > { %v5856_v8 = vpop.f32.mrf.mxu0 }
 0x6a8   : > { %v5985_v37 = vpop.f32.mrf.mxu3 }
 0x6a9   : > { %v5986_v39 = vadd.f32 %v5985_v37, %v5937_v25  ;;  %v5902_v19 = vpop.f32.mrf.mxu1 }
 0x6aa   : > { %6231 = vmatmul.bf16.gmra.mxu0 %v6054_v16  ;;  %v5903_v48 = vadd.f32 %v5902_v19, %v5854_v15  ;;  %v5857_v16 = vadd.f32 %v5856_v8, %v14283_v57 }
 0x6ab   : > { %v6023_v28 = vmax.f32 %v5986_v39, 0.0 }
 0x6ac   : > { %v5952_v36 = vadd.f32 %v5951_v10, %v5903_v48 }
 0x6ad   : > { %v6047_v54 = vpack.c.bf16 %v6023_v28, %v6021_v4  ;;  %v5954_v37 = vpop.f32.mrf.mxu2 }
 0x6af   : > { %6260 = vmatmul.bf16.gmra.mxu1 %v6047_v54  ;;  %v5858_v53 = vpop.f32.mrf.mxu0 }
 0x6b0   : > { %v5988_v20 = vpop.f32.mrf.mxu3  ;;  %v5859_v38 = vadd.f32 %v5858_v53, %v14283_v57  ;;  %v14354_v57 = vld [vmem:[%s14400_s8] ss:$0 sm:$0xff] }
 0x6b1   : > { %v5989_v2 = vadd.f32 %v5988_v20, %v5940_v45  ;;  %v5905_v47 = vpop.f32.mrf.mxu1 }
 0x6b2   : > { %v5906_v28 = vadd.f32 %v5905_v47, %v5857_v16 }
 0x6b3   : > { %v6025_v60 = vmax.f32 %v5989_v2, 0.0 }
 0x6b4   : > { %v5955_v5 = vadd.f32 %v5954_v37, %v5906_v28 }
 0x6b5   : > { %v5956_v34 = vpop.f32.mrf.mxu2 }
 0x6b7   : > { %v6197_v63 = vpop.f32.mrf.mxu0 }
 0x6b8   : > { %v5990_v3 = vpop.f32.mrf.mxu3  ;;  %v6198_v14 = vadd.f32 %v14354_v57, %v6197_v63 }
 0x6b9   : > { %v5991_v52 = vadd.f32 %v5990_v3, %v5942_v62  ;;  %v5907_v46 = vpop.f32.mrf.mxu1 }
 0x6ba   : > { %v5908_v54 = vadd.f32 %v5907_v46, %v5859_v38 }
 0x6bb   : > { %v6027_v27 = vmax.f32 %v5991_v52, 0.0 }
 0x6bc   : > { %v5957_v50 = vadd.f32 %v5956_v34, %v5908_v54 }
 0x6bd   : > { %v6049_v1 = vpack.c.bf16 %v6027_v27, %v6025_v60 }
 0x6bf   : > { %6265 = vmatmul.bf16.gmra.mxu1 %v6049_v1  ;;  %v6199_v49 = vpop.f32.mrf.mxu0 }
 0x6c0   : > { %v5993_v35 = vpop.f32.mrf.mxu3  ;;  %v6200_v27 = vadd.f32 %v14354_v57, %v6199_v49 }
 0x6c1   : > { %v5994_v12 = vadd.f32 %v5993_v35, %v5945_v22 }
 0x6c3   : > { %v6029_v13 = vmax.f32 %v5994_v12, 0.0 }
 0x6c7   : > { %v6202_v62 = vpop.f32.mrf.mxu0 }
 0x6c8   : > { %v5995_v18 = vpop.f32.mrf.mxu3  ;;  %v6203_v31 = vadd.f32 %v14354_v57, %v6202_v62 }
 0x6c9   : > { %v5996_v26 = vadd.f32 %v5995_v18, %v5947_v30 }
 0x6cb   : > { %v6031_v40 = vmax.f32 %v5996_v26, 0.0 }
 0x6cd   : > { %v6051_v42 = vpack.c.bf16 %v6031_v40, %v6029_v13 }
 0x6cf   : > { %6270 = vmatmul.bf16.gmra.mxu1 %v6051_v42  ;;  %v6204_v3 = vpop.f32.mrf.mxu0 }
 0x6d0   : > { %v5998_v24 = vpop.f32.mrf.mxu3  ;;  %v6205_v0 = vadd.f32 %v14354_v57, %v6204_v3 }
 0x6d1   : > { %v5999_v6 = vadd.f32 %v5998_v24, %v5950_v33 }
 0x6d3   : > { %v6033_v25 = vmax.f32 %v5999_v6, 0.0 }
 0x6d7   : > { %v6207_v60 = vpop.f32.mrf.mxu0 }
 0x6d8   : > { %v6000_v29 = vpop.f32.mrf.mxu3  ;;  %v6208_v11 = vadd.f32 %v14354_v57, %v6207_v60 }
 0x6d9   : > { %v6001_v59 = vadd.f32 %v6000_v29, %v5952_v36 }
 0x6db   : > { %v6035_v41 = vmax.f32 %v6001_v59, 0.0 }
 0x6dd   : > { %v6053_v39 = vpack.c.bf16 %v6035_v41, %v6033_v25 }
 0x6df   : > { %6275 = vmatmul.bf16.gmra.mxu1 %v6053_v39  ;;  %v6209_v35 = vpop.f32.mrf.mxu0 }
 0x6e0   : > { %v6003_v4 = vpop.f32.mrf.mxu3  ;;  %v6210_v42 = vadd.f32 %v14354_v57, %v6209_v35 }
 0x6e1   : > { %v6004_v20 = vadd.f32 %v6003_v4, %v5955_v5 }
 0x6e3   : > { %v6037_v7 = vmax.f32 %v6004_v20, 0.0 }
 0x6e7   : > { %v6212_v30 = vpop.f32.mrf.mxu0 }
 0x6e8   : > { %v6005_v43 = vpop.f32.mrf.mxu3  ;;  %v6213_v33 = vadd.f32 %v14354_v57, %v6212_v30 }
 0x6e9   : > { %v6006_v56 = vadd.f32 %v6005_v43, %v5957_v50 }
 0x6eb   : > { %v6039_v45 = vmax.f32 %v6006_v56, 0.0 }
 0x6ed   : > { %v6055_v2 = vpack.c.bf16 %v6039_v45, %v6037_v7 }
 0x6ef   : > { %6280 = vmatmul.bf16.gmra.mxu1 %v6055_v2  ;;  %v6214_v40 = vpop.f32.mrf.mxu0 }
 0x6f0   : > { %v6215_v6 = vadd.f32 %v14354_v57, %v6214_v40  ;;  %v8388_v40 = vld [vmem:[%s14402_s10] ss:$0 sm:$0xff] }
 0x6f7   : > { %v6217_v10 = vpop.f32.mrf.mxu0 }
 0x6f8   : > { %v6218_v16 = vadd.f32 %v14354_v57, %v6217_v10 }
 0x6fc   : > { %v6246_v52 = vpop.f32.mrf.mxu1 }
 0x6fd   : > { %v6247_v9 = vadd.f32 %v6246_v52, %v6198_v14 }
 0x6ff   : > { %v6286_v58 = vmax.f32 %v6247_v9, 0.0  ;;  %v6219_v47 = vpop.f32.mrf.mxu0 }
 0x700   : > { %v6220_v39 = vadd.f32 %v14354_v57, %v6219_v47 }
 0x704   : > { %v6248_v23 = vpop.f32.mrf.mxu1 }
 0x705   : > { %v6249_v1 = vadd.f32 %v6248_v23, %v6200_v27 }
 0x707   : > { %v6287_v55 = vmax.f32 %v6249_v1, 0.0  ;;  %v6222_v37 = vpop.f32.mrf.mxu0 }
 0x708   : > { %v6223_v20 = vadd.f32 %v14354_v57, %v6222_v37 }
 0x709   : > { %v6302_v44 = vpack.c.bf16 %v6287_v55, %v6286_v58 }
 0x70b   : > { %6386 = vmatmul.bf16.vlgmr.msra.gmra.mxu2 %v6302_v44 }
 0x70c   : > { %v6251_v51 = vpop.f32.mrf.mxu1 }
 0x70d   : > { %v6252_v22 = vadd.f32 %v6251_v51, %v6203_v31 }
 0x70f   : > { %v6288_v21 = vmax.f32 %v6252_v22, 0.0  ;;  %v6224_v49 = vpop.f32.mrf.mxu0 }
 0x710   : > { %v6225_v43 = vadd.f32 %v14354_v57, %v6224_v49 }
 0x714   : > { %v6253_v8 = vpop.f32.mrf.mxu1 }
 0x715   : > { %v6254_v12 = vadd.f32 %v6253_v8, %v6205_v0 }
 0x717   : > { %v6289_v18 = vmax.f32 %v6254_v12, 0.0  ;;  %v6227_v50 = vpop.f32.mrf.mxu0 }
 0x718   : > { %v6228_v60 = vadd.f32 %v14354_v57, %v6227_v50 }
 0x719   : > { %v6303_v26 = vpack.c.bf16 %v6289_v18, %v6288_v21 }
 0x71b   : > { %6391 = vmatmul.bf16.gmra.mxu2 %v6303_v26 }
 0x71c   : > { %v6256_v13 = vpop.f32.mrf.mxu1 }
 0x71d   : > { %v6257_v32 = vadd.f32 %v6256_v13, %v6208_v11 }
 0x71f   : > { %v6290_v53 = vmax.f32 %v6257_v32, 0.0  ;;  %v6229_v52 = vpop.f32.mrf.mxu0 }
 0x720   : > { %v6230_v27 = vadd.f32 %v14354_v57, %v6229_v52 }
 0x724   : > { %v6258_v19 = vpop.f32.mrf.mxu1 }
 0x725   : > { %v6259_v15 = vadd.f32 %v6258_v19, %v6210_v42 }
 0x727   : > { %v6291_v24 = vmax.f32 %v6259_v15, 0.0  ;;  %v6232_v58 = vpop.f32.mrf.mxu0 }
 0x728   : > { %v6233_v0 = vadd.f32 %v14354_v57, %v6232_v58 }
 0x729   : > { %v6304_v17 = vpack.c.bf16 %v6291_v24, %v6290_v53 }
 0x72b   : > { %6396 = vmatmul.bf16.gmra.mxu2 %v6304_v17 }
 0x72c   : > { %v6261_v48 = vpop.f32.mrf.mxu1 }
 0x72d   : > { %v6262_v36 = vadd.f32 %v6261_v48, %v6213_v33 }
 0x72f   : > { %v6292_v61 = vmax.f32 %v6262_v36, 0.0  ;;  %v6234_v31 = vpop.f32.mrf.mxu0 }
 0x730   : > { %v6235_v22 = vadd.f32 %v14354_v57, %v6234_v31 }
 0x734   : > { %v6263_v29 = vpop.f32.mrf.mxu1 }
 0x735   : > { %v6264_v59 = vadd.f32 %v6263_v29, %v6215_v6 }
 0x737   : > { %v6293_v63 = vmax.f32 %v6264_v59, 0.0 }
 0x739   : > { %v6305_v25 = vpack.c.bf16 %v6293_v63, %v6292_v61 }
 0x73b   : > { %6401 = vmatmul.bf16.gmra.mxu2 %v6305_v25 }
 0x73c   : > { %v6266_v41 = vpop.f32.mrf.mxu1 }
 0x73d   : > { %v6267_v38 = vadd.f32 %v6266_v41, %v6218_v16 }
 0x73f   : > { %v6294_v46 = vmax.f32 %v6267_v38, 0.0 }
 0x744   : > { %v6268_v4 = vpop.f32.mrf.mxu1 }
 0x745   : > { %v6269_v28 = vadd.f32 %v6268_v4, %v6220_v39 }
 0x747   : > { %v6295_v54 = vmax.f32 %v6269_v28, 0.0 }
 0x749   : > { %v6306_v5 = vpack.c.bf16 %v6295_v54, %v6294_v46 }
 0x74b   : > { %6406 = vmatmul.bf16.gmra.mxu2 %v6306_v5 }
 0x74c   : > { %v6271_v34 = vpop.f32.mrf.mxu1 }
 0x74d   : > { %v6272_v56 = vadd.f32 %v6271_v34, %v6223_v20 }
 0x74f   : > { %v6296_v2 = vmax.f32 %v6272_v56, 0.0 }
 0x754   : > { %v6273_v7 = vpop.f32.mrf.mxu1 }
 0x755   : > { %v6274_v45 = vadd.f32 %v6273_v7, %v6225_v43 }
 0x757   : > { %v6297_v62 = vmax.f32 %v6274_v45, 0.0 }
 0x759   : > { %v6307_v3 = vpack.c.bf16 %v6297_v62, %v6296_v2 }
 0x75b   : > { %6411 = vmatmul.bf16.gmra.mxu2 %v6307_v3 }
 0x75c   : > { %v6276_v14 = vpop.f32.mrf.mxu1 }
 0x75d   : > { %v6277_v9 = vadd.f32 %v6276_v14, %v6228_v60 }
 0x75f   : > { %v6298_v55 = vmax.f32 %v6277_v9, 0.0 }
 0x764   : > { %v6278_v23 = vpop.f32.mrf.mxu1 }
 0x765   : > { %v6279_v1 = vadd.f32 %v6278_v23, %v6230_v27 }
 0x767   : > { %v6299_v44 = vmax.f32 %v6279_v1, 0.0 }
 0x769   : > { %v6308_v35 = vpack.c.bf16 %v6299_v44, %v6298_v55 }
 0x76b   : > { %6416 = vmatmul.bf16.gmra.mxu2 %v6308_v35 }
 0x76c   : > { %v6281_v51 = vpop.f32.mrf.mxu1 }
 0x76d   : > { %v6282_v8 = vadd.f32 %v6281_v51, %v6233_v0 }
 0x76f   : > { %v6300_v21 = vmax.f32 %v6282_v8, 0.0 }
 0x774   : > { %v6283_v12 = vpop.f32.mrf.mxu1 }
 0x775   : > { %v6284_v30 = vadd.f32 %v6283_v12, %v6235_v22 }
 0x777   : > { %v6301_v18 = vmax.f32 %v6284_v30, 0.0 }
 0x779   : > { %v6309_v26 = vpack.c.bf16 %v6301_v18, %v6300_v21 }
 0x77b   : > { %6421 = vmatmul.bf16.gmra.mxu2 %v6309_v26 }
 0x78e   : > { %v6387_v13 = vpop.f32.mrf.mxu2 }
 0x78f   : > { %v6388_v42 = vadd.f32 %v8388_v40, %v6387_v13 }
 0x796   : > { %v6389_v11 = vpop.f32.mrf.mxu2 }
 0x797   : > { %v6390_v32 = vadd.f32 %v8388_v40, %v6389_v11 }
 0x799   : > { %v8249_v57 = vpack.c.bf16 %v6390_v32, %v6388_v42 }
 0x79b   : > { %8250 = vst [vmem:[%s14379_s30] sm:$0xff] %v8249_v57  }
 0x79e   : > { %v6392_v19 = vpop.f32.mrf.mxu2 }
 0x79f   : > { %v6393_v53 = vadd.f32 %v8388_v40, %v6392_v19 }
 0x7a6   : > { %v6394_v15 = vpop.f32.mrf.mxu2 }
 0x7a7   : > { %v6395_v24 = vadd.f32 %v8388_v40, %v6394_v15 }
 0x7a9   : > { %v8254_v17 = vpack.c.bf16 %v6395_v24, %v6393_v53 }
 0x7ab   : > { %8286 = vst [vmem:[%s14379_s30 + $0x8] sm:$0xff] %v8254_v17  }
 0x7ae   : > { %v6397_v10 = vpop.f32.mrf.mxu2 }
 0x7af   : > { %v6398_v33 = vadd.f32 %v8388_v40, %v6397_v10 }
 0x7b6   : > { %v6399_v48 = vpop.f32.mrf.mxu2 }
 0x7b7   : > { %v6400_v6 = vadd.f32 %v8388_v40, %v6399_v48 }
 0x7b9   : > { %v8259_v36 = vpack.c.bf16 %v6400_v6, %v6398_v33 }
 0x7bb   : > { %8287 = vst [vmem:[%s14379_s30 + $0x10] sm:$0xff] %v8259_v36  }
 0x7be   : > { %v6402_v47 = vpop.f32.mrf.mxu2 }
 0x7bf   : > { %v6403_v59 = vadd.f32 %v8388_v40, %v6402_v47 }
 0x7c6   : > { %v6404_v29 = vpop.f32.mrf.mxu2 }
 0x7c7   : > { %v6405_v61 = vadd.f32 %v8388_v40, %v6404_v29 }
 0x7c9   : > { %v8264_v63 = vpack.c.bf16 %v6405_v61, %v6403_v59 }
 0x7cb   : > { %8288 = vst [vmem:[%s14379_s30 + $0x18] sm:$0xff] %v8264_v63  }
 0x7ce   : > { %v6407_v25 = vpop.f32.mrf.mxu2 }
 0x7cf   : > { %v6408_v37 = vadd.f32 %v8388_v40, %v6407_v25 }
 0x7d6   : > { %v6409_v41 = vpop.f32.mrf.mxu2 }
 0x7d7   : > { %v6410_v16 = vadd.f32 %v8388_v40, %v6409_v41 }
 0x7d9   : > { %v8269_v39 = vpack.c.bf16 %v6410_v16, %v6408_v37 }
 0x7db   : > { %8289 = vst [vmem:[%s14379_s30 + $0x20] sm:$0xff] %v8269_v39  }
 0x7de   : > { %v6412_v38 = vpop.f32.mrf.mxu2 }
 0x7df   : > { %v6413_v28 = vadd.f32 %v8388_v40, %v6412_v38 }
 0x7e6   : > { %v6414_v4 = vpop.f32.mrf.mxu2 }
 0x7e7   : > { %v6415_v46 = vadd.f32 %v8388_v40, %v6414_v4 }
 0x7e9   : > { %v8274_v54 = vpack.c.bf16 %v6415_v46, %v6413_v28 }
 0x7eb   : > { %8290 = vst [vmem:[%s14379_s30 + $0x28] sm:$0xff] %v8274_v54  }
 0x7ee   : > { %v6417_v49 = vpop.f32.mrf.mxu2 }
 0x7ef   : > { %v6418_v34 = vadd.f32 %v8388_v40, %v6417_v49 }
 0x7f6   : > { %v6419_v5 = vpop.f32.mrf.mxu2 }
 0x7f7   : > { %v6420_v20 = vadd.f32 %v8388_v40, %v6419_v5 }
 0x7f9   : > { %v8279_v50 = vpack.c.bf16 %v6420_v20, %v6418_v34 }
 0x7fb   : > { %8291 = vst [vmem:[%s14379_s30 + $0x30] sm:$0xff] %v8279_v50  }
 0x7fe   : > { %v6422_v43 = vpop.f32.mrf.mxu2 }
 0x7ff   : > { %v6423_v7 = vadd.f32 %v8388_v40, %v6422_v43 }
 0x806   : > { %v6424_v56 = vpop.f32.mrf.mxu2 }
 0x807   : > { %v6425_v45 = vadd.f32 %v8388_v40, %v6424_v56 }
 0x809   : > { %v8284_v2 = vpack.c.bf16 %v6425_v45, %v6423_v7 }
 0x80b   : > { %8292 = vst [vmem:[%s14379_s30 + $0x38] sm:$0xff] %v8284_v2  }
 0x80c PF: > { %s21_s17 = sadd.s32 1, %s8401_s17  }
 0x80d   : > { %p18_p4 = scmp.ge.s32.totalorder %s21_s17, 6  }
 0x80f   :  { %20 = sbr.rel (!%p18_p4) target bundleno = 1 (0x1), region = 94 }

</bundles_post_ra>
